<compile_context>
chip_gen: v5e
topology: v5e:2x2
jax: 0.10.0
libtpu: 0.0.40
codegen_flags: <defaults>
</compile_context>

<pallas_src>
import functools

import jax
import jax.numpy as jnp
from jax import lax
from jax.experimental import pallas as pl
from jax.experimental.pallas import tpu as pltpu

K = 7                # conv kernel size
P = (K - 1) // 2     # "same" padding


def _spatial_attention_kernel(x_ref, w_ref, b_ref, o_ref, *, H, W, CB, UNROLL):
    # x_ref : (Bt, C, H*W)   VMEM  lane-dense input block
    # w_ref : (2*K*K,)       SMEM  conv weights flattened [cin, ky, kx]
    # b_ref : (1,)           SMEM  conv bias
    # o_ref : (Bt, C, H*W)   VMEM  lane-dense output block
    Bt, C, HW = x_ref.shape
    assert HW == H * W
    f32 = jnp.float32
    x_dt = x_ref.dtype

    nfull = C // CB
    rem = C % CB
    unroll_c = max(1, min(UNROLL, max(nfull, 1)))

    # ---- channel pooling: stream (Bt, CB, HW) slabs (full-tile VALU) --------
    # Sum accumulates in f32; max stays in the input dtype (exact) and is cast
    # once at the end.  One cross-sublane reduce (XLU, otherwise idle) each.
    s = None
    mx = None
    if nfull:
        x0 = x_ref[:, pl.ds(0, CB), :]

        def pool_body(i, carry):
            sc, mc = carry
            c0 = pl.multiple_of(i * CB, CB)
            xv = x_ref[:, pl.ds(c0, CB), :]
            return sc + xv.astype(f32), jnp.maximum(mc, xv)

        sb, mb = lax.fori_loop(1, nfull, pool_body, (x0.astype(f32), x0),
                               unroll=unroll_c)
        s = jnp.sum(sb, axis=1, keepdims=True)
        mx = jnp.max(mb, axis=1, keepdims=True).astype(f32)
    if rem:
        xr = x_ref[:, pl.ds(nfull * CB, rem), :]
        sr = jnp.sum(xr.astype(f32), axis=1, keepdims=True)
        mr = jnp.max(xr, axis=1, keepdims=True).astype(f32)
        s = sr if s is None else s + sr
        mx = mr if mx is None else jnp.maximum(mx, mr)

    avg = s * (1.0 / C)                                       # (Bt, 1, HW)

    # ---- 7x7 "same" conv (2 -> 1 channels), flat (H*W) lane layout ----------
    # Every shift is a masked pltpu.roll (XLU); no VMEM scratch round trips.
    wts = [w_ref[i] for i in range(2 * K * K)]                # hoisted sregs
    bias = b_ref[0]

    idx = lax.broadcasted_iota(jnp.int32, (1, 1, HW), 2)      # flat position
    col = idx % W                                             # x coordinate

    def shift(v, d, mask):
        # out[i] = v[i + d] where mask holds, else 0.  d is a static int;
        # masked positions are exactly the cyclic-wrap positions of the roll.
        if d == 0:
            return v
        return jnp.where(mask, pltpu.roll(v, (-d) % HW, 2), 0.0)

    pooled = (avg, mx)
    acc = jnp.zeros((Bt, 1, HW), f32)
    for ky in range(K):
        dy = ky - P
        rowmask = None if dy == 0 else jnp.logical_and(
            idx + dy * W >= 0, idx + dy * W < HW)
        # Row-shift both pooled maps once per ky; column shifts are produced
        # transiently inside the kx loop so the live vreg set stays small.
        rs = [shift(pm, dy * W, rowmask) for pm in pooled]
        for kx in range(K):
            dx = kx - P
            colmask = None if dx == 0 else jnp.logical_and(
                col + dx >= 0, col + dx < W)
            for cin in range(2):
                cs = shift(rs[cin], dx, colmask)
                acc = acc + cs * wts[cin * K * K + ky * K + kx]

    attn = jax.nn.sigmoid(acc + bias)                         # (Bt, 1, HW) f32

    # ---- broadcast multiply over channels, streamed in (Bt, CB, HW) slabs ---
    # bf16/f16 inputs stay in the native dtype for this loop (v6e/v7x native
    # bf16 VALU); f32 inputs multiply in f32 as before.
    mul_dt = x_dt if jnp.dtype(x_dt).itemsize < 4 else f32
    attn_m = attn.astype(mul_dt)
    out_dt = o_ref.dtype
    if nfull:
        attn_b = jnp.broadcast_to(attn_m, (Bt, CB, HW))       # hoisted, once

        def mul_body(i, carry):
            c0 = pl.multiple_of(i * CB, CB)
            xv = x_ref[:, pl.ds(c0, CB), :].astype(mul_dt)
            o_ref[:, pl.ds(c0, CB), :] = (xv * attn_b).astype(out_dt)
            return carry

        lax.fori_loop(0, nfull, mul_body, 0, unroll=unroll_c)
    if rem:
        attn_r = jnp.broadcast_to(attn_m, (Bt, rem, HW))
        xv = x_ref[:, pl.ds(nfull * CB, rem), :].astype(mul_dt)
        o_ref[:, pl.ds(nfull * CB, rem), :] = (xv * attn_r).astype(out_dt)


def _tpu_vmem_and_multicore():
    """Best-effort (vmem_capacity_bytes, dual_tensorcore) query."""
    vmem_cap = 64 * 1024 * 1024          # conservative default (v7x per-TC)
    dual_tc = False
    try:
        info = pltpu.get_tpu_info()
        vmem_cap = int(getattr(info, "vmem_capacity_bytes", vmem_cap))
    except Exception:
        pass
    try:
        kind = jax.devices()[0].device_kind.lower()
        dual_tc = ("v7" in kind) or ("7x" in kind)   # v7x: 2 TCs per chip
    except Exception:
        pass
    return vmem_cap, dual_tc


def _pick_batch_block(B, C, HW, dtype, budget_bytes, dual_tc):
    """Largest batch block that (a) divides B, (b) keeps the double-buffered
    in+out pipeline footprint (including sublane/lane padding) under the VMEM
    budget, and (c) leaves >= 2 grid steps only on dual-TensorCore chips so
    the 'parallel' grid axis can be sharded across both cores."""
    itemsize = jnp.dtype(dtype).itemsize
    sub = max(8, 32 // itemsize)                  # sublane tile: 8 f32, 16 bf16
    c_pad = -(-C // sub) * sub
    hw_pad = -(-HW // 128) * 128
    per_b = 2 * 2 * c_pad * hw_pad * itemsize     # (in + out) x double-buffer
    best = 1
    for bt in range(1, B + 1):
        if B % bt:
            continue
        if bt * per_b > budget_bytes:
            continue
        if dual_tc and B > 1 and bt > 1 and (B // bt) < 2:
            continue
        best = bt
    return best, per_b


def spatial_attention(x, conv_w, conv_b, *, batch_block=None, channel_block=None):
    """x: (B, C, H, W); conv_w: (1, 2, K, K); conv_b: (1,)."""
    B, C, H, W = x.shape
    HW = H * W
    itemsize = jnp.dtype(x.dtype).itemsize

    # Free bitcast reshapes: kernel lane dimension = H*W (lane-dense).
    x_flat = x.reshape(B, C, HW)
    w_flat = conv_w.reshape(-1).astype(jnp.float32)     # (2*K*K,)
    b_flat = conv_b.reshape(-1).astype(jnp.float32)     # (1,)

    # Generation-aware VMEM budgeting: 128 MiB on v5e/v6e -> ~80 MiB scoped
    # limit / ~64 MiB pipeline budget; 64 MiB/TC on v7x -> 40 / 32 MiB.
    vmem_cap, dual_tc = _tpu_vmem_and_multicore()
    vmem_limit = int(min(max(vmem_cap * 5 // 8, 32 * 1024 * 1024),
                         100 * 1024 * 1024))
    budget = vmem_limit * 4 // 5

    bt, per_b = _pick_batch_block(B, C, HW, x.dtype, budget, dual_tc)
    if batch_block is not None:
        bt = batch_block
    assert B % bt == 0
    # If even bt == 1 overruns the budget, raise the scoped limit as far as
    # the part allows rather than failing outright.
    # TODO(synk): H-tiled grid with a +/-3-row halo for feature maps whose
    # single batch element exceeds VMEM (needed earliest on v7x's 64 MiB/TC).
    vmem_limit = int(min(vmem_cap * 9 // 10,
                         max(vmem_limit, bt * per_b + 8 * 1024 * 1024)))
    grid = (B // bt,)

    cb = channel_block if channel_block is not None else max(8, 32 // itemsize)

    cost = pl.CostEstimate(
        flops=int(B * HW * (3 * C + 4 * K * K)),
        transcendentals=int(B * HW),
        bytes_accessed=int(2 * B * C * HW * itemsize),
    )

    kernel = functools.partial(_spatial_attention_kernel,
                               H=H, W=W, CB=cb, UNROLL=8)

    out_flat = pl.pallas_call(
        kernel,
        out_shape=jax.ShapeDtypeStruct((B, C, HW), x.dtype),
        grid_spec=pltpu.PrefetchScalarGridSpec(
            num_scalar_prefetch=0,
            grid=grid,
            in_specs=[
                pl.BlockSpec((bt, C, HW), lambda i: (i, 0, 0)),
                pl.BlockSpec(memory_space=pltpu.MemorySpace.SMEM),
                pl.BlockSpec(memory_space=pltpu.MemorySpace.SMEM),
            ],
            out_specs=pl.BlockSpec((bt, C, HW), lambda i: (i, 0, 0)),
        ),
        compiler_params=pltpu.CompilerParams(
            dimension_semantics=("parallel",),
            vmem_limit_bytes=vmem_limit,
        ),
        cost_estimate=cost,
    )(x_flat, w_flat, b_flat)

    return out_flat.reshape(B, C, H, W)


def reference(x, conv_w, conv_b):
    """Pure-JAX reference mirroring the PyTorch forward."""
    avg = jnp.mean(x, axis=1, keepdims=True)
    mx = jnp.max(x, axis=1, keepdims=True)
    cat = jnp.concatenate([avg, mx], axis=1)                  # (B, 2, H, W)
    conv = lax.conv_general_dilated(
        cat, conv_w, window_strides=(1, 1), padding=[(P, P), (P, P)],
        dimension_numbers=("NCHW", "OIHW", "NCHW"),
        precision=lax.Precision.HIGHEST)
    attn = jax.nn.sigmoid(conv + conv_b.reshape(1, 1, 1, 1))  # (B, 1, H, W)
    return x * attn


if __name__ == "__main__":
    key = jax.random.PRNGKey(0)
    k_x, k_w, k_b = jax.random.split(key, 3)

    B, C, H, W = 2, 4, 16, 16
    x = jax.random.normal(k_x, (B, C, H, W), dtype=jnp.float32)

    # Deterministic synthetic Conv2d(2, 1, 7) parameters (kaiming-uniform-ish).
    fan_in = 2 * K * K
    bound = 1.0 / (fan_in ** 0.5)
    conv_w = jax.random.uniform(k_w, (1, 2, K, K), jnp.float32, -bound, bound)
    conv_b = jax.random.uniform(k_b, (1,), jnp.float32, -bound, bound)

    out = spatial_attention(x, conv_w, conv_b)
    out = jax.block_until_ready(out)

    ref = reference(x, conv_w, conv_b)
    assert out.shape == ref.shape and out.dtype == ref.dtype
    assert jnp.allclose(out, ref, atol=1e-5, rtol=1e-5), "mismatch vs reference"

    print("KERNEL_OK")
</pallas_src>

<mosaic_0001>
module attributes {stable_mosaic.version = 11 : i64} {
  func.func @_spatial_attention_kernel(%arg0: i32, %arg1: memref<2x4x256xf32, #tpu.memory_space<vmem>>, %arg2: memref<98xf32, #tpu.memory_space<smem>>, %arg3: memref<1xf32, #tpu.memory_space<smem>>, %arg4: memref<2x4x256xf32, #tpu.memory_space<vmem>>) attributes {dimension_semantics = [#tpu.dimension_semantics<parallel>], iteration_bounds = array<i64: 1>, scalar_prefetch = 0 : i64, scratch_operands = 0 : i64, tpu.core_type = #tpu.core_type<tc>, window_params = [{transform_indices = @transform_0, window_bounds = array<i64: 2, 4, 256>}, {transform_indices = @transform_1, window_bounds = array<i64: 98>}, {transform_indices = @transform_2, window_bounds = array<i64: 1>}, {transform_indices = @transform_3, window_bounds = array<i64: 2, 4, 256>}]} {
    %c0 = arith.constant 0 : index
    %c0_0 = arith.constant 0 : index
    %c0_1 = arith.constant 0 : index
    %0 = vector.load %arg1[%c0, %c0_0, %c0_1] : memref<2x4x256xf32, #tpu.memory_space<vmem>>, vector<2x4x256xf32>
    %cst = arith.constant dense<0.000000e+00> : vector<2x256xf32>
    %1 = vector.multi_reduction <add>, %0, %cst [1] : vector<2x4x256xf32> to vector<2x256xf32>
    %2 = vector.shape_cast %1 : vector<2x256xf32> to vector<2x1x256xf32>
    %cst_2 = arith.constant dense<0xFF800000> : vector<2x256xf32>
    %3 = vector.multi_reduction <maximumf>, %0, %cst_2 [1] : vector<2x4x256xf32> to vector<2x256xf32>
    %4 = vector.shape_cast %3 : vector<2x256xf32> to vector<2x1x256xf32>
    %cst_3 = arith.constant 2.500000e-01 : f32
    %5 = vector.broadcast %cst_3 : f32 to vector<2x1x256xf32>
    %6 = arith.mulf %2, %5 : vector<2x1x256xf32>
    %c0_4 = arith.constant 0 : index
    %7 = memref.load %arg2[%c0_4] : memref<98xf32, #tpu.memory_space<smem>>
    %c1 = arith.constant 1 : index
    %8 = memref.load %arg2[%c1] : memref<98xf32, #tpu.memory_space<smem>>
    %c2 = arith.constant 2 : index
    %9 = memref.load %arg2[%c2] : memref<98xf32, #tpu.memory_space<smem>>
    %c3 = arith.constant 3 : index
    %10 = memref.load %arg2[%c3] : memref<98xf32, #tpu.memory_space<smem>>
    %c4 = arith.constant 4 : index
    %11 = memref.load %arg2[%c4] : memref<98xf32, #tpu.memory_space<smem>>
    %c5 = arith.constant 5 : index
    %12 = memref.load %arg2[%c5] : memref<98xf32, #tpu.memory_space<smem>>
    %c6 = arith.constant 6 : index
    %13 = memref.load %arg2[%c6] : memref<98xf32, #tpu.memory_space<smem>>
    %c7 = arith.constant 7 : index
    %14 = memref.load %arg2[%c7] : memref<98xf32, #tpu.memory_space<smem>>
    %c8 = arith.constant 8 : index
    %15 = memref.load %arg2[%c8] : memref<98xf32, #tpu.memory_space<smem>>
    %c9 = arith.constant 9 : index
    %16 = memref.load %arg2[%c9] : memref<98xf32, #tpu.memory_space<smem>>
    %c10 = arith.constant 10 : index
    %17 = memref.load %arg2[%c10] : memref<98xf32, #tpu.memory_space<smem>>
    %c11 = arith.constant 11 : index
    %18 = memref.load %arg2[%c11] : memref<98xf32, #tpu.memory_space<smem>>
    %c12 = arith.constant 12 : index
    %19 = memref.load %arg2[%c12] : memref<98xf32, #tpu.memory_space<smem>>
    %c13 = arith.constant 13 : index
    %20 = memref.load %arg2[%c13] : memref<98xf32, #tpu.memory_space<smem>>
    %c14 = arith.constant 14 : index
    %21 = memref.load %arg2[%c14] : memref<98xf32, #tpu.memory_space<smem>>
    %c15 = arith.constant 15 : index
    %22 = memref.load %arg2[%c15] : memref<98xf32, #tpu.memory_space<smem>>
    %c16 = arith.constant 16 : index
    %23 = memref.load %arg2[%c16] : memref<98xf32, #tpu.memory_space<smem>>
    %c17 = arith.constant 17 : index
    %24 = memref.load %arg2[%c17] : memref<98xf32, #tpu.memory_space<smem>>
    %c18 = arith.constant 18 : index
    %25 = memref.load %arg2[%c18] : memref<98xf32, #tpu.memory_space<smem>>
    %c19 = arith.constant 19 : index
    %26 = memref.load %arg2[%c19] : memref<98xf32, #tpu.memory_space<smem>>
    %c20 = arith.constant 20 : index
    %27 = memref.load %arg2[%c20] : memref<98xf32, #tpu.memory_space<smem>>
    %c21 = arith.constant 21 : index
    %28 = memref.load %arg2[%c21] : memref<98xf32, #tpu.memory_space<smem>>
    %c22 = arith.constant 22 : index
    %29 = memref.load %arg2[%c22] : memref<98xf32, #tpu.memory_space<smem>>
    %c23 = arith.constant 23 : index
    %30 = memref.load %arg2[%c23] : memref<98xf32, #tpu.memory_space<smem>>
    %c24 = arith.constant 24 : index
    %31 = memref.load %arg2[%c24] : memref<98xf32, #tpu.memory_space<smem>>
    %c25 = arith.constant 25 : index
    %32 = memref.load %arg2[%c25] : memref<98xf32, #tpu.memory_space<smem>>
    %c26 = arith.constant 26 : index
    %33 = memref.load %arg2[%c26] : memref<98xf32, #tpu.memory_space<smem>>
    %c27 = arith.constant 27 : index
    %34 = memref.load %arg2[%c27] : memref<98xf32, #tpu.memory_space<smem>>
    %c28 = arith.constant 28 : index
    %35 = memref.load %arg2[%c28] : memref<98xf32, #tpu.memory_space<smem>>
    %c29 = arith.constant 29 : index
    %36 = memref.load %arg2[%c29] : memref<98xf32, #tpu.memory_space<smem>>
    %c30 = arith.constant 30 : index
    %37 = memref.load %arg2[%c30] : memref<98xf32, #tpu.memory_space<smem>>
    %c31 = arith.constant 31 : index
    %38 = memref.load %arg2[%c31] : memref<98xf32, #tpu.memory_space<smem>>
    %c32 = arith.constant 32 : index
    %39 = memref.load %arg2[%c32] : memref<98xf32, #tpu.memory_space<smem>>
    %c33 = arith.constant 33 : index
    %40 = memref.load %arg2[%c33] : memref<98xf32, #tpu.memory_space<smem>>
    %c34 = arith.constant 34 : index
    %41 = memref.load %arg2[%c34] : memref<98xf32, #tpu.memory_space<smem>>
    %c35 = arith.constant 35 : index
    %42 = memref.load %arg2[%c35] : memref<98xf32, #tpu.memory_space<smem>>
    %c36 = arith.constant 36 : index
    %43 = memref.load %arg2[%c36] : memref<98xf32, #tpu.memory_space<smem>>
    %c37 = arith.constant 37 : index
    %44 = memref.load %arg2[%c37] : memref<98xf32, #tpu.memory_space<smem>>
    %c38 = arith.constant 38 : index
    %45 = memref.load %arg2[%c38] : memref<98xf32, #tpu.memory_space<smem>>
    %c39 = arith.constant 39 : index
    %46 = memref.load %arg2[%c39] : memref<98xf32, #tpu.memory_space<smem>>
    %c40 = arith.constant 40 : index
    %47 = memref.load %arg2[%c40] : memref<98xf32, #tpu.memory_space<smem>>
    %c41 = arith.constant 41 : index
    %48 = memref.load %arg2[%c41] : memref<98xf32, #tpu.memory_space<smem>>
    %c42 = arith.constant 42 : index
    %49 = memref.load %arg2[%c42] : memref<98xf32, #tpu.memory_space<smem>>
    %c43 = arith.constant 43 : index
    %50 = memref.load %arg2[%c43] : memref<98xf32, #tpu.memory_space<smem>>
    %c44 = arith.constant 44 : index
    %51 = memref.load %arg2[%c44] : memref<98xf32, #tpu.memory_space<smem>>
    %c45 = arith.constant 45 : index
    %52 = memref.load %arg2[%c45] : memref<98xf32, #tpu.memory_space<smem>>
    %c46 = arith.constant 46 : index
    %53 = memref.load %arg2[%c46] : memref<98xf32, #tpu.memory_space<smem>>
    %c47 = arith.constant 47 : index
    %54 = memref.load %arg2[%c47] : memref<98xf32, #tpu.memory_space<smem>>
    %c48 = arith.constant 48 : index
    %55 = memref.load %arg2[%c48] : memref<98xf32, #tpu.memory_space<smem>>
    %c49 = arith.constant 49 : index
    %56 = memref.load %arg2[%c49] : memref<98xf32, #tpu.memory_space<smem>>
    %c50 = arith.constant 50 : index
    %57 = memref.load %arg2[%c50] : memref<98xf32, #tpu.memory_space<smem>>
    %c51 = arith.constant 51 : index
    %58 = memref.load %arg2[%c51] : memref<98xf32, #tpu.memory_space<smem>>
    %c52 = arith.constant 52 : index
    %59 = memref.load %arg2[%c52] : memref<98xf32, #tpu.memory_space<smem>>
    %c53 = arith.constant 53 : index
    %60 = memref.load %arg2[%c53] : memref<98xf32, #tpu.memory_space<smem>>
    %c54 = arith.constant 54 : index
    %61 = memref.load %arg2[%c54] : memref<98xf32, #tpu.memory_space<smem>>
    %c55 = arith.constant 55 : index
    %62 = memref.load %arg2[%c55] : memref<98xf32, #tpu.memory_space<smem>>
    %c56 = arith.constant 56 : index
    %63 = memref.load %arg2[%c56] : memref<98xf32, #tpu.memory_space<smem>>
    %c57 = arith.constant 57 : index
    %64 = memref.load %arg2[%c57] : memref<98xf32, #tpu.memory_space<smem>>
    %c58 = arith.constant 58 : index
    %65 = memref.load %arg2[%c58] : memref<98xf32, #tpu.memory_space<smem>>
    %c59 = arith.constant 59 : index
    %66 = memref.load %arg2[%c59] : memref<98xf32, #tpu.memory_space<smem>>
    %c60 = arith.constant 60 : index
    %67 = memref.load %arg2[%c60] : memref<98xf32, #tpu.memory_space<smem>>
    %c61 = arith.constant 61 : index
    %68 = memref.load %arg2[%c61] : memref<98xf32, #tpu.memory_space<smem>>
    %c62 = arith.constant 62 : index
    %69 = memref.load %arg2[%c62] : memref<98xf32, #tpu.memory_space<smem>>
    %c63 = arith.constant 63 : index
    %70 = memref.load %arg2[%c63] : memref<98xf32, #tpu.memory_space<smem>>
    %c64 = arith.constant 64 : index
    %71 = memref.load %arg2[%c64] : memref<98xf32, #tpu.memory_space<smem>>
    %c65 = arith.constant 65 : index
    %72 = memref.load %arg2[%c65] : memref<98xf32, #tpu.memory_space<smem>>
    %c66 = arith.constant 66 : index
    %73 = memref.load %arg2[%c66] : memref<98xf32, #tpu.memory_space<smem>>
    %c67 = arith.constant 67 : index
    %74 = memref.load %arg2[%c67] : memref<98xf32, #tpu.memory_space<smem>>
    %c68 = arith.constant 68 : index
    %75 = memref.load %arg2[%c68] : memref<98xf32, #tpu.memory_space<smem>>
    %c69 = arith.constant 69 : index
    %76 = memref.load %arg2[%c69] : memref<98xf32, #tpu.memory_space<smem>>
    %c70 = arith.constant 70 : index
    %77 = memref.load %arg2[%c70] : memref<98xf32, #tpu.memory_space<smem>>
    %c71 = arith.constant 71 : index
    %78 = memref.load %arg2[%c71] : memref<98xf32, #tpu.memory_space<smem>>
    %c72 = arith.constant 72 : index
    %79 = memref.load %arg2[%c72] : memref<98xf32, #tpu.memory_space<smem>>
    %c73 = arith.constant 73 : index
    %80 = memref.load %arg2[%c73] : memref<98xf32, #tpu.memory_space<smem>>
    %c74 = arith.constant 74 : index
    %81 = memref.load %arg2[%c74] : memref<98xf32, #tpu.memory_space<smem>>
    %c75 = arith.constant 75 : index
    %82 = memref.load %arg2[%c75] : memref<98xf32, #tpu.memory_space<smem>>
    %c76 = arith.constant 76 : index
    %83 = memref.load %arg2[%c76] : memref<98xf32, #tpu.memory_space<smem>>
    %c77 = arith.constant 77 : index
    %84 = memref.load %arg2[%c77] : memref<98xf32, #tpu.memory_space<smem>>
    %c78 = arith.constant 78 : index
    %85 = memref.load %arg2[%c78] : memref<98xf32, #tpu.memory_space<smem>>
    %c79 = arith.constant 79 : index
    %86 = memref.load %arg2[%c79] : memref<98xf32, #tpu.memory_space<smem>>
    %c80 = arith.constant 80 : index
    %87 = memref.load %arg2[%c80] : memref<98xf32, #tpu.memory_space<smem>>
    %c81 = arith.constant 81 : index
    %88 = memref.load %arg2[%c81] : memref<98xf32, #tpu.memory_space<smem>>
    %c82 = arith.constant 82 : index
    %89 = memref.load %arg2[%c82] : memref<98xf32, #tpu.memory_space<smem>>
    %c83 = arith.constant 83 : index
    %90 = memref.load %arg2[%c83] : memref<98xf32, #tpu.memory_space<smem>>
    %c84 = arith.constant 84 : index
    %91 = memref.load %arg2[%c84] : memref<98xf32, #tpu.memory_space<smem>>
    %c85 = arith.constant 85 : index
    %92 = memref.load %arg2[%c85] : memref<98xf32, #tpu.memory_space<smem>>
    %c86 = arith.constant 86 : index
    %93 = memref.load %arg2[%c86] : memref<98xf32, #tpu.memory_space<smem>>
    %c87 = arith.constant 87 : index
    %94 = memref.load %arg2[%c87] : memref<98xf32, #tpu.memory_space<smem>>
    %c88 = arith.constant 88 : index
    %95 = memref.load %arg2[%c88] : memref<98xf32, #tpu.memory_space<smem>>
    %c89 = arith.constant 89 : index
    %96 = memref.load %arg2[%c89] : memref<98xf32, #tpu.memory_space<smem>>
    %c90 = arith.constant 90 : index
    %97 = memref.load %arg2[%c90] : memref<98xf32, #tpu.memory_space<smem>>
    %c91 = arith.constant 91 : index
    %98 = memref.load %arg2[%c91] : memref<98xf32, #tpu.memory_space<smem>>
    %c92 = arith.constant 92 : index
    %99 = memref.load %arg2[%c92] : memref<98xf32, #tpu.memory_space<smem>>
    %c93 = arith.constant 93 : index
    %100 = memref.load %arg2[%c93] : memref<98xf32, #tpu.memory_space<smem>>
    %c94 = arith.constant 94 : index
    %101 = memref.load %arg2[%c94] : memref<98xf32, #tpu.memory_space<smem>>
    %c95 = arith.constant 95 : index
    %102 = memref.load %arg2[%c95] : memref<98xf32, #tpu.memory_space<smem>>
    %c96 = arith.constant 96 : index
    %103 = memref.load %arg2[%c96] : memref<98xf32, #tpu.memory_space<smem>>
    %c97 = arith.constant 97 : index
    %104 = memref.load %arg2[%c97] : memref<98xf32, #tpu.memory_space<smem>>
    %c0_5 = arith.constant 0 : index
    %105 = memref.load %arg3[%c0_5] : memref<1xf32, #tpu.memory_space<smem>>
    %106 = tpu.iota {dimensions = array<i32: 2>} : vector<1x1x256xi32>
    %c16_i32 = arith.constant 16 : i32
    %c0_i32 = arith.constant 0 : i32
    %107 = arith.cmpi eq, %c16_i32, %c0_i32 : i32
    %c1_i32 = arith.constant 1 : i32
    %108 = arith.select %107, %c1_i32, %c16_i32 : i32
    %109 = vector.broadcast %108 : i32 to vector<1x1x256xi32>
    %110 = arith.remsi %106, %109 : vector<1x1x256xi32>
    %c0_i32_6 = arith.constant 0 : i32
    %111 = vector.broadcast %c0_i32_6 : i32 to vector<1x1x256xi32>
    %112 = arith.cmpi ne, %110, %111 : vector<1x1x256xi32>
    %c0_i32_7 = arith.constant 0 : i32
    %113 = vector.broadcast %c0_i32_7 : i32 to vector<1x1x256xi32>
    %114 = arith.cmpi slt, %110, %113 : vector<1x1x256xi32>
    %c0_i32_8 = arith.constant 0 : i32
    %115 = arith.cmpi slt, %108, %c0_i32_8 : i32
    %116 = vector.broadcast %115 : i1 to vector<1x1x256xi1>
    %117 = vector.broadcast %116 : vector<1x1x256xi1> to vector<1x1x256xi1>
    %118 = arith.xori %114, %117 : vector<1x1x256xi1>
    %119 = arith.andi %118, %112 : vector<1x1x256xi1>
    %120 = vector.broadcast %108 : i32 to vector<1x1x256xi32>
    %121 = arith.addi %110, %120 : vector<1x1x256xi32>
    %122 = arith.select %119, %121, %110 : vector<1x1x256xi1>, vector<1x1x256xi32>
    %cst_9 = arith.constant 0.000000e+00 : f32
    %123 = vector.broadcast %cst_9 : f32 to vector<2x1x256xf32>
    %c-48_i32 = arith.constant -48 : i32
    %124 = vector.broadcast %c-48_i32 : i32 to vector<1x1x256xi32>
    %125 = arith.addi %106, %124 : vector<1x1x256xi32>
    %c0_i32_10 = arith.constant 0 : i32
    %126 = vector.broadcast %c0_i32_10 : i32 to vector<1x1x256xi32>
    %127 = arith.cmpi sge, %125, %126 : vector<1x1x256xi32>
    %c-48_i32_11 = arith.constant -48 : i32
    %128 = vector.broadcast %c-48_i32_11 : i32 to vector<1x1x256xi32>
    %129 = arith.addi %106, %128 : vector<1x1x256xi32>
    %c256_i32 = arith.constant 256 : i32
    %130 = vector.broadcast %c256_i32 : i32 to vector<1x1x256xi32>
    %131 = arith.cmpi slt, %129, %130 : vector<1x1x256xi32>
    %132 = arith.andi %127, %131 : vector<1x1x256xi1>
    %c48_i32 = arith.constant 48 : i32
    %133 = tpu.dynamic_rotate %6 by %c48_i32 dim 2 : vector<2x1x256xf32>, i32 -> vector<2x1x256xf32>
    %cst_12 = arith.constant 0.000000e+00 : f32
    %134 = vector.shape_cast %132 : vector<1x1x256xi1> to vector<1x1x256xi1>
    %135 = vector.broadcast %134 : vector<1x1x256xi1> to vector<2x1x256xi1>
    %136 = vector.broadcast %cst_12 : f32 to vector<2x1x256xf32>
    %137 = arith.select %135, %133, %136 : vector<2x1x256xi1>, vector<2x1x256xf32>
    %c48_i32_13 = arith.constant 48 : i32
    %138 = tpu.dynamic_rotate %4 by %c48_i32_13 dim 2 : vector<2x1x256xf32>, i32 -> vector<2x1x256xf32>
    %cst_14 = arith.constant 0.000000e+00 : f32
    %139 = vector.shape_cast %132 : vector<1x1x256xi1> to vector<1x1x256xi1>
    %140 = vector.broadcast %139 : vector<1x1x256xi1> to vector<2x1x256xi1>
    %141 = vector.broadcast %cst_14 : f32 to vector<2x1x256xf32>
    %142 = arith.select %140, %138, %141 : vector<2x1x256xi1>, vector<2x1x256xf32>
    %c-3_i32 = arith.constant -3 : i32
    %143 = vector.broadcast %c-3_i32 : i32 to vector<1x1x256xi32>
    %144 = arith.addi %122, %143 : vector<1x1x256xi32>
    %c0_i32_15 = arith.constant 0 : i32
    %145 = vector.broadcast %c0_i32_15 : i32 to vector<1x1x256xi32>
    %146 = arith.cmpi sge, %144, %145 : vector<1x1x256xi32>
    %c-3_i32_16 = arith.constant -3 : i32
    %147 = vector.broadcast %c-3_i32_16 : i32 to vector<1x1x256xi32>
    %148 = arith.addi %122, %147 : vector<1x1x256xi32>
    %c16_i32_17 = arith.constant 16 : i32
    %149 = vector.broadcast %c16_i32_17 : i32 to vector<1x1x256xi32>
    %150 = arith.cmpi slt, %148, %149 : vector<1x1x256xi32>
    %151 = arith.andi %146, %150 : vector<1x1x256xi1>
    %c3_i32 = arith.constant 3 : i32
    %152 = tpu.dynamic_rotate %137 by %c3_i32 dim 2 : vector<2x1x256xf32>, i32 -> vector<2x1x256xf32>
    %cst_18 = arith.constant 0.000000e+00 : f32
    %153 = vector.shape_cast %151 : vector<1x1x256xi1> to vector<1x1x256xi1>
    %154 = vector.broadcast %153 : vector<1x1x256xi1> to vector<2x1x256xi1>
    %155 = vector.broadcast %cst_18 : f32 to vector<2x1x256xf32>
    %156 = arith.select %154, %152, %155 : vector<2x1x256xi1>, vector<2x1x256xf32>
    %157 = vector.broadcast %7 : f32 to vector<2x1x256xf32>
    %158 = arith.mulf %156, %157 : vector<2x1x256xf32>
    %159 = arith.addf %123, %158 : vector<2x1x256xf32>
    %c3_i32_19 = arith.constant 3 : i32
    %160 = tpu.dynamic_rotate %142 by %c3_i32_19 dim 2 : vector<2x1x256xf32>, i32 -> vector<2x1x256xf32>
    %cst_20 = arith.constant 0.000000e+00 : f32
    %161 = vector.shape_cast %151 : vector<1x1x256xi1> to vector<1x1x256xi1>
    %162 = vector.broadcast %161 : vector<1x1x256xi1> to vector<2x1x256xi1>
    %163 = vector.broadcast %cst_20 : f32 to vector<2x1x256xf32>
    %164 = arith.select %162, %160, %163 : vector<2x1x256xi1>, vector<2x1x256xf32>
    %165 = vector.broadcast %56 : f32 to vector<2x1x256xf32>
    %166 = arith.mulf %164, %165 : vector<2x1x256xf32>
    %167 = arith.addf %159, %166 : vector<2x1x256xf32>
    %c-2_i32 = arith.constant -2 : i32
    %168 = vector.broadcast %c-2_i32 : i32 to vector<1x1x256xi32>
    %169 = arith.addi %122, %168 : vector<1x1x256xi32>
    %c0_i32_21 = arith.constant 0 : i32
    %170 = vector.broadcast %c0_i32_21 : i32 to vector<1x1x256xi32>
    %171 = arith.cmpi sge, %169, %170 : vector<1x1x256xi32>
    %c-2_i32_22 = arith.constant -2 : i32
    %172 = vector.broadcast %c-2_i32_22 : i32 to vector<1x1x256xi32>
    %173 = arith.addi %122, %172 : vector<1x1x256xi32>
    %c16_i32_23 = arith.constant 16 : i32
    %174 = vector.broadcast %c16_i32_23 : i32 to vector<1x1x256xi32>
    %175 = arith.cmpi slt, %173, %174 : vector<1x1x256xi32>
    %176 = arith.andi %171, %175 : vector<1x1x256xi1>
    %c2_i32 = arith.constant 2 : i32
    %177 = tpu.dynamic_rotate %137 by %c2_i32 dim 2 : vector<2x1x256xf32>, i32 -> vector<2x1x256xf32>
    %cst_24 = arith.constant 0.000000e+00 : f32
    %178 = vector.shape_cast %176 : vector<1x1x256xi1> to vector<1x1x256xi1>
    %179 = vector.broadcast %178 : vector<1x1x256xi1> to vector<2x1x256xi1>
    %180 = vector.broadcast %cst_24 : f32 to vector<2x1x256xf32>
    %181 = arith.select %179, %177, %180 : vector<2x1x256xi1>, vector<2x1x256xf32>
    %182 = vector.broadcast %8 : f32 to vector<2x1x256xf32>
    %183 = arith.mulf %181, %182 : vector<2x1x256xf32>
    %184 = arith.addf %167, %183 : vector<2x1x256xf32>
    %c2_i32_25 = arith.constant 2 : i32
    %185 = tpu.dynamic_rotate %142 by %c2_i32_25 dim 2 : vector<2x1x256xf32>, i32 -> vector<2x1x256xf32>
    %cst_26 = arith.constant 0.000000e+00 : f32
    %186 = vector.shape_cast %176 : vector<1x1x256xi1> to vector<1x1x256xi1>
    %187 = vector.broadcast %186 : vector<1x1x256xi1> to vector<2x1x256xi1>
    %188 = vector.broadcast %cst_26 : f32 to vector<2x1x256xf32>
    %189 = arith.select %187, %185, %188 : vector<2x1x256xi1>, vector<2x1x256xf32>
    %190 = vector.broadcast %57 : f32 to vector<2x1x256xf32>
    %191 = arith.mulf %189, %190 : vector<2x1x256xf32>
    %192 = arith.addf %184, %191 : vector<2x1x256xf32>
    %c-1_i32 = arith.constant -1 : i32
    %193 = vector.broadcast %c-1_i32 : i32 to vector<1x1x256xi32>
    %194 = arith.addi %122, %193 : vector<1x1x256xi32>
    %c0_i32_27 = arith.constant 0 : i32
    %195 = vector.broadcast %c0_i32_27 : i32 to vector<1x1x256xi32>
    %196 = arith.cmpi sge, %194, %195 : vector<1x1x256xi32>
    %c-1_i32_28 = arith.constant -1 : i32
    %197 = vector.broadcast %c-1_i32_28 : i32 to vector<1x1x256xi32>
    %198 = arith.addi %122, %197 : vector<1x1x256xi32>
    %c16_i32_29 = arith.constant 16 : i32
    %199 = vector.broadcast %c16_i32_29 : i32 to vector<1x1x256xi32>
    %200 = arith.cmpi slt, %198, %199 : vector<1x1x256xi32>
    %201 = arith.andi %196, %200 : vector<1x1x256xi1>
    %c1_i32_30 = arith.constant 1 : i32
    %202 = tpu.dynamic_rotate %137 by %c1_i32_30 dim 2 : vector<2x1x256xf32>, i32 -> vector<2x1x256xf32>
    %cst_31 = arith.constant 0.000000e+00 : f32
    %203 = vector.shape_cast %201 : vector<1x1x256xi1> to vector<1x1x256xi1>
    %204 = vector.broadcast %203 : vector<1x1x256xi1> to vector<2x1x256xi1>
    %205 = vector.broadcast %cst_31 : f32 to vector<2x1x256xf32>
    %206 = arith.select %204, %202, %205 : vector<2x1x256xi1>, vector<2x1x256xf32>
    %207 = vector.broadcast %9 : f32 to vector<2x1x256xf32>
    %208 = arith.mulf %206, %207 : vector<2x1x256xf32>
    %209 = arith.addf %192, %208 : vector<2x1x256xf32>
    %c1_i32_32 = arith.constant 1 : i32
    %210 = tpu.dynamic_rotate %142 by %c1_i32_32 dim 2 : vector<2x1x256xf32>, i32 -> vector<2x1x256xf32>
    %cst_33 = arith.constant 0.000000e+00 : f32
    %211 = vector.shape_cast %201 : vector<1x1x256xi1> to vector<1x1x256xi1>
    %212 = vector.broadcast %211 : vector<1x1x256xi1> to vector<2x1x256xi1>
    %213 = vector.broadcast %cst_33 : f32 to vector<2x1x256xf32>
    %214 = arith.select %212, %210, %213 : vector<2x1x256xi1>, vector<2x1x256xf32>
    %215 = vector.broadcast %58 : f32 to vector<2x1x256xf32>
    %216 = arith.mulf %214, %215 : vector<2x1x256xf32>
    %217 = arith.addf %209, %216 : vector<2x1x256xf32>
    %218 = vector.broadcast %10 : f32 to vector<2x1x256xf32>
    %219 = arith.mulf %137, %218 : vector<2x1x256xf32>
    %220 = arith.addf %217, %219 : vector<2x1x256xf32>
    %221 = vector.broadcast %59 : f32 to vector<2x1x256xf32>
    %222 = arith.mulf %142, %221 : vector<2x1x256xf32>
    %223 = arith.addf %220, %222 : vector<2x1x256xf32>
    %c1_i32_34 = arith.constant 1 : i32
    %224 = vector.broadcast %c1_i32_34 : i32 to vector<1x1x256xi32>
    %225 = arith.addi %122, %224 : vector<1x1x256xi32>
    %c0_i32_35 = arith.constant 0 : i32
    %226 = vector.broadcast %c0_i32_35 : i32 to vector<1x1x256xi32>
    %227 = arith.cmpi sge, %225, %226 : vector<1x1x256xi32>
    %c1_i32_36 = arith.constant 1 : i32
    %228 = vector.broadcast %c1_i32_36 : i32 to vector<1x1x256xi32>
    %229 = arith.addi %122, %228 : vector<1x1x256xi32>
    %c16_i32_37 = arith.constant 16 : i32
    %230 = vector.broadcast %c16_i32_37 : i32 to vector<1x1x256xi32>
    %231 = arith.cmpi slt, %229, %230 : vector<1x1x256xi32>
    %232 = arith.andi %227, %231 : vector<1x1x256xi1>
    %c255_i32 = arith.constant 255 : i32
    %233 = tpu.dynamic_rotate %137 by %c255_i32 dim 2 : vector<2x1x256xf32>, i32 -> vector<2x1x256xf32>
    %cst_38 = arith.constant 0.000000e+00 : f32
    %234 = vector.shape_cast %232 : vector<1x1x256xi1> to vector<1x1x256xi1>
    %235 = vector.broadcast %234 : vector<1x1x256xi1> to vector<2x1x256xi1>
    %236 = vector.broadcast %cst_38 : f32 to vector<2x1x256xf32>
    %237 = arith.select %235, %233, %236 : vector<2x1x256xi1>, vector<2x1x256xf32>
    %238 = vector.broadcast %11 : f32 to vector<2x1x256xf32>
    %239 = arith.mulf %237, %238 : vector<2x1x256xf32>
    %240 = arith.addf %223, %239 : vector<2x1x256xf32>
    %c255_i32_39 = arith.constant 255 : i32
    %241 = tpu.dynamic_rotate %142 by %c255_i32_39 dim 2 : vector<2x1x256xf32>, i32 -> vector<2x1x256xf32>
    %cst_40 = arith.constant 0.000000e+00 : f32
    %242 = vector.shape_cast %232 : vector<1x1x256xi1> to vector<1x1x256xi1>
    %243 = vector.broadcast %242 : vector<1x1x256xi1> to vector<2x1x256xi1>
    %244 = vector.broadcast %cst_40 : f32 to vector<2x1x256xf32>
    %245 = arith.select %243, %241, %244 : vector<2x1x256xi1>, vector<2x1x256xf32>
    %246 = vector.broadcast %60 : f32 to vector<2x1x256xf32>
    %247 = arith.mulf %245, %246 : vector<2x1x256xf32>
    %248 = arith.addf %240, %247 : vector<2x1x256xf32>
    %c2_i32_41 = arith.constant 2 : i32
    %249 = vector.broadcast %c2_i32_41 : i32 to vector<1x1x256xi32>
    %250 = arith.addi %122, %249 : vector<1x1x256xi32>
    %c0_i32_42 = arith.constant 0 : i32
    %251 = vector.broadcast %c0_i32_42 : i32 to vector<1x1x256xi32>
    %252 = arith.cmpi sge, %250, %251 : vector<1x1x256xi32>
    %c2_i32_43 = arith.constant 2 : i32
    %253 = vector.broadcast %c2_i32_43 : i32 to vector<1x1x256xi32>
    %254 = arith.addi %122, %253 : vector<1x1x256xi32>
    %c16_i32_44 = arith.constant 16 : i32
    %255 = vector.broadcast %c16_i32_44 : i32 to vector<1x1x256xi32>
    %256 = arith.cmpi slt, %254, %255 : vector<1x1x256xi32>
    %257 = arith.andi %252, %256 : vector<1x1x256xi1>
    %c254_i32 = arith.constant 254 : i32
    %258 = tpu.dynamic_rotate %137 by %c254_i32 dim 2 : vector<2x1x256xf32>, i32 -> vector<2x1x256xf32>
    %cst_45 = arith.constant 0.000000e+00 : f32
    %259 = vector.shape_cast %257 : vector<1x1x256xi1> to vector<1x1x256xi1>
    %260 = vector.broadcast %259 : vector<1x1x256xi1> to vector<2x1x256xi1>
    %261 = vector.broadcast %cst_45 : f32 to vector<2x1x256xf32>
    %262 = arith.select %260, %258, %261 : vector<2x1x256xi1>, vector<2x1x256xf32>
    %263 = vector.broadcast %12 : f32 to vector<2x1x256xf32>
    %264 = arith.mulf %262, %263 : vector<2x1x256xf32>
    %265 = arith.addf %248, %264 : vector<2x1x256xf32>
    %c254_i32_46 = arith.constant 254 : i32
    %266 = tpu.dynamic_rotate %142 by %c254_i32_46 dim 2 : vector<2x1x256xf32>, i32 -> vector<2x1x256xf32>
    %cst_47 = arith.constant 0.000000e+00 : f32
    %267 = vector.shape_cast %257 : vector<1x1x256xi1> to vector<1x1x256xi1>
    %268 = vector.broadcast %267 : vector<1x1x256xi1> to vector<2x1x256xi1>
    %269 = vector.broadcast %cst_47 : f32 to vector<2x1x256xf32>
    %270 = arith.select %268, %266, %269 : vector<2x1x256xi1>, vector<2x1x256xf32>
    %271 = vector.broadcast %61 : f32 to vector<2x1x256xf32>
    %272 = arith.mulf %270, %271 : vector<2x1x256xf32>
    %273 = arith.addf %265, %272 : vector<2x1x256xf32>
    %c3_i32_48 = arith.constant 3 : i32
    %274 = vector.broadcast %c3_i32_48 : i32 to vector<1x1x256xi32>
    %275 = arith.addi %122, %274 : vector<1x1x256xi32>
    %c0_i32_49 = arith.constant 0 : i32
    %276 = vector.broadcast %c0_i32_49 : i32 to vector<1x1x256xi32>
    %277 = arith.cmpi sge, %275, %276 : vector<1x1x256xi32>
    %c3_i32_50 = arith.constant 3 : i32
    %278 = vector.broadcast %c3_i32_50 : i32 to vector<1x1x256xi32>
    %279 = arith.addi %122, %278 : vector<1x1x256xi32>
    %c16_i32_51 = arith.constant 16 : i32
    %280 = vector.broadcast %c16_i32_51 : i32 to vector<1x1x256xi32>
    %281 = arith.cmpi slt, %279, %280 : vector<1x1x256xi32>
    %282 = arith.andi %277, %281 : vector<1x1x256xi1>
    %c253_i32 = arith.constant 253 : i32
    %283 = tpu.dynamic_rotate %137 by %c253_i32 dim 2 : vector<2x1x256xf32>, i32 -> vector<2x1x256xf32>
    %cst_52 = arith.constant 0.000000e+00 : f32
    %284 = vector.shape_cast %282 : vector<1x1x256xi1> to vector<1x1x256xi1>
    %285 = vector.broadcast %284 : vector<1x1x256xi1> to vector<2x1x256xi1>
    %286 = vector.broadcast %cst_52 : f32 to vector<2x1x256xf32>
    %287 = arith.select %285, %283, %286 : vector<2x1x256xi1>, vector<2x1x256xf32>
    %288 = vector.broadcast %13 : f32 to vector<2x1x256xf32>
    %289 = arith.mulf %287, %288 : vector<2x1x256xf32>
    %290 = arith.addf %273, %289 : vector<2x1x256xf32>
    %c253_i32_53 = arith.constant 253 : i32
    %291 = tpu.dynamic_rotate %142 by %c253_i32_53 dim 2 : vector<2x1x256xf32>, i32 -> vector<2x1x256xf32>
    %cst_54 = arith.constant 0.000000e+00 : f32
    %292 = vector.shape_cast %282 : vector<1x1x256xi1> to vector<1x1x256xi1>
    %293 = vector.broadcast %292 : vector<1x1x256xi1> to vector<2x1x256xi1>
    %294 = vector.broadcast %cst_54 : f32 to vector<2x1x256xf32>
    %295 = arith.select %293, %291, %294 : vector<2x1x256xi1>, vector<2x1x256xf32>
    %296 = vector.broadcast %62 : f32 to vector<2x1x256xf32>
    %297 = arith.mulf %295, %296 : vector<2x1x256xf32>
    %298 = arith.addf %290, %297 : vector<2x1x256xf32>
    %c-32_i32 = arith.constant -32 : i32
    %299 = vector.broadcast %c-32_i32 : i32 to vector<1x1x256xi32>
    %300 = arith.addi %106, %299 : vector<1x1x256xi32>
    %c0_i32_55 = arith.constant 0 : i32
    %301 = vector.broadcast %c0_i32_55 : i32 to vector<1x1x256xi32>
    %302 = arith.cmpi sge, %300, %301 : vector<1x1x256xi32>
    %c-32_i32_56 = arith.constant -32 : i32
    %303 = vector.broadcast %c-32_i32_56 : i32 to vector<1x1x256xi32>
    %304 = arith.addi %106, %303 : vector<1x1x256xi32>
    %c256_i32_57 = arith.constant 256 : i32
    %305 = vector.broadcast %c256_i32_57 : i32 to vector<1x1x256xi32>
    %306 = arith.cmpi slt, %304, %305 : vector<1x1x256xi32>
    %307 = arith.andi %302, %306 : vector<1x1x256xi1>
    %c32_i32 = arith.constant 32 : i32
    %308 = tpu.dynamic_rotate %6 by %c32_i32 dim 2 : vector<2x1x256xf32>, i32 -> vector<2x1x256xf32>
    %cst_58 = arith.constant 0.000000e+00 : f32
    %309 = vector.shape_cast %307 : vector<1x1x256xi1> to vector<1x1x256xi1>
    %310 = vector.broadcast %309 : vector<1x1x256xi1> to vector<2x1x256xi1>
    %311 = vector.broadcast %cst_58 : f32 to vector<2x1x256xf32>
    %312 = arith.select %310, %308, %311 : vector<2x1x256xi1>, vector<2x1x256xf32>
    %c32_i32_59 = arith.constant 32 : i32
    %313 = tpu.dynamic_rotate %4 by %c32_i32_59 dim 2 : vector<2x1x256xf32>, i32 -> vector<2x1x256xf32>
    %cst_60 = arith.constant 0.000000e+00 : f32
    %314 = vector.shape_cast %307 : vector<1x1x256xi1> to vector<1x1x256xi1>
    %315 = vector.broadcast %314 : vector<1x1x256xi1> to vector<2x1x256xi1>
    %316 = vector.broadcast %cst_60 : f32 to vector<2x1x256xf32>
    %317 = arith.select %315, %313, %316 : vector<2x1x256xi1>, vector<2x1x256xf32>
    %c-3_i32_61 = arith.constant -3 : i32
    %318 = vector.broadcast %c-3_i32_61 : i32 to vector<1x1x256xi32>
    %319 = arith.addi %122, %318 : vector<1x1x256xi32>
    %c0_i32_62 = arith.constant 0 : i32
    %320 = vector.broadcast %c0_i32_62 : i32 to vector<1x1x256xi32>
    %321 = arith.cmpi sge, %319, %320 : vector<1x1x256xi32>
    %c-3_i32_63 = arith.constant -3 : i32
    %322 = vector.broadcast %c-3_i32_63 : i32 to vector<1x1x256xi32>
    %323 = arith.addi %122, %322 : vector<1x1x256xi32>
    %c16_i32_64 = arith.constant 16 : i32
    %324 = vector.broadcast %c16_i32_64 : i32 to vector<1x1x256xi32>
    %325 = arith.cmpi slt, %323, %324 : vector<1x1x256xi32>
    %326 = arith.andi %321, %325 : vector<1x1x256xi1>
    %c3_i32_65 = arith.constant 3 : i32
    %327 = tpu.dynamic_rotate %312 by %c3_i32_65 dim 2 : vector<2x1x256xf32>, i32 -> vector<2x1x256xf32>
    %cst_66 = arith.constant 0.000000e+00 : f32
    %328 = vector.shape_cast %326 : vector<1x1x256xi1> to vector<1x1x256xi1>
    %329 = vector.broadcast %328 : vector<1x1x256xi1> to vector<2x1x256xi1>
    %330 = vector.broadcast %cst_66 : f32 to vector<2x1x256xf32>
    %331 = arith.select %329, %327, %330 : vector<2x1x256xi1>, vector<2x1x256xf32>
    %332 = vector.broadcast %14 : f32 to vector<2x1x256xf32>
    %333 = arith.mulf %331, %332 : vector<2x1x256xf32>
    %334 = arith.addf %298, %333 : vector<2x1x256xf32>
    %c3_i32_67 = arith.constant 3 : i32
    %335 = tpu.dynamic_rotate %317 by %c3_i32_67 dim 2 : vector<2x1x256xf32>, i32 -> vector<2x1x256xf32>
    %cst_68 = arith.constant 0.000000e+00 : f32
    %336 = vector.shape_cast %326 : vector<1x1x256xi1> to vector<1x1x256xi1>
    %337 = vector.broadcast %336 : vector<1x1x256xi1> to vector<2x1x256xi1>
    %338 = vector.broadcast %cst_68 : f32 to vector<2x1x256xf32>
    %339 = arith.select %337, %335, %338 : vector<2x1x256xi1>, vector<2x1x256xf32>
    %340 = vector.broadcast %63 : f32 to vector<2x1x256xf32>
    %341 = arith.mulf %339, %340 : vector<2x1x256xf32>
    %342 = arith.addf %334, %341 : vector<2x1x256xf32>
    %c-2_i32_69 = arith.constant -2 : i32
    %343 = vector.broadcast %c-2_i32_69 : i32 to vector<1x1x256xi32>
    %344 = arith.addi %122, %343 : vector<1x1x256xi32>
    %c0_i32_70 = arith.constant 0 : i32
    %345 = vector.broadcast %c0_i32_70 : i32 to vector<1x1x256xi32>
    %346 = arith.cmpi sge, %344, %345 : vector<1x1x256xi32>
    %c-2_i32_71 = arith.constant -2 : i32
    %347 = vector.broadcast %c-2_i32_71 : i32 to vector<1x1x256xi32>
    %348 = arith.addi %122, %347 : vector<1x1x256xi32>
    %c16_i32_72 = arith.constant 16 : i32
    %349 = vector.broadcast %c16_i32_72 : i32 to vector<1x1x256xi32>
    %350 = arith.cmpi slt, %348, %349 : vector<1x1x256xi32>
    %351 = arith.andi %346, %350 : vector<1x1x256xi1>
    %c2_i32_73 = arith.constant 2 : i32
    %352 = tpu.dynamic_rotate %312 by %c2_i32_73 dim 2 : vector<2x1x256xf32>, i32 -> vector<2x1x256xf32>
    %cst_74 = arith.constant 0.000000e+00 : f32
    %353 = vector.shape_cast %351 : vector<1x1x256xi1> to vector<1x1x256xi1>
    %354 = vector.broadcast %353 : vector<1x1x256xi1> to vector<2x1x256xi1>
    %355 = vector.broadcast %cst_74 : f32 to vector<2x1x256xf32>
    %356 = arith.select %354, %352, %355 : vector<2x1x256xi1>, vector<2x1x256xf32>
    %357 = vector.broadcast %15 : f32 to vector<2x1x256xf32>
    %358 = arith.mulf %356, %357 : vector<2x1x256xf32>
    %359 = arith.addf %342, %358 : vector<2x1x256xf32>
    %c2_i32_75 = arith.constant 2 : i32
    %360 = tpu.dynamic_rotate %317 by %c2_i32_75 dim 2 : vector<2x1x256xf32>, i32 -> vector<2x1x256xf32>
    %cst_76 = arith.constant 0.000000e+00 : f32
    %361 = vector.shape_cast %351 : vector<1x1x256xi1> to vector<1x1x256xi1>
    %362 = vector.broadcast %361 : vector<1x1x256xi1> to vector<2x1x256xi1>
    %363 = vector.broadcast %cst_76 : f32 to vector<2x1x256xf32>
    %364 = arith.select %362, %360, %363 : vector<2x1x256xi1>, vector<2x1x256xf32>
    %365 = vector.broadcast %64 : f32 to vector<2x1x256xf32>
    %366 = arith.mulf %364, %365 : vector<2x1x256xf32>
    %367 = arith.addf %359, %366 : vector<2x1x256xf32>
    %c-1_i32_77 = arith.constant -1 : i32
    %368 = vector.broadcast %c-1_i32_77 : i32 to vector<1x1x256xi32>
    %369 = arith.addi %122, %368 : vector<1x1x256xi32>
    %c0_i32_78 = arith.constant 0 : i32
    %370 = vector.broadcast %c0_i32_78 : i32 to vector<1x1x256xi32>
    %371 = arith.cmpi sge, %369, %370 : vector<1x1x256xi32>
    %c-1_i32_79 = arith.constant -1 : i32
    %372 = vector.broadcast %c-1_i32_79 : i32 to vector<1x1x256xi32>
    %373 = arith.addi %122, %372 : vector<1x1x256xi32>
    %c16_i32_80 = arith.constant 16 : i32
    %374 = vector.broadcast %c16_i32_80 : i32 to vector<1x1x256xi32>
    %375 = arith.cmpi slt, %373, %374 : vector<1x1x256xi32>
    %376 = arith.andi %371, %375 : vector<1x1x256xi1>
    %c1_i32_81 = arith.constant 1 : i32
    %377 = tpu.dynamic_rotate %312 by %c1_i32_81 dim 2 : vector<2x1x256xf32>, i32 -> vector<2x1x256xf32>
    %cst_82 = arith.constant 0.000000e+00 : f32
    %378 = vector.shape_cast %376 : vector<1x1x256xi1> to vector<1x1x256xi1>
    %379 = vector.broadcast %378 : vector<1x1x256xi1> to vector<2x1x256xi1>
    %380 = vector.broadcast %cst_82 : f32 to vector<2x1x256xf32>
    %381 = arith.select %379, %377, %380 : vector<2x1x256xi1>, vector<2x1x256xf32>
    %382 = vector.broadcast %16 : f32 to vector<2x1x256xf32>
    %383 = arith.mulf %381, %382 : vector<2x1x256xf32>
    %384 = arith.addf %367, %383 : vector<2x1x256xf32>
    %c1_i32_83 = arith.constant 1 : i32
    %385 = tpu.dynamic_rotate %317 by %c1_i32_83 dim 2 : vector<2x1x256xf32>, i32 -> vector<2x1x256xf32>
    %cst_84 = arith.constant 0.000000e+00 : f32
    %386 = vector.shape_cast %376 : vector<1x1x256xi1> to vector<1x1x256xi1>
    %387 = vector.broadcast %386 : vector<1x1x256xi1> to vector<2x1x256xi1>
    %388 = vector.broadcast %cst_84 : f32 to vector<2x1x256xf32>
    %389 = arith.select %387, %385, %388 : vector<2x1x256xi1>, vector<2x1x256xf32>
    %390 = vector.broadcast %65 : f32 to vector<2x1x256xf32>
    %391 = arith.mulf %389, %390 : vector<2x1x256xf32>
    %392 = arith.addf %384, %391 : vector<2x1x256xf32>
    %393 = vector.broadcast %17 : f32 to vector<2x1x256xf32>
    %394 = arith.mulf %312, %393 : vector<2x1x256xf32>
    %395 = arith.addf %392, %394 : vector<2x1x256xf32>
    %396 = vector.broadcast %66 : f32 to vector<2x1x256xf32>
    %397 = arith.mulf %317, %396 : vector<2x1x256xf32>
    %398 = arith.addf %395, %397 : vector<2x1x256xf32>
    %c1_i32_85 = arith.constant 1 : i32
    %399 = vector.broadcast %c1_i32_85 : i32 to vector<1x1x256xi32>
    %400 = arith.addi %122, %399 : vector<1x1x256xi32>
    %c0_i32_86 = arith.constant 0 : i32
    %401 = vector.broadcast %c0_i32_86 : i32 to vector<1x1x256xi32>
    %402 = arith.cmpi sge, %400, %401 : vector<1x1x256xi32>
    %c1_i32_87 = arith.constant 1 : i32
    %403 = vector.broadcast %c1_i32_87 : i32 to vector<1x1x256xi32>
    %404 = arith.addi %122, %403 : vector<1x1x256xi32>
    %c16_i32_88 = arith.constant 16 : i32
    %405 = vector.broadcast %c16_i32_88 : i32 to vector<1x1x256xi32>
    %406 = arith.cmpi slt, %404, %405 : vector<1x1x256xi32>
    %407 = arith.andi %402, %406 : vector<1x1x256xi1>
    %c255_i32_89 = arith.constant 255 : i32
    %408 = tpu.dynamic_rotate %312 by %c255_i32_89 dim 2 : vector<2x1x256xf32>, i32 -> vector<2x1x256xf32>
    %cst_90 = arith.constant 0.000000e+00 : f32
    %409 = vector.shape_cast %407 : vector<1x1x256xi1> to vector<1x1x256xi1>
    %410 = vector.broadcast %409 : vector<1x1x256xi1> to vector<2x1x256xi1>
    %411 = vector.broadcast %cst_90 : f32 to vector<2x1x256xf32>
    %412 = arith.select %410, %408, %411 : vector<2x1x256xi1>, vector<2x1x256xf32>
    %413 = vector.broadcast %18 : f32 to vector<2x1x256xf32>
    %414 = arith.mulf %412, %413 : vector<2x1x256xf32>
    %415 = arith.addf %398, %414 : vector<2x1x256xf32>
    %c255_i32_91 = arith.constant 255 : i32
    %416 = tpu.dynamic_rotate %317 by %c255_i32_91 dim 2 : vector<2x1x256xf32>, i32 -> vector<2x1x256xf32>
    %cst_92 = arith.constant 0.000000e+00 : f32
    %417 = vector.shape_cast %407 : vector<1x1x256xi1> to vector<1x1x256xi1>
    %418 = vector.broadcast %417 : vector<1x1x256xi1> to vector<2x1x256xi1>
    %419 = vector.broadcast %cst_92 : f32 to vector<2x1x256xf32>
    %420 = arith.select %418, %416, %419 : vector<2x1x256xi1>, vector<2x1x256xf32>
    %421 = vector.broadcast %67 : f32 to vector<2x1x256xf32>
    %422 = arith.mulf %420, %421 : vector<2x1x256xf32>
    %423 = arith.addf %415, %422 : vector<2x1x256xf32>
    %c2_i32_93 = arith.constant 2 : i32
    %424 = vector.broadcast %c2_i32_93 : i32 to vector<1x1x256xi32>
    %425 = arith.addi %122, %424 : vector<1x1x256xi32>
    %c0_i32_94 = arith.constant 0 : i32
    %426 = vector.broadcast %c0_i32_94 : i32 to vector<1x1x256xi32>
    %427 = arith.cmpi sge, %425, %426 : vector<1x1x256xi32>
    %c2_i32_95 = arith.constant 2 : i32
    %428 = vector.broadcast %c2_i32_95 : i32 to vector<1x1x256xi32>
    %429 = arith.addi %122, %428 : vector<1x1x256xi32>
    %c16_i32_96 = arith.constant 16 : i32
    %430 = vector.broadcast %c16_i32_96 : i32 to vector<1x1x256xi32>
    %431 = arith.cmpi slt, %429, %430 : vector<1x1x256xi32>
    %432 = arith.andi %427, %431 : vector<1x1x256xi1>
    %c254_i32_97 = arith.constant 254 : i32
    %433 = tpu.dynamic_rotate %312 by %c254_i32_97 dim 2 : vector<2x1x256xf32>, i32 -> vector<2x1x256xf32>
    %cst_98 = arith.constant 0.000000e+00 : f32
    %434 = vector.shape_cast %432 : vector<1x1x256xi1> to vector<1x1x256xi1>
    %435 = vector.broadcast %434 : vector<1x1x256xi1> to vector<2x1x256xi1>
    %436 = vector.broadcast %cst_98 : f32 to vector<2x1x256xf32>
    %437 = arith.select %435, %433, %436 : vector<2x1x256xi1>, vector<2x1x256xf32>
    %438 = vector.broadcast %19 : f32 to vector<2x1x256xf32>
    %439 = arith.mulf %437, %438 : vector<2x1x256xf32>
    %440 = arith.addf %423, %439 : vector<2x1x256xf32>
    %c254_i32_99 = arith.constant 254 : i32
    %441 = tpu.dynamic_rotate %317 by %c254_i32_99 dim 2 : vector<2x1x256xf32>, i32 -> vector<2x1x256xf32>
    %cst_100 = arith.constant 0.000000e+00 : f32
    %442 = vector.shape_cast %432 : vector<1x1x256xi1> to vector<1x1x256xi1>
    %443 = vector.broadcast %442 : vector<1x1x256xi1> to vector<2x1x256xi1>
    %444 = vector.broadcast %cst_100 : f32 to vector<2x1x256xf32>
    %445 = arith.select %443, %441, %444 : vector<2x1x256xi1>, vector<2x1x256xf32>
    %446 = vector.broadcast %68 : f32 to vector<2x1x256xf32>
    %447 = arith.mulf %445, %446 : vector<2x1x256xf32>
    %448 = arith.addf %440, %447 : vector<2x1x256xf32>
    %c3_i32_101 = arith.constant 3 : i32
    %449 = vector.broadcast %c3_i32_101 : i32 to vector<1x1x256xi32>
    %450 = arith.addi %122, %449 : vector<1x1x256xi32>
    %c0_i32_102 = arith.constant 0 : i32
    %451 = vector.broadcast %c0_i32_102 : i32 to vector<1x1x256xi32>
    %452 = arith.cmpi sge, %450, %451 : vector<1x1x256xi32>
    %c3_i32_103 = arith.constant 3 : i32
    %453 = vector.broadcast %c3_i32_103 : i32 to vector<1x1x256xi32>
    %454 = arith.addi %122, %453 : vector<1x1x256xi32>
    %c16_i32_104 = arith.constant 16 : i32
    %455 = vector.broadcast %c16_i32_104 : i32 to vector<1x1x256xi32>
    %456 = arith.cmpi slt, %454, %455 : vector<1x1x256xi32>
    %457 = arith.andi %452, %456 : vector<1x1x256xi1>
    %c253_i32_105 = arith.constant 253 : i32
    %458 = tpu.dynamic_rotate %312 by %c253_i32_105 dim 2 : vector<2x1x256xf32>, i32 -> vector<2x1x256xf32>
    %cst_106 = arith.constant 0.000000e+00 : f32
    %459 = vector.shape_cast %457 : vector<1x1x256xi1> to vector<1x1x256xi1>
    %460 = vector.broadcast %459 : vector<1x1x256xi1> to vector<2x1x256xi1>
    %461 = vector.broadcast %cst_106 : f32 to vector<2x1x256xf32>
    %462 = arith.select %460, %458, %461 : vector<2x1x256xi1>, vector<2x1x256xf32>
    %463 = vector.broadcast %20 : f32 to vector<2x1x256xf32>
    %464 = arith.mulf %462, %463 : vector<2x1x256xf32>
    %465 = arith.addf %448, %464 : vector<2x1x256xf32>
    %c253_i32_107 = arith.constant 253 : i32
    %466 = tpu.dynamic_rotate %317 by %c253_i32_107 dim 2 : vector<2x1x256xf32>, i32 -> vector<2x1x256xf32>
    %cst_108 = arith.constant 0.000000e+00 : f32
    %467 = vector.shape_cast %457 : vector<1x1x256xi1> to vector<1x1x256xi1>
    %468 = vector.broadcast %467 : vector<1x1x256xi1> to vector<2x1x256xi1>
    %469 = vector.broadcast %cst_108 : f32 to vector<2x1x256xf32>
    %470 = arith.select %468, %466, %469 : vector<2x1x256xi1>, vector<2x1x256xf32>
    %471 = vector.broadcast %69 : f32 to vector<2x1x256xf32>
    %472 = arith.mulf %470, %471 : vector<2x1x256xf32>
    %473 = arith.addf %465, %472 : vector<2x1x256xf32>
    %c-16_i32 = arith.constant -16 : i32
    %474 = vector.broadcast %c-16_i32 : i32 to vector<1x1x256xi32>
    %475 = arith.addi %106, %474 : vector<1x1x256xi32>
    %c0_i32_109 = arith.constant 0 : i32
    %476 = vector.broadcast %c0_i32_109 : i32 to vector<1x1x256xi32>
    %477 = arith.cmpi sge, %475, %476 : vector<1x1x256xi32>
    %c-16_i32_110 = arith.constant -16 : i32
    %478 = vector.broadcast %c-16_i32_110 : i32 to vector<1x1x256xi32>
    %479 = arith.addi %106, %478 : vector<1x1x256xi32>
    %c256_i32_111 = arith.constant 256 : i32
    %480 = vector.broadcast %c256_i32_111 : i32 to vector<1x1x256xi32>
    %481 = arith.cmpi slt, %479, %480 : vector<1x1x256xi32>
    %482 = arith.andi %477, %481 : vector<1x1x256xi1>
    %c16_i32_112 = arith.constant 16 : i32
    %483 = tpu.dynamic_rotate %6 by %c16_i32_112 dim 2 : vector<2x1x256xf32>, i32 -> vector<2x1x256xf32>
    %cst_113 = arith.constant 0.000000e+00 : f32
    %484 = vector.shape_cast %482 : vector<1x1x256xi1> to vector<1x1x256xi1>
    %485 = vector.broadcast %484 : vector<1x1x256xi1> to vector<2x1x256xi1>
    %486 = vector.broadcast %cst_113 : f32 to vector<2x1x256xf32>
    %487 = arith.select %485, %483, %486 : vector<2x1x256xi1>, vector<2x1x256xf32>
    %c16_i32_114 = arith.constant 16 : i32
    %488 = tpu.dynamic_rotate %4 by %c16_i32_114 dim 2 : vector<2x1x256xf32>, i32 -> vector<2x1x256xf32>
    %cst_115 = arith.constant 0.000000e+00 : f32
    %489 = vector.shape_cast %482 : vector<1x1x256xi1> to vector<1x1x256xi1>
    %490 = vector.broadcast %489 : vector<1x1x256xi1> to vector<2x1x256xi1>
    %491 = vector.broadcast %cst_115 : f32 to vector<2x1x256xf32>
    %492 = arith.select %490, %488, %491 : vector<2x1x256xi1>, vector<2x1x256xf32>
    %c-3_i32_116 = arith.constant -3 : i32
    %493 = vector.broadcast %c-3_i32_116 : i32 to vector<1x1x256xi32>
    %494 = arith.addi %122, %493 : vector<1x1x256xi32>
    %c0_i32_117 = arith.constant 0 : i32
    %495 = vector.broadcast %c0_i32_117 : i32 to vector<1x1x256xi32>
    %496 = arith.cmpi sge, %494, %495 : vector<1x1x256xi32>
    %c-3_i32_118 = arith.constant -3 : i32
    %497 = vector.broadcast %c-3_i32_118 : i32 to vector<1x1x256xi32>
    %498 = arith.addi %122, %497 : vector<1x1x256xi32>
    %c16_i32_119 = arith.constant 16 : i32
    %499 = vector.broadcast %c16_i32_119 : i32 to vector<1x1x256xi32>
    %500 = arith.cmpi slt, %498, %499 : vector<1x1x256xi32>
    %501 = arith.andi %496, %500 : vector<1x1x256xi1>
    %c3_i32_120 = arith.constant 3 : i32
    %502 = tpu.dynamic_rotate %487 by %c3_i32_120 dim 2 : vector<2x1x256xf32>, i32 -> vector<2x1x256xf32>
    %cst_121 = arith.constant 0.000000e+00 : f32
    %503 = vector.shape_cast %501 : vector<1x1x256xi1> to vector<1x1x256xi1>
    %504 = vector.broadcast %503 : vector<1x1x256xi1> to vector<2x1x256xi1>
    %505 = vector.broadcast %cst_121 : f32 to vector<2x1x256xf32>
    %506 = arith.select %504, %502, %505 : vector<2x1x256xi1>, vector<2x1x256xf32>
    %507 = vector.broadcast %21 : f32 to vector<2x1x256xf32>
    %508 = arith.mulf %506, %507 : vector<2x1x256xf32>
    %509 = arith.addf %473, %508 : vector<2x1x256xf32>
    %c3_i32_122 = arith.constant 3 : i32
    %510 = tpu.dynamic_rotate %492 by %c3_i32_122 dim 2 : vector<2x1x256xf32>, i32 -> vector<2x1x256xf32>
    %cst_123 = arith.constant 0.000000e+00 : f32
    %511 = vector.shape_cast %501 : vector<1x1x256xi1> to vector<1x1x256xi1>
    %512 = vector.broadcast %511 : vector<1x1x256xi1> to vector<2x1x256xi1>
    %513 = vector.broadcast %cst_123 : f32 to vector<2x1x256xf32>
    %514 = arith.select %512, %510, %513 : vector<2x1x256xi1>, vector<2x1x256xf32>
    %515 = vector.broadcast %70 : f32 to vector<2x1x256xf32>
    %516 = arith.mulf %514, %515 : vector<2x1x256xf32>
    %517 = arith.addf %509, %516 : vector<2x1x256xf32>
    %c-2_i32_124 = arith.constant -2 : i32
    %518 = vector.broadcast %c-2_i32_124 : i32 to vector<1x1x256xi32>
    %519 = arith.addi %122, %518 : vector<1x1x256xi32>
    %c0_i32_125 = arith.constant 0 : i32
    %520 = vector.broadcast %c0_i32_125 : i32 to vector<1x1x256xi32>
    %521 = arith.cmpi sge, %519, %520 : vector<1x1x256xi32>
    %c-2_i32_126 = arith.constant -2 : i32
    %522 = vector.broadcast %c-2_i32_126 : i32 to vector<1x1x256xi32>
    %523 = arith.addi %122, %522 : vector<1x1x256xi32>
    %c16_i32_127 = arith.constant 16 : i32
    %524 = vector.broadcast %c16_i32_127 : i32 to vector<1x1x256xi32>
    %525 = arith.cmpi slt, %523, %524 : vector<1x1x256xi32>
    %526 = arith.andi %521, %525 : vector<1x1x256xi1>
    %c2_i32_128 = arith.constant 2 : i32
    %527 = tpu.dynamic_rotate %487 by %c2_i32_128 dim 2 : vector<2x1x256xf32>, i32 -> vector<2x1x256xf32>
    %cst_129 = arith.constant 0.000000e+00 : f32
    %528 = vector.shape_cast %526 : vector<1x1x256xi1> to vector<1x1x256xi1>
    %529 = vector.broadcast %528 : vector<1x1x256xi1> to vector<2x1x256xi1>
    %530 = vector.broadcast %cst_129 : f32 to vector<2x1x256xf32>
    %531 = arith.select %529, %527, %530 : vector<2x1x256xi1>, vector<2x1x256xf32>
    %532 = vector.broadcast %22 : f32 to vector<2x1x256xf32>
    %533 = arith.mulf %531, %532 : vector<2x1x256xf32>
    %534 = arith.addf %517, %533 : vector<2x1x256xf32>
    %c2_i32_130 = arith.constant 2 : i32
    %535 = tpu.dynamic_rotate %492 by %c2_i32_130 dim 2 : vector<2x1x256xf32>, i32 -> vector<2x1x256xf32>
    %cst_131 = arith.constant 0.000000e+00 : f32
    %536 = vector.shape_cast %526 : vector<1x1x256xi1> to vector<1x1x256xi1>
    %537 = vector.broadcast %536 : vector<1x1x256xi1> to vector<2x1x256xi1>
    %538 = vector.broadcast %cst_131 : f32 to vector<2x1x256xf32>
    %539 = arith.select %537, %535, %538 : vector<2x1x256xi1>, vector<2x1x256xf32>
    %540 = vector.broadcast %71 : f32 to vector<2x1x256xf32>
    %541 = arith.mulf %539, %540 : vector<2x1x256xf32>
    %542 = arith.addf %534, %541 : vector<2x1x256xf32>
    %c-1_i32_132 = arith.constant -1 : i32
    %543 = vector.broadcast %c-1_i32_132 : i32 to vector<1x1x256xi32>
    %544 = arith.addi %122, %543 : vector<1x1x256xi32>
    %c0_i32_133 = arith.constant 0 : i32
    %545 = vector.broadcast %c0_i32_133 : i32 to vector<1x1x256xi32>
    %546 = arith.cmpi sge, %544, %545 : vector<1x1x256xi32>
    %c-1_i32_134 = arith.constant -1 : i32
    %547 = vector.broadcast %c-1_i32_134 : i32 to vector<1x1x256xi32>
    %548 = arith.addi %122, %547 : vector<1x1x256xi32>
    %c16_i32_135 = arith.constant 16 : i32
    %549 = vector.broadcast %c16_i32_135 : i32 to vector<1x1x256xi32>
    %550 = arith.cmpi slt, %548, %549 : vector<1x1x256xi32>
    %551 = arith.andi %546, %550 : vector<1x1x256xi1>
    %c1_i32_136 = arith.constant 1 : i32
    %552 = tpu.dynamic_rotate %487 by %c1_i32_136 dim 2 : vector<2x1x256xf32>, i32 -> vector<2x1x256xf32>
    %cst_137 = arith.constant 0.000000e+00 : f32
    %553 = vector.shape_cast %551 : vector<1x1x256xi1> to vector<1x1x256xi1>
    %554 = vector.broadcast %553 : vector<1x1x256xi1> to vector<2x1x256xi1>
    %555 = vector.broadcast %cst_137 : f32 to vector<2x1x256xf32>
    %556 = arith.select %554, %552, %555 : vector<2x1x256xi1>, vector<2x1x256xf32>
    %557 = vector.broadcast %23 : f32 to vector<2x1x256xf32>
    %558 = arith.mulf %556, %557 : vector<2x1x256xf32>
    %559 = arith.addf %542, %558 : vector<2x1x256xf32>
    %c1_i32_138 = arith.constant 1 : i32
    %560 = tpu.dynamic_rotate %492 by %c1_i32_138 dim 2 : vector<2x1x256xf32>, i32 -> vector<2x1x256xf32>
    %cst_139 = arith.constant 0.000000e+00 : f32
    %561 = vector.shape_cast %551 : vector<1x1x256xi1> to vector<1x1x256xi1>
    %562 = vector.broadcast %561 : vector<1x1x256xi1> to vector<2x1x256xi1>
    %563 = vector.broadcast %cst_139 : f32 to vector<2x1x256xf32>
    %564 = arith.select %562, %560, %563 : vector<2x1x256xi1>, vector<2x1x256xf32>
    %565 = vector.broadcast %72 : f32 to vector<2x1x256xf32>
    %566 = arith.mulf %564, %565 : vector<2x1x256xf32>
    %567 = arith.addf %559, %566 : vector<2x1x256xf32>
    %568 = vector.broadcast %24 : f32 to vector<2x1x256xf32>
    %569 = arith.mulf %487, %568 : vector<2x1x256xf32>
    %570 = arith.addf %567, %569 : vector<2x1x256xf32>
    %571 = vector.broadcast %73 : f32 to vector<2x1x256xf32>
    %572 = arith.mulf %492, %571 : vector<2x1x256xf32>
    %573 = arith.addf %570, %572 : vector<2x1x256xf32>
    %c1_i32_140 = arith.constant 1 : i32
    %574 = vector.broadcast %c1_i32_140 : i32 to vector<1x1x256xi32>
    %575 = arith.addi %122, %574 : vector<1x1x256xi32>
    %c0_i32_141 = arith.constant 0 : i32
    %576 = vector.broadcast %c0_i32_141 : i32 to vector<1x1x256xi32>
    %577 = arith.cmpi sge, %575, %576 : vector<1x1x256xi32>
    %c1_i32_142 = arith.constant 1 : i32
    %578 = vector.broadcast %c1_i32_142 : i32 to vector<1x1x256xi32>
    %579 = arith.addi %122, %578 : vector<1x1x256xi32>
    %c16_i32_143 = arith.constant 16 : i32
    %580 = vector.broadcast %c16_i32_143 : i32 to vector<1x1x256xi32>
    %581 = arith.cmpi slt, %579, %580 : vector<1x1x256xi32>
    %582 = arith.andi %577, %581 : vector<1x1x256xi1>
    %c255_i32_144 = arith.constant 255 : i32
    %583 = tpu.dynamic_rotate %487 by %c255_i32_144 dim 2 : vector<2x1x256xf32>, i32 -> vector<2x1x256xf32>
    %cst_145 = arith.constant 0.000000e+00 : f32
    %584 = vector.shape_cast %582 : vector<1x1x256xi1> to vector<1x1x256xi1>
    %585 = vector.broadcast %584 : vector<1x1x256xi1> to vector<2x1x256xi1>
    %586 = vector.broadcast %cst_145 : f32 to vector<2x1x256xf32>
    %587 = arith.select %585, %583, %586 : vector<2x1x256xi1>, vector<2x1x256xf32>
    %588 = vector.broadcast %25 : f32 to vector<2x1x256xf32>
    %589 = arith.mulf %587, %588 : vector<2x1x256xf32>
    %590 = arith.addf %573, %589 : vector<2x1x256xf32>
    %c255_i32_146 = arith.constant 255 : i32
    %591 = tpu.dynamic_rotate %492 by %c255_i32_146 dim 2 : vector<2x1x256xf32>, i32 -> vector<2x1x256xf32>
    %cst_147 = arith.constant 0.000000e+00 : f32
    %592 = vector.shape_cast %582 : vector<1x1x256xi1> to vector<1x1x256xi1>
    %593 = vector.broadcast %592 : vector<1x1x256xi1> to vector<2x1x256xi1>
    %594 = vector.broadcast %cst_147 : f32 to vector<2x1x256xf32>
    %595 = arith.select %593, %591, %594 : vector<2x1x256xi1>, vector<2x1x256xf32>
    %596 = vector.broadcast %74 : f32 to vector<2x1x256xf32>
    %597 = arith.mulf %595, %596 : vector<2x1x256xf32>
    %598 = arith.addf %590, %597 : vector<2x1x256xf32>
    %c2_i32_148 = arith.constant 2 : i32
    %599 = vector.broadcast %c2_i32_148 : i32 to vector<1x1x256xi32>
    %600 = arith.addi %122, %599 : vector<1x1x256xi32>
    %c0_i32_149 = arith.constant 0 : i32
    %601 = vector.broadcast %c0_i32_149 : i32 to vector<1x1x256xi32>
    %602 = arith.cmpi sge, %600, %601 : vector<1x1x256xi32>
    %c2_i32_150 = arith.constant 2 : i32
    %603 = vector.broadcast %c2_i32_150 : i32 to vector<1x1x256xi32>
    %604 = arith.addi %122, %603 : vector<1x1x256xi32>
    %c16_i32_151 = arith.constant 16 : i32
    %605 = vector.broadcast %c16_i32_151 : i32 to vector<1x1x256xi32>
    %606 = arith.cmpi slt, %604, %605 : vector<1x1x256xi32>
    %607 = arith.andi %602, %606 : vector<1x1x256xi1>
    %c254_i32_152 = arith.constant 254 : i32
    %608 = tpu.dynamic_rotate %487 by %c254_i32_152 dim 2 : vector<2x1x256xf32>, i32 -> vector<2x1x256xf32>
    %cst_153 = arith.constant 0.000000e+00 : f32
    %609 = vector.shape_cast %607 : vector<1x1x256xi1> to vector<1x1x256xi1>
    %610 = vector.broadcast %609 : vector<1x1x256xi1> to vector<2x1x256xi1>
    %611 = vector.broadcast %cst_153 : f32 to vector<2x1x256xf32>
    %612 = arith.select %610, %608, %611 : vector<2x1x256xi1>, vector<2x1x256xf32>
    %613 = vector.broadcast %26 : f32 to vector<2x1x256xf32>
    %614 = arith.mulf %612, %613 : vector<2x1x256xf32>
    %615 = arith.addf %598, %614 : vector<2x1x256xf32>
    %c254_i32_154 = arith.constant 254 : i32
    %616 = tpu.dynamic_rotate %492 by %c254_i32_154 dim 2 : vector<2x1x256xf32>, i32 -> vector<2x1x256xf32>
    %cst_155 = arith.constant 0.000000e+00 : f32
    %617 = vector.shape_cast %607 : vector<1x1x256xi1> to vector<1x1x256xi1>
    %618 = vector.broadcast %617 : vector<1x1x256xi1> to vector<2x1x256xi1>
    %619 = vector.broadcast %cst_155 : f32 to vector<2x1x256xf32>
    %620 = arith.select %618, %616, %619 : vector<2x1x256xi1>, vector<2x1x256xf32>
    %621 = vector.broadcast %75 : f32 to vector<2x1x256xf32>
    %622 = arith.mulf %620, %621 : vector<2x1x256xf32>
    %623 = arith.addf %615, %622 : vector<2x1x256xf32>
    %c3_i32_156 = arith.constant 3 : i32
    %624 = vector.broadcast %c3_i32_156 : i32 to vector<1x1x256xi32>
    %625 = arith.addi %122, %624 : vector<1x1x256xi32>
    %c0_i32_157 = arith.constant 0 : i32
    %626 = vector.broadcast %c0_i32_157 : i32 to vector<1x1x256xi32>
    %627 = arith.cmpi sge, %625, %626 : vector<1x1x256xi32>
    %c3_i32_158 = arith.constant 3 : i32
    %628 = vector.broadcast %c3_i32_158 : i32 to vector<1x1x256xi32>
    %629 = arith.addi %122, %628 : vector<1x1x256xi32>
    %c16_i32_159 = arith.constant 16 : i32
    %630 = vector.broadcast %c16_i32_159 : i32 to vector<1x1x256xi32>
    %631 = arith.cmpi slt, %629, %630 : vector<1x1x256xi32>
    %632 = arith.andi %627, %631 : vector<1x1x256xi1>
    %c253_i32_160 = arith.constant 253 : i32
    %633 = tpu.dynamic_rotate %487 by %c253_i32_160 dim 2 : vector<2x1x256xf32>, i32 -> vector<2x1x256xf32>
    %cst_161 = arith.constant 0.000000e+00 : f32
    %634 = vector.shape_cast %632 : vector<1x1x256xi1> to vector<1x1x256xi1>
    %635 = vector.broadcast %634 : vector<1x1x256xi1> to vector<2x1x256xi1>
    %636 = vector.broadcast %cst_161 : f32 to vector<2x1x256xf32>
    %637 = arith.select %635, %633, %636 : vector<2x1x256xi1>, vector<2x1x256xf32>
    %638 = vector.broadcast %27 : f32 to vector<2x1x256xf32>
    %639 = arith.mulf %637, %638 : vector<2x1x256xf32>
    %640 = arith.addf %623, %639 : vector<2x1x256xf32>
    %c253_i32_162 = arith.constant 253 : i32
    %641 = tpu.dynamic_rotate %492 by %c253_i32_162 dim 2 : vector<2x1x256xf32>, i32 -> vector<2x1x256xf32>
    %cst_163 = arith.constant 0.000000e+00 : f32
    %642 = vector.shape_cast %632 : vector<1x1x256xi1> to vector<1x1x256xi1>
    %643 = vector.broadcast %642 : vector<1x1x256xi1> to vector<2x1x256xi1>
    %644 = vector.broadcast %cst_163 : f32 to vector<2x1x256xf32>
    %645 = arith.select %643, %641, %644 : vector<2x1x256xi1>, vector<2x1x256xf32>
    %646 = vector.broadcast %76 : f32 to vector<2x1x256xf32>
    %647 = arith.mulf %645, %646 : vector<2x1x256xf32>
    %648 = arith.addf %640, %647 : vector<2x1x256xf32>
    %c-3_i32_164 = arith.constant -3 : i32
    %649 = vector.broadcast %c-3_i32_164 : i32 to vector<1x1x256xi32>
    %650 = arith.addi %122, %649 : vector<1x1x256xi32>
    %c0_i32_165 = arith.constant 0 : i32
    %651 = vector.broadcast %c0_i32_165 : i32 to vector<1x1x256xi32>
    %652 = arith.cmpi sge, %650, %651 : vector<1x1x256xi32>
    %c-3_i32_166 = arith.constant -3 : i32
    %653 = vector.broadcast %c-3_i32_166 : i32 to vector<1x1x256xi32>
    %654 = arith.addi %122, %653 : vector<1x1x256xi32>
    %c16_i32_167 = arith.constant 16 : i32
    %655 = vector.broadcast %c16_i32_167 : i32 to vector<1x1x256xi32>
    %656 = arith.cmpi slt, %654, %655 : vector<1x1x256xi32>
    %657 = arith.andi %652, %656 : vector<1x1x256xi1>
    %c3_i32_168 = arith.constant 3 : i32
    %658 = tpu.dynamic_rotate %6 by %c3_i32_168 dim 2 : vector<2x1x256xf32>, i32 -> vector<2x1x256xf32>
    %cst_169 = arith.constant 0.000000e+00 : f32
    %659 = vector.shape_cast %657 : vector<1x1x256xi1> to vector<1x1x256xi1>
    %660 = vector.broadcast %659 : vector<1x1x256xi1> to vector<2x1x256xi1>
    %661 = vector.broadcast %cst_169 : f32 to vector<2x1x256xf32>
    %662 = arith.select %660, %658, %661 : vector<2x1x256xi1>, vector<2x1x256xf32>
    %663 = vector.broadcast %28 : f32 to vector<2x1x256xf32>
    %664 = arith.mulf %662, %663 : vector<2x1x256xf32>
    %665 = arith.addf %648, %664 : vector<2x1x256xf32>
    %c3_i32_170 = arith.constant 3 : i32
    %666 = tpu.dynamic_rotate %4 by %c3_i32_170 dim 2 : vector<2x1x256xf32>, i32 -> vector<2x1x256xf32>
    %cst_171 = arith.constant 0.000000e+00 : f32
    %667 = vector.shape_cast %657 : vector<1x1x256xi1> to vector<1x1x256xi1>
    %668 = vector.broadcast %667 : vector<1x1x256xi1> to vector<2x1x256xi1>
    %669 = vector.broadcast %cst_171 : f32 to vector<2x1x256xf32>
    %670 = arith.select %668, %666, %669 : vector<2x1x256xi1>, vector<2x1x256xf32>
    %671 = vector.broadcast %77 : f32 to vector<2x1x256xf32>
    %672 = arith.mulf %670, %671 : vector<2x1x256xf32>
    %673 = arith.addf %665, %672 : vector<2x1x256xf32>
    %c-2_i32_172 = arith.constant -2 : i32
    %674 = vector.broadcast %c-2_i32_172 : i32 to vector<1x1x256xi32>
    %675 = arith.addi %122, %674 : vector<1x1x256xi32>
    %c0_i32_173 = arith.constant 0 : i32
    %676 = vector.broadcast %c0_i32_173 : i32 to vector<1x1x256xi32>
    %677 = arith.cmpi sge, %675, %676 : vector<1x1x256xi32>
    %c-2_i32_174 = arith.constant -2 : i32
    %678 = vector.broadcast %c-2_i32_174 : i32 to vector<1x1x256xi32>
    %679 = arith.addi %122, %678 : vector<1x1x256xi32>
    %c16_i32_175 = arith.constant 16 : i32
    %680 = vector.broadcast %c16_i32_175 : i32 to vector<1x1x256xi32>
    %681 = arith.cmpi slt, %679, %680 : vector<1x1x256xi32>
    %682 = arith.andi %677, %681 : vector<1x1x256xi1>
    %c2_i32_176 = arith.constant 2 : i32
    %683 = tpu.dynamic_rotate %6 by %c2_i32_176 dim 2 : vector<2x1x256xf32>, i32 -> vector<2x1x256xf32>
    %cst_177 = arith.constant 0.000000e+00 : f32
    %684 = vector.shape_cast %682 : vector<1x1x256xi1> to vector<1x1x256xi1>
    %685 = vector.broadcast %684 : vector<1x1x256xi1> to vector<2x1x256xi1>
    %686 = vector.broadcast %cst_177 : f32 to vector<2x1x256xf32>
    %687 = arith.select %685, %683, %686 : vector<2x1x256xi1>, vector<2x1x256xf32>
    %688 = vector.broadcast %29 : f32 to vector<2x1x256xf32>
    %689 = arith.mulf %687, %688 : vector<2x1x256xf32>
    %690 = arith.addf %673, %689 : vector<2x1x256xf32>
    %c2_i32_178 = arith.constant 2 : i32
    %691 = tpu.dynamic_rotate %4 by %c2_i32_178 dim 2 : vector<2x1x256xf32>, i32 -> vector<2x1x256xf32>
    %cst_179 = arith.constant 0.000000e+00 : f32
    %692 = vector.shape_cast %682 : vector<1x1x256xi1> to vector<1x1x256xi1>
    %693 = vector.broadcast %692 : vector<1x1x256xi1> to vector<2x1x256xi1>
    %694 = vector.broadcast %cst_179 : f32 to vector<2x1x256xf32>
    %695 = arith.select %693, %691, %694 : vector<2x1x256xi1>, vector<2x1x256xf32>
    %696 = vector.broadcast %78 : f32 to vector<2x1x256xf32>
    %697 = arith.mulf %695, %696 : vector<2x1x256xf32>
    %698 = arith.addf %690, %697 : vector<2x1x256xf32>
    %c-1_i32_180 = arith.constant -1 : i32
    %699 = vector.broadcast %c-1_i32_180 : i32 to vector<1x1x256xi32>
    %700 = arith.addi %122, %699 : vector<1x1x256xi32>
    %c0_i32_181 = arith.constant 0 : i32
    %701 = vector.broadcast %c0_i32_181 : i32 to vector<1x1x256xi32>
    %702 = arith.cmpi sge, %700, %701 : vector<1x1x256xi32>
    %c-1_i32_182 = arith.constant -1 : i32
    %703 = vector.broadcast %c-1_i32_182 : i32 to vector<1x1x256xi32>
    %704 = arith.addi %122, %703 : vector<1x1x256xi32>
    %c16_i32_183 = arith.constant 16 : i32
    %705 = vector.broadcast %c16_i32_183 : i32 to vector<1x1x256xi32>
    %706 = arith.cmpi slt, %704, %705 : vector<1x1x256xi32>
    %707 = arith.andi %702, %706 : vector<1x1x256xi1>
    %c1_i32_184 = arith.constant 1 : i32
    %708 = tpu.dynamic_rotate %6 by %c1_i32_184 dim 2 : vector<2x1x256xf32>, i32 -> vector<2x1x256xf32>
    %cst_185 = arith.constant 0.000000e+00 : f32
    %709 = vector.shape_cast %707 : vector<1x1x256xi1> to vector<1x1x256xi1>
    %710 = vector.broadcast %709 : vector<1x1x256xi1> to vector<2x1x256xi1>
    %711 = vector.broadcast %cst_185 : f32 to vector<2x1x256xf32>
    %712 = arith.select %710, %708, %711 : vector<2x1x256xi1>, vector<2x1x256xf32>
    %713 = vector.broadcast %30 : f32 to vector<2x1x256xf32>
    %714 = arith.mulf %712, %713 : vector<2x1x256xf32>
    %715 = arith.addf %698, %714 : vector<2x1x256xf32>
    %c1_i32_186 = arith.constant 1 : i32
    %716 = tpu.dynamic_rotate %4 by %c1_i32_186 dim 2 : vector<2x1x256xf32>, i32 -> vector<2x1x256xf32>
    %cst_187 = arith.constant 0.000000e+00 : f32
    %717 = vector.shape_cast %707 : vector<1x1x256xi1> to vector<1x1x256xi1>
    %718 = vector.broadcast %717 : vector<1x1x256xi1> to vector<2x1x256xi1>
    %719 = vector.broadcast %cst_187 : f32 to vector<2x1x256xf32>
    %720 = arith.select %718, %716, %719 : vector<2x1x256xi1>, vector<2x1x256xf32>
    %721 = vector.broadcast %79 : f32 to vector<2x1x256xf32>
    %722 = arith.mulf %720, %721 : vector<2x1x256xf32>
    %723 = arith.addf %715, %722 : vector<2x1x256xf32>
    %724 = vector.broadcast %31 : f32 to vector<2x1x256xf32>
    %725 = arith.mulf %6, %724 : vector<2x1x256xf32>
    %726 = arith.addf %723, %725 : vector<2x1x256xf32>
    %727 = vector.broadcast %80 : f32 to vector<2x1x256xf32>
    %728 = arith.mulf %4, %727 : vector<2x1x256xf32>
    %729 = arith.addf %726, %728 : vector<2x1x256xf32>
    %c1_i32_188 = arith.constant 1 : i32
    %730 = vector.broadcast %c1_i32_188 : i32 to vector<1x1x256xi32>
    %731 = arith.addi %122, %730 : vector<1x1x256xi32>
    %c0_i32_189 = arith.constant 0 : i32
    %732 = vector.broadcast %c0_i32_189 : i32 to vector<1x1x256xi32>
    %733 = arith.cmpi sge, %731, %732 : vector<1x1x256xi32>
    %c1_i32_190 = arith.constant 1 : i32
    %734 = vector.broadcast %c1_i32_190 : i32 to vector<1x1x256xi32>
    %735 = arith.addi %122, %734 : vector<1x1x256xi32>
    %c16_i32_191 = arith.constant 16 : i32
    %736 = vector.broadcast %c16_i32_191 : i32 to vector<1x1x256xi32>
    %737 = arith.cmpi slt, %735, %736 : vector<1x1x256xi32>
    %738 = arith.andi %733, %737 : vector<1x1x256xi1>
    %c255_i32_192 = arith.constant 255 : i32
    %739 = tpu.dynamic_rotate %6 by %c255_i32_192 dim 2 : vector<2x1x256xf32>, i32 -> vector<2x1x256xf32>
    %cst_193 = arith.constant 0.000000e+00 : f32
    %740 = vector.shape_cast %738 : vector<1x1x256xi1> to vector<1x1x256xi1>
    %741 = vector.broadcast %740 : vector<1x1x256xi1> to vector<2x1x256xi1>
    %742 = vector.broadcast %cst_193 : f32 to vector<2x1x256xf32>
    %743 = arith.select %741, %739, %742 : vector<2x1x256xi1>, vector<2x1x256xf32>
    %744 = vector.broadcast %32 : f32 to vector<2x1x256xf32>
    %745 = arith.mulf %743, %744 : vector<2x1x256xf32>
    %746 = arith.addf %729, %745 : vector<2x1x256xf32>
    %c255_i32_194 = arith.constant 255 : i32
    %747 = tpu.dynamic_rotate %4 by %c255_i32_194 dim 2 : vector<2x1x256xf32>, i32 -> vector<2x1x256xf32>
    %cst_195 = arith.constant 0.000000e+00 : f32
    %748 = vector.shape_cast %738 : vector<1x1x256xi1> to vector<1x1x256xi1>
    %749 = vector.broadcast %748 : vector<1x1x256xi1> to vector<2x1x256xi1>
    %750 = vector.broadcast %cst_195 : f32 to vector<2x1x256xf32>
    %751 = arith.select %749, %747, %750 : vector<2x1x256xi1>, vector<2x1x256xf32>
    %752 = vector.broadcast %81 : f32 to vector<2x1x256xf32>
    %753 = arith.mulf %751, %752 : vector<2x1x256xf32>
    %754 = arith.addf %746, %753 : vector<2x1x256xf32>
    %c2_i32_196 = arith.constant 2 : i32
    %755 = vector.broadcast %c2_i32_196 : i32 to vector<1x1x256xi32>
    %756 = arith.addi %122, %755 : vector<1x1x256xi32>
    %c0_i32_197 = arith.constant 0 : i32
    %757 = vector.broadcast %c0_i32_197 : i32 to vector<1x1x256xi32>
    %758 = arith.cmpi sge, %756, %757 : vector<1x1x256xi32>
    %c2_i32_198 = arith.constant 2 : i32
    %759 = vector.broadcast %c2_i32_198 : i32 to vector<1x1x256xi32>
    %760 = arith.addi %122, %759 : vector<1x1x256xi32>
    %c16_i32_199 = arith.constant 16 : i32
    %761 = vector.broadcast %c16_i32_199 : i32 to vector<1x1x256xi32>
    %762 = arith.cmpi slt, %760, %761 : vector<1x1x256xi32>
    %763 = arith.andi %758, %762 : vector<1x1x256xi1>
    %c254_i32_200 = arith.constant 254 : i32
    %764 = tpu.dynamic_rotate %6 by %c254_i32_200 dim 2 : vector<2x1x256xf32>, i32 -> vector<2x1x256xf32>
    %cst_201 = arith.constant 0.000000e+00 : f32
    %765 = vector.shape_cast %763 : vector<1x1x256xi1> to vector<1x1x256xi1>
    %766 = vector.broadcast %765 : vector<1x1x256xi1> to vector<2x1x256xi1>
    %767 = vector.broadcast %cst_201 : f32 to vector<2x1x256xf32>
    %768 = arith.select %766, %764, %767 : vector<2x1x256xi1>, vector<2x1x256xf32>
    %769 = vector.broadcast %33 : f32 to vector<2x1x256xf32>
    %770 = arith.mulf %768, %769 : vector<2x1x256xf32>
    %771 = arith.addf %754, %770 : vector<2x1x256xf32>
    %c254_i32_202 = arith.constant 254 : i32
    %772 = tpu.dynamic_rotate %4 by %c254_i32_202 dim 2 : vector<2x1x256xf32>, i32 -> vector<2x1x256xf32>
    %cst_203 = arith.constant 0.000000e+00 : f32
    %773 = vector.shape_cast %763 : vector<1x1x256xi1> to vector<1x1x256xi1>
    %774 = vector.broadcast %773 : vector<1x1x256xi1> to vector<2x1x256xi1>
    %775 = vector.broadcast %cst_203 : f32 to vector<2x1x256xf32>
    %776 = arith.select %774, %772, %775 : vector<2x1x256xi1>, vector<2x1x256xf32>
    %777 = vector.broadcast %82 : f32 to vector<2x1x256xf32>
    %778 = arith.mulf %776, %777 : vector<2x1x256xf32>
    %779 = arith.addf %771, %778 : vector<2x1x256xf32>
    %c3_i32_204 = arith.constant 3 : i32
    %780 = vector.broadcast %c3_i32_204 : i32 to vector<1x1x256xi32>
    %781 = arith.addi %122, %780 : vector<1x1x256xi32>
    %c0_i32_205 = arith.constant 0 : i32
    %782 = vector.broadcast %c0_i32_205 : i32 to vector<1x1x256xi32>
    %783 = arith.cmpi sge, %781, %782 : vector<1x1x256xi32>
    %c3_i32_206 = arith.constant 3 : i32
    %784 = vector.broadcast %c3_i32_206 : i32 to vector<1x1x256xi32>
    %785 = arith.addi %122, %784 : vector<1x1x256xi32>
    %c16_i32_207 = arith.constant 16 : i32
    %786 = vector.broadcast %c16_i32_207 : i32 to vector<1x1x256xi32>
    %787 = arith.cmpi slt, %785, %786 : vector<1x1x256xi32>
    %788 = arith.andi %783, %787 : vector<1x1x256xi1>
    %c253_i32_208 = arith.constant 253 : i32
    %789 = tpu.dynamic_rotate %6 by %c253_i32_208 dim 2 : vector<2x1x256xf32>, i32 -> vector<2x1x256xf32>
    %cst_209 = arith.constant 0.000000e+00 : f32
    %790 = vector.shape_cast %788 : vector<1x1x256xi1> to vector<1x1x256xi1>
    %791 = vector.broadcast %790 : vector<1x1x256xi1> to vector<2x1x256xi1>
    %792 = vector.broadcast %cst_209 : f32 to vector<2x1x256xf32>
    %793 = arith.select %791, %789, %792 : vector<2x1x256xi1>, vector<2x1x256xf32>
    %794 = vector.broadcast %34 : f32 to vector<2x1x256xf32>
    %795 = arith.mulf %793, %794 : vector<2x1x256xf32>
    %796 = arith.addf %779, %795 : vector<2x1x256xf32>
    %c253_i32_210 = arith.constant 253 : i32
    %797 = tpu.dynamic_rotate %4 by %c253_i32_210 dim 2 : vector<2x1x256xf32>, i32 -> vector<2x1x256xf32>
    %cst_211 = arith.constant 0.000000e+00 : f32
    %798 = vector.shape_cast %788 : vector<1x1x256xi1> to vector<1x1x256xi1>
    %799 = vector.broadcast %798 : vector<1x1x256xi1> to vector<2x1x256xi1>
    %800 = vector.broadcast %cst_211 : f32 to vector<2x1x256xf32>
    %801 = arith.select %799, %797, %800 : vector<2x1x256xi1>, vector<2x1x256xf32>
    %802 = vector.broadcast %83 : f32 to vector<2x1x256xf32>
    %803 = arith.mulf %801, %802 : vector<2x1x256xf32>
    %804 = arith.addf %796, %803 : vector<2x1x256xf32>
    %c16_i32_212 = arith.constant 16 : i32
    %805 = vector.broadcast %c16_i32_212 : i32 to vector<1x1x256xi32>
    %806 = arith.addi %106, %805 : vector<1x1x256xi32>
    %c0_i32_213 = arith.constant 0 : i32
    %807 = vector.broadcast %c0_i32_213 : i32 to vector<1x1x256xi32>
    %808 = arith.cmpi sge, %806, %807 : vector<1x1x256xi32>
    %c16_i32_214 = arith.constant 16 : i32
    %809 = vector.broadcast %c16_i32_214 : i32 to vector<1x1x256xi32>
    %810 = arith.addi %106, %809 : vector<1x1x256xi32>
    %c256_i32_215 = arith.constant 256 : i32
    %811 = vector.broadcast %c256_i32_215 : i32 to vector<1x1x256xi32>
    %812 = arith.cmpi slt, %810, %811 : vector<1x1x256xi32>
    %813 = arith.andi %808, %812 : vector<1x1x256xi1>
    %c240_i32 = arith.constant 240 : i32
    %814 = tpu.dynamic_rotate %6 by %c240_i32 dim 2 : vector<2x1x256xf32>, i32 -> vector<2x1x256xf32>
    %cst_216 = arith.constant 0.000000e+00 : f32
    %815 = vector.shape_cast %813 : vector<1x1x256xi1> to vector<1x1x256xi1>
    %816 = vector.broadcast %815 : vector<1x1x256xi1> to vector<2x1x256xi1>
    %817 = vector.broadcast %cst_216 : f32 to vector<2x1x256xf32>
    %818 = arith.select %816, %814, %817 : vector<2x1x256xi1>, vector<2x1x256xf32>
    %c240_i32_217 = arith.constant 240 : i32
    %819 = tpu.dynamic_rotate %4 by %c240_i32_217 dim 2 : vector<2x1x256xf32>, i32 -> vector<2x1x256xf32>
    %cst_218 = arith.constant 0.000000e+00 : f32
    %820 = vector.shape_cast %813 : vector<1x1x256xi1> to vector<1x1x256xi1>
    %821 = vector.broadcast %820 : vector<1x1x256xi1> to vector<2x1x256xi1>
    %822 = vector.broadcast %cst_218 : f32 to vector<2x1x256xf32>
    %823 = arith.select %821, %819, %822 : vector<2x1x256xi1>, vector<2x1x256xf32>
    %c-3_i32_219 = arith.constant -3 : i32
    %824 = vector.broadcast %c-3_i32_219 : i32 to vector<1x1x256xi32>
    %825 = arith.addi %122, %824 : vector<1x1x256xi32>
    %c0_i32_220 = arith.constant 0 : i32
    %826 = vector.broadcast %c0_i32_220 : i32 to vector<1x1x256xi32>
    %827 = arith.cmpi sge, %825, %826 : vector<1x1x256xi32>
    %c-3_i32_221 = arith.constant -3 : i32
    %828 = vector.broadcast %c-3_i32_221 : i32 to vector<1x1x256xi32>
    %829 = arith.addi %122, %828 : vector<1x1x256xi32>
    %c16_i32_222 = arith.constant 16 : i32
    %830 = vector.broadcast %c16_i32_222 : i32 to vector<1x1x256xi32>
    %831 = arith.cmpi slt, %829, %830 : vector<1x1x256xi32>
    %832 = arith.andi %827, %831 : vector<1x1x256xi1>
    %c3_i32_223 = arith.constant 3 : i32
    %833 = tpu.dynamic_rotate %818 by %c3_i32_223 dim 2 : vector<2x1x256xf32>, i32 -> vector<2x1x256xf32>
    %cst_224 = arith.constant 0.000000e+00 : f32
    %834 = vector.shape_cast %832 : vector<1x1x256xi1> to vector<1x1x256xi1>
    %835 = vector.broadcast %834 : vector<1x1x256xi1> to vector<2x1x256xi1>
    %836 = vector.broadcast %cst_224 : f32 to vector<2x1x256xf32>
    %837 = arith.select %835, %833, %836 : vector<2x1x256xi1>, vector<2x1x256xf32>
    %838 = vector.broadcast %35 : f32 to vector<2x1x256xf32>
    %839 = arith.mulf %837, %838 : vector<2x1x256xf32>
    %840 = arith.addf %804, %839 : vector<2x1x256xf32>
    %c3_i32_225 = arith.constant 3 : i32
    %841 = tpu.dynamic_rotate %823 by %c3_i32_225 dim 2 : vector<2x1x256xf32>, i32 -> vector<2x1x256xf32>
    %cst_226 = arith.constant 0.000000e+00 : f32
    %842 = vector.shape_cast %832 : vector<1x1x256xi1> to vector<1x1x256xi1>
    %843 = vector.broadcast %842 : vector<1x1x256xi1> to vector<2x1x256xi1>
    %844 = vector.broadcast %cst_226 : f32 to vector<2x1x256xf32>
    %845 = arith.select %843, %841, %844 : vector<2x1x256xi1>, vector<2x1x256xf32>
    %846 = vector.broadcast %84 : f32 to vector<2x1x256xf32>
    %847 = arith.mulf %845, %846 : vector<2x1x256xf32>
    %848 = arith.addf %840, %847 : vector<2x1x256xf32>
    %c-2_i32_227 = arith.constant -2 : i32
    %849 = vector.broadcast %c-2_i32_227 : i32 to vector<1x1x256xi32>
    %850 = arith.addi %122, %849 : vector<1x1x256xi32>
    %c0_i32_228 = arith.constant 0 : i32
    %851 = vector.broadcast %c0_i32_228 : i32 to vector<1x1x256xi32>
    %852 = arith.cmpi sge, %850, %851 : vector<1x1x256xi32>
    %c-2_i32_229 = arith.constant -2 : i32
    %853 = vector.broadcast %c-2_i32_229 : i32 to vector<1x1x256xi32>
    %854 = arith.addi %122, %853 : vector<1x1x256xi32>
    %c16_i32_230 = arith.constant 16 : i32
    %855 = vector.broadcast %c16_i32_230 : i32 to vector<1x1x256xi32>
    %856 = arith.cmpi slt, %854, %855 : vector<1x1x256xi32>
    %857 = arith.andi %852, %856 : vector<1x1x256xi1>
    %c2_i32_231 = arith.constant 2 : i32
    %858 = tpu.dynamic_rotate %818 by %c2_i32_231 dim 2 : vector<2x1x256xf32>, i32 -> vector<2x1x256xf32>
    %cst_232 = arith.constant 0.000000e+00 : f32
    %859 = vector.shape_cast %857 : vector<1x1x256xi1> to vector<1x1x256xi1>
    %860 = vector.broadcast %859 : vector<1x1x256xi1> to vector<2x1x256xi1>
    %861 = vector.broadcast %cst_232 : f32 to vector<2x1x256xf32>
    %862 = arith.select %860, %858, %861 : vector<2x1x256xi1>, vector<2x1x256xf32>
    %863 = vector.broadcast %36 : f32 to vector<2x1x256xf32>
    %864 = arith.mulf %862, %863 : vector<2x1x256xf32>
    %865 = arith.addf %848, %864 : vector<2x1x256xf32>
    %c2_i32_233 = arith.constant 2 : i32
    %866 = tpu.dynamic_rotate %823 by %c2_i32_233 dim 2 : vector<2x1x256xf32>, i32 -> vector<2x1x256xf32>
    %cst_234 = arith.constant 0.000000e+00 : f32
    %867 = vector.shape_cast %857 : vector<1x1x256xi1> to vector<1x1x256xi1>
    %868 = vector.broadcast %867 : vector<1x1x256xi1> to vector<2x1x256xi1>
    %869 = vector.broadcast %cst_234 : f32 to vector<2x1x256xf32>
    %870 = arith.select %868, %866, %869 : vector<2x1x256xi1>, vector<2x1x256xf32>
    %871 = vector.broadcast %85 : f32 to vector<2x1x256xf32>
    %872 = arith.mulf %870, %871 : vector<2x1x256xf32>
    %873 = arith.addf %865, %872 : vector<2x1x256xf32>
    %c-1_i32_235 = arith.constant -1 : i32
    %874 = vector.broadcast %c-1_i32_235 : i32 to vector<1x1x256xi32>
    %875 = arith.addi %122, %874 : vector<1x1x256xi32>
    %c0_i32_236 = arith.constant 0 : i32
    %876 = vector.broadcast %c0_i32_236 : i32 to vector<1x1x256xi32>
    %877 = arith.cmpi sge, %875, %876 : vector<1x1x256xi32>
    %c-1_i32_237 = arith.constant -1 : i32
    %878 = vector.broadcast %c-1_i32_237 : i32 to vector<1x1x256xi32>
    %879 = arith.addi %122, %878 : vector<1x1x256xi32>
    %c16_i32_238 = arith.constant 16 : i32
    %880 = vector.broadcast %c16_i32_238 : i32 to vector<1x1x256xi32>
    %881 = arith.cmpi slt, %879, %880 : vector<1x1x256xi32>
    %882 = arith.andi %877, %881 : vector<1x1x256xi1>
    %c1_i32_239 = arith.constant 1 : i32
    %883 = tpu.dynamic_rotate %818 by %c1_i32_239 dim 2 : vector<2x1x256xf32>, i32 -> vector<2x1x256xf32>
    %cst_240 = arith.constant 0.000000e+00 : f32
    %884 = vector.shape_cast %882 : vector<1x1x256xi1> to vector<1x1x256xi1>
    %885 = vector.broadcast %884 : vector<1x1x256xi1> to vector<2x1x256xi1>
    %886 = vector.broadcast %cst_240 : f32 to vector<2x1x256xf32>
    %887 = arith.select %885, %883, %886 : vector<2x1x256xi1>, vector<2x1x256xf32>
    %888 = vector.broadcast %37 : f32 to vector<2x1x256xf32>
    %889 = arith.mulf %887, %888 : vector<2x1x256xf32>
    %890 = arith.addf %873, %889 : vector<2x1x256xf32>
    %c1_i32_241 = arith.constant 1 : i32
    %891 = tpu.dynamic_rotate %823 by %c1_i32_241 dim 2 : vector<2x1x256xf32>, i32 -> vector<2x1x256xf32>
    %cst_242 = arith.constant 0.000000e+00 : f32
    %892 = vector.shape_cast %882 : vector<1x1x256xi1> to vector<1x1x256xi1>
    %893 = vector.broadcast %892 : vector<1x1x256xi1> to vector<2x1x256xi1>
    %894 = vector.broadcast %cst_242 : f32 to vector<2x1x256xf32>
    %895 = arith.select %893, %891, %894 : vector<2x1x256xi1>, vector<2x1x256xf32>
    %896 = vector.broadcast %86 : f32 to vector<2x1x256xf32>
    %897 = arith.mulf %895, %896 : vector<2x1x256xf32>
    %898 = arith.addf %890, %897 : vector<2x1x256xf32>
    %899 = vector.broadcast %38 : f32 to vector<2x1x256xf32>
    %900 = arith.mulf %818, %899 : vector<2x1x256xf32>
    %901 = arith.addf %898, %900 : vector<2x1x256xf32>
    %902 = vector.broadcast %87 : f32 to vector<2x1x256xf32>
    %903 = arith.mulf %823, %902 : vector<2x1x256xf32>
    %904 = arith.addf %901, %903 : vector<2x1x256xf32>
    %c1_i32_243 = arith.constant 1 : i32
    %905 = vector.broadcast %c1_i32_243 : i32 to vector<1x1x256xi32>
    %906 = arith.addi %122, %905 : vector<1x1x256xi32>
    %c0_i32_244 = arith.constant 0 : i32
    %907 = vector.broadcast %c0_i32_244 : i32 to vector<1x1x256xi32>
    %908 = arith.cmpi sge, %906, %907 : vector<1x1x256xi32>
    %c1_i32_245 = arith.constant 1 : i32
    %909 = vector.broadcast %c1_i32_245 : i32 to vector<1x1x256xi32>
    %910 = arith.addi %122, %909 : vector<1x1x256xi32>
    %c16_i32_246 = arith.constant 16 : i32
    %911 = vector.broadcast %c16_i32_246 : i32 to vector<1x1x256xi32>
    %912 = arith.cmpi slt, %910, %911 : vector<1x1x256xi32>
    %913 = arith.andi %908, %912 : vector<1x1x256xi1>
    %c255_i32_247 = arith.constant 255 : i32
    %914 = tpu.dynamic_rotate %818 by %c255_i32_247 dim 2 : vector<2x1x256xf32>, i32 -> vector<2x1x256xf32>
    %cst_248 = arith.constant 0.000000e+00 : f32
    %915 = vector.shape_cast %913 : vector<1x1x256xi1> to vector<1x1x256xi1>
    %916 = vector.broadcast %915 : vector<1x1x256xi1> to vector<2x1x256xi1>
    %917 = vector.broadcast %cst_248 : f32 to vector<2x1x256xf32>
    %918 = arith.select %916, %914, %917 : vector<2x1x256xi1>, vector<2x1x256xf32>
    %919 = vector.broadcast %39 : f32 to vector<2x1x256xf32>
    %920 = arith.mulf %918, %919 : vector<2x1x256xf32>
    %921 = arith.addf %904, %920 : vector<2x1x256xf32>
    %c255_i32_249 = arith.constant 255 : i32
    %922 = tpu.dynamic_rotate %823 by %c255_i32_249 dim 2 : vector<2x1x256xf32>, i32 -> vector<2x1x256xf32>
    %cst_250 = arith.constant 0.000000e+00 : f32
    %923 = vector.shape_cast %913 : vector<1x1x256xi1> to vector<1x1x256xi1>
    %924 = vector.broadcast %923 : vector<1x1x256xi1> to vector<2x1x256xi1>
    %925 = vector.broadcast %cst_250 : f32 to vector<2x1x256xf32>
    %926 = arith.select %924, %922, %925 : vector<2x1x256xi1>, vector<2x1x256xf32>
    %927 = vector.broadcast %88 : f32 to vector<2x1x256xf32>
    %928 = arith.mulf %926, %927 : vector<2x1x256xf32>
    %929 = arith.addf %921, %928 : vector<2x1x256xf32>
    %c2_i32_251 = arith.constant 2 : i32
    %930 = vector.broadcast %c2_i32_251 : i32 to vector<1x1x256xi32>
    %931 = arith.addi %122, %930 : vector<1x1x256xi32>
    %c0_i32_252 = arith.constant 0 : i32
    %932 = vector.broadcast %c0_i32_252 : i32 to vector<1x1x256xi32>
    %933 = arith.cmpi sge, %931, %932 : vector<1x1x256xi32>
    %c2_i32_253 = arith.constant 2 : i32
    %934 = vector.broadcast %c2_i32_253 : i32 to vector<1x1x256xi32>
    %935 = arith.addi %122, %934 : vector<1x1x256xi32>
    %c16_i32_254 = arith.constant 16 : i32
    %936 = vector.broadcast %c16_i32_254 : i32 to vector<1x1x256xi32>
    %937 = arith.cmpi slt, %935, %936 : vector<1x1x256xi32>
    %938 = arith.andi %933, %937 : vector<1x1x256xi1>
    %c254_i32_255 = arith.constant 254 : i32
    %939 = tpu.dynamic_rotate %818 by %c254_i32_255 dim 2 : vector<2x1x256xf32>, i32 -> vector<2x1x256xf32>
    %cst_256 = arith.constant 0.000000e+00 : f32
    %940 = vector.shape_cast %938 : vector<1x1x256xi1> to vector<1x1x256xi1>
    %941 = vector.broadcast %940 : vector<1x1x256xi1> to vector<2x1x256xi1>
    %942 = vector.broadcast %cst_256 : f32 to vector<2x1x256xf32>
    %943 = arith.select %941, %939, %942 : vector<2x1x256xi1>, vector<2x1x256xf32>
    %944 = vector.broadcast %40 : f32 to vector<2x1x256xf32>
    %945 = arith.mulf %943, %944 : vector<2x1x256xf32>
    %946 = arith.addf %929, %945 : vector<2x1x256xf32>
    %c254_i32_257 = arith.constant 254 : i32
    %947 = tpu.dynamic_rotate %823 by %c254_i32_257 dim 2 : vector<2x1x256xf32>, i32 -> vector<2x1x256xf32>
    %cst_258 = arith.constant 0.000000e+00 : f32
    %948 = vector.shape_cast %938 : vector<1x1x256xi1> to vector<1x1x256xi1>
    %949 = vector.broadcast %948 : vector<1x1x256xi1> to vector<2x1x256xi1>
    %950 = vector.broadcast %cst_258 : f32 to vector<2x1x256xf32>
    %951 = arith.select %949, %947, %950 : vector<2x1x256xi1>, vector<2x1x256xf32>
    %952 = vector.broadcast %89 : f32 to vector<2x1x256xf32>
    %953 = arith.mulf %951, %952 : vector<2x1x256xf32>
    %954 = arith.addf %946, %953 : vector<2x1x256xf32>
    %c3_i32_259 = arith.constant 3 : i32
    %955 = vector.broadcast %c3_i32_259 : i32 to vector<1x1x256xi32>
    %956 = arith.addi %122, %955 : vector<1x1x256xi32>
    %c0_i32_260 = arith.constant 0 : i32
    %957 = vector.broadcast %c0_i32_260 : i32 to vector<1x1x256xi32>
    %958 = arith.cmpi sge, %956, %957 : vector<1x1x256xi32>
    %c3_i32_261 = arith.constant 3 : i32
    %959 = vector.broadcast %c3_i32_261 : i32 to vector<1x1x256xi32>
    %960 = arith.addi %122, %959 : vector<1x1x256xi32>
    %c16_i32_262 = arith.constant 16 : i32
    %961 = vector.broadcast %c16_i32_262 : i32 to vector<1x1x256xi32>
    %962 = arith.cmpi slt, %960, %961 : vector<1x1x256xi32>
    %963 = arith.andi %958, %962 : vector<1x1x256xi1>
    %c253_i32_263 = arith.constant 253 : i32
    %964 = tpu.dynamic_rotate %818 by %c253_i32_263 dim 2 : vector<2x1x256xf32>, i32 -> vector<2x1x256xf32>
    %cst_264 = arith.constant 0.000000e+00 : f32
    %965 = vector.shape_cast %963 : vector<1x1x256xi1> to vector<1x1x256xi1>
    %966 = vector.broadcast %965 : vector<1x1x256xi1> to vector<2x1x256xi1>
    %967 = vector.broadcast %cst_264 : f32 to vector<2x1x256xf32>
    %968 = arith.select %966, %964, %967 : vector<2x1x256xi1>, vector<2x1x256xf32>
    %969 = vector.broadcast %41 : f32 to vector<2x1x256xf32>
    %970 = arith.mulf %968, %969 : vector<2x1x256xf32>
    %971 = arith.addf %954, %970 : vector<2x1x256xf32>
    %c253_i32_265 = arith.constant 253 : i32
    %972 = tpu.dynamic_rotate %823 by %c253_i32_265 dim 2 : vector<2x1x256xf32>, i32 -> vector<2x1x256xf32>
    %cst_266 = arith.constant 0.000000e+00 : f32
    %973 = vector.shape_cast %963 : vector<1x1x256xi1> to vector<1x1x256xi1>
    %974 = vector.broadcast %973 : vector<1x1x256xi1> to vector<2x1x256xi1>
    %975 = vector.broadcast %cst_266 : f32 to vector<2x1x256xf32>
    %976 = arith.select %974, %972, %975 : vector<2x1x256xi1>, vector<2x1x256xf32>
    %977 = vector.broadcast %90 : f32 to vector<2x1x256xf32>
    %978 = arith.mulf %976, %977 : vector<2x1x256xf32>
    %979 = arith.addf %971, %978 : vector<2x1x256xf32>
    %c32_i32_267 = arith.constant 32 : i32
    %980 = vector.broadcast %c32_i32_267 : i32 to vector<1x1x256xi32>
    %981 = arith.addi %106, %980 : vector<1x1x256xi32>
    %c0_i32_268 = arith.constant 0 : i32
    %982 = vector.broadcast %c0_i32_268 : i32 to vector<1x1x256xi32>
    %983 = arith.cmpi sge, %981, %982 : vector<1x1x256xi32>
    %c32_i32_269 = arith.constant 32 : i32
    %984 = vector.broadcast %c32_i32_269 : i32 to vector<1x1x256xi32>
    %985 = arith.addi %106, %984 : vector<1x1x256xi32>
    %c256_i32_270 = arith.constant 256 : i32
    %986 = vector.broadcast %c256_i32_270 : i32 to vector<1x1x256xi32>
    %987 = arith.cmpi slt, %985, %986 : vector<1x1x256xi32>
    %988 = arith.andi %983, %987 : vector<1x1x256xi1>
    %c224_i32 = arith.constant 224 : i32
    %989 = tpu.dynamic_rotate %6 by %c224_i32 dim 2 : vector<2x1x256xf32>, i32 -> vector<2x1x256xf32>
    %cst_271 = arith.constant 0.000000e+00 : f32
    %990 = vector.shape_cast %988 : vector<1x1x256xi1> to vector<1x1x256xi1>
    %991 = vector.broadcast %990 : vector<1x1x256xi1> to vector<2x1x256xi1>
    %992 = vector.broadcast %cst_271 : f32 to vector<2x1x256xf32>
    %993 = arith.select %991, %989, %992 : vector<2x1x256xi1>, vector<2x1x256xf32>
    %c224_i32_272 = arith.constant 224 : i32
    %994 = tpu.dynamic_rotate %4 by %c224_i32_272 dim 2 : vector<2x1x256xf32>, i32 -> vector<2x1x256xf32>
    %cst_273 = arith.constant 0.000000e+00 : f32
    %995 = vector.shape_cast %988 : vector<1x1x256xi1> to vector<1x1x256xi1>
    %996 = vector.broadcast %995 : vector<1x1x256xi1> to vector<2x1x256xi1>
    %997 = vector.broadcast %cst_273 : f32 to vector<2x1x256xf32>
    %998 = arith.select %996, %994, %997 : vector<2x1x256xi1>, vector<2x1x256xf32>
    %c-3_i32_274 = arith.constant -3 : i32
    %999 = vector.broadcast %c-3_i32_274 : i32 to vector<1x1x256xi32>
    %1000 = arith.addi %122, %999 : vector<1x1x256xi32>
    %c0_i32_275 = arith.constant 0 : i32
    %1001 = vector.broadcast %c0_i32_275 : i32 to vector<1x1x256xi32>
    %1002 = arith.cmpi sge, %1000, %1001 : vector<1x1x256xi32>
    %c-3_i32_276 = arith.constant -3 : i32
    %1003 = vector.broadcast %c-3_i32_276 : i32 to vector<1x1x256xi32>
    %1004 = arith.addi %122, %1003 : vector<1x1x256xi32>
    %c16_i32_277 = arith.constant 16 : i32
    %1005 = vector.broadcast %c16_i32_277 : i32 to vector<1x1x256xi32>
    %1006 = arith.cmpi slt, %1004, %1005 : vector<1x1x256xi32>
    %1007 = arith.andi %1002, %1006 : vector<1x1x256xi1>
    %c3_i32_278 = arith.constant 3 : i32
    %1008 = tpu.dynamic_rotate %993 by %c3_i32_278 dim 2 : vector<2x1x256xf32>, i32 -> vector<2x1x256xf32>
    %cst_279 = arith.constant 0.000000e+00 : f32
    %1009 = vector.shape_cast %1007 : vector<1x1x256xi1> to vector<1x1x256xi1>
    %1010 = vector.broadcast %1009 : vector<1x1x256xi1> to vector<2x1x256xi1>
    %1011 = vector.broadcast %cst_279 : f32 to vector<2x1x256xf32>
    %1012 = arith.select %1010, %1008, %1011 : vector<2x1x256xi1>, vector<2x1x256xf32>
    %1013 = vector.broadcast %42 : f32 to vector<2x1x256xf32>
    %1014 = arith.mulf %1012, %1013 : vector<2x1x256xf32>
    %1015 = arith.addf %979, %1014 : vector<2x1x256xf32>
    %c3_i32_280 = arith.constant 3 : i32
    %1016 = tpu.dynamic_rotate %998 by %c3_i32_280 dim 2 : vector<2x1x256xf32>, i32 -> vector<2x1x256xf32>
    %cst_281 = arith.constant 0.000000e+00 : f32
    %1017 = vector.shape_cast %1007 : vector<1x1x256xi1> to vector<1x1x256xi1>
    %1018 = vector.broadcast %1017 : vector<1x1x256xi1> to vector<2x1x256xi1>
    %1019 = vector.broadcast %cst_281 : f32 to vector<2x1x256xf32>
    %1020 = arith.select %1018, %1016, %1019 : vector<2x1x256xi1>, vector<2x1x256xf32>
    %1021 = vector.broadcast %91 : f32 to vector<2x1x256xf32>
    %1022 = arith.mulf %1020, %1021 : vector<2x1x256xf32>
    %1023 = arith.addf %1015, %1022 : vector<2x1x256xf32>
    %c-2_i32_282 = arith.constant -2 : i32
    %1024 = vector.broadcast %c-2_i32_282 : i32 to vector<1x1x256xi32>
    %1025 = arith.addi %122, %1024 : vector<1x1x256xi32>
    %c0_i32_283 = arith.constant 0 : i32
    %1026 = vector.broadcast %c0_i32_283 : i32 to vector<1x1x256xi32>
    %1027 = arith.cmpi sge, %1025, %1026 : vector<1x1x256xi32>
    %c-2_i32_284 = arith.constant -2 : i32
    %1028 = vector.broadcast %c-2_i32_284 : i32 to vector<1x1x256xi32>
    %1029 = arith.addi %122, %1028 : vector<1x1x256xi32>
    %c16_i32_285 = arith.constant 16 : i32
    %1030 = vector.broadcast %c16_i32_285 : i32 to vector<1x1x256xi32>
    %1031 = arith.cmpi slt, %1029, %1030 : vector<1x1x256xi32>
    %1032 = arith.andi %1027, %1031 : vector<1x1x256xi1>
    %c2_i32_286 = arith.constant 2 : i32
    %1033 = tpu.dynamic_rotate %993 by %c2_i32_286 dim 2 : vector<2x1x256xf32>, i32 -> vector<2x1x256xf32>
    %cst_287 = arith.constant 0.000000e+00 : f32
    %1034 = vector.shape_cast %1032 : vector<1x1x256xi1> to vector<1x1x256xi1>
    %1035 = vector.broadcast %1034 : vector<1x1x256xi1> to vector<2x1x256xi1>
    %1036 = vector.broadcast %cst_287 : f32 to vector<2x1x256xf32>
    %1037 = arith.select %1035, %1033, %1036 : vector<2x1x256xi1>, vector<2x1x256xf32>
    %1038 = vector.broadcast %43 : f32 to vector<2x1x256xf32>
    %1039 = arith.mulf %1037, %1038 : vector<2x1x256xf32>
    %1040 = arith.addf %1023, %1039 : vector<2x1x256xf32>
    %c2_i32_288 = arith.constant 2 : i32
    %1041 = tpu.dynamic_rotate %998 by %c2_i32_288 dim 2 : vector<2x1x256xf32>, i32 -> vector<2x1x256xf32>
    %cst_289 = arith.constant 0.000000e+00 : f32
    %1042 = vector.shape_cast %1032 : vector<1x1x256xi1> to vector<1x1x256xi1>
    %1043 = vector.broadcast %1042 : vector<1x1x256xi1> to vector<2x1x256xi1>
    %1044 = vector.broadcast %cst_289 : f32 to vector<2x1x256xf32>
    %1045 = arith.select %1043, %1041, %1044 : vector<2x1x256xi1>, vector<2x1x256xf32>
    %1046 = vector.broadcast %92 : f32 to vector<2x1x256xf32>
    %1047 = arith.mulf %1045, %1046 : vector<2x1x256xf32>
    %1048 = arith.addf %1040, %1047 : vector<2x1x256xf32>
    %c-1_i32_290 = arith.constant -1 : i32
    %1049 = vector.broadcast %c-1_i32_290 : i32 to vector<1x1x256xi32>
    %1050 = arith.addi %122, %1049 : vector<1x1x256xi32>
    %c0_i32_291 = arith.constant 0 : i32
    %1051 = vector.broadcast %c0_i32_291 : i32 to vector<1x1x256xi32>
    %1052 = arith.cmpi sge, %1050, %1051 : vector<1x1x256xi32>
    %c-1_i32_292 = arith.constant -1 : i32
    %1053 = vector.broadcast %c-1_i32_292 : i32 to vector<1x1x256xi32>
    %1054 = arith.addi %122, %1053 : vector<1x1x256xi32>
    %c16_i32_293 = arith.constant 16 : i32
    %1055 = vector.broadcast %c16_i32_293 : i32 to vector<1x1x256xi32>
    %1056 = arith.cmpi slt, %1054, %1055 : vector<1x1x256xi32>
    %1057 = arith.andi %1052, %1056 : vector<1x1x256xi1>
    %c1_i32_294 = arith.constant 1 : i32
    %1058 = tpu.dynamic_rotate %993 by %c1_i32_294 dim 2 : vector<2x1x256xf32>, i32 -> vector<2x1x256xf32>
    %cst_295 = arith.constant 0.000000e+00 : f32
    %1059 = vector.shape_cast %1057 : vector<1x1x256xi1> to vector<1x1x256xi1>
    %1060 = vector.broadcast %1059 : vector<1x1x256xi1> to vector<2x1x256xi1>
    %1061 = vector.broadcast %cst_295 : f32 to vector<2x1x256xf32>
    %1062 = arith.select %1060, %1058, %1061 : vector<2x1x256xi1>, vector<2x1x256xf32>
    %1063 = vector.broadcast %44 : f32 to vector<2x1x256xf32>
    %1064 = arith.mulf %1062, %1063 : vector<2x1x256xf32>
    %1065 = arith.addf %1048, %1064 : vector<2x1x256xf32>
    %c1_i32_296 = arith.constant 1 : i32
    %1066 = tpu.dynamic_rotate %998 by %c1_i32_296 dim 2 : vector<2x1x256xf32>, i32 -> vector<2x1x256xf32>
    %cst_297 = arith.constant 0.000000e+00 : f32
    %1067 = vector.shape_cast %1057 : vector<1x1x256xi1> to vector<1x1x256xi1>
    %1068 = vector.broadcast %1067 : vector<1x1x256xi1> to vector<2x1x256xi1>
    %1069 = vector.broadcast %cst_297 : f32 to vector<2x1x256xf32>
    %1070 = arith.select %1068, %1066, %1069 : vector<2x1x256xi1>, vector<2x1x256xf32>
    %1071 = vector.broadcast %93 : f32 to vector<2x1x256xf32>
    %1072 = arith.mulf %1070, %1071 : vector<2x1x256xf32>
    %1073 = arith.addf %1065, %1072 : vector<2x1x256xf32>
    %1074 = vector.broadcast %45 : f32 to vector<2x1x256xf32>
    %1075 = arith.mulf %993, %1074 : vector<2x1x256xf32>
    %1076 = arith.addf %1073, %1075 : vector<2x1x256xf32>
    %1077 = vector.broadcast %94 : f32 to vector<2x1x256xf32>
    %1078 = arith.mulf %998, %1077 : vector<2x1x256xf32>
    %1079 = arith.addf %1076, %1078 : vector<2x1x256xf32>
    %c1_i32_298 = arith.constant 1 : i32
    %1080 = vector.broadcast %c1_i32_298 : i32 to vector<1x1x256xi32>
    %1081 = arith.addi %122, %1080 : vector<1x1x256xi32>
    %c0_i32_299 = arith.constant 0 : i32
    %1082 = vector.broadcast %c0_i32_299 : i32 to vector<1x1x256xi32>
    %1083 = arith.cmpi sge, %1081, %1082 : vector<1x1x256xi32>
    %c1_i32_300 = arith.constant 1 : i32
    %1084 = vector.broadcast %c1_i32_300 : i32 to vector<1x1x256xi32>
    %1085 = arith.addi %122, %1084 : vector<1x1x256xi32>
    %c16_i32_301 = arith.constant 16 : i32
    %1086 = vector.broadcast %c16_i32_301 : i32 to vector<1x1x256xi32>
    %1087 = arith.cmpi slt, %1085, %1086 : vector<1x1x256xi32>
    %1088 = arith.andi %1083, %1087 : vector<1x1x256xi1>
    %c255_i32_302 = arith.constant 255 : i32
    %1089 = tpu.dynamic_rotate %993 by %c255_i32_302 dim 2 : vector<2x1x256xf32>, i32 -> vector<2x1x256xf32>
    %cst_303 = arith.constant 0.000000e+00 : f32
    %1090 = vector.shape_cast %1088 : vector<1x1x256xi1> to vector<1x1x256xi1>
    %1091 = vector.broadcast %1090 : vector<1x1x256xi1> to vector<2x1x256xi1>
    %1092 = vector.broadcast %cst_303 : f32 to vector<2x1x256xf32>
    %1093 = arith.select %1091, %1089, %1092 : vector<2x1x256xi1>, vector<2x1x256xf32>
    %1094 = vector.broadcast %46 : f32 to vector<2x1x256xf32>
    %1095 = arith.mulf %1093, %1094 : vector<2x1x256xf32>
    %1096 = arith.addf %1079, %1095 : vector<2x1x256xf32>
    %c255_i32_304 = arith.constant 255 : i32
    %1097 = tpu.dynamic_rotate %998 by %c255_i32_304 dim 2 : vector<2x1x256xf32>, i32 -> vector<2x1x256xf32>
    %cst_305 = arith.constant 0.000000e+00 : f32
    %1098 = vector.shape_cast %1088 : vector<1x1x256xi1> to vector<1x1x256xi1>
    %1099 = vector.broadcast %1098 : vector<1x1x256xi1> to vector<2x1x256xi1>
    %1100 = vector.broadcast %cst_305 : f32 to vector<2x1x256xf32>
    %1101 = arith.select %1099, %1097, %1100 : vector<2x1x256xi1>, vector<2x1x256xf32>
    %1102 = vector.broadcast %95 : f32 to vector<2x1x256xf32>
    %1103 = arith.mulf %1101, %1102 : vector<2x1x256xf32>
    %1104 = arith.addf %1096, %1103 : vector<2x1x256xf32>
    %c2_i32_306 = arith.constant 2 : i32
    %1105 = vector.broadcast %c2_i32_306 : i32 to vector<1x1x256xi32>
    %1106 = arith.addi %122, %1105 : vector<1x1x256xi32>
    %c0_i32_307 = arith.constant 0 : i32
    %1107 = vector.broadcast %c0_i32_307 : i32 to vector<1x1x256xi32>
    %1108 = arith.cmpi sge, %1106, %1107 : vector<1x1x256xi32>
    %c2_i32_308 = arith.constant 2 : i32
    %1109 = vector.broadcast %c2_i32_308 : i32 to vector<1x1x256xi32>
    %1110 = arith.addi %122, %1109 : vector<1x1x256xi32>
    %c16_i32_309 = arith.constant 16 : i32
    %1111 = vector.broadcast %c16_i32_309 : i32 to vector<1x1x256xi32>
    %1112 = arith.cmpi slt, %1110, %1111 : vector<1x1x256xi32>
    %1113 = arith.andi %1108, %1112 : vector<1x1x256xi1>
    %c254_i32_310 = arith.constant 254 : i32
    %1114 = tpu.dynamic_rotate %993 by %c254_i32_310 dim 2 : vector<2x1x256xf32>, i32 -> vector<2x1x256xf32>
    %cst_311 = arith.constant 0.000000e+00 : f32
    %1115 = vector.shape_cast %1113 : vector<1x1x256xi1> to vector<1x1x256xi1>
    %1116 = vector.broadcast %1115 : vector<1x1x256xi1> to vector<2x1x256xi1>
    %1117 = vector.broadcast %cst_311 : f32 to vector<2x1x256xf32>
    %1118 = arith.select %1116, %1114, %1117 : vector<2x1x256xi1>, vector<2x1x256xf32>
    %1119 = vector.broadcast %47 : f32 to vector<2x1x256xf32>
    %1120 = arith.mulf %1118, %1119 : vector<2x1x256xf32>
    %1121 = arith.addf %1104, %1120 : vector<2x1x256xf32>
    %c254_i32_312 = arith.constant 254 : i32
    %1122 = tpu.dynamic_rotate %998 by %c254_i32_312 dim 2 : vector<2x1x256xf32>, i32 -> vector<2x1x256xf32>
    %cst_313 = arith.constant 0.000000e+00 : f32
    %1123 = vector.shape_cast %1113 : vector<1x1x256xi1> to vector<1x1x256xi1>
    %1124 = vector.broadcast %1123 : vector<1x1x256xi1> to vector<2x1x256xi1>
    %1125 = vector.broadcast %cst_313 : f32 to vector<2x1x256xf32>
    %1126 = arith.select %1124, %1122, %1125 : vector<2x1x256xi1>, vector<2x1x256xf32>
    %1127 = vector.broadcast %96 : f32 to vector<2x1x256xf32>
    %1128 = arith.mulf %1126, %1127 : vector<2x1x256xf32>
    %1129 = arith.addf %1121, %1128 : vector<2x1x256xf32>
    %c3_i32_314 = arith.constant 3 : i32
    %1130 = vector.broadcast %c3_i32_314 : i32 to vector<1x1x256xi32>
    %1131 = arith.addi %122, %1130 : vector<1x1x256xi32>
    %c0_i32_315 = arith.constant 0 : i32
    %1132 = vector.broadcast %c0_i32_315 : i32 to vector<1x1x256xi32>
    %1133 = arith.cmpi sge, %1131, %1132 : vector<1x1x256xi32>
    %c3_i32_316 = arith.constant 3 : i32
    %1134 = vector.broadcast %c3_i32_316 : i32 to vector<1x1x256xi32>
    %1135 = arith.addi %122, %1134 : vector<1x1x256xi32>
    %c16_i32_317 = arith.constant 16 : i32
    %1136 = vector.broadcast %c16_i32_317 : i32 to vector<1x1x256xi32>
    %1137 = arith.cmpi slt, %1135, %1136 : vector<1x1x256xi32>
    %1138 = arith.andi %1133, %1137 : vector<1x1x256xi1>
    %c253_i32_318 = arith.constant 253 : i32
    %1139 = tpu.dynamic_rotate %993 by %c253_i32_318 dim 2 : vector<2x1x256xf32>, i32 -> vector<2x1x256xf32>
    %cst_319 = arith.constant 0.000000e+00 : f32
    %1140 = vector.shape_cast %1138 : vector<1x1x256xi1> to vector<1x1x256xi1>
    %1141 = vector.broadcast %1140 : vector<1x1x256xi1> to vector<2x1x256xi1>
    %1142 = vector.broadcast %cst_319 : f32 to vector<2x1x256xf32>
    %1143 = arith.select %1141, %1139, %1142 : vector<2x1x256xi1>, vector<2x1x256xf32>
    %1144 = vector.broadcast %48 : f32 to vector<2x1x256xf32>
    %1145 = arith.mulf %1143, %1144 : vector<2x1x256xf32>
    %1146 = arith.addf %1129, %1145 : vector<2x1x256xf32>
    %c253_i32_320 = arith.constant 253 : i32
    %1147 = tpu.dynamic_rotate %998 by %c253_i32_320 dim 2 : vector<2x1x256xf32>, i32 -> vector<2x1x256xf32>
    %cst_321 = arith.constant 0.000000e+00 : f32
    %1148 = vector.shape_cast %1138 : vector<1x1x256xi1> to vector<1x1x256xi1>
    %1149 = vector.broadcast %1148 : vector<1x1x256xi1> to vector<2x1x256xi1>
    %1150 = vector.broadcast %cst_321 : f32 to vector<2x1x256xf32>
    %1151 = arith.select %1149, %1147, %1150 : vector<2x1x256xi1>, vector<2x1x256xf32>
    %1152 = vector.broadcast %97 : f32 to vector<2x1x256xf32>
    %1153 = arith.mulf %1151, %1152 : vector<2x1x256xf32>
    %1154 = arith.addf %1146, %1153 : vector<2x1x256xf32>
    %c48_i32_322 = arith.constant 48 : i32
    %1155 = vector.broadcast %c48_i32_322 : i32 to vector<1x1x256xi32>
    %1156 = arith.addi %106, %1155 : vector<1x1x256xi32>
    %c0_i32_323 = arith.constant 0 : i32
    %1157 = vector.broadcast %c0_i32_323 : i32 to vector<1x1x256xi32>
    %1158 = arith.cmpi sge, %1156, %1157 : vector<1x1x256xi32>
    %c48_i32_324 = arith.constant 48 : i32
    %1159 = vector.broadcast %c48_i32_324 : i32 to vector<1x1x256xi32>
    %1160 = arith.addi %106, %1159 : vector<1x1x256xi32>
    %c256_i32_325 = arith.constant 256 : i32
    %1161 = vector.broadcast %c256_i32_325 : i32 to vector<1x1x256xi32>
    %1162 = arith.cmpi slt, %1160, %1161 : vector<1x1x256xi32>
    %1163 = arith.andi %1158, %1162 : vector<1x1x256xi1>
    %c208_i32 = arith.constant 208 : i32
    %1164 = tpu.dynamic_rotate %6 by %c208_i32 dim 2 : vector<2x1x256xf32>, i32 -> vector<2x1x256xf32>
    %cst_326 = arith.constant 0.000000e+00 : f32
    %1165 = vector.shape_cast %1163 : vector<1x1x256xi1> to vector<1x1x256xi1>
    %1166 = vector.broadcast %1165 : vector<1x1x256xi1> to vector<2x1x256xi1>
    %1167 = vector.broadcast %cst_326 : f32 to vector<2x1x256xf32>
    %1168 = arith.select %1166, %1164, %1167 : vector<2x1x256xi1>, vector<2x1x256xf32>
    %c208_i32_327 = arith.constant 208 : i32
    %1169 = tpu.dynamic_rotate %4 by %c208_i32_327 dim 2 : vector<2x1x256xf32>, i32 -> vector<2x1x256xf32>
    %cst_328 = arith.constant 0.000000e+00 : f32
    %1170 = vector.shape_cast %1163 : vector<1x1x256xi1> to vector<1x1x256xi1>
    %1171 = vector.broadcast %1170 : vector<1x1x256xi1> to vector<2x1x256xi1>
    %1172 = vector.broadcast %cst_328 : f32 to vector<2x1x256xf32>
    %1173 = arith.select %1171, %1169, %1172 : vector<2x1x256xi1>, vector<2x1x256xf32>
    %c-3_i32_329 = arith.constant -3 : i32
    %1174 = vector.broadcast %c-3_i32_329 : i32 to vector<1x1x256xi32>
    %1175 = arith.addi %122, %1174 : vector<1x1x256xi32>
    %c0_i32_330 = arith.constant 0 : i32
    %1176 = vector.broadcast %c0_i32_330 : i32 to vector<1x1x256xi32>
    %1177 = arith.cmpi sge, %1175, %1176 : vector<1x1x256xi32>
    %c-3_i32_331 = arith.constant -3 : i32
    %1178 = vector.broadcast %c-3_i32_331 : i32 to vector<1x1x256xi32>
    %1179 = arith.addi %122, %1178 : vector<1x1x256xi32>
    %c16_i32_332 = arith.constant 16 : i32
    %1180 = vector.broadcast %c16_i32_332 : i32 to vector<1x1x256xi32>
    %1181 = arith.cmpi slt, %1179, %1180 : vector<1x1x256xi32>
    %1182 = arith.andi %1177, %1181 : vector<1x1x256xi1>
    %c3_i32_333 = arith.constant 3 : i32
    %1183 = tpu.dynamic_rotate %1168 by %c3_i32_333 dim 2 : vector<2x1x256xf32>, i32 -> vector<2x1x256xf32>
    %cst_334 = arith.constant 0.000000e+00 : f32
    %1184 = vector.shape_cast %1182 : vector<1x1x256xi1> to vector<1x1x256xi1>
    %1185 = vector.broadcast %1184 : vector<1x1x256xi1> to vector<2x1x256xi1>
    %1186 = vector.broadcast %cst_334 : f32 to vector<2x1x256xf32>
    %1187 = arith.select %1185, %1183, %1186 : vector<2x1x256xi1>, vector<2x1x256xf32>
    %1188 = vector.broadcast %49 : f32 to vector<2x1x256xf32>
    %1189 = arith.mulf %1187, %1188 : vector<2x1x256xf32>
    %1190 = arith.addf %1154, %1189 : vector<2x1x256xf32>
    %c3_i32_335 = arith.constant 3 : i32
    %1191 = tpu.dynamic_rotate %1173 by %c3_i32_335 dim 2 : vector<2x1x256xf32>, i32 -> vector<2x1x256xf32>
    %cst_336 = arith.constant 0.000000e+00 : f32
    %1192 = vector.shape_cast %1182 : vector<1x1x256xi1> to vector<1x1x256xi1>
    %1193 = vector.broadcast %1192 : vector<1x1x256xi1> to vector<2x1x256xi1>
    %1194 = vector.broadcast %cst_336 : f32 to vector<2x1x256xf32>
    %1195 = arith.select %1193, %1191, %1194 : vector<2x1x256xi1>, vector<2x1x256xf32>
    %1196 = vector.broadcast %98 : f32 to vector<2x1x256xf32>
    %1197 = arith.mulf %1195, %1196 : vector<2x1x256xf32>
    %1198 = arith.addf %1190, %1197 : vector<2x1x256xf32>
    %c-2_i32_337 = arith.constant -2 : i32
    %1199 = vector.broadcast %c-2_i32_337 : i32 to vector<1x1x256xi32>
    %1200 = arith.addi %122, %1199 : vector<1x1x256xi32>
    %c0_i32_338 = arith.constant 0 : i32
    %1201 = vector.broadcast %c0_i32_338 : i32 to vector<1x1x256xi32>
    %1202 = arith.cmpi sge, %1200, %1201 : vector<1x1x256xi32>
    %c-2_i32_339 = arith.constant -2 : i32
    %1203 = vector.broadcast %c-2_i32_339 : i32 to vector<1x1x256xi32>
    %1204 = arith.addi %122, %1203 : vector<1x1x256xi32>
    %c16_i32_340 = arith.constant 16 : i32
    %1205 = vector.broadcast %c16_i32_340 : i32 to vector<1x1x256xi32>
    %1206 = arith.cmpi slt, %1204, %1205 : vector<1x1x256xi32>
    %1207 = arith.andi %1202, %1206 : vector<1x1x256xi1>
    %c2_i32_341 = arith.constant 2 : i32
    %1208 = tpu.dynamic_rotate %1168 by %c2_i32_341 dim 2 : vector<2x1x256xf32>, i32 -> vector<2x1x256xf32>
    %cst_342 = arith.constant 0.000000e+00 : f32
    %1209 = vector.shape_cast %1207 : vector<1x1x256xi1> to vector<1x1x256xi1>
    %1210 = vector.broadcast %1209 : vector<1x1x256xi1> to vector<2x1x256xi1>
    %1211 = vector.broadcast %cst_342 : f32 to vector<2x1x256xf32>
    %1212 = arith.select %1210, %1208, %1211 : vector<2x1x256xi1>, vector<2x1x256xf32>
    %1213 = vector.broadcast %50 : f32 to vector<2x1x256xf32>
    %1214 = arith.mulf %1212, %1213 : vector<2x1x256xf32>
    %1215 = arith.addf %1198, %1214 : vector<2x1x256xf32>
    %c2_i32_343 = arith.constant 2 : i32
    %1216 = tpu.dynamic_rotate %1173 by %c2_i32_343 dim 2 : vector<2x1x256xf32>, i32 -> vector<2x1x256xf32>
    %cst_344 = arith.constant 0.000000e+00 : f32
    %1217 = vector.shape_cast %1207 : vector<1x1x256xi1> to vector<1x1x256xi1>
    %1218 = vector.broadcast %1217 : vector<1x1x256xi1> to vector<2x1x256xi1>
    %1219 = vector.broadcast %cst_344 : f32 to vector<2x1x256xf32>
    %1220 = arith.select %1218, %1216, %1219 : vector<2x1x256xi1>, vector<2x1x256xf32>
    %1221 = vector.broadcast %99 : f32 to vector<2x1x256xf32>
    %1222 = arith.mulf %1220, %1221 : vector<2x1x256xf32>
    %1223 = arith.addf %1215, %1222 : vector<2x1x256xf32>
    %c-1_i32_345 = arith.constant -1 : i32
    %1224 = vector.broadcast %c-1_i32_345 : i32 to vector<1x1x256xi32>
    %1225 = arith.addi %122, %1224 : vector<1x1x256xi32>
    %c0_i32_346 = arith.constant 0 : i32
    %1226 = vector.broadcast %c0_i32_346 : i32 to vector<1x1x256xi32>
    %1227 = arith.cmpi sge, %1225, %1226 : vector<1x1x256xi32>
    %c-1_i32_347 = arith.constant -1 : i32
    %1228 = vector.broadcast %c-1_i32_347 : i32 to vector<1x1x256xi32>
    %1229 = arith.addi %122, %1228 : vector<1x1x256xi32>
    %c16_i32_348 = arith.constant 16 : i32
    %1230 = vector.broadcast %c16_i32_348 : i32 to vector<1x1x256xi32>
    %1231 = arith.cmpi slt, %1229, %1230 : vector<1x1x256xi32>
    %1232 = arith.andi %1227, %1231 : vector<1x1x256xi1>
    %c1_i32_349 = arith.constant 1 : i32
    %1233 = tpu.dynamic_rotate %1168 by %c1_i32_349 dim 2 : vector<2x1x256xf32>, i32 -> vector<2x1x256xf32>
    %cst_350 = arith.constant 0.000000e+00 : f32
    %1234 = vector.shape_cast %1232 : vector<1x1x256xi1> to vector<1x1x256xi1>
    %1235 = vector.broadcast %1234 : vector<1x1x256xi1> to vector<2x1x256xi1>
    %1236 = vector.broadcast %cst_350 : f32 to vector<2x1x256xf32>
    %1237 = arith.select %1235, %1233, %1236 : vector<2x1x256xi1>, vector<2x1x256xf32>
    %1238 = vector.broadcast %51 : f32 to vector<2x1x256xf32>
    %1239 = arith.mulf %1237, %1238 : vector<2x1x256xf32>
    %1240 = arith.addf %1223, %1239 : vector<2x1x256xf32>
    %c1_i32_351 = arith.constant 1 : i32
    %1241 = tpu.dynamic_rotate %1173 by %c1_i32_351 dim 2 : vector<2x1x256xf32>, i32 -> vector<2x1x256xf32>
    %cst_352 = arith.constant 0.000000e+00 : f32
    %1242 = vector.shape_cast %1232 : vector<1x1x256xi1> to vector<1x1x256xi1>
    %1243 = vector.broadcast %1242 : vector<1x1x256xi1> to vector<2x1x256xi1>
    %1244 = vector.broadcast %cst_352 : f32 to vector<2x1x256xf32>
    %1245 = arith.select %1243, %1241, %1244 : vector<2x1x256xi1>, vector<2x1x256xf32>
    %1246 = vector.broadcast %100 : f32 to vector<2x1x256xf32>
    %1247 = arith.mulf %1245, %1246 : vector<2x1x256xf32>
    %1248 = arith.addf %1240, %1247 : vector<2x1x256xf32>
    %1249 = vector.broadcast %52 : f32 to vector<2x1x256xf32>
    %1250 = arith.mulf %1168, %1249 : vector<2x1x256xf32>
    %1251 = arith.addf %1248, %1250 : vector<2x1x256xf32>
    %1252 = vector.broadcast %101 : f32 to vector<2x1x256xf32>
    %1253 = arith.mulf %1173, %1252 : vector<2x1x256xf32>
    %1254 = arith.addf %1251, %1253 : vector<2x1x256xf32>
    %c1_i32_353 = arith.constant 1 : i32
    %1255 = vector.broadcast %c1_i32_353 : i32 to vector<1x1x256xi32>
    %1256 = arith.addi %122, %1255 : vector<1x1x256xi32>
    %c0_i32_354 = arith.constant 0 : i32
    %1257 = vector.broadcast %c0_i32_354 : i32 to vector<1x1x256xi32>
    %1258 = arith.cmpi sge, %1256, %1257 : vector<1x1x256xi32>
    %c1_i32_355 = arith.constant 1 : i32
    %1259 = vector.broadcast %c1_i32_355 : i32 to vector<1x1x256xi32>
    %1260 = arith.addi %122, %1259 : vector<1x1x256xi32>
    %c16_i32_356 = arith.constant 16 : i32
    %1261 = vector.broadcast %c16_i32_356 : i32 to vector<1x1x256xi32>
    %1262 = arith.cmpi slt, %1260, %1261 : vector<1x1x256xi32>
    %1263 = arith.andi %1258, %1262 : vector<1x1x256xi1>
    %c255_i32_357 = arith.constant 255 : i32
    %1264 = tpu.dynamic_rotate %1168 by %c255_i32_357 dim 2 : vector<2x1x256xf32>, i32 -> vector<2x1x256xf32>
    %cst_358 = arith.constant 0.000000e+00 : f32
    %1265 = vector.shape_cast %1263 : vector<1x1x256xi1> to vector<1x1x256xi1>
    %1266 = vector.broadcast %1265 : vector<1x1x256xi1> to vector<2x1x256xi1>
    %1267 = vector.broadcast %cst_358 : f32 to vector<2x1x256xf32>
    %1268 = arith.select %1266, %1264, %1267 : vector<2x1x256xi1>, vector<2x1x256xf32>
    %1269 = vector.broadcast %53 : f32 to vector<2x1x256xf32>
    %1270 = arith.mulf %1268, %1269 : vector<2x1x256xf32>
    %1271 = arith.addf %1254, %1270 : vector<2x1x256xf32>
    %c255_i32_359 = arith.constant 255 : i32
    %1272 = tpu.dynamic_rotate %1173 by %c255_i32_359 dim 2 : vector<2x1x256xf32>, i32 -> vector<2x1x256xf32>
    %cst_360 = arith.constant 0.000000e+00 : f32
    %1273 = vector.shape_cast %1263 : vector<1x1x256xi1> to vector<1x1x256xi1>
    %1274 = vector.broadcast %1273 : vector<1x1x256xi1> to vector<2x1x256xi1>
    %1275 = vector.broadcast %cst_360 : f32 to vector<2x1x256xf32>
    %1276 = arith.select %1274, %1272, %1275 : vector<2x1x256xi1>, vector<2x1x256xf32>
    %1277 = vector.broadcast %102 : f32 to vector<2x1x256xf32>
    %1278 = arith.mulf %1276, %1277 : vector<2x1x256xf32>
    %1279 = arith.addf %1271, %1278 : vector<2x1x256xf32>
    %c2_i32_361 = arith.constant 2 : i32
    %1280 = vector.broadcast %c2_i32_361 : i32 to vector<1x1x256xi32>
    %1281 = arith.addi %122, %1280 : vector<1x1x256xi32>
    %c0_i32_362 = arith.constant 0 : i32
    %1282 = vector.broadcast %c0_i32_362 : i32 to vector<1x1x256xi32>
    %1283 = arith.cmpi sge, %1281, %1282 : vector<1x1x256xi32>
    %c2_i32_363 = arith.constant 2 : i32
    %1284 = vector.broadcast %c2_i32_363 : i32 to vector<1x1x256xi32>
    %1285 = arith.addi %122, %1284 : vector<1x1x256xi32>
    %c16_i32_364 = arith.constant 16 : i32
    %1286 = vector.broadcast %c16_i32_364 : i32 to vector<1x1x256xi32>
    %1287 = arith.cmpi slt, %1285, %1286 : vector<1x1x256xi32>
    %1288 = arith.andi %1283, %1287 : vector<1x1x256xi1>
    %c254_i32_365 = arith.constant 254 : i32
    %1289 = tpu.dynamic_rotate %1168 by %c254_i32_365 dim 2 : vector<2x1x256xf32>, i32 -> vector<2x1x256xf32>
    %cst_366 = arith.constant 0.000000e+00 : f32
    %1290 = vector.shape_cast %1288 : vector<1x1x256xi1> to vector<1x1x256xi1>
    %1291 = vector.broadcast %1290 : vector<1x1x256xi1> to vector<2x1x256xi1>
    %1292 = vector.broadcast %cst_366 : f32 to vector<2x1x256xf32>
    %1293 = arith.select %1291, %1289, %1292 : vector<2x1x256xi1>, vector<2x1x256xf32>
    %1294 = vector.broadcast %54 : f32 to vector<2x1x256xf32>
    %1295 = arith.mulf %1293, %1294 : vector<2x1x256xf32>
    %1296 = arith.addf %1279, %1295 : vector<2x1x256xf32>
    %c254_i32_367 = arith.constant 254 : i32
    %1297 = tpu.dynamic_rotate %1173 by %c254_i32_367 dim 2 : vector<2x1x256xf32>, i32 -> vector<2x1x256xf32>
    %cst_368 = arith.constant 0.000000e+00 : f32
    %1298 = vector.shape_cast %1288 : vector<1x1x256xi1> to vector<1x1x256xi1>
    %1299 = vector.broadcast %1298 : vector<1x1x256xi1> to vector<2x1x256xi1>
    %1300 = vector.broadcast %cst_368 : f32 to vector<2x1x256xf32>
    %1301 = arith.select %1299, %1297, %1300 : vector<2x1x256xi1>, vector<2x1x256xf32>
    %1302 = vector.broadcast %103 : f32 to vector<2x1x256xf32>
    %1303 = arith.mulf %1301, %1302 : vector<2x1x256xf32>
    %1304 = arith.addf %1296, %1303 : vector<2x1x256xf32>
    %c3_i32_369 = arith.constant 3 : i32
    %1305 = vector.broadcast %c3_i32_369 : i32 to vector<1x1x256xi32>
    %1306 = arith.addi %122, %1305 : vector<1x1x256xi32>
    %c0_i32_370 = arith.constant 0 : i32
    %1307 = vector.broadcast %c0_i32_370 : i32 to vector<1x1x256xi32>
    %1308 = arith.cmpi sge, %1306, %1307 : vector<1x1x256xi32>
    %c3_i32_371 = arith.constant 3 : i32
    %1309 = vector.broadcast %c3_i32_371 : i32 to vector<1x1x256xi32>
    %1310 = arith.addi %122, %1309 : vector<1x1x256xi32>
    %c16_i32_372 = arith.constant 16 : i32
    %1311 = vector.broadcast %c16_i32_372 : i32 to vector<1x1x256xi32>
    %1312 = arith.cmpi slt, %1310, %1311 : vector<1x1x256xi32>
    %1313 = arith.andi %1308, %1312 : vector<1x1x256xi1>
    %c253_i32_373 = arith.constant 253 : i32
    %1314 = tpu.dynamic_rotate %1168 by %c253_i32_373 dim 2 : vector<2x1x256xf32>, i32 -> vector<2x1x256xf32>
    %cst_374 = arith.constant 0.000000e+00 : f32
    %1315 = vector.shape_cast %1313 : vector<1x1x256xi1> to vector<1x1x256xi1>
    %1316 = vector.broadcast %1315 : vector<1x1x256xi1> to vector<2x1x256xi1>
    %1317 = vector.broadcast %cst_374 : f32 to vector<2x1x256xf32>
    %1318 = arith.select %1316, %1314, %1317 : vector<2x1x256xi1>, vector<2x1x256xf32>
    %1319 = vector.broadcast %55 : f32 to vector<2x1x256xf32>
    %1320 = arith.mulf %1318, %1319 : vector<2x1x256xf32>
    %1321 = arith.addf %1304, %1320 : vector<2x1x256xf32>
    %c253_i32_375 = arith.constant 253 : i32
    %1322 = tpu.dynamic_rotate %1173 by %c253_i32_375 dim 2 : vector<2x1x256xf32>, i32 -> vector<2x1x256xf32>
    %cst_376 = arith.constant 0.000000e+00 : f32
    %1323 = vector.shape_cast %1313 : vector<1x1x256xi1> to vector<1x1x256xi1>
    %1324 = vector.broadcast %1323 : vector<1x1x256xi1> to vector<2x1x256xi1>
    %1325 = vector.broadcast %cst_376 : f32 to vector<2x1x256xf32>
    %1326 = arith.select %1324, %1322, %1325 : vector<2x1x256xi1>, vector<2x1x256xf32>
    %1327 = vector.broadcast %104 : f32 to vector<2x1x256xf32>
    %1328 = arith.mulf %1326, %1327 : vector<2x1x256xf32>
    %1329 = arith.addf %1321, %1328 : vector<2x1x256xf32>
    %1330 = vector.broadcast %105 : f32 to vector<2x1x256xf32>
    %1331 = arith.addf %1329, %1330 : vector<2x1x256xf32>
    %1332 = arith.negf %1331 : vector<2x1x256xf32>
    %1333 = math.exp %1332 : vector<2x1x256xf32>
    %cst_377 = arith.constant 1.000000e+00 : f32
    %1334 = vector.broadcast %cst_377 : f32 to vector<2x1x256xf32>
    %1335 = arith.addf %1334, %1333 : vector<2x1x256xf32>
    %1336 = arith.divf %1334, %1335 : vector<2x1x256xf32>
    %1337 = vector.shape_cast %1336 : vector<2x1x256xf32> to vector<2x1x256xf32>
    %1338 = vector.broadcast %1337 : vector<2x1x256xf32> to vector<2x4x256xf32>
    %c0_378 = arith.constant 0 : index
    %c0_379 = arith.constant 0 : index
    %c0_380 = arith.constant 0 : index
    %1339 = vector.load %arg1[%c0_378, %c0_379, %c0_380] : memref<2x4x256xf32, #tpu.memory_space<vmem>>, vector<2x4x256xf32>
    %1340 = arith.mulf %1339, %1338 : vector<2x4x256xf32>
    %c0_381 = arith.constant 0 : index
    %c0_382 = arith.constant 0 : index
    %c0_383 = arith.constant 0 : index
    %1341 = vector.load %arg4[%c0_381, %c0_382, %c0_383] : memref<2x4x256xf32, #tpu.memory_space<vmem>>, vector<2x4x256xf32>
    tpu.vector_store %arg4[%c0_381, %c0_382, %c0_383], %1340 {strides = array<i32>} : memref<2x4x256xf32, #tpu.memory_space<vmem>>, vector<2x4x256xf32>,
    return
  }
  func.func @transform_0(%arg0: i32) -> (i32, i32, i32) {
    %c0_i32 = arith.constant 0 : i32
    %c0_i32_0 = arith.constant 0 : i32
    %c0_i32_1 = arith.constant 0 : i32
    return %arg0, %c0_i32, %c0_i32_0 : i32, i32, i32
  }
  func.func @transform_1(%arg0: i32) -> i32 {
    %c0_i32 = arith.constant 0 : i32
    %c0_i32_0 = arith.constant 0 : i32
    return %c0_i32 : i32
  }
  func.func @transform_2(%arg0: i32) -> i32 {
    %c0_i32 = arith.constant 0 : i32
    %c0_i32_0 = arith.constant 0 : i32
    return %c0_i32 : i32
  }
  func.func @transform_3(%arg0: i32) -> (i32, i32, i32) {
    %c0_i32 = arith.constant 0 : i32
    %c0_i32_0 = arith.constant 0 : i32
    %c0_i32_1 = arith.constant 0 : i32
    return %arg0, %c0_i32, %c0_i32_0 : i32, i32, i32
  }
}

</mosaic_0001>

<bundles_post_ra>
// kernel: tpu_custom_call.1
= control target key start
LH: loop header
LB: loop body
LE: loop exit
PB: predicated region body
PF: predicated region fallthrough
CT: control target
= control target key end

     0   :  { %9 = vsyncpa [#allocation4], 0  ;;  %s6887_s0 = inlined_call_operand.hbm [shape: f32[2,4,256], index: 0, kind: input, shape index: {}]   ;;  %s6888_s1 = inlined_call_operand.vmem [shape: f32[98], index: 1, kind: input, shape index: {}]   ;;  %s6889_s2 = inlined_call_operand.<no memory space> [shape: f32[1], index: 2, kind: input, shape index: {}]   ;;  %s6890_s3 = inlined_call_operand.hbm [shape: f32[2,4,256], index: 3, kind: output, shape index: {}]  }
   0x1   :  { %10 = vsyncpa [#allocation6], 0 }
   0x2   :  { %11 = vsyncpa [#allocation5], 0  ;;  %s16_s14 = sshll.u32 %s6887_s0, 4  ;;  %s3151_s15 = smov [#allocation3]   ;;  %s17_s14 = int_to_ptr.hbm [resolvable:$true] %s16_s14 }
   0x3   :  { %s18_s16 = sshll.u32 %s3151_s15, 4  ;;  %s30_s19 = sshll.u32 %s6888_s1, 4  ;;  %s19_s16 = int_to_ptr.vmem [resolvable:$true] %s18_s16  ;;  %s31_s19 = int_to_ptr.vmem [resolvable:$true] %s30_s19 }
   0x4   :  { %s3152_s20 = smov 128   ;;  %s3153_s21 = smov 8  }
   0x5   :  { %24 = dma.hbm_to_vmem [thread:$0]  %s17_s14, 256, %s19_s16, [#allocation4], %s3152_s20, %s3152_s20, %s3153_s21  }
   0x6   :  { %s3154_s22 = smov [#allocation7]  }
   0x7   :  { %33 = dma.vmem_to_smem %s31_s19, 16, %s3154_s22, [#allocation6]  }
   0x8   :  { %3145 = dma.done.wait [#allocation4], 256  }
   0x9   :  { %3146 = vsyncadd [#allocation4], 4294967040 }
   0xa   :  { %3147 = dma.done.wait [#allocation6], 16  }
   0xb   :  { %3148 = vsyncadd [#allocation6], 4294967280 }
   0xc   :  { %44 = sfence }
   0xd   :  { %v3197_v0 = vld [vmem:[#allocation3] sm:$0xff]  ;;  %v3199_v1 = vld [vmem:[#allocation3 + $0x8] sm:$0xff]  ;;  %vm7062_vm0 = vcmask 1043456   ;;  %s3155_s0 = smov 48   ;;  %s3156_s1 = smov 32  }
   0xe   :  { %7100 = vst [vmem:[#allocation12_spill] sm:$0xff] %v3197_v0  ;;  %s3157_s23 = smov 2   ;;  %s3158_s24 = smov 3  }
   0xf   :  { %7101 = vst [vmem:[#allocation13_spill] sm:$0xff] %v3199_v1  ;;  %s3159_s25 = smov 1   ;;  %s3160_s26 = smov 126  }
  0x10   :  { %49 = vst [vmem:[#allocation1] ss:$2 sm:$0xff] %v3197_v0  ;;  %s3161_s27 = smov 127   ;;  %s3162_s28 = smov 125  }
  0x11   :  { %53 = vst [vmem:[#allocation1 + $0x10] ss:$2 sm:$0xff] %v3199_v1  ;;  %s3163_s29 = smov 16   ;;  %s3164_s30 = smov 112  }
  0x12   :  { %s2953_s4 = sld [smem:[#allocation7 + $0x3]] }
  0x13   :  { %s3002_s5 = sld [smem:[#allocation7 + $0x34]] }
  0x14   :  { %s132_s6 = sld [smem:[#allocation7]] }
  0x15   :  { %s2951_s7 = sld [smem:[#allocation7 + $0x1]] }
  0x16   :  { %s4113_s8 = sld [smem:[#allocation7 + $0x2]] }
  0x17   :  { %v51_v2 = vld.sshfl [vmem:[#allocation1 + $0x8] sm:$0xff pattern:$0x75316420]  ;;  %v50_v3 = vld.sshfl [vmem:[#allocation1] sm:$0xff pattern:$0x75316420] }
  0x18   :  { %v68_v4 = vsel %vm7062_vm0, %v51_v2, 0.0  ;;  %v61_v5 = vsel %vm7062_vm0, %v50_v3, 0.0  ;;  %89 = vst [vmem:[#allocation1] ss:$2 sm:$0xff] %v3197_v0  ;;  %s4121_s9 = sld [smem:[#allocation7 + $0x31]] }
  0x19   :  { %v69_v6 = vrot.slane %v68_v4, 4  ;;  %v62_v7 = vrot.slane %v61_v5, 4  ;;  %v55_v8 = vld.sshfl [vmem:[#allocation1 + $0x18] sm:$0xff pattern:$0x75316420]  ;;  %s4228_s10 = sld [smem:[#allocation7 + $0x32]] }
  0x1a   :  { %v82_v9 = vsel %vm7062_vm0, %v55_v8, 0.0  ;;  %v54_v10 = vld.sshfl [vmem:[#allocation1 + $0x10] sm:$0xff pattern:$0x75316420]  ;;  %v231_v8 = vlaneseq  ;;  %s4290_s11 = sld [smem:[#allocation7 + $0x33]] }
  0x1b   :  { %v70_v11 = vadd.f32 %v69_v6, %v68_v4  ;;  %v63_v12 = vadd.f32 %v62_v7, %v61_v5  ;;  %v83_v13 = vrot.slane %v82_v9, 4  ;;  %v75_v14 = vsel %vm7062_vm0, %v54_v10, 0.0  ;;  %93 = vst [vmem:[#allocation1 + $0x10] ss:$2 sm:$0xff] %v3199_v1  ;;  %s4322_s12 = sld [smem:[#allocation7 + $0x4]] }
  0x1c   :  { %v76_v15 = vrot.slane %v75_v14, 4  ;;  %s4339_s13 = sld [smem:[#allocation7 + $0x5]] }
  0x1d   :  { %v71_v16 = vrot.slane %v70_v11, 2  ;;  %v64_v17 = vrot.slane %v63_v12, 2  ;;  %v84_v18 = vadd.f32 %v83_v13, %v82_v9  ;;  %v3247_v9 = vand.u32 127, %v231_v8  ;;  %s4350_s14 = sld [smem:[#allocation7 + $0x6]] }
  0x1e   :  { %v77_v19 = vadd.f32 %v76_v15, %v75_v14  ;;  %s4380_s15 = sld [smem:[#allocation7 + $0x35]] }
  0x1f   :  { %v72_v20 = vadd.f32 %v71_v16, %v70_v11  ;;  %v65_v21 = vadd.f32 %v64_v17, %v63_v12  ;;  %v85_v22 = vrot.slane %v84_v18, 2  ;;  %v91_v23 = vld.sshfl [vmem:[#allocation1 + $0x8] sm:$0xff pattern:$0x75316420]  ;;  %vm274_vm1 = vcmp.lt.s32.totalorder %v3247_v9, 48  ;;  %s4466_s16 = sld [smem:[#allocation7 + $0x36]] }
  0x20   :  { %v78_v24 = vrot.slane %v77_v19, 2  ;;  %v107_v25 = vsel %vm7062_vm0, %v91_v23, -inf  ;;  %v90_v26 = vld.sshfl [vmem:[#allocation1] sm:$0xff pattern:$0x75316420]  ;;  %v258_v17 = vadd.s32 4294967248, %v3247_v9 }
  0x21   :  { %v73_v27 = vrot.slane %v72_v20, 1  ;;  %v66_v28 = vrot.slane %v65_v21, 1  ;;  %v86_v29 = vadd.f32 %v85_v22, %v84_v18  ;;  %v108_v30 = vrot.slane %v107_v25, 4  ;;  %s4517_s17 = sld [smem:[#allocation7 + $0x37]] }
  0x22   :  { %v79_v31 = vadd.f32 %v78_v24, %v77_v19  ;;  %v95_v32 = vld.sshfl [vmem:[#allocation1 + $0x18] sm:$0xff pattern:$0x75316420]  ;;  %v100_v33 = vsel %vm7062_vm0, %v90_v26, -inf  ;;  %vm260_vm2 = vcmp.ge.s32.totalorder %v258_v17, 0  ;;  %vm715_vm3 = vcmp.lt.s32.totalorder %v3247_v9, 32 }
  0x23   :  { %v74_v34 = vadd.f32 %v73_v27, %v72_v20  ;;  %v67_v35 = vadd.f32 %v66_v28, %v65_v21  ;;  %v87_v36 = vrot.slane %v86_v29, 1  ;;  %v109_v37 = vmax.f32 %v107_v25, %v108_v30  ;;  %v94_v38 = vld.sshfl [vmem:[#allocation1 + $0x10] sm:$0xff pattern:$0x75316420]  ;;  %s4536_s18 = sld [smem:[#allocation7 + $0x7]] }
  0x24   :  { %v80_v39 = vrot.slane %v79_v31, 1  ;;  %v121_v40 = vsel %vm7062_vm0, %v95_v32, -inf  ;;  %v101_v41 = vrot.slane %v100_v33, 4  ;;  %v114_v42 = vsel %vm7062_vm0, %v94_v38, -inf  ;;  %s4546_s19 = sld [smem:[#allocation7 + $0xa]] }
  0x25   :  { %v3213_v43 = vmul.f32 0.25, %v74_v34  ;;  %v3215_v44 = vmul.f32 0.25, %v67_v35  ;;  %v122_v45 = vrot.slane %v121_v40, 4  ;;  %v115_v47 = vrot.slane %v114_v42, 4  ;;  %s4569_s22 = sld [smem:[#allocation7 + $0x38]] }
  0x26   :  { %v102_v46 = vmax.f32 %v100_v33, %v101_v41  ;;  %v88_v48 = vadd.f32 %v87_v36, %v86_v29  ;;  %v81_v49 = vadd.f32 %v80_v39, %v79_v31  ;;  %v110_v50 = vrot.slane %v109_v37, 2 }
  0x27   :  { %7102 = vst [vmem:[#allocation14_spill] sm:$0xff] %v3213_v43  ;;  %270 = vrot.lane.b32.xlu1 %v3213_v43, %s3155_s0  ;;  %266 = vrot.lane.b32.xlu0 %v3215_v44, %s3155_s0  ;;  %v123_v51 = vmax.f32 %v121_v40, %v122_v45  ;;  %v116_v53 = vmax.f32 %v114_v42, %v115_v47  ;;  %vm1078_vm5 = vcmp.lt.s32.totalorder %v3247_v9, 16  ;;  %vm7099_vm8 = vcmp.lt.s32.totalorder %v3247_v9, 3 }
  0x28   :  { %7103 = vst [vmem:[#allocation15_spill] sm:$0xff] %v3215_v44  ;;  %707 = vrot.lane.b32.xlu2 %v3215_v44, %s3156_s1  ;;  %v103_v52 = vrot.slane %v102_v46, 2  ;;  %v3223_v57 = vmul.f32 0.25, %v88_v48  ;;  %v3225_v58 = vmul.f32 0.25, %v81_v49  ;;  %v111_v59 = vmax.f32 %v109_v37, %v110_v50 }
  0x29   :  { %v124_v54 = vrot.slane %v123_v51, 2  ;;  %v117_v56 = vrot.slane %v116_v53, 2  ;;  %vm382_vm11 = vcmp.lt.s32.totalorder %v3247_v9, 2  ;;  %vm7074_vm13 = vcmp.lt.s32.totalorder %v3247_v9, 1 }
  0x2a   :  { %v104_v55 = vmax.f32 %v102_v46, %v103_v52  ;;  %7104 = vst [vmem:[#allocation16_spill] sm:$0xff] %v3223_v57  ;;  %v112_v2 = vrot.slane %v111_v59, 1  ;;  %vm652_vm0 = vcmp.lt.s32.totalorder %v3247_v9, 125 }
  0x2b   :  { %7105 = vst [vmem:[#allocation17_spill] sm:$0xff] %v3225_v58  ;;  %v125_v60 = vmax.f32 %v123_v51, %v124_v54  ;;  %v118_v62 = vmax.f32 %v116_v53, %v117_v56 }
  0x2c   :  { %v105_v61 = vrot.slane %v104_v55, 1  ;;  %v3235_v5 = vmax.f32 %v111_v59, %v112_v2 }
  0x2d   :  { %v126_v3 = vrot.slane %v125_v60, 1  ;;  %v119_v4 = vrot.slane %v118_v62, 1 }
  0x2e   :  { %v3227_v63 = vmax.f32 %v104_v55, %v105_v61  ;;  %7107 = vst [vmem:[#allocation19_spill] sm:$0xff] %v3235_v5 }
  0x2f   :  { %272 = vrot.lane.b32.xlu1 %v3223_v57, %s3155_s0  ;;  %268 = vrot.lane.b32.xlu0 %v3225_v58, %s3155_s0  ;;  %v3237_v6 = vmax.f32 %v125_v60, %v126_v3  ;;  %v3239_v7 = vmax.f32 %v118_v62, %v119_v4 }
  0x30   :  { %7106 = vst [vmem:[#allocation18_spill] sm:$0xff] %v3227_v63  ;;  %287 = vrot.lane.b32.xlu2 %v3227_v63, %s3155_s0 }
  0x31   :  { %7108 = vst [vmem:[#allocation20_spill] sm:$0xff] %v3237_v6 }
  0x32   :  { %7109 = vst [vmem:[#allocation21_spill] sm:$0xff] %v3239_v7 }
  0x37   :  { %291 = vrot.lane.b32.xlu0 %v3235_v5, %s3155_s0  ;;  %293 = vrot.lane.b32.xlu1 %v3237_v6, %s3155_s0 }
  0x38   :  { %289 = vrot.lane.b32.xlu2 %v3239_v7, %s3155_s0  ;;  %s4588_s0 = sld [smem:[#allocation7 + $0x8]] }
  0x82   :  { %v3268_v16 = vpop.permute.xlu2 %707 }
  0x8a   :  { %v288_v18 = vpop.permute.xlu2 %287 }
  0x92   :  { %v290_v23 = vpop.permute.xlu2 %289 }
  0x99   :  { %v271_v10 = vpop.permute.xlu1 %270  ;;  %v267_v11 = vpop.permute.xlu0 %266 }
  0x9a   :  { %v3252_v12 = vsel %vm274_vm1, %v267_v11, %v271_v10  ;;  %v277_v26 = vsel %vm274_vm1, %v271_v10, %v267_v11 }
  0x9b   :  { %378 = vrot.lane.b32.xlu0 %v3252_v12, %s3157_s23  ;;  %315 = vrot.lane.b32.xlu1 %v3252_v12, %s3158_s24  ;;  %v3295_v28 = vsel %vm260_vm2, %v277_v26, 0.0 }
  0xa1   :  { %v273_v13 = vpop.permute.xlu1 %272  ;;  %v269_v14 = vpop.permute.xlu0 %268 }
  0xa2   :  { %v3260_v15 = vsel %vm274_vm1, %v269_v14, %v273_v13  ;;  %v278_v27 = vsel %vm274_vm1, %v273_v13, %v269_v14 }
  0xa3   :  { %443 = vrot.lane.b32.xlu0 %v3260_v15, %s3159_s25  ;;  %380 = vrot.lane.b32.xlu1 %v3260_v15, %s3157_s23  ;;  %v3297_v29 = vsel %vm260_vm2, %v278_v27, 0.0 }
  0xa4   :  { %317 = vrot.lane.b32.xlu2 %v3260_v15, %s3158_s24 }
  0xa9   :  { %v292_v19 = vpop.permute.xlu0 %291  ;;  %v294_v22 = vpop.permute.xlu1 %293 }
  0xaa   :  { %v297_v20 = vsel %vm274_vm1, %v292_v19, %v288_v18  ;;  %v298_v24 = vsel %vm274_vm1, %v294_v22, %v290_v23  ;;  %v3325_v30 = vsel %vm274_vm1, %v290_v23, %v294_v22  ;;  %v3329_v31 = vsel %vm274_vm1, %v288_v18, %v292_v19 }
  0xab   :  { %585 = vrot.lane.b32.xlu0 %v3252_v12, %s3160_s26  ;;  %522 = vrot.lane.b32.xlu1 %v3252_v12, %s3161_s27  ;;  %v3279_v21 = vsel %vm260_vm2, %v297_v20, 0.0  ;;  %v3289_v25 = vsel %vm260_vm2, %v298_v24, 0.0  ;;  %vm526_vm1 = vcmp.lt.s32.totalorder %v3247_v9, 127 }
  0xac   :  { %441 = vrot.lane.b32.xlu2 %v3252_v12, %s3159_s25 }
  0xb3   :  { %650 = vrot.lane.b32.xlu0 %v3260_v15, %s3162_s28  ;;  %587 = vrot.lane.b32.xlu1 %v3260_v15, %s3160_s26 }
  0xb4   :  { %524 = vrot.lane.b32.xlu2 %v3260_v15, %s3161_s27 }
  0xbb   :  { %313 = vrot.lane.b32.xlu0 %v3297_v29, %s3158_s24  ;;  %374 = vrot.lane.b32.xlu1 %v3295_v28, %s3157_s23 }
  0xbc   :  { %648 = vrot.lane.b32.xlu2 %v3252_v12, %s3162_s28 }
  0xc3   :  { %437 = vrot.lane.b32.xlu0 %v3295_v28, %s3159_s25  ;;  %439 = vrot.lane.b32.xlu1 %v3297_v29, %s3159_s25 }
  0xc4   :  { %311 = vrot.lane.b32.xlu2 %v3295_v28, %s3158_s24 }
  0xcb   :  { %520 = vrot.lane.b32.xlu0 %v3297_v29, %s3161_s27  ;;  %581 = vrot.lane.b32.xlu1 %v3295_v28, %s3160_s26 }
  0xcc   :  { %376 = vrot.lane.b32.xlu2 %v3297_v29, %s3157_s23 }
  0xd3   :  { %644 = vrot.lane.b32.xlu0 %v3295_v28, %s3162_s28  ;;  %646 = vrot.lane.b32.xlu1 %v3297_v29, %s3162_s28 }
  0xd4   :  { %518 = vrot.lane.b32.xlu2 %v3295_v28, %s3161_s27 }
  0xdb   :  { %347 = vrot.lane.b32.xlu0 %v3325_v30, %s3158_s24  ;;  %408 = vrot.lane.b32.xlu1 %v3329_v31, %s3157_s23 }
  0xdc   :  { %583 = vrot.lane.b32.xlu2 %v3297_v29, %s3160_s26 }
  0xe3   :  { %471 = vrot.lane.b32.xlu0 %v3329_v31, %s3159_s25  ;;  %473 = vrot.lane.b32.xlu1 %v3325_v30, %s3159_s25 }
  0xe4   :  { %345 = vrot.lane.b32.xlu2 %v3329_v31, %s3158_s24 }
  0xeb   :  { %554 = vrot.lane.b32.xlu0 %v3325_v30, %s3161_s27  ;;  %615 = vrot.lane.b32.xlu1 %v3329_v31, %s3160_s26 }
  0xec   :  { %410 = vrot.lane.b32.xlu2 %v3325_v30, %s3157_s23 }
  0xf3   :  { %678 = vrot.lane.b32.xlu0 %v3329_v31, %s3162_s28  ;;  %680 = vrot.lane.b32.xlu1 %v3325_v30, %s3162_s28 }
  0xf4   :  { %552 = vrot.lane.b32.xlu2 %v3329_v31, %s3161_s27 }
  0xfb   :  { %341 = vrot.lane.b32.xlu0 %v3279_v21, %s3158_s24  ;;  %343 = vrot.lane.b32.xlu1 %v3289_v25, %s3158_s24 }
  0xfc   :  { %617 = vrot.lane.b32.xlu2 %v3325_v30, %s3160_s26 }
  0xfe   :  { %v3361_v32 = vpop.permute.xlu2 %317 }
 0x103   :  { %406 = vrot.lane.b32.xlu0 %v3289_v25, %s3157_s23  ;;  %467 = vrot.lane.b32.xlu1 %v3279_v21, %s3159_s25 }
 0x104   :  { %404 = vrot.lane.b32.xlu2 %v3279_v21, %s3157_s23 }
 0x106   :  { %v3369_v33 = vpop.permute.xlu2 %441 }
 0x10b   :  { %548 = vrot.lane.b32.xlu0 %v3279_v21, %s3161_s27  ;;  %550 = vrot.lane.b32.xlu1 %v3289_v25, %s3161_s27 }
 0x10c   :  { %469 = vrot.lane.b32.xlu2 %v3289_v25, %s3159_s25 }
 0x10d   :  { %v3377_v34 = vpop.permute.xlu1 %315  ;;  %v3379_v35 = vpop.permute.xlu0 %378 }
 0x10e   :  { %v3381_v36 = vpop.permute.xlu2 %524 }
 0x113   :  { %613 = vrot.lane.b32.xlu0 %v3289_v25, %s3160_s26  ;;  %674 = vrot.lane.b32.xlu1 %v3279_v21, %s3162_s28 }
 0x114   :  { %611 = vrot.lane.b32.xlu2 %v3279_v21, %s3160_s26 }
 0x115   :  { %v3389_v37 = vpop.permute.xlu1 %380  ;;  %v3391_v38 = vpop.permute.xlu0 %443 }
 0x116   :  { %v3393_v39 = vpop.permute.xlu2 %648 }
 0x117   :  { %7110 = vst [vmem:[#allocation22_spill] sm:$0xff] %v3393_v39 }
 0x11b   :  { %709 = vrot.lane.b32.xlu0 %v3225_v58, %s3156_s1  ;;  %711 = vrot.lane.b32.xlu1 %v3213_v43, %s3156_s1 }
 0x11c   :  { %676 = vrot.lane.b32.xlu2 %v3289_v25, %s3162_s28 }
 0x11d   :  { %v3401_v40 = vpop.permute.xlu1 %522  ;;  %v3403_v41 = vpop.permute.xlu0 %585 }
 0x11e   :  { %7111 = vst [vmem:[#allocation23_spill] sm:$0xff] %v3403_v41  ;;  %v3405_v42 = vpop.permute.xlu2 %311 }
 0x123   :  { %728 = vrot.lane.b32.xlu0 %v3227_v63, %s3156_s1  ;;  %730 = vrot.lane.b32.xlu1 %v3239_v7, %s3156_s1 }
 0x124   :  { %713 = vrot.lane.b32.xlu2 %v3223_v57, %s3156_s1 }
 0x125   :  { %v3413_v45 = vpop.permute.xlu1 %587  ;;  %v3415_v46 = vpop.permute.xlu0 %650 }
 0x126   :  { %7112 = vst [vmem:[#allocation24_spill] sm:$0xff] %v3415_v46  ;;  %v3417_v47 = vpop.permute.xlu2 %376 }
 0x12b   :  { %734 = vrot.lane.b32.xlu0 %v3237_v6, %s3156_s1 }
 0x12c   :  { %732 = vrot.lane.b32.xlu2 %v3235_v5, %s3156_s1  ;;  %s4596_s1 = sld [smem:[#allocation7 + $0x39]] }
 0x12d   :  { %v3423_v48 = vpop.permute.xlu1 %374  ;;  %v3425_v49 = vpop.permute.xlu0 %313 }
 0x12e   :  { %v3427_v50 = vpop.permute.xlu2 %518 }
 0x135   :  { %v3429_v51 = vpop.permute.xlu1 %439  ;;  %v3431_v52 = vpop.permute.xlu0 %437 }
 0x136   :  { %v3433_v53 = vpop.permute.xlu2 %583 }
 0x13d   :  { %v3435_v54 = vpop.permute.xlu1 %581  ;;  %v3437_v55 = vpop.permute.xlu0 %520 }
 0x13e   :  { %7113 = vst [vmem:[#allocation25_spill] sm:$0xff] %v3435_v54  ;;  %v3439_v56 = vpop.permute.xlu2 %345 }
 0x145   :  { %v3441_v59 = vpop.permute.xlu1 %646  ;;  %v3443_v60 = vpop.permute.xlu0 %644 }
 0x146   :  { %7114 = vst [vmem:[#allocation26_spill] sm:$0xff] %v3441_v59  ;;  %v3445_v61 = vpop.permute.xlu2 %410 }
 0x147   :  { %7115 = vst [vmem:[#allocation27_spill] sm:$0xff] %v3443_v60 }
 0x14d   :  { %v3447_v62 = vpop.permute.xlu1 %408  ;;  %v3449_v2 = vpop.permute.xlu0 %347 }
 0x14e   :  { %v3451_v3 = vpop.permute.xlu2 %552 }
 0x155   :  { %v3453_v4 = vpop.permute.xlu1 %473  ;;  %v3455_v8 = vpop.permute.xlu0 %471 }
 0x156   :  { %v3457_v10 = vpop.permute.xlu2 %617 }
 0x157   :  { %7116 = vst [vmem:[#allocation28_spill] sm:$0xff] %v3457_v10 }
 0x15d   :  { %v3459_v11 = vpop.permute.xlu1 %615  ;;  %v3461_v13 = vpop.permute.xlu0 %554 }
 0x15e   :  { %7117 = vst [vmem:[#allocation29_spill] sm:$0xff] %v3459_v11  ;;  %v3463_v14 = vpop.permute.xlu2 %404  ;;  %v699_v11 = vadd.s32 4294967264, %v3247_v9 }
 0x15f   :  { %7118 = vst [vmem:[#allocation30_spill] sm:$0xff] %v3461_v13 }
 0x160   :  { %vm701_vm4 = vcmp.ge.s32.totalorder %v699_v11, 0 }
 0x165   :  { %v3465_v17 = vpop.permute.xlu1 %680  ;;  %v3467_v18 = vpop.permute.xlu0 %678 }
 0x166   :  { %7119 = vst [vmem:[#allocation31_spill] sm:$0xff] %v3465_v17  ;;  %v3469_v19 = vpop.permute.xlu2 %469 }
 0x167   :  { %7120 = vst [vmem:[#allocation32_spill] sm:$0xff] %v3467_v18 }
 0x16d   :  { %v3471_v20 = vpop.permute.xlu1 %343  ;;  %v3473_v22 = vpop.permute.xlu0 %341 }
 0x16e   :  { %v3479_v26 = vpop.permute.xlu2 %611 }
 0x16f   :  { %7121 = vst [vmem:[#allocation33_spill] sm:$0xff] %v3479_v26 }
 0x175   :  { %v3475_v23 = vpop.permute.xlu1 %467  ;;  %v3477_v24 = vpop.permute.xlu0 %406 }
 0x176   :  { %v3485_v0 = vpop.permute.xlu2 %676 }
 0x177   :  { %7124 = vst [vmem:[#allocation36_spill] sm:$0xff] %v3485_v0 }
 0x17d   :  { %v3481_v27 = vpop.permute.xlu1 %550  ;;  %v3483_v1 = vpop.permute.xlu0 %548 }
 0x17e   :  { %7122 = vst [vmem:[#allocation34_spill] sm:$0xff] %v3481_v27  ;;  %v714_v60 = vpop.permute.xlu2 %713 }
 0x17f   :  { %7123 = vst [vmem:[#allocation35_spill] sm:$0xff] %v3483_v1 }
 0x185   :  { %v3487_v17 = vpop.permute.xlu1 %674  ;;  %v3489_v18 = vpop.permute.xlu0 %613 }
 0x186   :  { %7125 = vst [vmem:[#allocation37_spill] sm:$0xff] %v3487_v17  ;;  %v733_v46 = vpop.permute.xlu2 %732 }
 0x187   :  { %7126 = vst [vmem:[#allocation38_spill] sm:$0xff] %v3489_v18 }
 0x18d   :  { %v712_v39 = vpop.permute.xlu1 %711  ;;  %v710_v10 = vpop.permute.xlu0 %709 }
 0x18e   :  { %v3496_v26 = vsel %vm715_vm3, %v3268_v16, %v712_v39  ;;  %v718_v0 = vsel %vm715_vm3, %v712_v39, %v3268_v16  ;;  %v719_v18 = vsel %vm715_vm3, %v714_v60, %v710_v10  ;;  %v3519_v39 = vsel %vm715_vm3, %v710_v10, %v714_v60 }
 0x18f   :  { %7127 = vst [vmem:[#allocation39_spill] sm:$0xff] %v3496_v26  ;;  %v3502_v17 = vsel %vm701_vm4, %v718_v0, 0.0  ;;  %748 = vrot.lane.b32.xlu0 %v3496_v26, %s3158_s24  ;;  %v3509_v59 = vsel %vm701_vm4, %v719_v18, 0.0 }
 0x190   :  { %7128 = vst [vmem:[#allocation40_spill] sm:$0xff] %v3502_v17  ;;  %744 = vrot.lane.b32.xlu1 %v3502_v17, %s3158_s24  ;;  %746 = vrot.lane.b32.xlu2 %v3509_v59, %s3158_s24 }
 0x191   :  { %7129 = vst [vmem:[#allocation41_spill] sm:$0xff] %v3509_v59 }
 0x192   :  { %7130 = vst [vmem:[#allocation42_spill] sm:$0xff] %v3519_v39 }
 0x195   :  { %v729_v16 = vpop.permute.xlu0 %728  ;;  %v731_v18 = vpop.permute.xlu1 %730 }
 0x196   :  { %v738_v0 = vsel %vm715_vm3, %v733_v46, %v729_v16  ;;  %v3536_v60 = vsel %vm715_vm3, %v729_v16, %v733_v46 }
 0x197   :  { %v3522_v27 = vsel %vm701_vm4, %v738_v0, 0.0  ;;  %7133 = vst [vmem:[#allocation45_spill] sm:$0xff] %v3536_v60 }
 0x198   :  { %7131 = vst [vmem:[#allocation43_spill] sm:$0xff] %v3522_v27  ;;  %750 = vrot.lane.b32.xlu1 %v3519_v39, %s3158_s24  ;;  %769 = vrot.lane.b32.xlu2 %v3522_v27, %s3158_s24 }
 0x19d   :  { %v735_v13 = vpop.permute.xlu0 %734 }
 0x19e   :  { %v3530_v54 = vsel %vm715_vm3, %v731_v18, %v735_v13  ;;  %v739_v41 = vsel %vm715_vm3, %v735_v13, %v731_v18 }
 0x19f   :  { %7132 = vst [vmem:[#allocation44_spill] sm:$0xff] %v3530_v54  ;;  %v3539_v10 = vsel %vm701_vm4, %v739_v41, 0.0  ;;  %vm589_vm4 = vcmp.lt.s32.totalorder %v3247_v9, 126 }
 0x1a0   :  { %7134 = vst [vmem:[#allocation46_spill] sm:$0xff] %v3539_v10  ;;  %773 = vrot.lane.b32.xlu1 %v3536_v60, %s3158_s24  ;;  %771 = vrot.lane.b32.xlu0 %v3539_v10, %s3158_s24 }
 0x1a1   :  { %775 = vrot.lane.b32.xlu2 %v3530_v54, %s3158_s24 }
 0x1a8   :  { %796 = vrot.lane.b32.xlu1 %v3509_v59, %s3157_s23  ;;  %794 = vrot.lane.b32.xlu0 %v3502_v17, %s3157_s23 }
 0x1a9   :  { %798 = vrot.lane.b32.xlu2 %v3496_v26, %s3157_s23 }
 0x1b0   :  { %819 = vrot.lane.b32.xlu1 %v3522_v27, %s3157_s23  ;;  %800 = vrot.lane.b32.xlu0 %v3519_v39, %s3157_s23 }
 0x1b1   :  { %821 = vrot.lane.b32.xlu2 %v3539_v10, %s3157_s23 }
 0x1b8   :  { %823 = vrot.lane.b32.xlu0 %v3536_v60, %s3157_s23  ;;  %825 = vrot.lane.b32.xlu1 %v3530_v54, %s3157_s23 }
 0x1b9   :  { %844 = vrot.lane.b32.xlu2 %v3502_v17, %s3159_s25 }
 0x1c0   :  { %846 = vrot.lane.b32.xlu0 %v3509_v59, %s3159_s25  ;;  %848 = vrot.lane.b32.xlu1 %v3496_v26, %s3159_s25 }
 0x1c1   :  { %850 = vrot.lane.b32.xlu2 %v3519_v39, %s3159_s25 }
 0x1c8   :  { %869 = vrot.lane.b32.xlu0 %v3522_v27, %s3159_s25  ;;  %871 = vrot.lane.b32.xlu1 %v3539_v10, %s3159_s25 }
 0x1c9   :  { %873 = vrot.lane.b32.xlu2 %v3536_v60, %s3159_s25 }
 0x1d0   :  { %875 = vrot.lane.b32.xlu0 %v3530_v54, %s3159_s25  ;;  %912 = vrot.lane.b32.xlu1 %v3502_v17, %s3161_s27 }
 0x1d1   :  { %914 = vrot.lane.b32.xlu2 %v3509_v59, %s3161_s27 }
 0x1d8   :  { %916 = vrot.lane.b32.xlu0 %v3496_v26, %s3161_s27  ;;  %918 = vrot.lane.b32.xlu1 %v3519_v39, %s3161_s27 }
 0x1d9   :  { %937 = vrot.lane.b32.xlu2 %v3522_v27, %s3161_s27 }
 0x1e0   :  { %939 = vrot.lane.b32.xlu0 %v3539_v10, %s3161_s27  ;;  %941 = vrot.lane.b32.xlu1 %v3536_v60, %s3161_s27 }
 0x1e1   :  { %943 = vrot.lane.b32.xlu2 %v3530_v54, %s3161_s27 }
 0x1e8   :  { %962 = vrot.lane.b32.xlu0 %v3502_v17, %s3160_s26  ;;  %964 = vrot.lane.b32.xlu1 %v3509_v59, %s3160_s26 }
 0x1e9   :  { %966 = vrot.lane.b32.xlu2 %v3496_v26, %s3160_s26 }
 0x1ea   :  { %v3601_v41 = vpop.permute.xlu2 %746 }
 0x1eb   :  { %7135 = vst [vmem:[#allocation47_spill] sm:$0xff] %v3601_v41 }
 0x1f0   :  { %968 = vrot.lane.b32.xlu0 %v3519_v39, %s3160_s26  ;;  %987 = vrot.lane.b32.xlu1 %v3522_v27, %s3160_s26 }
 0x1f1   :  { %989 = vrot.lane.b32.xlu2 %v3539_v10, %s3160_s26 }
 0x1f2   :  { %v3609_v46 = vpop.permute.xlu2 %769 }
 0x1f3   :  { %7136 = vst [vmem:[#allocation48_spill] sm:$0xff] %v3609_v46 }
 0x1f8   :  { %991 = vrot.lane.b32.xlu0 %v3536_v60, %s3160_s26  ;;  %993 = vrot.lane.b32.xlu1 %v3530_v54, %s3160_s26 }
 0x1f9   :  { %1012 = vrot.lane.b32.xlu2 %v3502_v17, %s3162_s28 }
 0x1fb   :  { %v3617_v11 = vpop.permute.xlu2 %775 }
 0x1fc   :  { %7137 = vst [vmem:[#allocation49_spill] sm:$0xff] %v3617_v11 }
 0x200   :  { %1014 = vrot.lane.b32.xlu0 %v3509_v59, %s3162_s28  ;;  %1016 = vrot.lane.b32.xlu1 %v3496_v26, %s3162_s28 }
 0x201   :  { %1018 = vrot.lane.b32.xlu2 %v3519_v39, %s3162_s28  ;;  %v3635_v0 = vpop.permute.xlu0 %748 }
 0x202   :  { %v3625_v13 = vpop.permute.xlu1 %744  ;;  %7140 = vst [vmem:[#allocation52_spill] sm:$0xff] %v3635_v0 }
 0x203   :  { %7138 = vst [vmem:[#allocation50_spill] sm:$0xff] %v3625_v13  ;;  %v3627_v16 = vpop.permute.xlu2 %798 }
 0x204   :  { %7139 = vst [vmem:[#allocation51_spill] sm:$0xff] %v3627_v16 }
 0x208   :  { %1037 = vrot.lane.b32.xlu0 %v3522_v27, %s3162_s28  ;;  %1039 = vrot.lane.b32.xlu1 %v3539_v10, %s3162_s28 }
 0x209   :  { %1041 = vrot.lane.b32.xlu2 %v3536_v60, %s3162_s28 }
 0x20a   :  { %v3637_v18 = vpop.permute.xlu1 %750 }
 0x20b   :  { %7141 = vst [vmem:[#allocation53_spill] sm:$0xff] %v3637_v18  ;;  %v3639_v59 = vpop.permute.xlu2 %821 }
 0x20c   :  { %7142 = vst [vmem:[#allocation54_spill] sm:$0xff] %v3639_v59 }
 0x210   :  { %1043 = vrot.lane.b32.xlu0 %v3530_v54, %s3162_s28  ;;  %1070 = vrot.lane.b32.xlu1 %v3215_v44, %s3163_s29 }
 0x211   :  { %1072 = vrot.lane.b32.xlu2 %v3225_v58, %s3163_s29 }
 0x212   :  { %v3645_v27 = vpop.permute.xlu1 %773  ;;  %v3647_v10 = vpop.permute.xlu0 %771 }
 0x213   :  { %7143 = vst [vmem:[#allocation55_spill] sm:$0xff] %v3645_v27  ;;  %v3649_v39 = vpop.permute.xlu2 %844 }
 0x214   :  { %7144 = vst [vmem:[#allocation56_spill] sm:$0xff] %v3647_v10 }
 0x215   :  { %7145 = vst [vmem:[#allocation57_spill] sm:$0xff] %v3649_v39 }
 0x218   :  { %1074 = vrot.lane.b32.xlu0 %v3213_v43, %s3163_s29  ;;  %1076 = vrot.lane.b32.xlu1 %v3223_v57, %s3163_s29 }
 0x219   :  { %1091 = vrot.lane.b32.xlu2 %v3227_v63, %s3163_s29 }
 0x21a   :  { %v3654_v60 = vpop.permute.xlu1 %796  ;;  %v3656_v54 = vpop.permute.xlu0 %794 }
 0x21b   :  { %7146 = vst [vmem:[#allocation58_spill] sm:$0xff] %v3654_v60  ;;  %v3658_v26 = vpop.permute.xlu2 %850 }
 0x21c   :  { %7147 = vst [vmem:[#allocation59_spill] sm:$0xff] %v3656_v54 }
 0x21d   :  { %7148 = vst [vmem:[#allocation60_spill] sm:$0xff] %v3658_v26 }
 0x220   :  { %1093 = vrot.lane.b32.xlu0 %v3239_v7, %s3163_s29  ;;  %1095 = vrot.lane.b32.xlu1 %v3235_v5, %s3163_s29 }
 0x221   :  { %1097 = vrot.lane.b32.xlu2 %v3237_v6, %s3163_s29  ;;  %s4609_s29 = sld [smem:[#allocation7 + $0x9]] }
 0x222   :  { %v3663_v17 = vpop.permute.xlu1 %819  ;;  %v3665_v59 = vpop.permute.xlu0 %800 }
 0x223   :  { %7149 = vst [vmem:[#allocation61_spill] sm:$0xff] %v3663_v17  ;;  %v3667_v39 = vpop.permute.xlu2 %873 }
 0x224   :  { %7150 = vst [vmem:[#allocation62_spill] sm:$0xff] %v3665_v59 }
 0x225   :  { %7151 = vst [vmem:[#allocation63_spill] sm:$0xff] %v3667_v39 }
 0x22a   :  { %v3669_v16 = vpop.permute.xlu1 %825  ;;  %v3671_v10 = vpop.permute.xlu0 %823 }
 0x22b   :  { %7152 = vst [vmem:[#allocation64_spill] sm:$0xff] %v3669_v16  ;;  %v3673_v60 = vpop.permute.xlu2 %914 }
 0x22c   :  { %7153 = vst [vmem:[#allocation65_spill] sm:$0xff] %v3671_v10 }
 0x22d   :  { %7154 = vst [vmem:[#allocation66_spill] sm:$0xff] %v3673_v60 }
 0x232   :  { %v3675_v54 = vpop.permute.xlu1 %848  ;;  %v3677_v26 = vpop.permute.xlu0 %846 }
 0x233   :  { %7155 = vst [vmem:[#allocation67_spill] sm:$0xff] %v3675_v54  ;;  %v3679_v11 = vpop.permute.xlu2 %937 }
 0x234   :  { %7156 = vst [vmem:[#allocation68_spill] sm:$0xff] %v3677_v26 }
 0x235   :  { %7157 = vst [vmem:[#allocation69_spill] sm:$0xff] %v3679_v11 }
 0x23a   :  { %v3681_v46 = vpop.permute.xlu1 %871  ;;  %v3683_v27 = vpop.permute.xlu0 %869 }
 0x23b   :  { %7158 = vst [vmem:[#allocation70_spill] sm:$0xff] %v3681_v46  ;;  %v3685_v17 = vpop.permute.xlu2 %943 }
 0x23c   :  { %7159 = vst [vmem:[#allocation71_spill] sm:$0xff] %v3683_v27 }
 0x23d   :  { %7160 = vst [vmem:[#allocation72_spill] sm:$0xff] %v3685_v17 }
 0x242   :  { %v3687_v59 = vpop.permute.xlu1 %912  ;;  %v3689_v39 = vpop.permute.xlu0 %875 }
 0x243   :  { %7161 = vst [vmem:[#allocation73_spill] sm:$0xff] %v3687_v59  ;;  %v3695_v60 = vpop.permute.xlu2 %966 }
 0x244   :  { %7162 = vst [vmem:[#allocation74_spill] sm:$0xff] %v3689_v39 }
 0x245   :  { %7165 = vst [vmem:[#allocation77_spill] sm:$0xff] %v3695_v60 }
 0x24a   :  { %v3691_v16 = vpop.permute.xlu1 %918  ;;  %v3693_v10 = vpop.permute.xlu0 %916 }
 0x24b   :  { %7163 = vst [vmem:[#allocation75_spill] sm:$0xff] %v3691_v16  ;;  %v3701_v11 = vpop.permute.xlu2 %989 }
 0x24c   :  { %7164 = vst [vmem:[#allocation76_spill] sm:$0xff] %v3693_v10 }
 0x24d   :  { %7168 = vst [vmem:[#allocation80_spill] sm:$0xff] %v3701_v11 }
 0x252   :  { %v3697_v54 = vpop.permute.xlu1 %941  ;;  %v3699_v26 = vpop.permute.xlu0 %939 }
 0x253   :  { %7166 = vst [vmem:[#allocation78_spill] sm:$0xff] %v3697_v54  ;;  %v3707_v17 = vpop.permute.xlu2 %1012 }
 0x254   :  { %7167 = vst [vmem:[#allocation79_spill] sm:$0xff] %v3699_v26 }
 0x255   :  { %7171 = vst [vmem:[#allocation83_spill] sm:$0xff] %v3707_v17 }
 0x25a   :  { %v3703_v46 = vpop.permute.xlu1 %964  ;;  %v3705_v27 = vpop.permute.xlu0 %962 }
 0x25b   :  { %7169 = vst [vmem:[#allocation81_spill] sm:$0xff] %v3703_v46  ;;  %v3713_v16 = vpop.permute.xlu2 %1018 }
 0x25c   :  { %7170 = vst [vmem:[#allocation82_spill] sm:$0xff] %v3705_v27 }
 0x25d   :  { %7174 = vst [vmem:[#allocation86_spill] sm:$0xff] %v3713_v16  ;;  %v1062_v16 = vadd.s32 4294967280, %v3247_v9 }
 0x25f   :  { %vm1064_vm6 = vcmp.ge.s32.totalorder %v1062_v16, 0 }
 0x262   :  { %v3709_v59 = vpop.permute.xlu1 %987  ;;  %v3711_v39 = vpop.permute.xlu0 %968 }
 0x263   :  { %7172 = vst [vmem:[#allocation84_spill] sm:$0xff] %v3709_v59  ;;  %v3723_v11 = vpop.permute.xlu2 %1041 }
 0x264   :  { %7173 = vst [vmem:[#allocation85_spill] sm:$0xff] %v3711_v39 }
 0x265   :  { %7179 = vst [vmem:[#allocation91_spill] sm:$0xff] %v3723_v11 }
 0x26a   :  { %v3715_v10 = vpop.permute.xlu1 %993  ;;  %v3717_v60 = vpop.permute.xlu0 %991 }
 0x26b   :  { %7175 = vst [vmem:[#allocation87_spill] sm:$0xff] %v3715_v10  ;;  %v1073_v17 = vpop.permute.xlu2 %1072 }
 0x26c   :  { %7176 = vst [vmem:[#allocation88_spill] sm:$0xff] %v3717_v60 }
 0x272   :  { %v3719_v54 = vpop.permute.xlu1 %1016  ;;  %v3721_v26 = vpop.permute.xlu0 %1014 }
 0x273   :  { %7177 = vst [vmem:[#allocation89_spill] sm:$0xff] %v3719_v54  ;;  %v1092_v39 = vpop.permute.xlu2 %1091 }
 0x274   :  { %7178 = vst [vmem:[#allocation90_spill] sm:$0xff] %v3721_v26 }
 0x27a   :  { %v3725_v46 = vpop.permute.xlu1 %1039  ;;  %v3727_v27 = vpop.permute.xlu0 %1037 }
 0x27b   :  { %7180 = vst [vmem:[#allocation92_spill] sm:$0xff] %v3725_v46  ;;  %v1098_v10 = vpop.permute.xlu2 %1097 }
 0x27c   :  { %7181 = vst [vmem:[#allocation93_spill] sm:$0xff] %v3727_v27 }
 0x282   :  { %v1071_v59 = vpop.permute.xlu1 %1070  ;;  %v3729_v18 = vpop.permute.xlu0 %1043 }
 0x283   :  { %7182 = vst [vmem:[#allocation94_spill] sm:$0xff] %v3729_v18 }
 0x28a   :  { %v1077_v60 = vpop.permute.xlu1 %1076  ;;  %v1075_v54 = vpop.permute.xlu0 %1074 }
 0x28b   :  { %v1082_v26 = vsel %vm1078_vm5, %v1077_v60, %v1073_v17  ;;  %v3737_v46 = vsel %vm1078_vm5, %v1071_v59, %v1075_v54  ;;  %v1081_v27 = vsel %vm1078_vm5, %v1075_v54, %v1071_v59 }
 0x28c   :  { %7183 = vst [vmem:[#allocation95_spill] sm:$0xff] %v3737_v46  ;;  %v3742_v18 = vsel %vm1064_vm6, %v1082_v26, 0.0  ;;  %v3745_v11 = vsel %vm1064_vm6, %v1081_v27, 0.0  ;;  %1111 = vrot.lane.b32.xlu2 %v3737_v46, %s3158_s24  ;;  %v3759_v26 = vsel %vm1078_vm5, %v1073_v17, %v1077_v60 }
 0x28d   :  { %7184 = vst [vmem:[#allocation96_spill] sm:$0xff] %v3742_v18  ;;  %1109 = vrot.lane.b32.xlu1 %v3742_v18, %s3158_s24  ;;  %1107 = vrot.lane.b32.xlu0 %v3745_v11, %s3158_s24 }
 0x28e   :  { %7185 = vst [vmem:[#allocation97_spill] sm:$0xff] %v3745_v11 }
 0x28f   :  { %7186 = vst [vmem:[#allocation98_spill] sm:$0xff] %v3759_v26 }
 0x292   :  { %v1096_v41 = vpop.permute.xlu1 %1095  ;;  %v1094_v0 = vpop.permute.xlu0 %1093 }
 0x293   :  { %v1101_v54 = vsel %vm1078_vm5, %v1096_v41, %v1092_v39  ;;  %v1102_v59 = vsel %vm1078_vm5, %v1098_v10, %v1094_v0  ;;  %v3775_v1 = vsel %vm1078_vm5, %v1094_v0, %v1098_v10  ;;  %v3779_v17 = vsel %vm1078_vm5, %v1092_v39, %v1096_v41 }
 0x294   :  { %v3762_v27 = vsel %vm1064_vm6, %v1101_v54, 0.0  ;;  %v3765_v13 = vsel %vm1064_vm6, %v1102_v59, 0.0  ;;  %7189 = vst [vmem:[#allocation101_spill] sm:$0xff] %v3775_v1 }
 0x295   :  { %7187 = vst [vmem:[#allocation99_spill] sm:$0xff] %v3762_v27  ;;  %1132 = vrot.lane.b32.xlu1 %v3762_v27, %s3158_s24  ;;  %1113 = vrot.lane.b32.xlu0 %v3759_v26, %s3158_s24 }
 0x296   :  { %7188 = vst [vmem:[#allocation100_spill] sm:$0xff] %v3765_v13  ;;  %1134 = vrot.lane.b32.xlu2 %v3765_v13, %s3158_s24 }
 0x297   :  { %7190 = vst [vmem:[#allocation102_spill] sm:$0xff] %v3779_v17 }
 0x29d   :  { %1136 = vrot.lane.b32.xlu0 %v3779_v17, %s3158_s24  ;;  %1138 = vrot.lane.b32.xlu1 %v3775_v1, %s3158_s24 }
 0x29e   :  { %1157 = vrot.lane.b32.xlu2 %v3745_v11, %s3157_s23 }
 0x2a5   :  { %1159 = vrot.lane.b32.xlu0 %v3742_v18, %s3157_s23  ;;  %1161 = vrot.lane.b32.xlu1 %v3737_v46, %s3157_s23 }
 0x2a6   :  { %1163 = vrot.lane.b32.xlu2 %v3759_v26, %s3157_s23 }
 0x2ad   :  { %1182 = vrot.lane.b32.xlu0 %v3762_v27, %s3157_s23  ;;  %1184 = vrot.lane.b32.xlu1 %v3765_v13, %s3157_s23 }
 0x2ae   :  { %1186 = vrot.lane.b32.xlu2 %v3779_v17, %s3157_s23 }
 0x2b5   :  { %1188 = vrot.lane.b32.xlu0 %v3775_v1, %s3157_s23  ;;  %1207 = vrot.lane.b32.xlu1 %v3745_v11, %s3159_s25 }
 0x2b6   :  { %1209 = vrot.lane.b32.xlu2 %v3742_v18, %s3159_s25 }
 0x2bd   :  { %1211 = vrot.lane.b32.xlu0 %v3737_v46, %s3159_s25  ;;  %1213 = vrot.lane.b32.xlu1 %v3759_v26, %s3159_s25 }
 0x2be   :  { %1232 = vrot.lane.b32.xlu2 %v3762_v27, %s3159_s25 }
 0x2c5   :  { %1234 = vrot.lane.b32.xlu0 %v3765_v13, %s3159_s25  ;;  %1236 = vrot.lane.b32.xlu1 %v3779_v17, %s3159_s25 }
 0x2c6   :  { %1238 = vrot.lane.b32.xlu2 %v3775_v1, %s3159_s25 }
 0x2cd   :  { %1275 = vrot.lane.b32.xlu0 %v3745_v11, %s3161_s27  ;;  %1277 = vrot.lane.b32.xlu1 %v3742_v18, %s3161_s27 }
 0x2ce   :  { %1279 = vrot.lane.b32.xlu2 %v3737_v46, %s3161_s27 }
 0x2d5   :  { %1281 = vrot.lane.b32.xlu0 %v3759_v26, %s3161_s27  ;;  %1300 = vrot.lane.b32.xlu1 %v3762_v27, %s3161_s27 }
 0x2d6   :  { %1302 = vrot.lane.b32.xlu2 %v3765_v13, %s3161_s27 }
 0x2dd   :  { %1304 = vrot.lane.b32.xlu0 %v3779_v17, %s3161_s27  ;;  %1306 = vrot.lane.b32.xlu1 %v3775_v1, %s3161_s27 }
 0x2de   :  { %1325 = vrot.lane.b32.xlu2 %v3745_v11, %s3160_s26 }
 0x2e5   :  { %1327 = vrot.lane.b32.xlu0 %v3742_v18, %s3160_s26  ;;  %1329 = vrot.lane.b32.xlu1 %v3737_v46, %s3160_s26 }
 0x2e6   :  { %1331 = vrot.lane.b32.xlu2 %v3759_v26, %s3160_s26  ;;  %v3841_v39 = vpop.permute.xlu2 %1111 }
 0x2e7   :  { %7191 = vst [vmem:[#allocation103_spill] sm:$0xff] %v3841_v39 }
 0x2ed   :  { %1350 = vrot.lane.b32.xlu0 %v3762_v27, %s3160_s26  ;;  %1352 = vrot.lane.b32.xlu1 %v3765_v13, %s3160_s26 }
 0x2ee   :  { %1354 = vrot.lane.b32.xlu2 %v3779_v17, %s3160_s26 }
 0x2f0   :  { %v3849_v60 = vpop.permute.xlu2 %1134 }
 0x2f1   :  { %7192 = vst [vmem:[#allocation104_spill] sm:$0xff] %v3849_v60  ;;  %v386_v60 = vsel %vm382_vm11, %v3389_v37, %v3417_v47 }
 0x2f5   :  { %1356 = vrot.lane.b32.xlu0 %v3775_v1, %s3160_s26  ;;  %1375 = vrot.lane.b32.xlu1 %v3745_v11, %s3162_s28 }
 0x2f6   :  { %1377 = vrot.lane.b32.xlu2 %v3742_v18, %s3162_s28 }
 0x2f8   :  { %v3857_v10 = vpop.permute.xlu2 %1157 }
 0x2f9   :  { %7193 = vst [vmem:[#allocation105_spill] sm:$0xff] %v3857_v10  ;;  %v322_v10 = vsel %vm7099_vm8, %v3377_v34, %v3405_v42 }
 0x2fd   :  { %1379 = vrot.lane.b32.xlu0 %v3737_v46, %s3162_s28  ;;  %1381 = vrot.lane.b32.xlu1 %v3759_v26, %s3162_s28 }
 0x2fe   :  { %1400 = vrot.lane.b32.xlu2 %v3762_v27, %s3162_s28 }
 0x2ff   :  { %v3865_v41 = vpop.permute.xlu1 %1109  ;;  %v3867_v16 = vpop.permute.xlu0 %1107 }
 0x300   :  { %7194 = vst [vmem:[#allocation106_spill] sm:$0xff] %v3865_v41  ;;  %v3869_v0 = vpop.permute.xlu2 %1163  ;;  %v4200_v41 = vstv %s4113_s8  ;;  %s4803_s8 = sld [smem:[#allocation7 + $0x3d]] }
 0x301   :  { %7195 = vst [vmem:[#allocation107_spill] sm:$0xff] %v3867_v16  ;;  %v350_v16 = vsel %vm7099_vm8, %v3471_v20, %v3449_v2 }
 0x302   :  { %7196 = vst [vmem:[#allocation108_spill] sm:$0xff] %v3869_v0 }
 0x305   :  { %1402 = vrot.lane.b32.xlu0 %v3765_v13, %s3162_s28  ;;  %1404 = vrot.lane.b32.xlu1 %v3779_v17, %s3162_s28 }
 0x306   :  { %1406 = vrot.lane.b32.xlu2 %v3775_v1, %s3162_s28 }
 0x307   :  { %v3877_v54 = vpop.permute.xlu1 %1132  ;;  %v3879_v59 = vpop.permute.xlu0 %1113 }
 0x308   :  { %7197 = vst [vmem:[#allocation109_spill] sm:$0xff] %v3877_v54  ;;  %v3881_v27 = vpop.permute.xlu2 %1186 }
 0x309   :  { %7198 = vst [vmem:[#allocation110_spill] sm:$0xff] %v3879_v59 }
 0x30a   :  { %7199 = vst [vmem:[#allocation111_spill] sm:$0xff] %v3881_v27 }
 0x30d   :  { %1425 = vrot.lane.b32.xlu0 %v3215_v44, %s3158_s24  ;;  %1427 = vrot.lane.b32.xlu1 %v3225_v58, %s3158_s24 }
 0x30e   :  { %1429 = vrot.lane.b32.xlu2 %v3213_v43, %s3158_s24 }
 0x30f   :  { %v3889_v13 = vpop.permute.xlu1 %1138  ;;  %v3891_v17 = vpop.permute.xlu0 %1136 }
 0x310   :  { %7200 = vst [vmem:[#allocation112_spill] sm:$0xff] %v3889_v13  ;;  %v3893_v1 = vpop.permute.xlu2 %1209  ;;  %v349_v13 = vsel %vm7099_vm8, %v3473_v22, %v3439_v56 }
 0x311   :  { %7201 = vst [vmem:[#allocation113_spill] sm:$0xff] %v3891_v17 }
 0x312   :  { %7202 = vst [vmem:[#allocation114_spill] sm:$0xff] %v3893_v1 }
 0x315   :  { %1431 = vrot.lane.b32.xlu0 %v3223_v57, %s3158_s24  ;;  %1450 = vrot.lane.b32.xlu1 %v3227_v63, %s3158_s24 }
 0x316   :  { %1452 = vrot.lane.b32.xlu2 %v3239_v7, %s3158_s24 }
 0x317   :  { %v3901_v46 = vpop.permute.xlu1 %1161  ;;  %v3903_v11 = vpop.permute.xlu0 %1159 }
 0x318   :  { %7203 = vst [vmem:[#allocation115_spill] sm:$0xff] %v3901_v46  ;;  %v3905_v18 = vpop.permute.xlu2 %1232 }
 0x319   :  { %7204 = vst [vmem:[#allocation116_spill] sm:$0xff] %v3903_v11 }
 0x31a   :  { %7205 = vst [vmem:[#allocation117_spill] sm:$0xff] %v3905_v18 }
 0x31d   :  { %1454 = vrot.lane.b32.xlu0 %v3235_v5, %s3158_s24  ;;  %1456 = vrot.lane.b32.xlu1 %v3237_v6, %s3158_s24 }
 0x31e   :  { %1475 = vrot.lane.b32.xlu2 %v3215_v44, %s3157_s23 }
 0x31f   :  { %v3913_v26 = vpop.permute.xlu1 %1184  ;;  %v3915_v1 = vpop.permute.xlu0 %1182 }
 0x320   :  { %7206 = vst [vmem:[#allocation118_spill] sm:$0xff] %v3913_v26  ;;  %v3917_v27 = vpop.permute.xlu2 %1238 }
 0x321   :  { %7207 = vst [vmem:[#allocation119_spill] sm:$0xff] %v3915_v1 }
 0x322   :  { %7208 = vst [vmem:[#allocation120_spill] sm:$0xff] %v3917_v27 }
 0x325   :  { %1477 = vrot.lane.b32.xlu0 %v3225_v58, %s3157_s23  ;;  %1479 = vrot.lane.b32.xlu1 %v3213_v43, %s3157_s23 }
 0x326   :  { %1481 = vrot.lane.b32.xlu2 %v3223_v57, %s3157_s23 }
 0x327   :  { %v3925_v18 = vpop.permute.xlu1 %1207  ;;  %v3927_v0 = vpop.permute.xlu0 %1188 }
 0x328   :  { %7209 = vst [vmem:[#allocation121_spill] sm:$0xff] %v3925_v18  ;;  %v3929_v11 = vpop.permute.xlu2 %1279 }
 0x329   :  { %7210 = vst [vmem:[#allocation122_spill] sm:$0xff] %v3927_v0 }
 0x32a   :  { %7211 = vst [vmem:[#allocation123_spill] sm:$0xff] %v3929_v11 }
 0x32d   :  { %1500 = vrot.lane.b32.xlu0 %v3227_v63, %s3157_s23  ;;  %1502 = vrot.lane.b32.xlu1 %v3239_v7, %s3157_s23 }
 0x32e   :  { %1504 = vrot.lane.b32.xlu2 %v3235_v5, %s3157_s23 }
 0x32f   :  { %v3937_v27 = vpop.permute.xlu1 %1213  ;;  %v3939_v26 = vpop.permute.xlu0 %1211 }
 0x330   :  { %7212 = vst [vmem:[#allocation124_spill] sm:$0xff] %v3937_v27  ;;  %v3941_v1 = vpop.permute.xlu2 %1302 }
 0x331   :  { %7213 = vst [vmem:[#allocation125_spill] sm:$0xff] %v3939_v26 }
 0x332   :  { %7214 = vst [vmem:[#allocation126_spill] sm:$0xff] %v3941_v1 }
 0x335   :  { %1506 = vrot.lane.b32.xlu0 %v3237_v6, %s3157_s23  ;;  %1525 = vrot.lane.b32.xlu1 %v3215_v44, %s3159_s25 }
 0x336   :  { %1527 = vrot.lane.b32.xlu2 %v3225_v58, %s3159_s25 }
 0x337   :  { %v3949_v11 = vpop.permute.xlu1 %1236  ;;  %v3951_v18 = vpop.permute.xlu0 %1234 }
 0x338   :  { %7215 = vst [vmem:[#allocation127_spill] sm:$0xff] %v3949_v11  ;;  %v3953_v0 = vpop.permute.xlu2 %1325 }
 0x339   :  { %7216 = vst [vmem:[#allocation128_spill] sm:$0xff] %v3951_v18 }
 0x33a   :  { %7217 = vst [vmem:[#allocation129_spill] sm:$0xff] %v3953_v0 }
 0x33d   :  { %1529 = vrot.lane.b32.xlu0 %v3213_v43, %s3159_s25  ;;  %1531 = vrot.lane.b32.xlu1 %v3223_v57, %s3159_s25 }
 0x33e   :  { %1550 = vrot.lane.b32.xlu2 %v3227_v63, %s3159_s25 }
 0x33f   :  { %v3961_v1 = vpop.permute.xlu1 %1277  ;;  %v3963_v27 = vpop.permute.xlu0 %1275 }
 0x340   :  { %7218 = vst [vmem:[#allocation130_spill] sm:$0xff] %v3961_v1  ;;  %v3965_v26 = vpop.permute.xlu2 %1331 }
 0x341   :  { %7219 = vst [vmem:[#allocation131_spill] sm:$0xff] %v3963_v27 }
 0x342   :  { %7220 = vst [vmem:[#allocation132_spill] sm:$0xff] %v3965_v26 }
 0x345   :  { %1552 = vrot.lane.b32.xlu0 %v3239_v7, %s3159_s25  ;;  %1554 = vrot.lane.b32.xlu1 %v3235_v5, %s3159_s25 }
 0x346   :  { %1556 = vrot.lane.b32.xlu2 %v3237_v6, %s3159_s25 }
 0x347   :  { %v3973_v0 = vpop.permute.xlu1 %1300  ;;  %v3975_v18 = vpop.permute.xlu0 %1281 }
 0x348   :  { %7221 = vst [vmem:[#allocation133_spill] sm:$0xff] %v3973_v0  ;;  %v3977_v11 = vpop.permute.xlu2 %1354 }
 0x349   :  { %7222 = vst [vmem:[#allocation134_spill] sm:$0xff] %v3975_v18 }
 0x34a   :  { %7223 = vst [vmem:[#allocation135_spill] sm:$0xff] %v3977_v11 }
 0x34d   :  { %1593 = vrot.lane.b32.xlu0 %v3215_v44, %s3161_s27  ;;  %1595 = vrot.lane.b32.xlu1 %v3225_v58, %s3161_s27 }
 0x34e   :  { %1597 = vrot.lane.b32.xlu2 %v3213_v43, %s3161_s27 }
 0x34f   :  { %v3985_v26 = vpop.permute.xlu1 %1306  ;;  %v3987_v1 = vpop.permute.xlu0 %1304 }
 0x350   :  { %7224 = vst [vmem:[#allocation136_spill] sm:$0xff] %v3985_v26  ;;  %v3989_v27 = vpop.permute.xlu2 %1377 }
 0x351   :  { %7225 = vst [vmem:[#allocation137_spill] sm:$0xff] %v3987_v1 }
 0x352   :  { %7226 = vst [vmem:[#allocation138_spill] sm:$0xff] %v3989_v27 }
 0x355   :  { %1599 = vrot.lane.b32.xlu0 %v3223_v57, %s3161_s27  ;;  %1618 = vrot.lane.b32.xlu1 %v3227_v63, %s3161_s27 }
 0x356   :  { %1620 = vrot.lane.b32.xlu2 %v3239_v7, %s3161_s27 }
 0x357   :  { %v3997_v11 = vpop.permute.xlu1 %1329  ;;  %v3999_v0 = vpop.permute.xlu0 %1327 }
 0x358   :  { %7227 = vst [vmem:[#allocation139_spill] sm:$0xff] %v3997_v11  ;;  %v4001_v18 = vpop.permute.xlu2 %1400 }
 0x359   :  { %7228 = vst [vmem:[#allocation140_spill] sm:$0xff] %v3999_v0 }
 0x35a   :  { %7229 = vst [vmem:[#allocation141_spill] sm:$0xff] %v4001_v18 }
 0x35d   :  { %1622 = vrot.lane.b32.xlu0 %v3235_v5, %s3161_s27  ;;  %1624 = vrot.lane.b32.xlu1 %v3237_v6, %s3161_s27 }
 0x35e   :  { %1643 = vrot.lane.b32.xlu2 %v3215_v44, %s3160_s26 }
 0x35f   :  { %v4009_v27 = vpop.permute.xlu1 %1352  ;;  %v4011_v26 = vpop.permute.xlu0 %1350 }
 0x360   :  { %7230 = vst [vmem:[#allocation142_spill] sm:$0xff] %v4009_v27  ;;  %v4013_v1 = vpop.permute.xlu2 %1406 }
 0x361   :  { %7231 = vst [vmem:[#allocation143_spill] sm:$0xff] %v4011_v26 }
 0x362   :  { %7232 = vst [vmem:[#allocation144_spill] sm:$0xff] %v4013_v1 }
 0x365   :  { %1645 = vrot.lane.b32.xlu0 %v3225_v58, %s3160_s26  ;;  %1647 = vrot.lane.b32.xlu1 %v3213_v43, %s3160_s26 }
 0x366   :  { %1649 = vrot.lane.b32.xlu2 %v3223_v57, %s3160_s26 }
 0x367   :  { %v4021_v18 = vpop.permute.xlu1 %1375  ;;  %v4023_v0 = vpop.permute.xlu0 %1356 }
 0x368   :  { %7233 = vst [vmem:[#allocation145_spill] sm:$0xff] %v4021_v18  ;;  %v4025_v11 = vpop.permute.xlu2 %1429 }
 0x369   :  { %7234 = vst [vmem:[#allocation146_spill] sm:$0xff] %v4023_v0 }
 0x36a   :  { %7235 = vst [vmem:[#allocation147_spill] sm:$0xff] %v4025_v11 }
 0x36d   :  { %1668 = vrot.lane.b32.xlu0 %v3227_v63, %s3160_s26  ;;  %1670 = vrot.lane.b32.xlu1 %v3239_v7, %s3160_s26 }
 0x36e   :  { %1672 = vrot.lane.b32.xlu2 %v3235_v5, %s3160_s26 }
 0x36f   :  { %v4033_v1 = vpop.permute.xlu1 %1381  ;;  %v4035_v27 = vpop.permute.xlu0 %1379 }
 0x370   :  { %7236 = vst [vmem:[#allocation148_spill] sm:$0xff] %v4033_v1  ;;  %v4037_v26 = vpop.permute.xlu2 %1452 }
 0x371   :  { %7237 = vst [vmem:[#allocation149_spill] sm:$0xff] %v4035_v27 }
 0x372   :  { %7238 = vst [vmem:[#allocation150_spill] sm:$0xff] %v4037_v26 }
 0x375   :  { %1674 = vrot.lane.b32.xlu0 %v3237_v6, %s3160_s26  ;;  %1693 = vrot.lane.b32.xlu1 %v3215_v44, %s3162_s28 }
 0x376   :  { %1695 = vrot.lane.b32.xlu2 %v3225_v58, %s3162_s28 }
 0x377   :  { %v4045_v11 = vpop.permute.xlu1 %1404  ;;  %v4047_v18 = vpop.permute.xlu0 %1402 }
 0x378   :  { %7239 = vst [vmem:[#allocation151_spill] sm:$0xff] %v4045_v11  ;;  %v4049_v0 = vpop.permute.xlu2 %1475 }
 0x379   :  { %7240 = vst [vmem:[#allocation152_spill] sm:$0xff] %v4047_v18 }
 0x37a   :  { %7241 = vst [vmem:[#allocation153_spill] sm:$0xff] %v4049_v0 }
 0x37d   :  { %1697 = vrot.lane.b32.xlu0 %v3213_v43, %s3162_s28  ;;  %1699 = vrot.lane.b32.xlu1 %v3223_v57, %s3162_s28 }
 0x37e   :  { %1718 = vrot.lane.b32.xlu2 %v3227_v63, %s3162_s28 }
 0x37f   :  { %v4057_v26 = vpop.permute.xlu1 %1427  ;;  %v4059_v27 = vpop.permute.xlu0 %1425 }
 0x380   :  { %7242 = vst [vmem:[#allocation154_spill] sm:$0xff] %v4057_v26  ;;  %v4061_v1 = vpop.permute.xlu2 %1481 }
 0x381   :  { %7243 = vst [vmem:[#allocation155_spill] sm:$0xff] %v4059_v27 }
 0x382   :  { %7244 = vst [vmem:[#allocation156_spill] sm:$0xff] %v4061_v1 }
 0x385   :  { %1720 = vrot.lane.b32.xlu0 %v3239_v7, %s3162_s28  ;;  %1722 = vrot.lane.b32.xlu1 %v3235_v5, %s3162_s28 }
 0x386   :  { %1724 = vrot.lane.b32.xlu2 %v3237_v6, %s3162_s28 }
 0x387   :  { %v4069_v0 = vpop.permute.xlu1 %1450  ;;  %v4071_v18 = vpop.permute.xlu0 %1431 }
 0x388   :  { %7245 = vst [vmem:[#allocation157_spill] sm:$0xff] %v4069_v0  ;;  %v4073_v11 = vpop.permute.xlu2 %1504 }
 0x389   :  { %7246 = vst [vmem:[#allocation158_spill] sm:$0xff] %v4071_v18 }
 0x38a   :  { %7247 = vst [vmem:[#allocation159_spill] sm:$0xff] %v4073_v11 }
 0x38d   :  { %1751 = vrot.lane.b32.xlu0 %v3215_v44, %s3164_s30  ;;  %1753 = vrot.lane.b32.xlu1 %v3225_v58, %s3164_s30  ;;  %v4094_v58 = vadd.s32 128, %v3247_v9 }
 0x38e   :  { %1755 = vrot.lane.b32.xlu2 %v3213_v43, %s3164_s30  ;;  %v4097_v43 = vand.u32 15, %v3247_v9 }
 0x38f   :  { %v4078_v1 = vpop.permute.xlu1 %1456  ;;  %v4080_v26 = vpop.permute.xlu0 %1454  ;;  %7254 = vst [vmem:[#allocation166_spill] sm:$0xff] %v4094_v58 }
 0x390   :  { %7248 = vst [vmem:[#allocation160_spill] sm:$0xff] %v4078_v1  ;;  %v4082_v27 = vpop.permute.xlu2 %1527  ;;  %v4177_v17 = vadd.s32 4294967295, %v4097_v43 }
 0x391   :  { %7249 = vst [vmem:[#allocation161_spill] sm:$0xff] %v4080_v26 }
 0x392   :  { %7250 = vst [vmem:[#allocation162_spill] sm:$0xff] %v4082_v27  ;;  %v4108_v27 = vstv %s3002_s5  ;;  %vm7064_vm14 = vcmp.ge.s32.totalorder %v4177_v17, 0  ;;  %s4765_s5 = sld [smem:[#allocation7 + $0xb]] }
 0x393   :  { %v4142_v46 = vmul.f32 %v4108_v27, %v3279_v21 }
 0x395   :  { %1757 = vrot.lane.b32.xlu0 %v3223_v57, %s3164_s30  ;;  %1772 = vrot.lane.b32.xlu1 %v3227_v63, %s3164_s30 }
 0x396   :  { %1774 = vrot.lane.b32.xlu2 %v3239_v7, %s3164_s30  ;;  %v4102_v7 = vand.u32 15, %v4094_v58 }
 0x397   :  { %v4087_v11 = vpop.permute.xlu1 %1479  ;;  %v4089_v0 = vpop.permute.xlu0 %1477 }
 0x398   :  { %7251 = vst [vmem:[#allocation163_spill] sm:$0xff] %v4087_v11  ;;  %v4091_v44 = vpop.permute.xlu2 %1550  ;;  %v4111_v11 = vadd.s32 4294967293, %v4097_v43  ;;  %v4132_v26 = vadd.s32 4294967294, %v4102_v7  ;;  %v4162_v21 = vadd.s32 1, %v4102_v7  ;;  %v4180_v54 = vadd.s32 4294967295, %v4102_v7 }
 0x399   :  { %7252 = vst [vmem:[#allocation164_spill] sm:$0xff] %v4089_v0 }
 0x39a   :  { %7253 = vst [vmem:[#allocation165_spill] sm:$0xff] %v4091_v44  ;;  %v492_v44 = vstv %s2953_s4  ;;  %vm7067_vm7 = vcmp.ge.s32.totalorder %v4111_v11, 0  ;;  %vm7088_vm12 = vcmp.ge.s32.totalorder %v4132_v26, 0  ;;  %vm7063_vm15 = vcmp.ge.s32.totalorder %v4180_v54, 0  ;;  %s4734_s4 = sld [smem:[#allocation7 + $0x3b]] }
 0x39b   :  { %v4135_v1 = vmul.f32 %v492_v44, %v3297_v29  ;;  %v4138_v18 = vmul.f32 %v492_v44, %v3260_v15  ;;  %v332_v29 = vstv %s132_s6  ;;  %v4159_v15 = vadd.s32 1, %v4097_v43  ;;  %7261 = vst [vmem:[#allocation173_spill] sm:$0xff] %v4162_v21  ;;  %s4769_s6 = sld [smem:[#allocation7 + $0x3c]] }
 0x39c   :  { %vm515_vm3 = vcmp.lt.s32.totalorder %v4162_v21, 16 }
 0x39d   :  { %1776 = vrot.lane.b32.xlu0 %v3235_v5, %s3164_s30  ;;  %1778 = vrot.lane.b32.xlu1 %v3237_v6, %s3164_s30  ;;  %v4116_v5 = vadd.s32 4294967293, %v4102_v7  ;;  %v4119_v6 = vadd.s32 4294967294, %v4097_v43  ;;  %7260 = vst [vmem:[#allocation172_spill] sm:$0xff] %v4159_v15  ;;  %vm514_vm2 = vcmp.lt.s32.totalorder %v4159_v15, 16  ;;  %s4634_s30 = sld [smem:[#allocation7 + $0x3a]] }
 0x39f   :  { %v4104_v57 = vpop.permute.xlu1 %1502  ;;  %v4106_v63 = vpop.permute.xlu0 %1500  ;;  %vm7066_vm9 = vcmp.ge.s32.totalorder %v4116_v5, 0  ;;  %vm7089_vm10 = vcmp.ge.s32.totalorder %v4119_v6, 0 }
 0x3a0   :  { %7255 = vst [vmem:[#allocation167_spill] sm:$0xff] %v4104_v57  ;;  %v4123_v0 = vpop.permute.xlu2 %1556  ;;  %v4129_v57 = vmul.f32 %v492_v44, %v3252_v12  ;;  %v4150_v12 = vmul.f32 %v4108_v27, %v3325_v30  ;;  %v351_v30 = vsel %vm7099_vm8, %v3439_v56, %v3473_v22  ;;  %v357_v56 = vstv %s4121_s9  ;;  %s4859_s9 = sld [smem:[#allocation7 + $0xd]] }
 0x3a1   :  { %7256 = vst [vmem:[#allocation168_spill] sm:$0xff] %v4106_v63  ;;  %v4126_v63 = vmul.f32 %v492_v44, %v3295_v28  ;;  %v4146_v28 = vmul.f32 %v4108_v27, %v3329_v31  ;;  %v395_v44 = vstv %s2951_s7  ;;  %v328_v22 = vsel %vm7067_vm7, %v322_v10, 0.0  ;;  %s4773_s7 = sld [smem:[#allocation7 + $0xc]] }
 0x3a2   :  { %7257 = vst [vmem:[#allocation169_spill] sm:$0xff] %v4123_v0  ;;  %v354_v59 = vsel %vm7066_vm9, %v349_v13, 0.0  ;;  %v383_v13 = vsel %vm382_vm11, %v3423_v48, %v3379_v35 }
 0x3a3   :  { %7258 = vst [vmem:[#allocation170_spill] sm:$0xff] %v4146_v28 }
 0x3a4   :  { %7259 = vst [vmem:[#allocation171_spill] sm:$0xff] %v4150_v12  ;;  %v333_v12 = vmul.f32 %v332_v29, %v328_v22 }
 0x3a7   :  { %v4168_v31 = vpop.permute.xlu1 %1525  ;;  %v4170_v0 = vpop.permute.xlu0 %1506 }
 0x3a8   :  { %7262 = vst [vmem:[#allocation174_spill] sm:$0xff] %v4168_v31  ;;  %v320_v31 = vsel %vm7099_vm8, %v3405_v42, %v3377_v34  ;;  %v352_v34 = vsel %vm7099_vm8, %v3449_v2, %v3471_v20  ;;  %v353_v42 = vsel %vm7067_vm7, %v351_v30, 0.0  ;;  %v393_v30 = vsel %vm7089_vm10, %v386_v60, 0.0  ;;  %v4234_v58 = vpop.permute.xlu2 %1597 }
 0x3a9   :  { %7263 = vst [vmem:[#allocation175_spill] sm:$0xff] %v4170_v0  ;;  %v384_v0 = vsel %vm382_vm11, %v3417_v47, %v3389_v37  ;;  %v385_v37 = vsel %vm382_vm11, %v3379_v35, %v3423_v48  ;;  %v323_v47 = vsel %vm7099_vm8, %v3361_v32, %v3425_v49  ;;  %v329_v39 = vsel %vm7066_vm9, %v320_v31, 0.0 }
 0x3aa   :  { %v394_v10 = vsel %vm7088_vm12, %v384_v0, 0.0  ;;  %7264 = vst [vmem:[#allocation176_spill] sm:$0xff] %v4234_v58  ;;  %v321_v60 = vsel %vm7099_vm8, %v3425_v49, %v3361_v32  ;;  %v355_v0 = vsel %vm7067_vm7, %v352_v34, 0.0  ;;  %v358_v31 = vmul.f32 %v357_v56, %v353_v42 }
 0x3ab   :  { %v391_v2 = vsel %vm7089_vm10, %v385_v37, 0.0  ;;  %v330_v20 = vsel %vm7067_vm7, %v323_v47, 0.0  ;;  %v359_v58 = vmul.f32 %v357_v56, %v354_v59  ;;  %v334_v35 = vmul.f32 %v332_v29, %v329_v39 }
 0x3ac   :  { %v398_v48 = vmul.f32 %v395_v44, %v393_v30  ;;  %v399_v28 = vmul.f32 %v395_v44, %v394_v10  ;;  %v356_v32 = vsel %vm7066_vm9, %v350_v16, 0.0  ;;  %v392_v42 = vsel %vm7088_vm12, %v383_v13, 0.0 }
 0x3ad   :  { %v331_v22 = vsel %vm7066_vm9, %v321_v60, 0.0  ;;  %v360_v37 = vmul.f32 %v357_v56, %v355_v0  ;;  %v415_v39 = vsel %vm382_vm11, %v3445_v61, %v3477_v24  ;;  %v396_v59 = vmul.f32 %v395_v44, %v391_v2 }
 0x3ae   :  { %v335_v47 = vmul.f32 %v332_v29, %v330_v20  ;;  %v414_v16 = vsel %vm382_vm11, %v3447_v62, %v3463_v14  ;;  %v362_v30 = vadd.f32 %v358_v31, %v333_v12  ;;  %v412_v10 = vsel %vm382_vm11, %v3463_v14, %v3447_v62 }
 0x3af   :  { %v4253_v49 = vpop.permute.xlu1 %1531  ;;  %v4255_v34 = vpop.permute.xlu0 %1529  ;;  %v361_v13 = vmul.f32 %v357_v56, %v356_v32  ;;  %v363_v60 = vadd.f32 %v359_v58, %v334_v35  ;;  %v413_v0 = vsel %vm382_vm11, %v3477_v24, %v3445_v61  ;;  %v397_v2 = vmul.f32 %v395_v44, %v392_v42 }
 0x3b0   :  { %7265 = vst [vmem:[#allocation177_spill] sm:$0xff] %v4255_v34  ;;  %v336_v20 = vmul.f32 %v332_v29, %v331_v22  ;;  %v449_v34 = vsel %vm7074_vm13, %v3391_v38, %v3429_v51  ;;  %v418_v12 = vsel %vm7089_vm10, %v415_v39, 0.0  ;;  %v448_v58 = vsel %vm7074_vm13, %v3369_v33, %v3431_v52  ;;  %v4304_v22 = vpop.permute.xlu2 %1620 }
 0x3b1   :  { %v420_v62 = vstv %s4228_s10  ;;  %v416_v14 = vsel %vm7089_vm10, %v414_v16, 0.0  ;;  %v364_v61 = vadd.f32 %v360_v37, %v335_v47  ;;  %v447_v24 = vsel %vm7074_vm13, %v3429_v51, %v3391_v38  ;;  %7266 = vst [vmem:[#allocation178_spill] sm:$0xff] %v4304_v22  ;;  %s4882_s10 = sld [smem:[#allocation7 + $0x3e]] }
 0x3b2   :  { %v417_v29 = vsel %vm7088_vm12, %v412_v10, 0.0  ;;  %v400_v44 = vadd.f32 %v396_v59, %v362_v30  ;;  %v419_v56 = vsel %vm7088_vm12, %v413_v0, 0.0  ;;  %v446_v31 = vsel %vm7074_vm13, %v3431_v52, %v3369_v33 }
 0x3b3   :  { %v365_v35 = vadd.f32 %v361_v13, %v336_v20  ;;  %v401_v32 = vadd.f32 %v397_v2, %v363_v60  ;;  %v423_v42 = vmul.f32 %v420_v62, %v418_v12  ;;  %v456_v38 = vsel %vm7064_vm14, %v449_v34, 0.0 }
 0x3b4   :  { %v454_v51 = vsel %vm7064_vm14, %v448_v58, 0.0  ;;  %v421_v37 = vmul.f32 %v420_v62, %v416_v14  ;;  %v477_v39 = vsel %vm7074_vm13, %v3455_v8, %v3475_v23  ;;  %v422_v52 = vmul.f32 %v420_v62, %v417_v29 }
 0x3b5   :  { %v402_v47 = vadd.f32 %v398_v48, %v364_v61  ;;  %v475_v34 = vsel %vm7074_vm13, %v3475_v23, %v3455_v8  ;;  %v424_v16 = vmul.f32 %v420_v62, %v419_v56  ;;  %v455_v30 = vsel %vm7063_vm15, %v446_v31, 0.0 }
 0x3b6   :  { %v478_v10 = vsel %vm7074_vm13, %v3453_v4, %v3469_v19  ;;  %v425_v48 = vadd.f32 %v421_v37, %v400_v44  ;;  %v403_v13 = vadd.f32 %v399_v28, %v365_v35  ;;  %v426_v60 = vadd.f32 %v422_v52, %v401_v32 }
 0x3b7   :  { %v4314_v59 = vpop.permute.xlu1 %1554  ;;  %v4316_v33 = vpop.permute.xlu0 %1552  ;;  %v479_v8 = vsel %vm7064_vm14, %v477_v39, 0.0  ;;  %v427_v23 = vadd.f32 %v423_v42, %v402_v47  ;;  %v457_v0 = vsel %vm7063_vm15, %v447_v24, 0.0  ;;  %v461_v2 = vmul.f32 %v4200_v41, %v456_v38 }
 0x3b8   :  { %v459_v20 = vmul.f32 %v4200_v41, %v454_v51  ;;  %v480_v12 = vsel %vm7063_vm15, %v475_v34, 0.0  ;;  %v460_v58 = vmul.f32 %v4200_v41, %v455_v30  ;;  %v483_v28 = vstv %s4290_s11  ;;  %v4372_v37 = vpop.permute.xlu2 %1643  ;;  %s5006_s11 = sld [smem:[#allocation7 + $0xe]] }
 0x3b9   :  { %v476_v62 = vsel %vm7074_vm13, %v3469_v19, %v3453_v4  ;;  %v428_v14 = vadd.f32 %v424_v16, %v403_v13  ;;  %v4348_v61 = vadd.s32 2, %v4097_v43  ;;  %v481_v24 = vsel %vm7064_vm14, %v478_v10, 0.0  ;;  %7269 = vst [vmem:[#allocation181_spill] sm:$0xff] %v4372_v37 }
 0x3ba   :  { %v463_v29 = vadd.f32 %v459_v20, %v425_v48  ;;  %v484_v44 = vmul.f32 %v483_v28, %v479_v8  ;;  %v462_v56 = vmul.f32 %v4200_v41, %v457_v0  ;;  %v464_v31 = vadd.f32 %v460_v58, %v426_v60 }
 0x3bb   :  { %7267 = vst [vmem:[#allocation179_spill] sm:$0xff] %v4348_v61  ;;  %v485_v35 = vmul.f32 %v483_v28, %v480_v12  ;;  %v465_v32 = vadd.f32 %v461_v2, %v427_v23  ;;  %v504_v4 = vmul.f32 %v4108_v27, %v3289_v25  ;;  %v4359_v19 = vadd.s32 2, %v4102_v7 }
 0x3bc   :  { %v482_v42 = vsel %vm7063_vm15, %v476_v62, 0.0  ;;  %v527_v41 = vsel %vm526_vm1, %v3427_v50, %v3401_v40  ;;  %v486_v25 = vmul.f32 %v483_v28, %v481_v24  ;;  %v466_v27 = vadd.f32 %v462_v56, %v428_v14  ;;  %v7273_v24 = vld [vmem:[#allocation25_spill] sm:$0xff] }
 0x3bd   :  { %7268 = vst [vmem:[#allocation180_spill] sm:$0xff] %v4359_v19  ;;  %v539_v39 = vstv %s4322_s12  ;;  %v529_v52 = vsel %vm526_vm1, %v3401_v40, %v3427_v50  ;;  %v488_v47 = vadd.f32 %v484_v44, %v463_v29  ;;  %vm577_vm5 = vcmp.lt.s32.totalorder %v4348_v61, 16  ;;  %s5018_s12 = sld [smem:[#allocation7 + $0x3f]] }
 0x3be   :  { %v487_v34 = vmul.f32 %v483_v28, %v482_v42  ;;  %v489_v16 = vadd.f32 %v485_v35, %v464_v31  ;;  %v490_v30 = vadd.f32 %v486_v25, %v465_v32  ;;  %v535_v10 = vsel %vm514_vm2, %v527_v41, 0.0  ;;  %v7274_v32 = vld [vmem:[#allocation170_spill] sm:$0xff] }
 0x3bf   :  { %v4363_v38 = vpop.permute.xlu1 %1595  ;;  %v4365_v51 = vpop.permute.xlu0 %1593  ;;  %vm578_vm6 = vcmp.lt.s32.totalorder %v4359_v19, 16  ;;  %v4387_v48 = vadd.s32 3, %v4097_v43  ;;  %v4390_v40 = vadd.s32 3, %v4102_v7  ;;  %v536_v50 = vsel %vm515_vm3, %v529_v52, 0.0  ;;  %v7276_v25 = vld [vmem:[#allocation34_spill] sm:$0xff] }
 0x3c0   :  { %v591_v13 = vsel %vm589_vm4, %v3433_v53, %v3413_v45  ;;  %v593_v60 = vsel %vm589_vm4, %v3413_v45, %v3433_v53  ;;  %v491_v8 = vadd.f32 %v487_v34, %v466_v27  ;;  %v602_v23 = vstv %s4339_s13  ;;  %v4456_v52 = vpop.permute.xlu2 %1649  ;;  %s5030_s13 = sld [smem:[#allocation7 + $0xf]] }
 0x3c1   :  { %v4405_v43 = vstv %s4350_s14  ;;  %v497_v7 = vadd.f32 %v4126_v63, %v488_v47  ;;  %v540_v0 = vmul.f32 %v539_v39, %v535_v10  ;;  %v528_v2 = vsel %vm526_vm1, %v3437_v55, %v3381_v36  ;;  %v7270_v63 = vld [vmem:[#allocation35_spill] sm:$0xff]  ;;  %s5074_s14 = sld [smem:[#allocation7 + $0x40]] }
 0x3c2   :  { %v498_v20 = vadd.f32 %v4129_v57, %v489_v16  ;;  %v499_v12 = vadd.f32 %v4135_v1, %v490_v30  ;;  %v541_v45 = vmul.f32 %v539_v39, %v536_v50  ;;  %v600_v53 = vsel %vm577_vm5, %v591_v13, 0.0  ;;  %v7272_v57 = vld [vmem:[#allocation23_spill] sm:$0xff] }
 0x3c3   :  { %v601_v58 = vsel %vm578_vm6, %v593_v60, 0.0  ;;  %v556_v28 = vsel %vm526_vm1, %v7270_v63, %v3451_v3  ;;  %v590_v1 = vsel %vm589_vm4, %v7273_v24, %v7272_v57  ;;  %v530_v29 = vsel %vm526_vm1, %v3381_v36, %v3437_v55  ;;  %7277 = vst [vmem:[#allocation23_spill] sm:$0xff] %v4456_v52  ;;  %v7278_v10 = vld [vmem:[#allocation171_spill] sm:$0xff] }
 0x3c4   :  { %vm640_vm15 = vcmp.lt.s32.totalorder %v4387_v48, 16  ;;  %vm7084_vm14 = vcmp.lt.s32.totalorder %v4390_v40, 16  ;;  %v500_v44 = vadd.f32 %v4138_v18, %v491_v8  ;;  %v558_v56 = vsel %vm526_vm1, %v3451_v3, %v7270_v63  ;;  %v7275_v18 = vld [vmem:[#allocation30_spill] sm:$0xff] }
 0x3c5   :  { %v592_v31 = vsel %vm589_vm4, %v7272_v57, %v7273_v24  ;;  %v537_v35 = vsel %vm514_vm2, %v528_v2, 0.0  ;;  %v506_v36 = vadd.f32 %v4142_v46, %v497_v7  ;;  %v564_v55 = vstv %s4380_s15  ;;  %v7279_v24 = vld [vmem:[#allocation24_spill] sm:$0xff]  ;;  %s5084_s15 = sld [smem:[#allocation7 + $0x10]] }
 0x3c6   :  { %v507_v42 = vadd.f32 %v7274_v32, %v498_v20  ;;  %v508_v41 = vadd.f32 %v504_v4, %v499_v12  ;;  %v557_v27 = vsel %vm526_vm1, %v7276_v25, %v7275_v18  ;;  %v560_v3 = vsel %vm514_vm2, %v556_v28, 0.0  ;;  %v7285_v32 = vld [vmem:[#allocation27_spill] sm:$0xff] }
 0x3c7   :  { %v4422_v62 = vpop.permute.xlu1 %1618  ;;  %v4424_v14 = vpop.permute.xlu0 %1599  ;;  %v605_v47 = vmul.f32 %v602_v23, %v600_v53  ;;  %v598_v34 = vsel %vm577_vm5, %v590_v1, 0.0  ;;  %v538_v46 = vsel %vm515_vm3, %v530_v29, 0.0  ;;  %v561_v4 = vsel %vm515_vm3, %v558_v56, 0.0  ;;  %v7280_v1 = vld [vmem:[#allocation26_spill] sm:$0xff] }
 0x3c8   :  { %7271 = vst [vmem:[#allocation35_spill] sm:$0xff] %v4422_v62  ;;  %v599_v16 = vsel %vm578_vm6, %v592_v31, 0.0  ;;  %v542_v30 = vmul.f32 %v539_v39, %v537_v35  ;;  %v509_v50 = vadd.f32 %v7278_v10, %v500_v44  ;;  %v559_v13 = vsel %vm526_vm1, %v7275_v18, %v7276_v25  ;;  %v7283_v31 = vld [vmem:[#allocation38_spill] sm:$0xff]  ;;  %v7287_v18 = vld [vmem:[#allocation33_spill] sm:$0xff] }
 0x3c9   :  { %v606_v60 = vmul.f32 %v602_v23, %v601_v58  ;;  %v544_v8 = vadd.f32 %v540_v0, %v506_v36  ;;  %v562_v7 = vsel %vm514_vm2, %v557_v27, 0.0  ;;  %v565_v2 = vmul.f32 %v564_v55, %v560_v3  ;;  %v7284_v36 = vld [vmem:[#allocation22_spill] sm:$0xff] }
 0x3ca   :  { %v543_v20 = vmul.f32 %v539_v39, %v538_v46  ;;  %v545_v12 = vadd.f32 %v541_v45, %v507_v42  ;;  %v546_v53 = vadd.f32 %v542_v30, %v508_v41  ;;  %v566_v63 = vmul.f32 %v564_v55, %v561_v4  ;;  %v7286_v41 = vld [vmem:[#allocation29_spill] sm:$0xff] }
 0x3cb   :  { %v603_v28 = vmul.f32 %v602_v23, %v598_v34  ;;  %v604_v57 = vmul.f32 %v602_v23, %v599_v16  ;;  %v654_v29 = vsel %vm652_vm0, %v7280_v1, %v7279_v24  ;;  %v563_v44 = vsel %vm515_vm3, %v559_v13, 0.0  ;;  %v7282_v23 = vld [vmem:[#allocation28_spill] sm:$0xff] }
 0x3cc   :  { %v656_v39 = vsel %vm652_vm0, %v7279_v24, %v7280_v1  ;;  %v547_v45 = vadd.f32 %v543_v20, %v509_v50  ;;  %v567_v56 = vmul.f32 %v564_v55, %v562_v7  ;;  %v620_v35 = vsel %vm589_vm4, %v7283_v31, %v7282_v23  ;;  %v4526_v20 = vpop.permute.xlu2 %1672  ;;  %v7290_v24 = vld [vmem:[#allocation37_spill] sm:$0xff] }
 0x3cd   :  { %v653_v42 = vsel %vm652_vm0, %v7285_v32, %v7284_v36  ;;  %v619_v25 = vsel %vm589_vm4, %v7287_v18, %v7286_v41  ;;  %v621_v27 = vsel %vm589_vm4, %v7286_v41, %v7287_v18  ;;  %v569_v3 = vadd.f32 %v565_v2, %v544_v8  ;;  %7288 = vst [vmem:[#allocation170_spill] sm:$0xff] %v4526_v20  ;;  %v7364_v20 = vld [vmem:[#allocation94_spill] sm:$0xff] }
 0x3ce   :  { %v568_v34 = vmul.f32 %v564_v55, %v563_v44  ;;  %v571_v46 = vadd.f32 %v567_v56, %v546_v53  ;;  %v570_v4 = vadd.f32 %v566_v63, %v545_v12  ;;  %v622_v16 = vsel %vm589_vm4, %v7282_v23, %v7283_v31  ;;  %v7289_v63 = vld [vmem:[#allocation32_spill] sm:$0xff] }
 0x3cf   :  { %v4481_v58 = vpop.permute.xlu1 %1624  ;;  %v4483_v0 = vpop.permute.xlu0 %1622  ;;  %v663_v30 = vsel %vm640_vm15, %v654_v29, 0.0  ;;  %v664_v10 = vsel %vm7084_vm14, %v656_v39, 0.0  ;;  %v655_v50 = vsel %vm652_vm0, %v7284_v36, %v7285_v32  ;;  %v625_v55 = vsel %vm577_vm5, %v620_v35, 0.0  ;;  %v7293_v32 = vld [vmem:[#allocation31_spill] sm:$0xff] }
 0x3d0   :  { %7281 = vst [vmem:[#allocation25_spill] sm:$0xff] %v4483_v0  ;;  %v661_v13 = vsel %vm640_vm15, %v653_v42, 0.0  ;;  %v627_v8 = vstv %s4466_s16  ;;  %v623_v7 = vsel %vm577_vm5, %v619_v25, 0.0  ;;  %v572_v2 = vadd.f32 %v568_v34, %v547_v45  ;;  %v7294_v42 = vld [vmem:[#allocation36_spill] sm:$0xff]  ;;  %s5101_s16 = sld [smem:[#allocation7 + $0x41]] }
 0x3d1   :  { %v624_v12 = vsel %vm578_vm6, %v621_v27, 0.0  ;;  %v607_v53 = vadd.f32 %v603_v28, %v569_v3  ;;  %v682_v1 = vsel %vm652_vm0, %v7290_v24, %v7289_v63  ;;  %v626_v29 = vsel %vm578_vm6, %v622_v16, 0.0 }
 0x3d2   :  { %v609_v44 = vadd.f32 %v605_v47, %v571_v46  ;;  %v608_v39 = vadd.f32 %v604_v57, %v570_v4  ;;  %v684_v45 = vsel %vm652_vm0, %v7289_v63, %v7290_v24  ;;  %v630_v56 = vmul.f32 %v627_v8, %v625_v55 }
 0x3d3   :  { %v668_v28 = vmul.f32 %v4405_v43, %v663_v30  ;;  %v669_v23 = vmul.f32 %v4405_v43, %v664_v10  ;;  %v662_v31 = vsel %vm7084_vm14, %v655_v50, 0.0  ;;  %v628_v35 = vmul.f32 %v627_v8, %v623_v7  ;;  %v7295_v10 = vld [vmem:[#allocation50_spill] sm:$0xff] }
 0x3d4   :  { %v629_v57 = vmul.f32 %v627_v8, %v624_v12  ;;  %v683_v41 = vsel %vm652_vm0, %v7294_v42, %v7293_v32  ;;  %v610_v18 = vadd.f32 %v606_v60, %v572_v2  ;;  %v631_v25 = vmul.f32 %v627_v8, %v626_v29  ;;  %v7296_v60 = vld [vmem:[#allocation52_spill] sm:$0xff]  ;;  %v7297_v29 = vld [vmem:[#allocation47_spill] sm:$0xff] }
 0x3d5   :  { %v685_v27 = vsel %vm652_vm0, %v7293_v32, %v7294_v42  ;;  %v632_v3 = vadd.f32 %v628_v35, %v607_v53  ;;  %v686_v34 = vsel %vm640_vm15, %v682_v1, 0.0  ;;  %v687_v46 = vsel %vm7084_vm14, %v684_v45, 0.0 }
 0x3d6   :  { %v666_v4 = vmul.f32 %v4405_v43, %v661_v13  ;;  %v633_v16 = vadd.f32 %v629_v57, %v608_v39  ;;  %v634_v30 = vadd.f32 %v630_v56, %v609_v44  ;;  %v754_v50 = vsel %vm7099_vm8, %v7296_v60, %v7295_v10  ;;  %v7298_v44 = vld [vmem:[#allocation53_spill] sm:$0xff]  ;;  %v4598_v57 = vpop.permute.xlu2 %1695 }
 0x3d7   :  { %v4548_v36 = vpop.permute.xlu1 %1647  ;;  %v4550_v47 = vpop.permute.xlu0 %1645  ;;  %v667_v55 = vmul.f32 %v4405_v43, %v662_v31  ;;  %v690_v8 = vstv %s4517_s17  ;;  %v688_v7 = vsel %vm640_vm15, %v683_v41, 0.0  ;;  %v752_v13 = vsel %vm7099_vm8, %v7295_v10, %v7296_v60  ;;  %7299 = vst [vmem:[#allocation171_spill] sm:$0xff] %v4598_v57  ;;  %v7323_v57 = vld [vmem:[#allocation68_spill] sm:$0xff]  ;;  %s5166_s17 = sld [smem:[#allocation7 + $0x11]] }
 0x3d8   :  { %7291 = vst [vmem:[#allocation30_spill] sm:$0xff] %v4548_v36  ;;  %v689_v2 = vsel %vm7084_vm14, %v685_v27, 0.0  ;;  %v691_v12 = vmul.f32 %v690_v8, %v686_v34  ;;  %v692_v53 = vmul.f32 %v690_v8, %v687_v46  ;;  %v635_v63 = vadd.f32 %v631_v25, %v610_v18 }
 0x3d9   :  { %7292 = vst [vmem:[#allocation34_spill] sm:$0xff] %v4550_v47  ;;  %v670_v24 = vadd.f32 %v666_v4, %v632_v3  ;;  %v760_v1 = vstv %s4536_s18  ;;  %v756_v43 = vsel %vm7067_vm7, %v754_v50, 0.0  ;;  %v755_v39 = vsel %vm7099_vm8, %v7298_v44, %v7297_v29  ;;  %v7302_v4 = vld [vmem:[#allocation55_spill] sm:$0xff]  ;;  %v7365_v47 = vld [vmem:[#allocation92_spill] sm:$0xff]  ;;  %s5192_s18 = sld [smem:[#allocation7 + $0x42]] }
 0x3da   :  { %v671_v45 = vadd.f32 %v667_v55, %v633_v16  ;;  %v672_v56 = vadd.f32 %v668_v28, %v634_v30  ;;  %v757_v31 = vsel %vm7066_vm9, %v752_v13, 0.0  ;;  %v753_v35 = vsel %vm7099_vm8, %v7297_v29, %v7298_v44  ;;  %v7303_v16 = vld [vmem:[#allocation48_spill] sm:$0xff]  ;;  %v7307_v29 = vld [vmem:[#allocation51_spill] sm:$0xff] }
 0x3db   :  { %v693_v32 = vmul.f32 %v690_v8, %v688_v7  ;;  %v4601_v42 = vstv %s4546_s19  ;;  %v694_v28 = vmul.f32 %v690_v8, %v689_v2  ;;  %v673_v25 = vadd.f32 %v669_v23, %v635_v63  ;;  %v7304_v7 = vld [vmem:[#allocation49_spill] sm:$0xff]  ;;  %v7305_v13 = vld [vmem:[#allocation56_spill] sm:$0xff]  ;;  %s5206_s19 = sld [smem:[#allocation7 + $0x12]] }
 0x3dc   :  { %v761_v27 = vmul.f32 %v760_v1, %v756_v43  ;;  %v758_v3 = vsel %vm7067_vm7, %v755_v39, 0.0  ;;  %v762_v34 = vmul.f32 %v760_v1, %v757_v31  ;;  %v759_v46 = vsel %vm7066_vm9, %v753_v35, 0.0  ;;  %v7306_v43 = vld [vmem:[#allocation59_spill] sm:$0xff] }
 0x3dd   :  { %v777_v30 = vsel %vm7099_vm8, %v7303_v16, %v7302_v4  ;;  %v779_v23 = vsel %vm7099_vm8, %v7302_v4, %v7303_v16  ;;  %v695_v10 = vadd.f32 %v691_v12, %v670_v24  ;;  %v696_v60 = vadd.f32 %v692_v53, %v671_v45 }
 0x3de   :  { %v697_v50 = vadd.f32 %v693_v32, %v672_v56  ;;  %v785_v55 = vstv %s4569_s22  ;;  %v763_v8 = vmul.f32 %v760_v1, %v758_v3  ;;  %v778_v2 = vsel %vm7099_vm8, %v7305_v13, %v7304_v7  ;;  %s5214_s22 = sld [smem:[#allocation7 + $0x43]] }
 0x3df   :  { %v4603_v41 = vpop.permute.xlu1 %1670  ;;  %v4605_v18 = vpop.permute.xlu0 %1668  ;;  %v780_v63 = vsel %vm7099_vm8, %v7304_v7, %v7305_v13  ;;  %v804_v12 = vsel %vm382_vm11, %v7307_v29, %v7306_v43  ;;  %v764_v53 = vmul.f32 %v760_v1, %v759_v46  ;;  %v781_v24 = vsel %vm7067_vm7, %v779_v23, 0.0 }
 0x3e0   :  { %7300 = vst [vmem:[#allocation24_spill] sm:$0xff] %v4603_v41  ;;  %v782_v44 = vsel %vm7066_vm9, %v777_v30, 0.0  ;;  %v802_v39 = vsel %vm382_vm11, %v7306_v43, %v7307_v29  ;;  %v698_v45 = vadd.f32 %v694_v28, %v673_v25  ;;  %v765_v56 = vadd.f32 %v761_v27, %v695_v10  ;;  %v7308_v25 = vld [vmem:[#allocation61_spill] sm:$0xff]  ;;  %v7312_v29 = vld [vmem:[#allocation58_spill] sm:$0xff] }
 0x3e1   :  { %7301 = vst [vmem:[#allocation26_spill] sm:$0xff] %v4605_v18  ;;  %v766_v31 = vadd.f32 %v762_v34, %v696_v60  ;;  %v810_v35 = vstv %s4588_s0  ;;  %v783_v32 = vsel %vm7067_vm7, %v780_v63, 0.0  ;;  %v784_v1 = vsel %vm7066_vm9, %v778_v2, 0.0  ;;  %v7309_v27 = vld [vmem:[#allocation65_spill] sm:$0xff]  ;;  %s5217_s0 = sld [smem:[#allocation7 + $0x13]] }
 0x3e2   :  { %v806_v3 = vsel %vm7089_vm10, %v804_v12, 0.0  ;;  %v4652_v46 = vstv %s4596_s1  ;;  %v786_v4 = vmul.f32 %v785_v55, %v781_v24  ;;  %v787_v16 = vmul.f32 %v785_v55, %v782_v44  ;;  %v7313_v12 = vld [vmem:[#allocation62_spill] sm:$0xff]  ;;  %v4675_v44 = vpop.permute.xlu2 %1718  ;;  %s5239_s1 = sld [smem:[#allocation7 + $0x44]] }
 0x3e3   :  { %v807_v28 = vsel %vm7088_vm12, %v802_v39, 0.0  ;;  %v829_v34 = vsel %vm382_vm11, %v7309_v27, %v7308_v25  ;;  %v767_v10 = vadd.f32 %v763_v8, %v697_v50  ;;  %v768_v60 = vadd.f32 %v764_v53, %v698_v45  ;;  %7314 = vst [vmem:[#allocation22_spill] sm:$0xff] %v4675_v44  ;;  %v7315_v53 = vld [vmem:[#allocation67_spill] sm:$0xff]  ;;  %v7316_v39 = vld [vmem:[#allocation57_spill] sm:$0xff] }
 0x3e4   :  { %v827_v7 = vsel %vm382_vm11, %v7308_v25, %v7309_v27  ;;  %v4669_v13 = vstv %s4609_s29  ;;  %v788_v2 = vmul.f32 %v785_v55, %v783_v32  ;;  %v789_v63 = vmul.f32 %v785_v55, %v784_v1  ;;  %v7318_v44 = vld [vmem:[#allocation71_spill] sm:$0xff]  ;;  %s5279_s29 = sld [smem:[#allocation7 + $0x14]] }
 0x3e5   :  { %v811_v43 = vmul.f32 %v810_v35, %v806_v3  ;;  %v805_v24 = vsel %vm382_vm11, %v7313_v12, %v7312_v29  ;;  %v812_v50 = vmul.f32 %v810_v35, %v807_v28  ;;  %v831_v8 = vsel %vm7089_vm10, %v829_v34, 0.0  ;;  %v7317_v34 = vld [vmem:[#allocation63_spill] sm:$0xff] }
 0x3e6   :  { %v852_v45 = vsel %vm7074_vm13, %v7316_v39, %v7315_v53  ;;  %v854_v55 = vsel %vm7074_vm13, %v7315_v53, %v7316_v39  ;;  %v790_v32 = vadd.f32 %v786_v4, %v765_v56  ;;  %v791_v1 = vadd.f32 %v787_v16, %v766_v31  ;;  %v7319_v31 = vld [vmem:[#allocation54_spill] sm:$0xff]  ;;  %v7320_v4 = vld [vmem:[#allocation64_spill] sm:$0xff] }
 0x3e7   :  { %v4660_v30 = vpop.permute.xlu1 %1693  ;;  %v4662_v23 = vpop.permute.xlu0 %1674  ;;  %v832_v3 = vsel %vm7088_vm12, %v827_v7, 0.0  ;;  %v4690_v25 = vstv %s4634_s30  ;;  %v803_v28 = vsel %vm382_vm11, %v7312_v29, %v7313_v12  ;;  %v808_v27 = vsel %vm7089_vm10, %v805_v24, 0.0  ;;  %s5310_s30 = sld [smem:[#allocation7 + $0x45]] }
 0x3e8   :  { %7310 = vst [vmem:[#allocation28_spill] sm:$0xff] %v4660_v30  ;;  %v877_v53 = vsel %vm7074_vm13, %v7318_v44, %v7317_v34  ;;  %v879_v56 = vsel %vm7074_vm13, %v7317_v34, %v7318_v44  ;;  %v830_v16 = vsel %vm382_vm11, %v7320_v4, %v7319_v31  ;;  %v836_v7 = vmul.f32 %v4652_v46, %v831_v8  ;;  %v7324_v8 = vld [vmem:[#allocation60_spill] sm:$0xff] }
 0x3e9   :  { %7311 = vst [vmem:[#allocation38_spill] sm:$0xff] %v4662_v23  ;;  %vm7321_vm9 = vcmp.ge.s32.totalorder %v4177_v17, 0  ;;  %vm7322_vm7 = vcmp.ge.s32.totalorder %v4180_v54, 0  ;;  %v815_v24 = vadd.f32 %v811_v43, %v790_v32  ;;  %v816_v39 = vadd.f32 %v812_v50, %v791_v1 }
 0x3ea   :  { %v856_v29 = vsel %vm7321_vm9, %v854_v55, 0.0  ;;  %v857_v12 = vsel %vm7322_vm7, %v852_v45, 0.0  ;;  %v828_v44 = vsel %vm382_vm11, %v7319_v31, %v7320_v4  ;;  %v837_v34 = vmul.f32 %v4652_v46, %v832_v3 }
 0x3eb   :  { %v809_v30 = vsel %vm7088_vm12, %v803_v28, 0.0  ;;  %v855_v55 = vsel %vm7074_vm13, %v7324_v8, %v7323_v57  ;;  %v881_v45 = vsel %vm7321_vm9, %v879_v56, 0.0  ;;  %v882_v43 = vsel %vm7322_vm7, %v877_v53, 0.0 }
 0x3ec   :  { %v813_v1 = vmul.f32 %v810_v35, %v808_v27  ;;  %v833_v3 = vsel %vm7089_vm10, %v830_v16, 0.0  ;;  %v861_v28 = vmul.f32 %v4669_v13, %v856_v29  ;;  %v862_v31 = vmul.f32 %v4669_v13, %v857_v12 }
 0x3ed   :  { %v834_v56 = vsel %vm7088_vm12, %v828_v44, 0.0  ;;  %v840_v4 = vadd.f32 %v836_v7, %v815_v24  ;;  %v853_v53 = vsel %vm7074_vm13, %v7323_v57, %v7324_v8  ;;  %v841_v41 = vadd.f32 %v837_v34, %v816_v39  ;;  %v4759_v8 = vpop.permute.xlu2 %1724 }
 0x3ee   :  { %v858_v16 = vsel %vm7321_vm9, %v855_v55, 0.0  ;;  %v886_v29 = vmul.f32 %v4690_v25, %v881_v45  ;;  %v887_v12 = vmul.f32 %v4690_v25, %v882_v43  ;;  %v792_v44 = vadd.f32 %v788_v2, %v767_v10  ;;  %7329 = vst [vmem:[#allocation33_spill] sm:$0xff] %v4759_v8 }
 0x3ef   :  { %v4730_v50 = vpop.permute.xlu1 %1699  ;;  %v4732_v32 = vpop.permute.xlu0 %1697  ;;  %v814_v7 = vmul.f32 %v810_v35, %v809_v30  ;;  %v838_v24 = vmul.f32 %v4652_v46, %v833_v3  ;;  %v865_v23 = vadd.f32 %v861_v28, %v840_v4  ;;  %v866_v39 = vadd.f32 %v862_v31, %v841_v41  ;;  %v7335_v4 = vld [vmem:[#allocation41_spill] sm:$0xff] }
 0x3f0   :  { %7325 = vst [vmem:[#allocation27_spill] sm:$0xff] %v4730_v50  ;;  %v7328_v50 = vld [vmem:[#allocation74_spill] sm:$0xff]  ;;  %v859_v34 = vsel %vm7322_vm7, %v853_v53, 0.0  ;;  %v793_v35 = vadd.f32 %v789_v63, %v768_v60  ;;  %v817_v30 = vadd.f32 %v813_v1, %v792_v44  ;;  %v839_v10 = vmul.f32 %v4652_v46, %v834_v56  ;;  %v7333_v1 = vld [vmem:[#allocation40_spill] sm:$0xff] }
 0x3f1   :  { %7326 = vst [vmem:[#allocation29_spill] sm:$0xff] %v4732_v32  ;;  %v7327_v32 = vld [vmem:[#allocation70_spill] sm:$0xff]  ;;  %v863_v2 = vmul.f32 %v4669_v13, %v858_v16  ;;  %v890_v45 = vadd.f32 %v886_v29, %v865_v23  ;;  %v891_v43 = vadd.f32 %v887_v12, %v866_v39  ;;  %v864_v3 = vmul.f32 %v4669_v13, %v859_v34  ;;  %v7334_v23 = vld [vmem:[#allocation39_spill] sm:$0xff] }
 0x3f2   :  { %v880_v27 = vsel %vm7074_vm13, %v7328_v50, %v7327_v32  ;;  %v878_v57 = vsel %vm7074_vm13, %v7327_v32, %v7328_v50  ;;  %vm7330_vm13 = vmmov %vm7322_vm7  ;;  %v818_v50 = vadd.f32 %v814_v7, %v793_v35  ;;  %v842_v32 = vadd.f32 %v838_v24, %v817_v30  ;;  %v7336_v29 = vld [vmem:[#allocation42_spill] sm:$0xff]  ;;  %v7338_v39 = vld [vmem:[#allocation43_spill] sm:$0xff] }
 0x3f3   :  { %v883_v55 = vsel %vm7321_vm9, %v880_v27, 0.0  ;;  %v884_v41 = vsel %vm7330_vm13, %v878_v57, 0.0  ;;  %v895_v28 = vmul.f32 %v4601_v42, %v7333_v1  ;;  %v896_v31 = vmul.f32 %v4601_v42, %v7334_v23  ;;  %v7337_v24 = vld [vmem:[#allocation166_spill] sm:$0xff] }
 0x3f4   :  { %v888_v60 = vmul.f32 %v4690_v25, %v883_v55  ;;  %v903_v56 = vstv %s4734_s4  ;;  %v897_v53 = vmul.f32 %v4601_v42, %v7335_v4  ;;  %v843_v27 = vadd.f32 %v839_v10, %v818_v50  ;;  %v7339_v55 = vld [vmem:[#allocation45_spill] sm:$0xff]  ;;  %v7340_v10 = vld [vmem:[#allocation46_spill] sm:$0xff]  ;;  %v7341_v50 = vld [vmem:[#allocation44_spill] sm:$0xff]  ;;  %s5330_s4 = sld [smem:[#allocation7 + $0x15]] }
 0x3f5   :  { %v867_v16 = vadd.f32 %v863_v2, %v842_v32  ;;  %v889_v13 = vmul.f32 %v4690_v25, %v884_v41  ;;  %v898_v12 = vmul.f32 %v4601_v42, %v7336_v29  ;;  %v899_v44 = vadd.f32 %v895_v28, %v890_v45  ;;  %v7342_v32 = vld [vmem:[#allocation75_spill] sm:$0xff]  ;;  %v7343_v23 = vld [vmem:[#allocation66_spill] sm:$0xff]  ;;  %v7345_v28 = vld [vmem:[#allocation73_spill] sm:$0xff] }
 0x3f6   :  { %v900_v7 = vadd.f32 %v896_v31, %v891_v43  ;;  %v4792_v57 = vadd.s32 16, %v7337_v24  ;;  %v904_v34 = vmul.f32 %v903_v56, %v7338_v39  ;;  %v905_v35 = vmul.f32 %v903_v56, %v7339_v55  ;;  %v7344_v43 = vld [vmem:[#allocation76_spill] sm:$0xff]  ;;  %v7346_v55 = vld [vmem:[#allocation78_spill] sm:$0xff] }
 0x3f7   :  { %v4777_v63 = vpop.permute.xlu1 %1722  ;;  %v4779_v46 = vpop.permute.xlu0 %1720  ;;  %v868_v30 = vadd.f32 %v864_v3, %v843_v27  ;;  %v892_v1 = vadd.f32 %v888_v60, %v867_v16  ;;  %v906_v2 = vmul.f32 %v903_v56, %v7340_v10  ;;  %v907_v25 = vmul.f32 %v903_v56, %v7341_v50 }
 0x3f8   :  { %7331 = vst [vmem:[#allocation32_spill] sm:$0xff] %v4777_v63  ;;  %v928_v41 = vstv %s4765_s5  ;;  %v921_v42 = vsel %vm526_vm1, %v7343_v23, %v7342_v32  ;;  %v920_v31 = vsel %vm526_vm1, %v7345_v28, %v7344_v43  ;;  %v953_v3 = vstv %s4769_s6  ;;  %v1756_v60 = vpop.permute.xlu2 %1755  ;;  %s5349_s5 = sld [smem:[#allocation7 + $0x46]] }
 0x3f9   :  { %7332 = vst [vmem:[#allocation37_spill] sm:$0xff] %v4779_v46  ;;  %v893_v45 = vadd.f32 %v889_v13, %v868_v30  ;;  %vm1759_vm13 = vcmp.lt.s32.totalorder %v3247_v9, 112  ;;  %v908_v4 = vadd.f32 %v904_v34, %v899_v44  ;;  %v909_v56 = vadd.f32 %v905_v35, %v900_v7  ;;  %s5400_s6 = sld [smem:[#allocation7 + $0x16]] }
 0x3fa   :  { %v4812_v27 = vstv %s4773_s7  ;;  %vm1748_vm7 = vcmp.lt.s32.totalorder %v4792_v57, 256  ;;  %v901_v16 = vadd.f32 %v897_v53, %v892_v1  ;;  %v923_v13 = vsel %vm526_vm1, %v7342_v32, %v7343_v23  ;;  %v7347_v53 = vld [vmem:[#allocation69_spill] sm:$0xff]  ;;  %v7348_v32 = vld [vmem:[#allocation72_spill] sm:$0xff]  ;;  %v7349_v23 = vld [vmem:[#allocation79_spill] sm:$0xff]  ;;  %s5432_s7 = sld [smem:[#allocation7 + $0x47]] }
 0x3fb   :  { %v926_v29 = vsel %vm514_vm2, %v921_v42, 0.0  ;;  %v922_v39 = vsel %vm526_vm1, %v7344_v43, %v7345_v28  ;;  %v924_v34 = vsel %vm514_vm2, %v920_v31, 0.0  ;;  %v945_v35 = vsel %vm526_vm1, %v7347_v53, %v7346_v55 }
 0x3fc   :  { %v902_v10 = vadd.f32 %v898_v12, %v893_v45  ;;  %v947_v50 = vsel %vm526_vm1, %v7346_v55, %v7347_v53  ;;  %v946_v42 = vsel %vm526_vm1, %v7349_v23, %v7348_v32  ;;  %v927_v12 = vsel %vm515_vm3, %v923_v13, 0.0  ;;  %v7350_v55 = vld [vmem:[#allocation77_spill] sm:$0xff]  ;;  %v7351_v13 = vld [vmem:[#allocation82_spill] sm:$0xff] }
 0x3fd   :  { %v931_v45 = vmul.f32 %v928_v41, %v926_v29  ;;  %v925_v28 = vsel %vm515_vm3, %v922_v39, 0.0  ;;  %v948_v31 = vsel %vm526_vm1, %v7348_v32, %v7349_v23  ;;  %v970_v29 = vsel %vm589_vm4, %v7351_v13, %v7350_v55 }
 0x3fe   :  { %v972_v39 = vsel %vm589_vm4, %v7350_v55, %v7351_v13  ;;  %v910_v53 = vadd.f32 %v906_v2, %v901_v16  ;;  %v4878_v32 = vstv %s4803_s8  ;;  %v932_v23 = vmul.f32 %v928_v41, %v927_v12  ;;  %v7352_v13 = vld [vmem:[#allocation85_spill] sm:$0xff]  ;;  %s5458_s8 = sld [smem:[#allocation7 + $0x17]] }
 0x3ff   :  { %v1754_v44 = vpop.permute.xlu1 %1753  ;;  %v1752_v7 = vpop.permute.xlu0 %1751  ;;  %v930_v24 = vmul.f32 %v928_v41, %v925_v28  ;;  %v952_v46 = vsel %vm515_vm3, %v948_v31, 0.0  ;;  %v974_v2 = vsel %vm577_vm5, %v970_v29, 0.0  ;;  %v975_v16 = vsel %vm578_vm6, %v972_v39, 0.0 }
 0x400   :  { %v4833_v30 = vsel %vm1759_vm13, %v1752_v7, %v1756_v60  ;;  %v1762_v1 = vsel %vm1759_vm13, %v1756_v60, %v1752_v7  ;;  %v929_v60 = vmul.f32 %v928_v41, %v924_v34  ;;  %v949_v7 = vsel %vm514_vm2, %v945_v35, 0.0 }
 0x401   :  { %v4847_v43 = vsel %vm1748_vm7, %v1762_v1, 0.0  ;;  %1788 = vrot.lane.b32.xlu2 %v4833_v30, %s3158_s24  ;;  %v950_v1 = vsel %vm515_vm3, %v947_v50, 0.0  ;;  %v951_v34 = vsel %vm514_vm2, %v946_v42, 0.0  ;;  %v911_v35 = vadd.f32 %v907_v25, %v902_v10  ;;  %v7353_v25 = vld [vmem:[#allocation81_spill] sm:$0xff] }
 0x402   :  { %1792 = vrot.lane.b32.xlu1 %v4847_v43, %s3158_s24  ;;  %v935_v8 = vadd.f32 %v931_v45, %v910_v53  ;;  %v954_v63 = vmul.f32 %v953_v3, %v949_v7  ;;  %v933_v50 = vadd.f32 %v929_v60, %v908_v4  ;;  %v955_v42 = vmul.f32 %v953_v3, %v950_v1 }
 0x403   :  { %v956_v55 = vmul.f32 %v953_v3, %v951_v34  ;;  %v971_v41 = vsel %vm589_vm4, %v7353_v25, %v7352_v13  ;;  %v957_v28 = vmul.f32 %v953_v3, %v952_v46  ;;  %v973_v45 = vsel %vm589_vm4, %v7352_v13, %v7353_v25  ;;  %v7355_v34 = vld [vmem:[#allocation80_spill] sm:$0xff] }
 0x404   :  { %v934_v60 = vadd.f32 %v930_v24, %v909_v56  ;;  %v979_v7 = vmul.f32 %v4812_v27, %v974_v2  ;;  %v980_v29 = vmul.f32 %v4812_v27, %v975_v16  ;;  %v936_v3 = vadd.f32 %v932_v23, %v911_v35  ;;  %v7356_v16 = vld [vmem:[#allocation88_spill] sm:$0xff] }
 0x405   :  { %v958_v39 = vadd.f32 %v954_v63, %v933_v50  ;;  %v976_v53 = vsel %vm577_vm5, %v971_v41, 0.0  ;;  %v1028_v1 = vstv %s4859_s9  ;;  %v977_v56 = vsel %vm578_vm6, %v973_v45, 0.0  ;;  %v7357_v35 = vld [vmem:[#allocation84_spill] sm:$0xff]  ;;  %s5467_s9 = sld [smem:[#allocation7 + $0x18]] }
 0x406   :  { %v959_v24 = vadd.f32 %v955_v42, %v934_v60  ;;  %v995_v63 = vsel %vm589_vm4, %v7357_v35, %v7356_v16  ;;  %v960_v23 = vadd.f32 %v956_v55, %v935_v8  ;;  %v961_v50 = vadd.f32 %v957_v28, %v936_v3  ;;  %v7358_v28 = vld [vmem:[#allocation89_spill] sm:$0xff]  ;;  %v7359_v3 = vld [vmem:[#allocation83_spill] sm:$0xff] }
 0x407   :  { %v1773_v10 = vpop.permute.xlu1 %1772  ;;  %v1758_v12 = vpop.permute.xlu0 %1757  ;;  %v997_v13 = vsel %vm589_vm4, %v7356_v16, %v7357_v35  ;;  %v983_v25 = vadd.f32 %v979_v7, %v958_v39  ;;  %v1053_v45 = vstv %s4882_s10  ;;  %v982_v60 = vmul.f32 %v4812_v27, %v977_v56  ;;  %v7360_v39 = vld [vmem:[#allocation86_spill] sm:$0xff]  ;;  %s5471_s10 = sld [smem:[#allocation7 + $0x48]] }
 0x408   :  { %v4898_v31 = vsel %vm1759_vm13, %v1754_v44, %v1758_v12  ;;  %v1763_v4 = vsel %vm1759_vm13, %v1758_v12, %v1754_v44  ;;  %v7354_v44 = vld [vmem:[#allocation87_spill] sm:$0xff]  ;;  %v984_v41 = vadd.f32 %v980_v29, %v959_v24  ;;  %v981_v12 = vmul.f32 %v4812_v27, %v976_v53  ;;  %v7361_v53 = vld [vmem:[#allocation90_spill] sm:$0xff] }
 0x409   :  { %v4906_v46 = vsel %vm1748_vm7, %v1763_v4, 0.0  ;;  %1790 = vrot.lane.b32.xlu0 %v4898_v31, %s3158_s24  ;;  %v996_v2 = vsel %vm589_vm4, %v7355_v34, %v7354_v44  ;;  %v998_v42 = vsel %vm589_vm4, %v7354_v44, %v7355_v34  ;;  %v1775_v4 = vpop.permute.xlu2 %1774  ;;  %v999_v55 = vsel %vm577_vm5, %v995_v63, 0.0 }
 0x40a   :  { %1794 = vrot.lane.b32.xlu2 %v4906_v46, %s3158_s24  ;;  %v1001_v8 = vsel %vm577_vm5, %v996_v2, 0.0  ;;  %v1020_v44 = vsel %vm652_vm0, %v7359_v3, %v7358_v28  ;;  %v1002_v7 = vsel %vm578_vm6, %v998_v42, 0.0  ;;  %v1000_v29 = vsel %vm578_vm6, %v997_v13, 0.0 }
 0x40b   :  { %v1022_v27 = vsel %vm652_vm0, %v7358_v28, %v7359_v3  ;;  %v1021_v24 = vsel %vm652_vm0, %v7361_v53, %v7360_v39  ;;  %v1023_v2 = vsel %vm652_vm0, %v7360_v39, %v7361_v53  ;;  %v1004_v42 = vmul.f32 %v4878_v32, %v999_v55  ;;  %v7362_v28 = vld [vmem:[#allocation91_spill] sm:$0xff]  ;;  %v7363_v3 = vld [vmem:[#allocation93_spill] sm:$0xff] }
 0x40c   :  { %v1024_v13 = vsel %vm640_vm15, %v1020_v44, 0.0  ;;  %v1045_v39 = vsel %vm652_vm0, %v7363_v3, %v7362_v28  ;;  %v1006_v55 = vmul.f32 %v4878_v32, %v1001_v8  ;;  %v1007_v44 = vmul.f32 %v4878_v32, %v1002_v7 }
 0x40d   :  { %v1027_v18 = vsel %vm7084_vm14, %v1023_v2, 0.0  ;;  %v986_v8 = vadd.f32 %v982_v60, %v961_v50  ;;  %v1005_v7 = vmul.f32 %v4878_v32, %v1000_v29  ;;  %v1008_v2 = vadd.f32 %v1004_v42, %v983_v25 }
 0x40e   :  { %v1047_v37 = vsel %vm652_vm0, %v7362_v28, %v7363_v3  ;;  %v7367_v3 = vld [vmem:[#allocation103_spill] sm:$0xff]  ;;  %vm7370_vm9 = vcmp.ge.s32.totalorder %v4111_v11, 0  ;;  %v1223_v0 = vstv %s5084_s15  ;;  %s5632_s15 = sld [smem:[#allocation7 + $0x4b]] }
 0x40f   :  { %v1779_v56 = vpop.permute.xlu1 %1778  ;;  %v1777_v34 = vpop.permute.xlu0 %1776  ;;  %v1011_v60 = vadd.f32 %v1007_v44, %v986_v8  ;;  %v1009_v42 = vadd.f32 %v1005_v7, %v984_v41  ;;  %v1050_v28 = vsel %vm7084_vm14, %v1047_v37, 0.0  ;;  %v7369_v44 = vld [vmem:[#allocation106_spill] sm:$0xff]  ;;  %v7372_v8 = vld [vmem:[#allocation112_spill] sm:$0xff] }
 0x410   :  { %v4962_v16 = vsel %vm1759_vm13, %v1775_v4, %v1779_v56  ;;  %v4966_v35 = vsel %vm1759_vm13, %v1773_v10, %v1777_v34  ;;  %v1782_v63 = vsel %vm1759_vm13, %v1777_v34, %v1773_v10  ;;  %v985_v10 = vadd.f32 %v981_v12, %v960_v23 }
 0x411   :  { %v4979_v53 = vsel %vm1748_vm7, %v1782_v63, 0.0  ;;  %1815 = vrot.lane.b32.xlu1 %v4962_v16, %s3158_s24  ;;  %1813 = vrot.lane.b32.xlu0 %v4966_v35, %s3158_s24  ;;  %v1025_v34 = vsel %vm7084_vm14, %v1022_v27, 0.0  ;;  %v1026_v63 = vsel %vm640_vm15, %v1021_v24, 0.0  ;;  %v1046_v23 = vsel %vm652_vm0, %v7365_v47, %v7364_v20 }
 0x412   :  { %1817 = vrot.lane.b32.xlu2 %v4979_v53, %s3158_s24  ;;  %v1048_v12 = vsel %vm652_vm0, %v7364_v20, %v7365_v47  ;;  %v1029_v27 = vmul.f32 %v1028_v1, %v1024_v13  ;;  %v1049_v24 = vsel %vm640_vm15, %v1045_v39, 0.0  ;;  %v1030_v52 = vmul.f32 %v1028_v1, %v1025_v34 }
 0x413   :  { %v1783_v36 = vsel %vm1759_vm13, %v1779_v56, %v1775_v4  ;;  %v1031_v20 = vmul.f32 %v1028_v1, %v1026_v63  ;;  %v1032_v47 = vmul.f32 %v1028_v1, %v1027_v18  ;;  %v1051_v32 = vsel %vm640_vm15, %v1046_v23, 0.0  ;;  %v7366_v56 = vld [vmem:[#allocation107_spill] sm:$0xff]  ;;  %vm7375_vm13 = vmmov %vm7370_vm9 }
 0x414   :  { %v1052_v50 = vsel %vm7084_vm14, %v1048_v12, 0.0  ;;  %v1010_v25 = vadd.f32 %v1006_v55, %v985_v10  ;;  %v1054_v29 = vmul.f32 %v1053_v45, %v1049_v24  ;;  %v1033_v13 = vadd.f32 %v1029_v27, %v1008_v2  ;;  %v7368_v55 = vld [vmem:[#allocation110_spill] sm:$0xff]  ;;  %v7371_v12 = vld [vmem:[#allocation104_spill] sm:$0xff]  ;;  %vm7378_vm14 = vmmov %vm7375_vm13 }
 0x415   :  { %v5024_v18 = vsel %vm1748_vm7, %v1783_v36, 0.0  ;;  %v1056_v1 = vmul.f32 %v1053_v45, %v1051_v32  ;;  %v1057_v4 = vmul.f32 %v1053_v45, %v1052_v50  ;;  %v1117_v39 = vsel %vm7099_vm8, %v7367_v3, %v7366_v56 }
 0x416   :  { %v1034_v37 = vadd.f32 %v1030_v52, %v1009_v42  ;;  %v1035_v57 = vadd.f32 %v1031_v20, %v1010_v25  ;;  %v1036_v41 = vadd.f32 %v1032_v47, %v1011_v60  ;;  %v1055_v36 = vmul.f32 %v1053_v45, %v1050_v28  ;;  %v7373_v20 = vld [vmem:[#allocation109_spill] sm:$0xff] }
 0x417   :  { %v1058_v10 = vadd.f32 %v1054_v29, %v1033_v13  ;;  %v1116_v34 = vsel %vm7099_vm8, %v7369_v44, %v7368_v55  ;;  %v1118_v63 = vsel %vm7099_vm8, %v7368_v55, %v7369_v44  ;;  %v1123_v23 = vstv %s5006_s11  ;;  %v7374_v47 = vld [vmem:[#allocation113_spill] sm:$0xff]  ;;  %v7384_v55 = vld [vmem:[#allocation108_spill] sm:$0xff]  ;;  %s5523_s11 = sld [smem:[#allocation7 + $0x49]] }
 0x418   :  { %v1115_v52 = vsel %vm7099_vm8, %v7366_v56, %v7367_v3  ;;  %v1119_v45 = vsel %vm7370_vm9, %v1117_v39, 0.0  ;;  %v1143_v7 = vsel %vm7099_vm8, %v7372_v8, %v7371_v12  ;;  %v1060_v27 = vadd.f32 %v1056_v1, %v1035_v57  ;;  %v7379_v1 = vld [vmem:[#allocation105_spill] sm:$0xff] }
 0x419   :  { %1838 = vrot.lane.b32.xlu1 %v4833_v30, %s3157_s23  ;;  %1819 = vrot.lane.b32.xlu0 %v5024_v18, %s3158_s24  ;;  %v1061_v24 = vadd.f32 %v1057_v4, %v1036_v41  ;;  %v1141_v2 = vsel %vm7099_vm8, %v7371_v12, %v7372_v8  ;;  %v1142_v32 = vsel %vm7099_vm8, %v7374_v47, %v7373_v20  ;;  %v1121_v50 = vsel %vm7375_vm13, %v1118_v63, 0.0  ;;  %v7380_v4 = vld [vmem:[#allocation115_spill] sm:$0xff]  ;;  %v7383_v41 = vld [vmem:[#allocation116_spill] sm:$0xff] }
 0x41a   :  { %1840 = vrot.lane.b32.xlu2 %v4898_v31, %s3157_s23  ;;  %vm7376_vm7 = vcmp.ge.s32.totalorder %v4116_v5, 0  ;;  %v1148_v60 = vstv %s5018_s12  ;;  %v1140_v29 = vsel %vm7099_vm8, %v7373_v20, %v7374_v47  ;;  %v1124_v13 = vmul.f32 %v1123_v23, %v1119_v45  ;;  %s5598_s12 = sld [smem:[#allocation7 + $0x19]] }
 0x41b   :  { %v1122_v25 = vsel %vm7376_vm7, %v1116_v34, 0.0  ;;  %vm7377_vm9 = vmmov %vm7376_vm7  ;;  %v1146_v28 = vsel %vm7378_vm14, %v1143_v7, 0.0  ;;  %v1167_v56 = vsel %vm382_vm11, %v7380_v4, %v7379_v1  ;;  %v1165_v57 = vsel %vm382_vm11, %v7379_v1, %v7380_v4 }
 0x41c   :  { %v1120_v42 = vsel %vm7377_vm9, %v1115_v52, 0.0  ;;  %vm7381_vm13 = vmmov %vm7376_vm7  ;;  %v1168_v44 = vsel %vm382_vm11, %v7384_v55, %v7383_v41  ;;  %v1126_v34 = vmul.f32 %v1123_v23, %v1121_v50  ;;  %v1127_v63 = vmul.f32 %v1123_v23, %v1122_v25 }
 0x41d   :  { %v1147_v3 = vsel %vm7381_vm13, %v1141_v2, 0.0  ;;  %vm7382_vm7 = vmmov %vm7378_vm14  ;;  %v1173_v45 = vstv %s5030_s13  ;;  %v1125_v12 = vmul.f32 %v1123_v23, %v1120_v42  ;;  %v1151_v8 = vmul.f32 %v1148_v60, %v1146_v28  ;;  %s5602_s13 = sld [smem:[#allocation7 + $0x4a]] }
 0x41e   :  { %v1144_v39 = vsel %vm7382_vm7, %v1142_v32, 0.0  ;;  %vm7385_vm14 = vmmov %vm7377_vm9  ;;  %v1169_v7 = vsel %vm7089_vm10, %v1167_v56, 0.0  ;;  %v1166_v2 = vsel %vm382_vm11, %v7383_v41, %v7384_v55  ;;  %v1152_v20 = vmul.f32 %v1148_v60, %v1147_v3 }
 0x41f   :  { %v1145_v52 = vsel %vm7385_vm14, %v1140_v29, 0.0  ;;  %v1149_v47 = vmul.f32 %v1148_v60, %v1144_v39  ;;  %v1170_v32 = vsel %vm7088_vm12, %v1165_v57, 0.0  ;;  %v1171_v23 = vsel %vm7089_vm10, %v1168_v44, 0.0 }
 0x420   :  { %v1059_v50 = vadd.f32 %v1055_v36, %v1034_v37  ;;  %v1128_v25 = vadd.f32 %v1124_v13, %v1058_v10  ;;  %v1150_v29 = vmul.f32 %v1148_v60, %v1145_v52  ;;  %v1130_v42 = vadd.f32 %v1126_v34, %v1060_v27  ;;  %v7386_v37 = vld [vmem:[#allocation111_spill] sm:$0xff]  ;;  %v7388_v60 = vld [vmem:[#allocation122_spill] sm:$0xff] }
 0x421   :  { %1844 = vrot.lane.b32.xlu1 %v4906_v46, %s3157_s23  ;;  %1842 = vrot.lane.b32.xlu0 %v4847_v43, %s3157_s23  ;;  %v1131_v28 = vadd.f32 %v1127_v63, %v1061_v24  ;;  %v1174_v1 = vmul.f32 %v1173_v45, %v1169_v7  ;;  %v1172_v4 = vsel %vm7088_vm12, %v1166_v2, 0.0  ;;  %v1175_v3 = vmul.f32 %v1173_v45, %v1170_v32  ;;  %v7387_v36 = vld [vmem:[#allocation119_spill] sm:$0xff]  ;;  %v7389_v13 = vld [vmem:[#allocation118_spill] sm:$0xff] }
 0x422   :  { %1863 = vrot.lane.b32.xlu2 %v4966_v35, %s3157_s23  ;;  %v1129_v56 = vadd.f32 %v1125_v12, %v1059_v50  ;;  %v1176_v39 = vmul.f32 %v1173_v45, %v1171_v23  ;;  %v1198_v41 = vstv %s5074_s14  ;;  %v1155_v55 = vadd.f32 %v1151_v8, %v1130_v42  ;;  %v7391_v8 = vld [vmem:[#allocation121_spill] sm:$0xff]  ;;  %v7395_v32 = vld [vmem:[#allocation114_spill] sm:$0xff]  ;;  %v7398_v42 = vld [vmem:[#allocation127_spill] sm:$0xff]  ;;  %s5607_s14 = sld [smem:[#allocation7 + $0x1a]] }
 0x423   :  { %v1156_v57 = vadd.f32 %v1152_v20, %v1131_v28  ;;  %v1153_v62 = vadd.f32 %v1149_v47, %v1128_v25  ;;  %v1177_v44 = vmul.f32 %v1173_v45, %v1172_v4  ;;  %v1190_v10 = vsel %vm382_vm11, %v7387_v36, %v7386_v37  ;;  %v7394_v47 = vld [vmem:[#allocation124_spill] sm:$0xff]  ;;  %v7399_v28 = vld [vmem:[#allocation117_spill] sm:$0xff] }
 0x424   :  { %v1154_v22 = vadd.f32 %v1150_v29, %v1129_v56  ;;  %v1192_v27 = vsel %vm382_vm11, %v7386_v37, %v7387_v36  ;;  %v1191_v34 = vsel %vm382_vm11, %v7389_v13, %v7388_v60  ;;  %v1193_v63 = vsel %vm382_vm11, %v7388_v60, %v7389_v13 }
 0x425   :  { %v1178_v24 = vadd.f32 %v1174_v1, %v1153_v62  ;;  %v1248_v52 = vstv %s5101_s16  ;;  %v1180_v12 = vadd.f32 %v1176_v39, %v1155_v55  ;;  %v7390_v62 = vld [vmem:[#allocation125_spill] sm:$0xff]  ;;  %vm7392_vm9 = vcmp.lt.s32.totalorder %v3247_v9, 1  ;;  %v7404_v39 = vld [vmem:[#allocation120_spill] sm:$0xff]  ;;  %s5667_s16 = sld [smem:[#allocation7 + $0x1b]] }
 0x426   :  { %v1179_v45 = vadd.f32 %v1175_v3, %v1154_v22  ;;  %v1215_v7 = vsel %vm7392_vm9, %v7391_v8, %v7390_v62  ;;  %vm7393_vm13 = vmmov %vm7392_vm9  ;;  %v1194_v20 = vsel %vm7089_vm10, %v1192_v27, 0.0  ;;  %v1195_v22 = vsel %vm7088_vm12, %v1190_v10, 0.0  ;;  %v7405_v55 = vld [vmem:[#allocation128_spill] sm:$0xff] }
 0x427   :  { %v1217_v2 = vsel %vm7393_vm13, %v7390_v62, %v7391_v8  ;;  %vm7396_vm7 = vmmov %vm7392_vm9  ;;  %v1196_v25 = vsel %vm7089_vm10, %v1193_v63, 0.0  ;;  %v1197_v29 = vsel %vm7088_vm12, %v1191_v34, 0.0  ;;  %v1199_v10 = vmul.f32 %v1198_v41, %v1194_v20 }
 0x428   :  { %v1216_v23 = vsel %vm7396_vm7, %v7395_v32, %v7394_v47  ;;  %vm7397_vm14 = vmmov %vm7396_vm7  ;;  %v1200_v27 = vmul.f32 %v1198_v41, %v1195_v22  ;;  %v1201_v34 = vmul.f32 %v1198_v41, %v1196_v25  ;;  %v1202_v63 = vmul.f32 %v1198_v41, %v1197_v29 }
 0x429   :  { %1867 = vrot.lane.b32.xlu1 %v4979_v53, %s3157_s23  ;;  %1865 = vrot.lane.b32.xlu0 %v4962_v16, %s3157_s23  ;;  %v1218_v50 = vsel %vm7397_vm14, %v7394_v47, %v7395_v32  ;;  %vm7400_vm9 = vmmov %vm7396_vm7  ;;  %vm7403_vm14 = vcmp.ge.s32.totalorder %v4180_v54, 0  ;;  %v1181_v47 = vadd.f32 %v1177_v44, %v1156_v57  ;;  %v1203_v41 = vadd.f32 %v1199_v10, %v1178_v24  ;;  %v7414_v10 = vld [vmem:[#allocation123_spill] sm:$0xff] }
 0x42a   :  { %1869 = vrot.lane.b32.xlu2 %v5024_v18, %s3157_s23  ;;  %v1240_v1 = vsel %vm7400_vm9, %v7399_v28, %v7398_v42  ;;  %vm7401_vm13 = vmmov %vm7396_vm7  ;;  %vm7402_vm7 = vcmp.ge.s32.totalorder %v4177_v17, 0  ;;  %v1220_v3 = vsel %vm7403_vm14, %v1215_v7, 0.0  ;;  %v1243_v36 = vsel %vm7400_vm9, %v7404_v39, %v7405_v55 }
 0x42b   :  { %v1242_v4 = vsel %vm7401_vm13, %v7398_v42, %v7399_v28  ;;  %v1219_v56 = vsel %vm7402_vm7, %v1217_v2, 0.0  ;;  %vm7406_vm12 = vmmov %vm7400_vm9  ;;  %v1225_v2 = vmul.f32 %v1223_v0, %v1220_v3  ;;  %v1205_v57 = vadd.f32 %v1201_v34, %v1180_v12  ;;  %v7417_v34 = vld [vmem:[#allocation97_spill] sm:$0xff] }
 0x42c   :  { %v1241_v37 = vsel %vm7406_vm12, %v7405_v55, %v7404_v39  ;;  %vm7407_vm13 = vmmov %vm7402_vm7  ;;  %v1224_v7 = vmul.f32 %v1223_v0, %v1219_v56  ;;  %v1206_v44 = vadd.f32 %v1202_v63, %v1181_v47  ;;  %v1257_v28 = vstv %s5166_s17  ;;  %v7413_v55 = vld [vmem:[#allocation98_spill] sm:$0xff]  ;;  %s5694_s17 = sld [smem:[#allocation7 + $0x4c]] }
 0x42d   :  { %v1221_v60 = vsel %vm7407_vm13, %v1218_v50, 0.0  ;;  %vm7408_vm7 = vmmov %vm7403_vm14  ;;  %v1204_v50 = vadd.f32 %v1200_v27, %v1179_v45  ;;  %v1266_v45 = vstv %s5192_s18  ;;  %v7415_v27 = vld [vmem:[#allocation131_spill] sm:$0xff]  ;;  %v1258_v63 = vmul.f32 %v1257_v28, %v7417_v34  ;;  %v7427_v34 = vld [vmem:[#allocation136_spill] sm:$0xff]  ;;  %s3165_s18 = smov 96  }
 0x42e   :  { %v1222_v13 = vsel %vm7408_vm7, %v1216_v23, 0.0  ;;  %vm7409_vm14 = vmmov %vm7407_vm13  ;;  %v1226_v32 = vmul.f32 %v1223_v0, %v1221_v60  ;;  %v7416_v60 = vld [vmem:[#allocation96_spill] sm:$0xff] }
 0x42f   :  { %v1244_v62 = vsel %vm7409_vm14, %v1242_v4, 0.0  ;;  %vm7410_vm12 = vmmov %vm7408_vm7  ;;  %v1227_v23 = vmul.f32 %v1223_v0, %v1222_v13  ;;  %v1229_v4 = vadd.f32 %v1225_v2, %v1204_v50  ;;  %v1260_v13 = vmul.f32 %v1257_v28, %v7416_v60  ;;  %v7419_v2 = vld [vmem:[#allocation102_spill] sm:$0xff]  ;;  %v7426_v60 = vld [vmem:[#allocation133_spill] sm:$0xff] }
 0x430   :  { %v1245_v8 = vsel %vm7410_vm12, %v1240_v1, 0.0  ;;  %vm7411_vm9 = vmmov %vm7407_vm13  ;;  %v1249_v25 = vmul.f32 %v1248_v52, %v1244_v62  ;;  %v1228_v1 = vadd.f32 %v1224_v7, %v1203_v41  ;;  %v1230_v24 = vadd.f32 %v1226_v32, %v1205_v57  ;;  %v7418_v62 = vld [vmem:[#allocation95_spill] sm:$0xff]  ;;  %v7422_v41 = vld [vmem:[#allocation130_spill] sm:$0xff] }
 0x431   :  { %v1246_v20 = vsel %vm7411_vm9, %v1243_v36, 0.0  ;;  %vm7412_vm10 = vmmov %vm7408_vm7  ;;  %1890 = vrot.lane.b32.xlu1 %v4898_v31, %s3159_s25  ;;  %1888 = vrot.lane.b32.xlu0 %v4833_v30, %s3159_s25  ;;  %v1250_v29 = vmul.f32 %v1248_v52, %v1245_v8  ;;  %v1231_v56 = vadd.f32 %v1227_v23, %v1206_v44  ;;  %v1259_v8 = vmul.f32 %v1257_v28, %v7418_v62  ;;  %v7421_v23 = vld [vmem:[#allocation134_spill] sm:$0xff] }
 0x432   :  { %v1247_v22 = vsel %vm7412_vm10, %v1241_v37, 0.0  ;;  %1892 = vrot.lane.b32.xlu2 %v4847_v43, %s3159_s25  ;;  %v1251_v42 = vmul.f32 %v1248_v52, %v1246_v20  ;;  %v1253_v3 = vadd.f32 %v1249_v25, %v1228_v1  ;;  %v1261_v37 = vmul.f32 %v1257_v28, %v7413_v55 }
 0x433   :  { %v1252_v0 = vmul.f32 %v1248_v52, %v1247_v22  ;;  %v1254_v39 = vadd.f32 %v1250_v29, %v1229_v4  ;;  %v1283_v52 = vsel %vm526_vm1, %v7415_v27, %v7414_v10  ;;  %v1285_v7 = vsel %vm526_vm1, %v7414_v10, %v7415_v27  ;;  %v7420_v22 = vld [vmem:[#allocation101_spill] sm:$0xff] }
 0x434   :  { %v1255_v36 = vadd.f32 %v1251_v42, %v1230_v24  ;;  %v1268_v20 = vmul.f32 %v1266_v45, %v7419_v2  ;;  %v1270_v47 = vmul.f32 %v1266_v45, %v7420_v22  ;;  %v1291_v32 = vstv %s5206_s19  ;;  %v7423_v42 = vld [vmem:[#allocation99_spill] sm:$0xff]  ;;  %v7424_v24 = vld [vmem:[#allocation100_spill] sm:$0xff]  ;;  %s5802_s19 = sld [smem:[#allocation7 + $0x1c]] }
 0x435   :  { %v1256_v12 = vadd.f32 %v1252_v0, %v1231_v56  ;;  %v1284_v50 = vsel %vm526_vm1, %v7422_v41, %v7421_v23  ;;  %v1262_v25 = vadd.f32 %v1258_v63, %v1253_v3  ;;  %v1263_v29 = vadd.f32 %v1259_v8, %v1254_v39  ;;  %v7428_v63 = vld [vmem:[#allocation126_spill] sm:$0xff] }
 0x436   :  { %v1287_v57 = vsel %vm514_vm2, %v1283_v52, 0.0  ;;  %v1286_v44 = vsel %vm526_vm1, %v7421_v23, %v7422_v41  ;;  %v1267_v0 = vmul.f32 %v1266_v45, %v7423_v42  ;;  %v1264_v28 = vadd.f32 %v1260_v13, %v1255_v36  ;;  %v7425_v52 = vld [vmem:[#allocation137_spill] sm:$0xff] }
 0x437   :  { %v1265_v1 = vadd.f32 %v1261_v37, %v1256_v12  ;;  %v1288_v4 = vsel %vm515_vm3, %v1285_v7, 0.0  ;;  %v1269_v56 = vmul.f32 %v1266_v45, %v7424_v24  ;;  %v1289_v3 = vsel %vm514_vm2, %v1284_v50, 0.0  ;;  %v7429_v50 = vld [vmem:[#allocation139_spill] sm:$0xff] }
 0x438   :  { %v1316_v39 = vstv %s5214_s22  ;;  %v1341_v55 = vstv %s5217_s0  ;;  %v1292_v10 = vmul.f32 %v1291_v32, %v1287_v57  ;;  %v1290_v27 = vsel %vm515_vm3, %v1286_v44, 0.0  ;;  %s5806_s22 = sld [smem:[#allocation7 + $0x4d]] }
 0x439   :  { %1913 = vrot.lane.b32.xlu1 %v4966_v35, %s3159_s25  ;;  %1894 = vrot.lane.b32.xlu0 %v4906_v46, %s3159_s25  ;;  %v1308_v36 = vsel %vm526_vm1, %v7426_v60, %v7425_v52  ;;  %v1310_v37 = vsel %vm526_vm1, %v7425_v52, %v7426_v60  ;;  %v1271_v45 = vadd.f32 %v1267_v0, %v1262_v25  ;;  %v7430_v25 = vld [vmem:[#allocation129_spill] sm:$0xff]  ;;  %v1366_v44 = vstv %s5239_s1  ;;  %v7434_v52 = vld [vmem:[#allocation143_spill] sm:$0xff]  ;;  %s5823_s0 = sld [smem:[#allocation7 + $0x1d]] }
 0x43a   :  { %1915 = vrot.lane.b32.xlu2 %v4962_v16, %s3159_s25  ;;  %v1272_v12 = vadd.f32 %v1268_v20, %v1263_v29  ;;  %v1293_v13 = vmul.f32 %v1291_v32, %v1288_v4  ;;  %v1309_v62 = vsel %vm526_vm1, %v7428_v63, %v7427_v34  ;;  %v1273_v8 = vadd.f32 %v1269_v56, %v1264_v28  ;;  %v7431_v28 = vld [vmem:[#allocation132_spill] sm:$0xff]  ;;  %s5879_s1 = sld [smem:[#allocation7 + $0x4e]] }
 0x43b   :  { %v1274_v7 = vadd.f32 %v1270_v47, %v1265_v1  ;;  %v1294_v2 = vmul.f32 %v1291_v32, %v1289_v3  ;;  %v1311_v22 = vsel %vm526_vm1, %v7427_v34, %v7428_v63  ;;  %v1295_v23 = vmul.f32 %v1291_v32, %v1290_v27  ;;  %v7432_v1 = vld [vmem:[#allocation140_spill] sm:$0xff]  ;;  %v7433_v27 = vld [vmem:[#allocation135_spill] sm:$0xff] }
 0x43c   :  { %v1312_v20 = vsel %vm514_vm2, %v1308_v36, 0.0  ;;  %v1313_v41 = vsel %vm515_vm3, %v1310_v37, 0.0  ;;  %v1333_v47 = vsel %vm589_vm4, %v7430_v25, %v7429_v50  ;;  %v1296_v29 = vadd.f32 %v1292_v10, %v1271_v45 }
 0x43d   :  { %v1314_v57 = vsel %vm514_vm2, %v1309_v62, 0.0  ;;  %v1335_v32 = vsel %vm589_vm4, %v7429_v50, %v7430_v25  ;;  %v1297_v42 = vadd.f32 %v1293_v13, %v1272_v12  ;;  %v1315_v0 = vsel %vm515_vm3, %v1311_v22, 0.0  ;;  %v7436_v22 = vld [vmem:[#allocation142_spill] sm:$0xff] }
 0x43e   :  { %v1334_v4 = vsel %vm589_vm4, %v7432_v1, %v7431_v28  ;;  %v1336_v24 = vsel %vm589_vm4, %v7431_v28, %v7432_v1  ;;  %v1317_v56 = vmul.f32 %v1316_v39, %v1312_v20  ;;  %v1318_v3 = vmul.f32 %v1316_v39, %v1313_v41  ;;  %v7438_v28 = vld [vmem:[#allocation138_spill] sm:$0xff] }
 0x43f   :  { %v1337_v10 = vsel %vm577_vm5, %v1333_v47, 0.0  ;;  %v1358_v60 = vsel %vm589_vm4, %v7434_v52, %v7433_v27  ;;  %v1298_v36 = vadd.f32 %v1294_v2, %v1273_v8  ;;  %v1299_v37 = vadd.f32 %v1295_v23, %v1274_v7  ;;  %v7435_v2 = vld [vmem:[#allocation146_spill] sm:$0xff] }
 0x440   :  { %v1319_v45 = vmul.f32 %v1316_v39, %v1314_v57  ;;  %v1338_v12 = vsel %vm578_vm6, %v1335_v32, 0.0  ;;  %v1320_v13 = vmul.f32 %v1316_v39, %v1315_v0  ;;  %v1339_v34 = vsel %vm577_vm5, %v1334_v4, 0.0  ;;  %v7437_v0 = vld [vmem:[#allocation148_spill] sm:$0xff] }
 0x441   :  { %1919 = vrot.lane.b32.xlu1 %v5024_v18, %s3159_s25  ;;  %1917 = vrot.lane.b32.xlu0 %v4979_v53, %s3159_s25  ;;  %v1340_v63 = vsel %vm578_vm6, %v1336_v24, 0.0  ;;  %v1360_v62 = vsel %vm589_vm4, %v7433_v27, %v7434_v52  ;;  %v1342_v8 = vmul.f32 %v1341_v55, %v1337_v10  ;;  %v1362_v7 = vsel %vm577_vm5, %v1358_v60, 0.0 }
 0x442   :  { %1956 = vrot.lane.b32.xlu2 %v4833_v30, %s3161_s27  ;;  %v1359_v39 = vsel %vm589_vm4, %v7436_v22, %v7435_v2  ;;  %v1361_v23 = vsel %vm589_vm4, %v7435_v2, %v7436_v22  ;;  %v1321_v20 = vadd.f32 %v1317_v56, %v1296_v29  ;;  %v1322_v41 = vadd.f32 %v1318_v3, %v1297_v42 }
 0x443   :  { %v1343_v50 = vmul.f32 %v1341_v55, %v1338_v12  ;;  %v1391_v25 = vstv %s5279_s29  ;;  %v1344_v47 = vmul.f32 %v1341_v55, %v1339_v34  ;;  %v1345_v57 = vmul.f32 %v1341_v55, %v1340_v63  ;;  %v7439_v12 = vld [vmem:[#allocation149_spill] sm:$0xff]  ;;  %s2980_s29 = sld [smem:[#allocation7 + $0x1e]] }
 0x444   :  { %v1363_v32 = vsel %vm578_vm6, %v1360_v62, 0.0  ;;  %v1384_v1 = vsel %vm652_vm0, %v7438_v28, %v7437_v0  ;;  %v1367_v4 = vmul.f32 %v1366_v44, %v1362_v7  ;;  %v1364_v29 = vsel %vm577_vm5, %v1359_v39, 0.0  ;;  %v7440_v34 = vld [vmem:[#allocation145_spill] sm:$0xff] }
 0x445   :  { %v1365_v42 = vsel %vm578_vm6, %v1361_v23, 0.0  ;;  %v1386_v55 = vsel %vm652_vm0, %v7437_v0, %v7438_v28  ;;  %v1323_v24 = vadd.f32 %v1319_v45, %v1298_v36  ;;  %v1324_v56 = vadd.f32 %v1320_v13, %v1299_v37  ;;  %v7442_v23 = vld [vmem:[#allocation151_spill] sm:$0xff]  ;;  %v7446_v0 = vld [vmem:[#allocation152_spill] sm:$0xff] }
 0x446   :  { %v1346_v3 = vadd.f32 %v1342_v8, %v1321_v20  ;;  %v1416_v10 = vstv %s5310_s30  ;;  %v1347_v27 = vadd.f32 %v1343_v50, %v1322_v41  ;;  %v1368_v52 = vmul.f32 %v1366_v44, %v1363_v32  ;;  %v7443_v20 = vld [vmem:[#allocation141_spill] sm:$0xff]  ;;  %s2981_s30 = sld [smem:[#allocation7 + $0x1f]] }
 0x447   :  { %v1389_v60 = vsel %vm640_vm15, %v1384_v1, 0.0  ;;  %v1383_v63 = vsel %vm652_vm0, %v7440_v34, %v7439_v12  ;;  %v1369_v62 = vmul.f32 %v1366_v44, %v1364_v29  ;;  %v1370_v7 = vmul.f32 %v1366_v44, %v1365_v42 }
 0x448   :  { %vm7441_vm10 = vcmp.lt.s32.totalorder %v4390_v40, 16  ;;  %v1385_v37 = vsel %vm652_vm0, %v7439_v12, %v7440_v34  ;;  %v1348_v45 = vadd.f32 %v1344_v47, %v1323_v24  ;;  %v1349_v13 = vadd.f32 %v1345_v57, %v1324_v56  ;;  %v7445_v57 = vld [vmem:[#allocation144_spill] sm:$0xff] }
 0x449   :  { %1960 = vrot.lane.b32.xlu1 %v4847_v43, %s3161_s27  ;;  %1958 = vrot.lane.b32.xlu0 %v4898_v31, %s3161_s27  ;;  %v1390_v36 = vsel %vm7441_vm10, %v1386_v55, 0.0  ;;  %v1371_v8 = vadd.f32 %v1367_v4, %v1346_v3  ;;  %v1441_v2 = vstv %s5330_s4  ;;  %v1394_v22 = vmul.f32 %v1391_v25, %v1389_v60  ;;  %vm7444_vm13 = vmmov %vm7441_vm10  ;;  %v7448_v3 = vld [vmem:[#allocation155_spill] sm:$0xff]  ;;  %s3029_s4 = sld [smem:[#allocation7 + $0x4f]] }
 0x44a   :  { %1962 = vrot.lane.b32.xlu2 %v4906_v46, %s3161_s27  ;;  %v1387_v39 = vsel %vm640_vm15, %v1383_v63, 0.0  ;;  %v1408_v44 = vsel %vm652_vm0, %v7443_v20, %v7442_v23  ;;  %v1410_v41 = vsel %vm652_vm0, %v7442_v23, %v7443_v20  ;;  %v1372_v50 = vadd.f32 %v1368_v52, %v1347_v27  ;;  %vm7447_vm7 = vmmov %vm7441_vm10  ;;  %v7449_v27 = vld [vmem:[#allocation147_spill] sm:$0xff]  ;;  %v7450_v63 = vld [vmem:[#allocation154_spill] sm:$0xff] }
 0x44b   :  { %v1395_v32 = vmul.f32 %v1391_v25, %v1390_v36  ;;  %v1388_v47 = vsel %vm7444_vm13, %v1385_v37, 0.0  ;;  %v1409_v28 = vsel %vm652_vm0, %v7446_v0, %v7445_v57  ;;  %v1373_v1 = vadd.f32 %v1369_v62, %v1348_v45  ;;  %v7451_v62 = vld [vmem:[#allocation158_spill] sm:$0xff]  ;;  %vm7452_vm14 = vmmov %vm7447_vm7  ;;  %v7455_v20 = vld [vmem:[#allocation160_spill] sm:$0xff] }
 0x44c   :  { %v1374_v4 = vadd.f32 %v1370_v7, %v1349_v13  ;;  %v1411_v29 = vsel %vm652_vm0, %v7445_v57, %v7446_v0  ;;  %v1466_v42 = vstv %s5349_s5  ;;  %v1392_v55 = vmul.f32 %v1391_v25, %v1387_v39  ;;  %v7454_v23 = vld [vmem:[#allocation150_spill] sm:$0xff]  ;;  %v7457_v57 = vld [vmem:[#allocation157_spill] sm:$0xff]  ;;  %s3030_s5 = sld [smem:[#allocation7 + $0x50]] }
 0x44d   :  { %v1412_v24 = vsel %vm640_vm15, %v1408_v44, 0.0  ;;  %v1413_v56 = vsel %vm7447_vm7, %v1410_v41, 0.0  ;;  %v1435_v52 = vsel %vm7099_vm8, %v7449_v27, %v7448_v3  ;;  %v1398_v60 = vadd.f32 %v1394_v22, %v1373_v1  ;;  %v7458_v0 = vld [vmem:[#allocation161_spill] sm:$0xff] }
 0x44e   :  { %v1393_v12 = vmul.f32 %v1391_v25, %v1388_v47  ;;  %v1414_v34 = vsel %vm640_vm15, %v1409_v28, 0.0  ;;  %v1436_v7 = vsel %vm7099_vm8, %v7451_v62, %v7450_v63  ;;  %v1399_v36 = vadd.f32 %v1395_v32, %v1374_v4 }
 0x44f   :  { %v1415_v37 = vsel %vm7452_vm14, %v1411_v29, 0.0  ;;  %v1433_v25 = vsel %vm7099_vm8, %v7448_v3, %v7449_v27  ;;  %v1434_v45 = vsel %vm7099_vm8, %v7450_v63, %v7451_v62  ;;  %v1417_v13 = vmul.f32 %v1416_v10, %v1412_v24 }
 0x450   :  { %v1418_v22 = vmul.f32 %v1416_v10, %v1413_v56  ;;  %vm7453_vm12 = vcmp.ge.s32.totalorder %v4111_v11, 0  ;;  %v1461_v44 = vsel %vm7099_vm8, %v7455_v20, %v7454_v23  ;;  %v1419_v41 = vmul.f32 %v1416_v10, %v1414_v34 }
 0x451   :  { %1983 = vrot.lane.b32.xlu1 %v4962_v16, %s3161_s27  ;;  %1981 = vrot.lane.b32.xlu0 %v4966_v35, %s3161_s27  ;;  %v1437_v39 = vsel %vm7453_vm12, %v1435_v52, 0.0  ;;  %vm7456_vm9 = vmmov %vm7453_vm12  ;;  %v1459_v47 = vsel %vm7099_vm8, %v7454_v23, %v7455_v20  ;;  %v1460_v28 = vsel %vm7099_vm8, %v7458_v0, %v7457_v57  ;;  %v1420_v1 = vmul.f32 %v1416_v10, %v1415_v37 }
 0x452   :  { %1985 = vrot.lane.b32.xlu2 %v4979_v53, %s3161_s27  ;;  %v1439_v32 = vsel %vm7456_vm9, %v1436_v7, 0.0  ;;  %vm7459_vm10 = vcmp.ge.s32.totalorder %v4116_v5, 0  ;;  %v1458_v24 = vsel %vm7099_vm8, %v7457_v57, %v7458_v0  ;;  %v1396_v56 = vadd.f32 %v1392_v55, %v1371_v8  ;;  %vm7461_vm7 = vmmov %vm7456_vm9  ;;  %v7466_v57 = vld [vmem:[#allocation164_spill] sm:$0xff]  ;;  %v7467_v0 = vld [vmem:[#allocation163_spill] sm:$0xff] }
 0x453   :  { %v1438_v4 = vsel %vm7459_vm10, %v1433_v25, 0.0  ;;  %vm7460_vm13 = vmmov %vm7459_vm10  ;;  %v1397_v3 = vadd.f32 %v1393_v12, %v1372_v50  ;;  %v1442_v27 = vmul.f32 %v1441_v2, %v1437_v39  ;;  %v1464_v52 = vsel %vm7461_vm7, %v1461_v44, 0.0 }
 0x454   :  { %v1440_v29 = vsel %vm7460_vm13, %v1434_v45, 0.0  ;;  %v1444_v10 = vmul.f32 %v1441_v2, %v1439_v32  ;;  %vm7462_vm14 = vmmov %vm7459_vm10  ;;  %v1491_v62 = vstv %s5400_s6  ;;  %v1421_v7 = vadd.f32 %v1417_v13, %v1396_v56  ;;  %s2982_s6 = sld [smem:[#allocation7 + $0x20]] }
 0x455   :  { %v1465_v34 = vsel %vm7462_vm14, %v1459_v47, 0.0  ;;  %vm7463_vm12 = vmmov %vm7461_vm7  ;;  %v1443_v37 = vmul.f32 %v1441_v2, %v1438_v4  ;;  %v1445_v25 = vmul.f32 %v1441_v2, %v1440_v29  ;;  %v1422_v50 = vadd.f32 %v1418_v22, %v1397_v3  ;;  %v7465_v47 = vld [vmem:[#allocation156_spill] sm:$0xff]  ;;  %v7469_v29 = vld [vmem:[#allocation175_spill] sm:$0xff] }
 0x456   :  { %v1462_v63 = vsel %vm7463_vm12, %v1460_v28, 0.0  ;;  %vm7464_vm9 = vmmov %vm7459_vm10  ;;  %v1423_v55 = vadd.f32 %v1419_v41, %v1398_v60  ;;  %v1424_v12 = vadd.f32 %v1420_v1, %v1399_v36  ;;  %v1469_v45 = vmul.f32 %v1466_v42, %v1464_v52  ;;  %v7468_v28 = vld [vmem:[#allocation153_spill] sm:$0xff] }
 0x457   :  { %v1463_v8 = vsel %vm7464_vm9, %v1458_v24, 0.0  ;;  %v1446_v13 = vadd.f32 %v1442_v27, %v1421_v7  ;;  %v1470_v2 = vmul.f32 %v1466_v42, %v1465_v34  ;;  %v1467_v39 = vmul.f32 %v1466_v42, %v1462_v63  ;;  %v7470_v24 = vld [vmem:[#allocation167_spill] sm:$0xff] }
 0x458   :  { %v1516_v23 = vstv %s5432_s7  ;;  %v1448_v44 = vadd.f32 %v1444_v10, %v1423_v55  ;;  %v1468_v32 = vmul.f32 %v1466_v42, %v1463_v8  ;;  %v1484_v22 = vsel %vm382_vm11, %v7466_v57, %v7465_v47  ;;  %v7475_v8 = vld [vmem:[#allocation168_spill] sm:$0xff]  ;;  %s3031_s7 = sld [smem:[#allocation7 + $0x51]] }
 0x459   :  { %2006 = vrot.lane.b32.xlu1 %v4833_v30, %s3160_s26  ;;  %1987 = vrot.lane.b32.xlu0 %v5024_v18, %s3161_s27  ;;  %v1486_v60 = vsel %vm382_vm11, %v7465_v47, %v7466_v57  ;;  %v1447_v36 = vadd.f32 %v1443_v37, %v1422_v50  ;;  %v1449_v41 = vadd.f32 %v1445_v25, %v1424_v12  ;;  %v1541_v27 = vstv %s5458_s8  ;;  %v7476_v50 = vld [vmem:[#allocation159_spill] sm:$0xff]  ;;  %s2983_s8 = sld [smem:[#allocation7 + $0x21]] }
 0x45a   :  { %2008 = vrot.lane.b32.xlu2 %v4898_v31, %s3160_s26  ;;  %v1483_v1 = vsel %vm382_vm11, %v7468_v28, %v7467_v0  ;;  %v1485_v42 = vsel %vm382_vm11, %v7467_v0, %v7468_v28  ;;  %v1473_v4 = vadd.f32 %v1469_v45, %v1448_v44  ;;  %v1509_v56 = vsel %vm382_vm11, %v7470_v24, %v7469_v29 }
 0x45b   :  { %v5480_v20 = vpop.permute.xlu2 %1788  ;;  %v1511_v3 = vsel %vm382_vm11, %v7469_v29, %v7470_v24  ;;  %v1474_v52 = vadd.f32 %v1470_v2, %v1449_v41  ;;  %v1471_v10 = vadd.f32 %v1467_v39, %v1446_v13  ;;  %vm7471_vm10 = vcmp.ge.s32.totalorder %v4119_v6, 0 }
 0x45c   :  { %v1489_v34 = vsel %vm7471_vm10, %v1486_v60, 0.0  ;;  %vm7472_vm13 = vcmp.ge.s32.totalorder %v4132_v26, 0  ;;  %v1472_v7 = vadd.f32 %v1468_v32, %v1447_v36  ;;  %vm7473_vm7 = vmmov %vm7471_vm10  ;;  %v1510_v55 = vsel %vm382_vm11, %v7476_v50, %v7475_v8  ;;  %v7479_v32 = vld [vmem:[#allocation162_spill] sm:$0xff] }
 0x45d   :  { %v1490_v63 = vsel %vm7472_vm13, %v1484_v22, 0.0  ;;  %v1487_v37 = vsel %vm7473_vm7, %v1485_v42, 0.0  ;;  %vm7474_vm14 = vmmov %vm7472_vm13  ;;  %v1566_v13 = vstv %s5471_s10  ;;  %v5527_v2 = vstv %s5467_s9  ;;  %s3032_s9 = sld [smem:[#allocation7 + $0x52]] }
 0x45e   :  { %v1488_v25 = vsel %vm7474_vm14, %v1483_v1, 0.0  ;;  %vm7477_vm12 = vmmov %vm7473_vm7  ;;  %v1494_v39 = vmul.f32 %v1491_v62, %v1489_v34  ;;  %v1495_v44 = vmul.f32 %v1491_v62, %v1490_v63  ;;  %vm7480_vm10 = vcmp.lt.s32.totalorder %v3247_v9, 1  ;;  %v7482_v1 = vld [vmem:[#allocation169_spill] sm:$0xff]  ;;  %s2984_s10 = sld [smem:[#allocation7 + $0x22]] }
 0x45f   :  { %v1514_v12 = vsel %vm7477_vm12, %v1511_v3, 0.0  ;;  %vm7478_vm9 = vmmov %vm7472_vm13  ;;  %v1534_v47 = vsel %vm7480_vm10, %v7479_v32, %v4253_v49  ;;  %v1492_v22 = vmul.f32 %v1491_v62, %v1487_v37  ;;  %v1493_v60 = vmul.f32 %v1491_v62, %v1488_v25  ;;  %v7488_v3 = vld [vmem:[#allocation174_spill] sm:$0xff] }
 0x460   :  { %v1515_v45 = vsel %vm7478_vm9, %v1509_v56, 0.0  ;;  %vm7481_vm13 = vmmov %vm7480_vm10  ;;  %v1508_v36 = vsel %vm382_vm11, %v7475_v8, %v7476_v50  ;;  %v1512_v41 = vsel %vm7473_vm7, %v1510_v55, 0.0  ;;  %v1519_v0 = vmul.f32 %v1516_v23, %v1514_v12  ;;  %v7487_v56 = vld [vmem:[#allocation177_spill] sm:$0xff] }
 0x461   :  { %2012 = vrot.lane.b32.xlu1 %v4906_v46, %s3160_s26  ;;  %2010 = vrot.lane.b32.xlu0 %v4847_v43, %s3160_s26  ;;  %v1536_v57 = vsel %vm7481_vm13, %v4253_v49, %v7479_v32  ;;  %v1520_v28 = vmul.f32 %v1516_v23, %v1515_v45  ;;  %vm7483_vm14 = vmmov %vm7480_vm10  ;;  %vm7485_vm9 = vcmp.ge.s32.totalorder %v4177_v17, 0  ;;  %v1499_v37 = vadd.f32 %v1495_v44, %v1474_v52  ;;  %v7492_v50 = vld [vmem:[#allocation165_spill] sm:$0xff] }
 0x462   :  { %2031 = vrot.lane.b32.xlu2 %v4966_v35, %s3160_s26  ;;  %v1559_v49 = vsel %vm7483_vm14, %v4316_v33, %v7482_v1  ;;  %vm7484_vm12 = vmmov %vm7480_vm10  ;;  %v1539_v29 = vsel %vm7485_vm9, %v1536_v57, 0.0  ;;  %vm7486_vm10 = vcmp.ge.s32.totalorder %v4180_v54, 0  ;;  %vm7491_vm14 = vcmp.ge.s32.totalorder %v4132_v26, 0 }
 0x463   :  { %v1561_v62 = vsel %vm7484_vm12, %v7482_v1, %v4316_v33  ;;  %v1540_v24 = vsel %vm7486_vm10, %v1534_v47, 0.0  ;;  %vm7489_vm13 = vmmov %vm7484_vm12  ;;  %v1498_v33 = vadd.f32 %v1494_v39, %v1473_v4  ;;  %v1513_v25 = vsel %vm7491_vm14, %v1508_v36, 0.0 }
 0x464   :  { %v5557_v42 = vpop.permute.xlu2 %1794  ;;  %v1533_v34 = vsel %vm7489_vm13, %v7488_v3, %v7487_v56  ;;  %vm7490_vm7 = vmmov %vm7484_vm12  ;;  %v1517_v8 = vmul.f32 %v1516_v23, %v1512_v41  ;;  %vm7495_vm10 = vcmp.ge.s32.totalorder %v4177_v17, 0  ;;  %vm7496_vm13 = vcmp.ge.s32.totalorder %v4180_v54, 0 }
 0x465   :  { %v1535_v63 = vsel %vm7490_vm7, %v7487_v56, %v7488_v3  ;;  %vm7493_vm12 = vmmov %vm7490_vm7  ;;  %v1564_v45 = vsel %vm7495_vm10, %v1561_v62, 0.0  ;;  %v1565_v4 = vsel %vm7496_vm13, %v1559_v49, 0.0  ;;  %v1544_v52 = vmul.f32 %v1541_v27, %v1539_v29  ;;  %v7501_v3 = vld [vmem:[#allocation14_spill] sm:$0xff] }
 0x466   :  { %v1558_v55 = vsel %vm7493_vm12, %v7492_v50, %v4314_v59  ;;  %vm7494_vm9 = vmmov %vm7490_vm7  ;;  %v1545_v39 = vmul.f32 %v1541_v27, %v1540_v24  ;;  %v1518_v47 = vmul.f32 %v1516_v23, %v1513_v25  ;;  %v1523_v57 = vadd.f32 %v1519_v0, %v1498_v33 }
 0x467   :  { %v1560_v12 = vsel %vm7494_vm9, %v4314_v59, %v7492_v50  ;;  %vm7497_vm7 = vmmov %vm7495_vm10  ;;  %v1524_v36 = vadd.f32 %v1520_v28, %v1499_v37  ;;  %v1584_v41 = vstv %s5523_s11  ;;  %v1569_v49 = vmul.f32 %v1566_v13, %v1564_v45  ;;  %s3033_s11 = sld [smem:[#allocation7 + $0x53]] }
 0x468   :  { %v1537_v44 = vsel %vm7497_vm7, %v1535_v63, 0.0  ;;  %vm7498_vm14 = vmmov %vm7496_vm13  ;;  %v1570_v62 = vmul.f32 %v1566_v13, %v1565_v4  ;;  %v1496_v23 = vadd.f32 %v1492_v22, %v1471_v10  ;;  %v1497_v0 = vadd.f32 %v1493_v60, %v1472_v7  ;;  %v7502_v63 = vld [vmem:[#allocation18_spill] sm:$0xff]  ;;  %v7503_v7 = vld [vmem:[#allocation17_spill] sm:$0xff] }
 0x469   :  { %v1538_v32 = vsel %vm7498_vm14, %v1533_v34, 0.0  ;;  %2035 = vrot.lane.b32.xlu1 %v4979_v53, %s3160_s26  ;;  %2033 = vrot.lane.b32.xlu0 %v4962_v16, %s3160_s26  ;;  %vm7499_vm12 = vmmov %vm7497_vm7  ;;  %v1542_v28 = vmul.f32 %v1541_v27, %v1537_v44  ;;  %v1548_v24 = vadd.f32 %v1544_v52, %v1523_v57  ;;  %v1549_v56 = vadd.f32 %v1545_v39, %v1524_v36  ;;  %v7504_v22 = vld [vmem:[#allocation16_spill] sm:$0xff]  ;;  %v7505_v39 = vld [vmem:[#allocation19_spill] sm:$0xff] }
 0x46a   :  { %v1562_v59 = vsel %vm7499_vm12, %v1560_v12, 0.0  ;;  %vm7500_vm9 = vmmov %vm7496_vm13  ;;  %2037 = vrot.lane.b32.xlu2 %v5024_v18, %s3160_s26  ;;  %v1543_v29 = vmul.f32 %v1541_v27, %v1538_v32  ;;  %v1577_v34 = vmul.f32 %v5527_v2, %v7501_v3  ;;  %v1585_v33 = vmul.f32 %v1584_v41, %v7502_v63  ;;  %v7506_v32 = vld [vmem:[#allocation15_spill] sm:$0xff]  ;;  %v7508_v36 = vld [vmem:[#allocation20_spill] sm:$0xff] }
 0x46b   :  { %v1563_v1 = vsel %vm7500_vm9, %v1558_v55, 0.0  ;;  %v1521_v25 = vadd.f32 %v1517_v8, %v1496_v23  ;;  %v1522_v50 = vadd.f32 %v1518_v47, %v1497_v0  ;;  %v1567_v55 = vmul.f32 %v1566_v13, %v1562_v59  ;;  %v7507_v8 = vld [vmem:[#allocation21_spill] sm:$0xff]  ;;  %v7509_v23 = vld [vmem:[#allocation176_spill] sm:$0xff] }
 0x46c   :  { %v5609_v37 = vpop.permute.xlu2 %1817  ;;  %v1568_v10 = vmul.f32 %v1566_v13, %v1563_v1  ;;  %v1578_v27 = vmul.f32 %v5527_v2, %v7503_v7  ;;  %v1579_v60 = vmul.f32 %v5527_v2, %v7504_v22  ;;  %v1573_v12 = vadd.f32 %v1569_v49, %v1548_v24  ;;  %v7510_v24 = vld [vmem:[#allocation178_spill] sm:$0xff] }
 0x46d   :  { %v1574_v45 = vadd.f32 %v1570_v62, %v1549_v56  ;;  %v1546_v4 = vadd.f32 %v1542_v28, %v1521_v25  ;;  %v1547_v52 = vadd.f32 %v1543_v29, %v1522_v50  ;;  %v1586_v44 = vmul.f32 %v1584_v41, %v7505_v39 }
 0x46e   :  { %v1576_v57 = vmul.f32 %v5527_v2, %v7506_v32  ;;  %v1587_v47 = vmul.f32 %v1584_v41, %v7507_v8  ;;  %v1588_v13 = vmul.f32 %v1584_v41, %v7508_v36  ;;  %v1602_v59 = vsel %vm526_vm1, %v4363_v38, %v4424_v14 }
 0x46f   :  { %v1604_v1 = vsel %vm526_vm1, %v4424_v14, %v4363_v38  ;;  %v1571_v49 = vadd.f32 %v1567_v55, %v1546_v4  ;;  %v1572_v62 = vadd.f32 %v1568_v10, %v1547_v52  ;;  %v1601_v2 = vsel %vm526_vm1, %v4365_v51, %v7509_v23  ;;  %v7511_v55 = vld [vmem:[#allocation25_spill] sm:$0xff]  ;;  %v7512_v10 = vld [vmem:[#allocation35_spill] sm:$0xff] }
 0x470   :  { %v1582_v41 = vadd.f32 %v1578_v27, %v1573_v12  ;;  %v1583_v0 = vadd.f32 %v1579_v60, %v1574_v45  ;;  %v1609_v38 = vstv %s5598_s12  ;;  %v1603_v14 = vsel %vm526_vm1, %v7509_v23, %v4365_v51  ;;  %s2985_s12 = sld [smem:[#allocation7 + $0x23]] }
 0x471   :  { %2058 = vrot.lane.b32.xlu1 %v4898_v31, %s3162_s28  ;;  %2056 = vrot.lane.b32.xlu0 %v4833_v30, %s3162_s28  ;;  %v1607_v28 = vsel %vm514_vm2, %v1602_v59, 0.0  ;;  %v1608_v29 = vsel %vm515_vm3, %v1604_v1, 0.0  ;;  %v1627_v56 = vsel %vm526_vm1, %v7510_v24, %v4481_v58  ;;  %v1629_v25 = vsel %vm526_vm1, %v4481_v58, %v7510_v24 }
 0x472   :  { %2060 = vrot.lane.b32.xlu2 %v4847_v43, %s3162_s28  ;;  %v1605_v51 = vsel %vm514_vm2, %v1601_v2, 0.0  ;;  %v1634_v50 = vstv %s5602_s13  ;;  %v1626_v27 = vsel %vm526_vm1, %v7512_v10, %v7511_v55  ;;  %v5665_v60 = vstv %s5607_s14  ;;  %s3034_s13 = sld [smem:[#allocation7 + $0x54]]  ;;  %s3166_s14 = smov 80  }
 0x473   :  { %v1580_v45 = vadd.f32 %v1576_v57, %v1571_v49  ;;  %v1581_v4 = vadd.f32 %v1577_v34, %v1572_v62  ;;  %v1606_v58 = vsel %vm515_vm3, %v1603_v14, 0.0  ;;  %v1628_v52 = vsel %vm526_vm1, %v7511_v55, %v7512_v10  ;;  %v7513_v55 = vld [vmem:[#allocation30_spill] sm:$0xff]  ;;  %v7514_v10 = vld [vmem:[#allocation181_spill] sm:$0xff] }
 0x474   :  { %v5669_v12 = vpop.permute.xlu2 %1840  ;;  %v1612_v59 = vmul.f32 %v1609_v38, %v1607_v28  ;;  %v1613_v1 = vmul.f32 %v1609_v38, %v1608_v29  ;;  %v1632_v23 = vsel %vm514_vm2, %v1627_v56, 0.0  ;;  %v1633_v2 = vsel %vm515_vm3, %v1629_v25, 0.0  ;;  %v7515_v29 = vld [vmem:[#allocation23_spill] sm:$0xff]  ;;  %v7516_v56 = vld [vmem:[#allocation34_spill] sm:$0xff] }
 0x475   :  { %v1591_v24 = vadd.f32 %v1587_v47, %v1582_v41  ;;  %v1592_v57 = vadd.f32 %v1588_v13, %v1583_v0  ;;  %v1610_v34 = vmul.f32 %v1609_v38, %v1605_v51  ;;  %v1630_v49 = vsel %vm514_vm2, %v1626_v27, 0.0 }
 0x476   :  { %v1611_v62 = vmul.f32 %v1609_v38, %v1606_v58  ;;  %v1631_v14 = vsel %vm515_vm3, %v1628_v52, 0.0  ;;  %v1651_v28 = vsel %vm589_vm4, %v7514_v10, %v7513_v55  ;;  %v1652_v25 = vsel %vm589_vm4, %v7516_v56, %v7515_v29 }
 0x477   :  { %v1589_v47 = vadd.f32 %v1585_v33, %v1580_v45  ;;  %v1637_v13 = vmul.f32 %v1634_v50, %v1632_v23  ;;  %v1638_v41 = vmul.f32 %v1634_v50, %v1633_v2  ;;  %v1684_v0 = vstv %s5632_s15  ;;  %v5710_v2 = vpop.permute.xlu1 %1792  ;;  %s2986_s15 = sld [smem:[#allocation7 + $0x24]] }
 0x478   :  { %v1590_v38 = vadd.f32 %v1586_v44, %v1581_v4  ;;  %v1616_v51 = vadd.f32 %v1612_v59, %v1591_v24  ;;  %v1617_v27 = vadd.f32 %v1613_v1, %v1592_v57  ;;  %v1635_v58 = vmul.f32 %v1634_v50, %v1630_v49 }
 0x479   :  { %2081 = vrot.lane.b32.xlu1 %v4966_v35, %s3162_s28  ;;  %2062 = vrot.lane.b32.xlu0 %v4906_v46, %s3162_s28  ;;  %v1636_v33 = vmul.f32 %v1634_v50, %v1631_v14  ;;  %v1653_v45 = vsel %vm589_vm4, %v7513_v55, %v7514_v10  ;;  %v1655_v52 = vsel %vm577_vm5, %v1651_v28, 0.0  ;;  %v1657_v23 = vsel %vm577_vm5, %v1652_v25, 0.0  ;;  %v7517_v14 = vld [vmem:[#allocation170_spill] sm:$0xff]  ;;  %v7520_v25 = vld [vmem:[#allocation24_spill] sm:$0xff] }
 0x47a   :  { %2083 = vrot.lane.b32.xlu2 %v4962_v16, %s3162_s28  ;;  %v1614_v4 = vadd.f32 %v1610_v34, %v1589_v47  ;;  %v1615_v59 = vadd.f32 %v1611_v62, %v1590_v38  ;;  %v1654_v50 = vsel %vm589_vm4, %v7515_v29, %v7516_v56  ;;  %v5719_v1 = vstv %s5667_s16  ;;  %v7518_v55 = vld [vmem:[#allocation26_spill] sm:$0xff]  ;;  %s3035_s16 = sld [smem:[#allocation7 + $0x55]] }
 0x47b   :  { %v5712_v44 = vpop.permute.xlu0 %1790  ;;  %v1641_v57 = vadd.f32 %v1637_v13, %v1616_v51  ;;  %v1642_v49 = vadd.f32 %v1638_v41, %v1617_v27  ;;  %v1676_v10 = vsel %vm589_vm4, %v7518_v55, %v7517_v14  ;;  %v7519_v28 = vld [vmem:[#allocation38_spill] sm:$0xff]  ;;  %v1656_v62 = vsel %vm578_vm6, %v1653_v45, 0.0 }
 0x47c   :  { %v5721_v24 = vpop.permute.xlu2 %1863  ;;  %v1677_v34 = vsel %vm589_vm4, %v7520_v25, %v7519_v28  ;;  %v1660_v29 = vmul.f32 %v5665_v60, %v1655_v52  ;;  %v1662_v56 = vmul.f32 %v5665_v60, %v1657_v23  ;;  %v1679_v47 = vsel %vm589_vm4, %v7519_v28, %v7520_v25  ;;  %v7521_v52 = vld [vmem:[#allocation27_spill] sm:$0xff] }
 0x47d   :  { %v1639_v13 = vadd.f32 %v1635_v58, %v1614_v4  ;;  %v1640_v41 = vadd.f32 %v1636_v33, %v1615_v59  ;;  %v1658_v38 = vsel %vm578_vm6, %v1654_v50, 0.0  ;;  %v1678_v51 = vsel %vm589_vm4, %v7517_v14, %v7518_v55  ;;  %v7522_v23 = vld [vmem:[#allocation171_spill] sm:$0xff]  ;;  %v7523_v50 = vld [vmem:[#allocation29_spill] sm:$0xff]  ;;  %v7524_v14 = vld [vmem:[#allocation28_spill] sm:$0xff] }
 0x47e   :  { %v1680_v27 = vsel %vm577_vm5, %v1676_v10, 0.0  ;;  %v1682_v45 = vsel %vm577_vm5, %v1677_v34, 0.0  ;;  %v1702_v58 = vsel %vm652_vm0, %v7522_v23, %v7521_v52  ;;  %v1704_v33 = vsel %vm652_vm0, %v7521_v52, %v7522_v23 }
 0x47f   :  { %v1661_v4 = vmul.f32 %v5665_v60, %v1656_v62  ;;  %v1683_v59 = vsel %vm578_vm6, %v1679_v47, 0.0  ;;  %v1701_v55 = vsel %vm652_vm0, %v7524_v14, %v7523_v50  ;;  %v1734_v10 = vstv %s5694_s17  ;;  %s2987_s17 = sld [smem:[#allocation7 + $0x25]] }
 0x480   :  { %v1664_v28 = vadd.f32 %v1660_v29, %v1639_v13  ;;  %v1663_v25 = vmul.f32 %v5665_v60, %v1658_v38  ;;  %v1666_v34 = vadd.f32 %v1662_v56, %v1641_v57  ;;  %v1681_v62 = vsel %vm578_vm6, %v1678_v51, 0.0  ;;  %v7526_v56 = vld [vmem:[#allocation32_spill] sm:$0xff]  ;;  %v7527_v38 = vld [vmem:[#allocation22_spill] sm:$0xff] }
 0x481   :  { %2087 = vrot.lane.b32.xlu1 %v5024_v18, %s3162_s28  ;;  %2085 = vrot.lane.b32.xlu0 %v4979_v53, %s3162_s28  ;;  %v1685_v47 = vmul.f32 %v1684_v0, %v1680_v27  ;;  %v1687_v52 = vmul.f32 %v1684_v0, %v1682_v45  ;;  %v1707_v23 = vsel %vm640_vm15, %v1702_v58, 0.0  ;;  %vm7525_vm10 = vcmp.lt.s32.totalorder %v4390_v40, 16 }
 0x482   :  { %2114 = vrot.lane.b32.xlu2 %v7506_v32, %s3165_s18  ;;  %v1708_v61 = vsel %vm7525_vm10, %v1704_v33, 0.0  ;;  %v1688_v13 = vmul.f32 %v1684_v0, %v1683_v59  ;;  %v1703_v60 = vsel %vm652_vm0, %v7523_v50, %v7524_v14  ;;  %v1705_v57 = vsel %vm640_vm15, %v1701_v55, 0.0  ;;  %v7528_v33 = vld [vmem:[#allocation33_spill] sm:$0xff]  ;;  %vm7530_vm13 = vmmov %vm7525_vm10 }
 0x483   :  { %v1816_v21 = vpop.permute.xlu1 %1815  ;;  %v1814_v29 = vpop.permute.xlu0 %1813  ;;  %v1726_v51 = vsel %vm652_vm0, %v7527_v38, %v7526_v56  ;;  %v1686_v45 = vmul.f32 %v1684_v0, %v1681_v62  ;;  %v1728_v58 = vsel %vm652_vm0, %v7526_v56, %v7527_v38  ;;  %v7529_v59 = vld [vmem:[#allocation37_spill] sm:$0xff]  ;;  %v1665_v55 = vadd.f32 %v1661_v4, %v1640_v41  ;;  %vm7531_vm7 = vmmov %vm7525_vm10 }
 0x484   :  { %v5788_v27 = vpop.permute.xlu2 %1869  ;;  %v1727_v50 = vsel %vm652_vm0, %v7529_v59, %v7528_v33  ;;  %v1729_v14 = vsel %vm652_vm0, %v7528_v33, %v7529_v59  ;;  %v1667_v32 = vadd.f32 %v1663_v25, %v1642_v49  ;;  %v1712_v0 = vmul.f32 %v5719_v1, %v1707_v23  ;;  %vm7532_vm14 = vmmov %vm7531_vm7 }
 0x485   :  { %v1713_v62 = vmul.f32 %v5719_v1, %v1708_v61  ;;  %v1691_v56 = vadd.f32 %v1687_v52, %v1666_v34  ;;  %v1706_v38 = vsel %vm7530_vm13, %v1703_v60, 0.0  ;;  %v1710_v19 = vmul.f32 %v5719_v1, %v1705_v57 }
 0x486   :  { %v1730_v15 = vsel %vm640_vm15, %v1726_v51, 0.0  ;;  %v1692_v33 = vadd.f32 %v1688_v13, %v1667_v32  ;;  %v1731_v41 = vsel %vm7531_vm7, %v1728_v58, 0.0  ;;  %v1732_v49 = vsel %vm640_vm15, %v1727_v50, 0.0 }
 0x487   :  { %v1733_v61 = vsel %vm7532_vm14, %v1729_v14, 0.0  ;;  %v1689_v4 = vadd.f32 %v1685_v47, %v1664_v28  ;;  %v1690_v25 = vadd.f32 %v1686_v45, %v1665_v55  ;;  %v1716_v32 = vadd.f32 %v1712_v0, %v1691_v56 }
 0x488   :  { %v1717_v34 = vadd.f32 %v1713_v62, %v1692_v33  ;;  %v1711_v52 = vmul.f32 %v5719_v1, %v1706_v38  ;;  %v1735_v23 = vmul.f32 %v1734_v10, %v1730_v15  ;;  %v1736_v60 = vmul.f32 %v1734_v10, %v1731_v41 }
 0x489   :  { %2118 = vrot.lane.b32.xlu1 %v7501_v3, %s3165_s18  ;;  %2116 = vrot.lane.b32.xlu0 %v7503_v7, %s3165_s18  ;;  %v1714_v13 = vadd.f32 %v1710_v19, %v1689_v4  ;;  %v1737_v28 = vmul.f32 %v1734_v10, %v1732_v49  ;;  %v1738_v47 = vmul.f32 %v1734_v10, %v1733_v61  ;;  %vm7533_vm12 = vcmp.ge.s32.totalorder %v4111_v11, 0 }
 0x48a   :  { %2120 = vrot.lane.b32.xlu2 %v7504_v22, %s3165_s18  ;;  %v1796_v45 = vsel %vm7099_vm8, %v5480_v20, %v5710_v2  ;;  %v1798_v15 = vsel %vm7099_vm8, %v5710_v2, %v5480_v20  ;;  %v1797_v19 = vsel %vm7099_vm8, %v5712_v44, %v5557_v42  ;;  %v1799_v1 = vsel %vm7099_vm8, %v5557_v42, %v5712_v44  ;;  %vm7535_vm10 = vmmov %vm7533_vm12 }
 0x48b   :  { %v1839_v57 = vpop.permute.xlu1 %1838  ;;  %v1820_v51 = vpop.permute.xlu0 %1819  ;;  %v1821_v58 = vsel %vm7099_vm8, %v1814_v29, %v5609_v37  ;;  %v1823_v20 = vsel %vm7099_vm8, %v5609_v37, %v1814_v29  ;;  %v1715_v50 = vadd.f32 %v1711_v52, %v1690_v25  ;;  %v1739_v14 = vadd.f32 %v1735_v23, %v1714_v13  ;;  %vm7537_vm7 = vmmov %vm7535_vm10 }
 0x48c   :  { %v5844_v10 = vpop.permute.xlu2 %1892  ;;  %v1822_v2 = vsel %vm7099_vm8, %v1816_v21, %v1820_v51  ;;  %v1824_v59 = vsel %vm7099_vm8, %v1820_v51, %v1816_v21  ;;  %v1804_v42 = vstv %s5802_s19  ;;  %v1829_v44 = vstv %s5806_s22  ;;  %vm7539_vm8 = vmmov %vm7537_vm7  ;;  %s2988_s19 = sld [smem:[#allocation7 + $0x26]] }
 0x48d   :  { %v1800_v55 = vsel %vm7533_vm12, %v1798_v15, 0.0  ;;  %vm7534_vm9 = vcmp.ge.s32.totalorder %v4116_v5, 0  ;;  %v1802_v37 = vsel %vm7535_vm10, %v1799_v1, 0.0  ;;  %v1825_v21 = vsel %vm7537_vm7, %v1823_v20, 0.0  ;;  %s3037_s22 = sld [smem:[#allocation7 + $0x57]] }
 0x48e   :  { %v1801_v0 = vsel %vm7534_vm9, %v1796_v45, 0.0  ;;  %vm7536_vm13 = vmmov %vm7534_vm9  ;;  %v1827_v56 = vsel %vm7539_vm8, %v1824_v59, 0.0  ;;  %v1740_v33 = vadd.f32 %v1736_v60, %v1715_v50  ;;  %v1741_v41 = vadd.f32 %v1737_v28, %v1716_v32 }
 0x48f   :  { %v1803_v29 = vsel %vm7536_vm13, %v1797_v19, 0.0  ;;  %vm7538_vm14 = vmmov %vm7534_vm9  ;;  %v1742_v49 = vadd.f32 %v1738_v47, %v1717_v34  ;;  %v1854_v61 = vstv %s5823_s0  ;;  %v1805_v4 = vmul.f32 %v1804_v42, %v1800_v55  ;;  %s2989_s0 = sld [smem:[#allocation7 + $0x27]] }
 0x490   :  { %v1826_v62 = vsel %vm7538_vm14, %v1821_v58, 0.0  ;;  %vm7540_vm12 = vmmov %vm7534_vm9  ;;  %v1806_v25 = vmul.f32 %v1804_v42, %v1801_v0  ;;  %v1807_v52 = vmul.f32 %v1804_v42, %v1802_v37  ;;  %v1808_v23 = vmul.f32 %v1804_v42, %v1803_v29 }
 0x491   :  { %v1828_v38 = vsel %vm7540_vm12, %v1822_v2, 0.0  ;;  %2135 = vrot.lane.b32.xlu0 %v7502_v63, %s3165_s18  ;;  %2137 = vrot.lane.b32.xlu1 %v7507_v8, %s3165_s18  ;;  %v1830_v13 = vmul.f32 %v1829_v44, %v1825_v21  ;;  %v1831_v60 = vmul.f32 %v1829_v44, %v1826_v62  ;;  %v1832_v32 = vmul.f32 %v1829_v44, %v1827_v56 }
 0x492   :  { %2139 = vrot.lane.b32.xlu2 %v7505_v39, %s3165_s18  ;;  %v1833_v34 = vmul.f32 %v1829_v44, %v1828_v38  ;;  %vm7541_vm8 = vcmp.ge.s32.totalorder %v4119_v6, 0  ;;  %vm7542_vm9 = vcmp.ge.s32.totalorder %v4132_v26, 0  ;;  %v1809_v59 = vadd.f32 %v1805_v4, %v1739_v14 }
 0x493   :  { %v1845_v28 = vpop.permute.xlu1 %1844  ;;  %v1843_v47 = vpop.permute.xlu0 %1842  ;;  %vm7543_vm10 = vmmov %vm7541_vm8  ;;  %v1810_v50 = vadd.f32 %v1806_v25, %v1740_v33  ;;  %v1811_v42 = vadd.f32 %v1807_v52, %v1741_v41  ;;  %v1812_v44 = vadd.f32 %v1808_v23, %v1742_v49  ;;  %v1879_v38 = vstv %s5879_s1  ;;  %s3038_s1 = sld [smem:[#allocation7 + $0x58]] }
 0x494   :  { %v1847_v51 = vsel %vm382_vm11, %v5669_v12, %v1845_v28  ;;  %v1849_v45 = vsel %vm382_vm11, %v1845_v28, %v5669_v12  ;;  %v1846_v15 = vsel %vm382_vm11, %v1839_v57, %v1843_v47  ;;  %v1848_v19 = vsel %vm382_vm11, %v1843_v47, %v1839_v57  ;;  %v5893_v1 = vpop.permute.xlu2 %1915  ;;  %vm7544_vm13 = vmmov %vm7542_vm9 }
 0x495   :  { %v1852_v58 = vsel %vm7541_vm8, %v1849_v45, 0.0  ;;  %v1853_v20 = vsel %vm7542_vm9, %v1847_v51, 0.0  ;;  %v1850_v2 = vsel %vm7543_vm10, %v1848_v19, 0.0  ;;  %v1851_v12 = vsel %vm7544_vm13, %v1846_v15, 0.0  ;;  %vm7545_vm7 = vmmov %vm7541_vm8 }
 0x496   :  { %v1857_v57 = vmul.f32 %v1854_v61, %v1852_v58  ;;  %v1858_v55 = vmul.f32 %v1854_v61, %v1853_v20  ;;  %v1855_v0 = vmul.f32 %v1854_v61, %v1850_v2  ;;  %v1856_v37 = vmul.f32 %v1854_v61, %v1851_v12  ;;  %vm7546_vm14 = vmmov %vm7542_vm9 }
 0x497   :  { %v1834_v29 = vadd.f32 %v1830_v13, %v1809_v59  ;;  %v1835_v21 = vadd.f32 %v1831_v60, %v1810_v50  ;;  %v1836_v62 = vadd.f32 %v1832_v32, %v1811_v42  ;;  %v1837_v56 = vadd.f32 %v1833_v34, %v1812_v44  ;;  %vm7547_vm12 = vmmov %vm7545_vm7 }
 0x498   :  { %vm7548_vm8 = vmmov %vm7542_vm9  ;;  %v1904_v12 = vstv %s2980_s29  ;;  %vm7549_vm9 = vcmp.lt.s32.totalorder %v3247_v9, 1  ;;  %vm7551_vm13 = vcmp.ge.s32.totalorder %v4177_v17, 0  ;;  %s2990_s29 = sld [smem:[#allocation7 + $0x28]] }
 0x499   :  { %2141 = vrot.lane.b32.xlu0 %v7508_v36, %s3165_s18  ;;  %v1861_v28 = vadd.f32 %v1857_v57, %v1836_v62  ;;  %v1862_v47 = vadd.f32 %v1858_v55, %v1837_v56  ;;  %v1859_v51 = vadd.f32 %v1855_v0, %v1834_v29  ;;  %v1860_v45 = vadd.f32 %v1856_v37, %v1835_v21  ;;  %vm7550_vm10 = vmmov %vm7549_vm9  ;;  %s3036_s18 = sld [smem:[#allocation7 + $0x56]] }
 0x49b   :  { %v1868_v14 = vpop.permute.xlu1 %1867  ;;  %v1866_v33 = vpop.permute.xlu0 %1865 }
 0x49c   :  { %v1871_v41 = vsel %vm382_vm11, %v5721_v24, %v1868_v14  ;;  %v1873_v49 = vsel %vm382_vm11, %v1868_v14, %v5721_v24  ;;  %v1872_v61 = vsel %vm382_vm11, %v1866_v33, %v5788_v27  ;;  %v1874_v4 = vsel %vm382_vm11, %v5788_v27, %v1866_v33  ;;  %v5926_v15 = vpop.permute.xlu2 %1956 }
 0x49d   :  { %v1875_v25 = vsel %vm7545_vm7, %v1873_v49, 0.0  ;;  %v1876_v52 = vsel %vm7546_vm14, %v1871_v41, 0.0  ;;  %v1877_v23 = vsel %vm7547_vm12, %v1874_v4, 0.0  ;;  %v1878_v24 = vsel %vm7548_vm8, %v1872_v61, 0.0  ;;  %vm7553_vm14 = vmmov %vm7549_vm9 }
 0x49e   :  { %v1880_v13 = vmul.f32 %v1879_v38, %v1875_v25  ;;  %v1881_v60 = vmul.f32 %v1879_v38, %v1876_v52  ;;  %v1882_v32 = vmul.f32 %v1879_v38, %v1877_v23  ;;  %v1883_v34 = vmul.f32 %v1879_v38, %v1878_v24  ;;  %vm7554_vm12 = vmmov %vm7549_vm9 }
 0x49f   :  { %vm7552_vm7 = vcmp.ge.s32.totalorder %v4180_v54, 0  ;;  %vm7555_vm8 = vmmov %vm7551_vm13  ;;  %v1929_v49 = vstv %s3029_s4  ;;  %v1938_v61 = vstv %s2981_s30  ;;  %s3039_s30 = sld [smem:[#allocation7 + $0x59]] }
 0x4a0   :  { %v1884_v19 = vadd.f32 %v1880_v13, %v1859_v51  ;;  %v1885_v27 = vadd.f32 %v1881_v60, %v1860_v45  ;;  %v1886_v58 = vadd.f32 %v1882_v32, %v1861_v28  ;;  %v1887_v20 = vadd.f32 %v1883_v34, %v1862_v47  ;;  %s2991_s4 = sld [smem:[#allocation7 + $0x29]] }
 0x4a3   :  { %v1891_v2 = vpop.permute.xlu1 %1890  ;;  %v1889_v59 = vpop.permute.xlu0 %1888 }
 0x4a4   :  { %v1896_v50 = vsel %vm7549_vm9, %v1889_v59, %v5844_v10  ;;  %v1898_v42 = vsel %vm7550_vm10, %v5844_v10, %v1889_v59  ;;  %v5938_v21 = vpop.permute.xlu2 %1962  ;;  %vm7556_vm9 = vmmov %vm7552_vm7  ;;  %v1947_v59 = vstv %s3030_s5  ;;  %s3040_s5 = sld [smem:[#allocation7 + $0x5a]] }
 0x4a5   :  { %v1900_v44 = vsel %vm7551_vm13, %v1898_v42, 0.0  ;;  %v1901_v57 = vsel %vm7552_vm7, %v1896_v50, 0.0  ;;  %vm7557_vm13 = vmmov %vm7550_vm10 }
 0x4a6   :  { %v1905_v55 = vmul.f32 %v1904_v12, %v1900_v44  ;;  %v1906_v0 = vmul.f32 %v1904_v12, %v1901_v57  ;;  %vm7558_vm7 = vmmov %vm7550_vm10 }
 0x4a8   :  { %v1909_v37 = vadd.f32 %v1905_v55, %v1884_v19  ;;  %v1910_v29 = vadd.f32 %v1906_v0, %v1885_v27  ;;  %v1941_v55 = vmul.f32 %v1938_v61, %v4898_v31  ;;  %v1942_v0 = vmul.f32 %v1938_v61, %v4906_v46 }
 0x4a9   :  { %v1950_v46 = vmul.f32 %v1947_v59, %v4962_v16 }
 0x4ab   :  { %v1914_v62 = vpop.permute.xlu1 %1913  ;;  %v1895_v56 = vpop.permute.xlu0 %1894 }
 0x4ac   :  { %v1897_v38 = vsel %vm7553_vm14, %v1891_v2, %v1895_v56  ;;  %v1899_v10 = vsel %vm7554_vm12, %v1895_v56, %v1891_v2  ;;  %v5948_v41 = vpop.permute.xlu2 %1985  ;;  %vm7559_vm14 = vmmov %vm7558_vm7  ;;  %v1939_v2 = vmul.f32 %v1938_v61, %v4833_v30  ;;  %v1972_v30 = vstv %s2982_s6  ;;  %s2995_s6 = sld [smem:[#allocation7 + $0x2d]] }
 0x4ad   :  { %v1902_v28 = vsel %vm7555_vm8, %v1899_v10, 0.0  ;;  %v1903_v47 = vsel %vm7556_vm9, %v1897_v38, 0.0  ;;  %vm7560_vm12 = vmmov %vm7555_vm8  ;;  %v1948_v38 = vmul.f32 %v1947_v59, %v4966_v35  ;;  %v1951_v35 = vmul.f32 %v1947_v59, %v5024_v18 }
 0x4ae   :  { %v1907_v51 = vmul.f32 %v1904_v12, %v1902_v28  ;;  %v1908_v45 = vmul.f32 %v1904_v12, %v1903_v47  ;;  %vm7561_vm8 = vmmov %vm7556_vm9  ;;  %v1940_v12 = vmul.f32 %v1938_v61, %v4847_v43  ;;  %v1949_v47 = vmul.f32 %v1947_v59, %v4979_v53 }
 0x4af   :  { %vm7562_vm9 = vmmov %vm7560_vm12 }
 0x4b0   :  { %v1911_v14 = vadd.f32 %v1907_v51, %v1886_v58  ;;  %v1912_v33 = vadd.f32 %v1908_v45, %v1887_v20 }
 0x4b3   :  { %v1920_v4 = vpop.permute.xlu1 %1919  ;;  %v1918_v25 = vpop.permute.xlu0 %1917 }
 0x4b4   :  { %v1922_v52 = vsel %vm7550_vm10, %v5893_v1, %v1920_v4  ;;  %v1924_v23 = vsel %vm7557_vm13, %v1920_v4, %v5893_v1  ;;  %v1921_v24 = vsel %vm7558_vm7, %v1914_v62, %v1918_v25  ;;  %v1923_v13 = vsel %vm7559_vm14, %v1918_v25, %v1914_v62  ;;  %vm7563_vm10 = vmmov %vm7561_vm8  ;;  %v2009_v45 = vpop.permute.xlu2 %2008 }
 0x4b5   :  { %v1927_v60 = vsel %vm7560_vm12, %v1924_v23, 0.0  ;;  %v1928_v32 = vsel %vm7561_vm8, %v1922_v52, 0.0  ;;  %v1925_v34 = vsel %vm7562_vm9, %v1923_v13, 0.0  ;;  %v1926_v19 = vsel %vm7563_vm10, %v1921_v24, 0.0 }
 0x4b6   :  { %v1932_v27 = vmul.f32 %v1929_v49, %v1927_v60  ;;  %v1933_v1 = vmul.f32 %v1929_v49, %v1928_v32  ;;  %v1930_v58 = vmul.f32 %v1929_v49, %v1925_v34  ;;  %v1931_v20 = vmul.f32 %v1929_v49, %v1926_v19 }
 0x4b7   :  { %vm7568_vm13 = vcmp.lt.s32.totalorder %v4390_v40, 16  ;;  %vm2122_vm8 = vcmp.lt.s32.totalorder %v3247_v9, 96  ;;  %vm7573_vm10 = vcmp.lt.s32.totalorder %v3247_v9, 3 }
 0x4b8   :  { %v1936_v50 = vadd.f32 %v1932_v27, %v1911_v14  ;;  %v1937_v42 = vadd.f32 %v1933_v1, %v1912_v33  ;;  %v1934_v44 = vadd.f32 %v1930_v58, %v1909_v37  ;;  %v1935_v57 = vadd.f32 %v1931_v20, %v1910_v29  ;;  %vm7569_vm7 = vmmov %vm7568_vm13 }
 0x4b9   :  { %v1997_v58 = vstv %s3031_s7  ;;  %vm7571_vm14 = vmmov %vm7569_vm7  ;;  %s3044_s7 = sld [smem:[#allocation7 + $0x5e]] }
 0x4ba   :  { %v1943_v62 = vadd.f32 %v1939_v2, %v1934_v44  ;;  %v1944_v56 = vadd.f32 %v1940_v12, %v1935_v57  ;;  %v1945_v10 = vadd.f32 %v1941_v55, %v1936_v50  ;;  %v1946_v28 = vadd.f32 %v1942_v0, %v1937_v42  ;;  %vm7572_vm12 = vmmov %vm7569_vm7 }
 0x4bb   :  { %v1961_v51 = vpop.permute.xlu1 %1960  ;;  %v1959_v43 = vpop.permute.xlu0 %1958 }
 0x4bc   :  { %v1964_v37 = vsel %vm526_vm1, %v5926_v15, %v1961_v51  ;;  %v1966_v31 = vsel %vm526_vm1, %v1961_v51, %v5926_v15  ;;  %v1952_v29 = vadd.f32 %v1948_v38, %v1943_v62  ;;  %v1953_v14 = vadd.f32 %v1949_v47, %v1944_v56  ;;  %v2032_v50 = vpop.permute.xlu2 %2031 }
 0x4bd   :  { %v1968_v33 = vsel %vm514_vm2, %v1964_v37, 0.0  ;;  %v1969_v61 = vsel %vm515_vm3, %v1966_v31, 0.0  ;;  %v1965_v52 = vsel %vm526_vm1, %v1959_v43, %v5938_v21  ;;  %v1967_v16 = vsel %vm526_vm1, %v5938_v21, %v1959_v43 }
 0x4be   :  { %v1973_v4 = vmul.f32 %v1972_v30, %v1968_v33  ;;  %v1974_v25 = vmul.f32 %v1972_v30, %v1969_v61  ;;  %v1954_v15 = vadd.f32 %v1950_v46, %v1945_v10  ;;  %v1955_v18 = vadd.f32 %v1951_v35, %v1946_v28 }
 0x4bf   :  { %v1970_v23 = vsel %vm514_vm2, %v1965_v52, 0.0  ;;  %v1971_v24 = vsel %vm515_vm3, %v1967_v16, 0.0  ;;  %v2022_v37 = vstv %s2983_s8  ;;  %s2996_s8 = sld [smem:[#allocation7 + $0x2e]] }
 0x4c0   :  { %v1977_v13 = vadd.f32 %v1973_v4, %v1952_v29  ;;  %v1978_v60 = vadd.f32 %v1974_v25, %v1953_v14  ;;  %v1975_v32 = vmul.f32 %v1972_v30, %v1970_v23  ;;  %v1976_v34 = vmul.f32 %v1972_v30, %v1971_v24 }
 0x4c2   :  { %v1979_v19 = vadd.f32 %v1975_v32, %v1954_v15  ;;  %v1980_v27 = vadd.f32 %v1976_v34, %v1955_v18 }
 0x4c3   :  { %v1984_v1 = vpop.permute.xlu1 %1983  ;;  %v1982_v20 = vpop.permute.xlu0 %1981 }
 0x4c4   :  { %v1989_v21 = vsel %vm526_vm1, %v1982_v20, %v5948_v41  ;;  %v1991_v2 = vsel %vm526_vm1, %v5948_v41, %v1982_v20  ;;  %v2038_v30 = vpop.permute.xlu2 %2037 }
 0x4c5   :  { %v1993_v12 = vsel %vm514_vm2, %v1989_v21, 0.0  ;;  %v1994_v59 = vsel %vm515_vm3, %v1991_v2, 0.0 }
 0x4c6   :  { %v1998_v42 = vmul.f32 %v1997_v58, %v1993_v12  ;;  %v1999_v44 = vmul.f32 %v1997_v58, %v1994_v59 }
 0x4c8   :  { %v2002_v57 = vadd.f32 %v1998_v42, %v1977_v13  ;;  %v2003_v55 = vadd.f32 %v1999_v44, %v1978_v60 }
 0x4cb   :  { %v2007_v0 = vpop.permute.xlu1 %2006  ;;  %v1988_v62 = vpop.permute.xlu0 %1987 }
 0x4cc   :  { %v1990_v56 = vsel %vm526_vm1, %v1984_v1, %v1988_v62  ;;  %v1992_v41 = vsel %vm526_vm1, %v1988_v62, %v1984_v1 }
 0x4cd   :  { %v1995_v38 = vsel %vm514_vm2, %v1990_v56, 0.0  ;;  %v1996_v10 = vsel %vm515_vm3, %v1992_v41, 0.0 }
 0x4ce   :  { %v2000_v28 = vmul.f32 %v1997_v58, %v1995_v38  ;;  %v2001_v47 = vmul.f32 %v1997_v58, %v1996_v10 }
 0x4d0   :  { %v2004_v51 = vadd.f32 %v2000_v28, %v1979_v19  ;;  %v2005_v43 = vadd.f32 %v2001_v47, %v1980_v27  ;;  %v2061_v19 = vpop.permute.xlu2 %2060  ;;  %v2047_v27 = vstv %s3032_s9  ;;  %v2072_v47 = vstv %s2984_s10  ;;  %s6720_s9 = sld [smem:[#allocation7 + $0x5f]] }
 0x4d1   :  { %s6722_s10 = sld [smem:[#allocation7 + $0x2f]] }
 0x4d3   :  { %v2013_v31 = vpop.permute.xlu1 %2012  ;;  %v2011_v46 = vpop.permute.xlu0 %2010 }
 0x4d4   :  { %v2015_v35 = vsel %vm589_vm4, %v2009_v45, %v2013_v31  ;;  %v2017_v29 = vsel %vm589_vm4, %v2013_v31, %v2009_v45  ;;  %v2014_v14 = vsel %vm589_vm4, %v2007_v0, %v2011_v46  ;;  %v2016_v33 = vsel %vm589_vm4, %v2011_v46, %v2007_v0 }
 0x4d5   :  { %v2020_v4 = vsel %vm577_vm5, %v2015_v35, 0.0  ;;  %v2021_v52 = vsel %vm578_vm6, %v2017_v29, 0.0  ;;  %v2018_v16 = vsel %vm577_vm5, %v2014_v14, 0.0  ;;  %v2019_v15 = vsel %vm578_vm6, %v2016_v33, 0.0 }
 0x4d6   :  { %v2025_v18 = vmul.f32 %v2022_v37, %v2020_v4  ;;  %v2026_v45 = vmul.f32 %v2022_v37, %v2021_v52  ;;  %v2023_v23 = vmul.f32 %v2022_v37, %v2018_v16  ;;  %v2024_v24 = vmul.f32 %v2022_v37, %v2019_v15 }
 0x4d8   :  { %v2029_v13 = vadd.f32 %v2025_v18, %v2004_v51  ;;  %v2030_v60 = vadd.f32 %v2026_v45, %v2005_v43  ;;  %v2027_v32 = vadd.f32 %v2023_v23, %v2002_v57  ;;  %v2028_v34 = vadd.f32 %v2024_v24, %v2003_v55  ;;  %v2084_v37 = vpop.permute.xlu2 %2083 }
 0x4db   :  { %v2036_v1 = vpop.permute.xlu1 %2035  ;;  %v2034_v58 = vpop.permute.xlu0 %2033 }
 0x4dc   :  { %v2039_v20 = vsel %vm589_vm4, %v2032_v50, %v2036_v1  ;;  %v2041_v21 = vsel %vm589_vm4, %v2036_v1, %v2032_v50  ;;  %v2040_v2 = vsel %vm589_vm4, %v2034_v58, %v2038_v30  ;;  %v2042_v12 = vsel %vm589_vm4, %v2038_v30, %v2034_v58  ;;  %v7570_v1 = vld [vmem:[#allocation166_spill] sm:$0xff] }
 0x4dd   :  { %v2043_v59 = vsel %vm577_vm5, %v2039_v20, 0.0  ;;  %v2044_v42 = vsel %vm578_vm6, %v2041_v21, 0.0  ;;  %v2045_v44 = vsel %vm577_vm5, %v2040_v2, 0.0  ;;  %v2046_v57 = vsel %vm578_vm6, %v2042_v12, 0.0 }
 0x4de   :  { %v2048_v55 = vmul.f32 %v2047_v27, %v2043_v59  ;;  %v2049_v50 = vmul.f32 %v2047_v27, %v2044_v42  ;;  %v2050_v0 = vmul.f32 %v2047_v27, %v2045_v44  ;;  %v2051_v62 = vmul.f32 %v2047_v27, %v2046_v57 }
 0x4df   :  { %v2107_v58 = vadd.s32 32, %v7570_v1 }
 0x4e0   :  { %v2052_v56 = vadd.f32 %v2048_v55, %v2027_v32  ;;  %v2053_v41 = vadd.f32 %v2049_v50, %v2028_v34  ;;  %v2054_v38 = vadd.f32 %v2050_v0, %v2029_v13  ;;  %v2055_v10 = vadd.f32 %v2051_v62, %v2030_v60  ;;  %v2115_v23 = vpop.permute.xlu2 %2114 }
 0x4e1   :  { %v2097_v34 = vstv %s3033_s11  ;;  %vm2111_vm9 = vcmp.lt.s32.totalorder %v2107_v58, 256  ;;  %s6731_s11 = sld [smem:[#allocation7 + $0x60]] }
 0x4e3   :  { %v2059_v28 = vpop.permute.xlu1 %2058  ;;  %v2057_v30 = vpop.permute.xlu0 %2056 }
 0x4e4   :  { %v2064_v51 = vsel %vm652_vm0, %v2057_v30, %v2061_v19  ;;  %v2066_v43 = vsel %vm652_vm0, %v2061_v19, %v2057_v30 }
 0x4e5   :  { %v2068_v31 = vsel %vm640_vm15, %v2064_v51, 0.0  ;;  %v2069_v46 = vsel %vm7568_vm13, %v2066_v43, 0.0  ;;  %vm7574_vm13 = vmmov %vm7573_vm10 }
 0x4e6   :  { %v2073_v35 = vmul.f32 %v2072_v47, %v2068_v31  ;;  %v2074_v29 = vmul.f32 %v2072_v47, %v2069_v46 }
 0x4e8   :  { %v2077_v14 = vadd.f32 %v2073_v35, %v2052_v56  ;;  %v2078_v33 = vadd.f32 %v2074_v29, %v2053_v41  ;;  %v2121_v56 = vpop.permute.xlu2 %2120 }
 0x4eb   :  { %v2082_v4 = vpop.permute.xlu1 %2081  ;;  %v2063_v52 = vpop.permute.xlu0 %2062 }
 0x4ec   :  { %v2065_v16 = vsel %vm652_vm0, %v2059_v28, %v2063_v52  ;;  %v2067_v15 = vsel %vm652_vm0, %v2063_v52, %v2059_v28 }
 0x4ed   :  { %v2070_v18 = vsel %vm640_vm15, %v2065_v16, 0.0  ;;  %v2071_v45 = vsel %vm7569_vm7, %v2067_v15, 0.0  ;;  %vm7575_vm7 = vcmp.ge.s32.totalorder %v4111_v11, 0 }
 0x4ee   :  { %v2075_v24 = vmul.f32 %v2072_v47, %v2070_v18  ;;  %v2076_v13 = vmul.f32 %v2072_v47, %v2071_v45 }
 0x4f0   :  { %v2079_v60 = vadd.f32 %v2075_v24, %v2054_v38  ;;  %v2080_v32 = vadd.f32 %v2076_v13, %v2055_v10  ;;  %v2140_v35 = vpop.permute.xlu2 %2139 }
 0x4f3   :  { %v2088_v19 = vpop.permute.xlu1 %2087  ;;  %v2086_v27 = vpop.permute.xlu0 %2085 }
 0x4f4   :  { %v2090_v20 = vsel %vm652_vm0, %v2084_v37, %v2088_v19  ;;  %v2092_v21 = vsel %vm652_vm0, %v2088_v19, %v2084_v37  ;;  %v2089_v2 = vsel %vm652_vm0, %v2082_v4, %v2086_v27  ;;  %v2091_v12 = vsel %vm652_vm0, %v2086_v27, %v2082_v4 }
 0x4f5   :  { %v2095_v59 = vsel %vm640_vm15, %v2090_v20, 0.0  ;;  %v2096_v42 = vsel %vm7571_vm14, %v2092_v21, 0.0  ;;  %v2093_v44 = vsel %vm640_vm15, %v2089_v2, 0.0  ;;  %v2094_v57 = vsel %vm7572_vm12, %v2091_v12, 0.0  ;;  %vm7577_vm12 = vmmov %vm7573_vm10 }
 0x4f6   :  { %v2100_v55 = vmul.f32 %v2097_v34, %v2095_v59  ;;  %v2101_v50 = vmul.f32 %v2097_v34, %v2096_v42  ;;  %v2098_v0 = vmul.f32 %v2097_v34, %v2093_v44  ;;  %v2099_v62 = vmul.f32 %v2097_v34, %v2094_v57 }
 0x4f7   :  { %v2167_v19 = vstv %s2985_s12  ;;  %vm7576_vm14 = vcmp.ge.s32.totalorder %v4116_v5, 0  ;;  %s6764_s12 = sld [smem:[#allocation7 + $0x30]] }
 0x4f8   :  { %v6079_v41 = vadd.f32 %v2100_v55, %v2079_v60  ;;  %v6081_v38 = vadd.f32 %v2101_v50, %v2080_v32  ;;  %v6083_v10 = vadd.f32 %v2098_v0, %v2077_v14  ;;  %v6085_v28 = vadd.f32 %v2099_v62, %v2078_v33 }
 0x4fb   :  { %v2119_v47 = vpop.permute.xlu1 %2118  ;;  %v2117_v30 = vpop.permute.xlu0 %2116 }
 0x4fc   :  { %v6090_v51 = vsel %vm2122_vm8, %v2115_v23, %v2119_v47  ;;  %v2125_v43 = vsel %vm2122_vm8, %v2119_v47, %v2115_v23  ;;  %v6096_v37 = vsel %vm2122_vm8, %v2117_v30, %v2121_v56  ;;  %v2126_v46 = vsel %vm2122_vm8, %v2121_v56, %v2117_v30 }
 0x4fd   :  { %v6099_v31 = vsel %vm2111_vm9, %v2125_v43, 0.0  ;;  %2151 = vrot.lane.b32.xlu1 %v6090_v51, %s3158_s24  ;;  %2153 = vrot.lane.b32.xlu2 %v6096_v37, %s3158_s24  ;;  %v6110_v14 = vsel %vm2111_vm9, %v2126_v46, 0.0  ;;  %v7581_v43 = vld [vmem:[#allocation15_spill] sm:$0xff]  ;;  %v2192_v46 = vstv %s3034_s13  ;;  %s3047_s13 = sld [smem:[#allocation7 + $0x61]] }
 0x4fe   :  { %2155 = vrot.lane.b32.xlu0 %v6099_v31, %s3158_s24 }
 0x503   :  { %v2136_v29 = vpop.permute.xlu0 %2135  ;;  %v2138_v52 = vpop.permute.xlu1 %2137 }
 0x504   :  { %v6114_v33 = vsel %vm2122_vm8, %v2136_v29, %v2140_v35  ;;  %v2145_v4 = vsel %vm2122_vm8, %v2140_v35, %v2136_v29 }
 0x505   :  { %2157 = vrot.lane.b32.xlu1 %v6110_v14, %s3158_s24  ;;  %2176 = vrot.lane.b32.xlu2 %v6114_v33, %s3158_s24  ;;  %v6123_v15 = vsel %vm2111_vm9, %v2145_v4, 0.0 }
 0x50b   :  { %v2142_v16 = vpop.permute.xlu0 %2141 }
 0x50c   :  { %v6127_v18 = vsel %vm2122_vm8, %v2138_v52, %v2142_v16  ;;  %v2146_v45 = vsel %vm2122_vm8, %v2142_v16, %v2138_v52  ;;  %vm7578_vm8 = vmmov %vm7573_vm10 }
 0x50d   :  { %v6132_v23 = vsel %vm2111_vm9, %v2146_v45, 0.0  ;;  %2180 = vrot.lane.b32.xlu1 %v6123_v15, %s3158_s24  ;;  %2178 = vrot.lane.b32.xlu0 %v6127_v18, %s3158_s24  ;;  %vm7579_vm9 = vmmov %vm7575_vm7 }
 0x50e   :  { %2182 = vrot.lane.b32.xlu2 %v6132_v23, %s3158_s24 }
 0x515   :  { %2203 = vrot.lane.b32.xlu1 %v6096_v37, %s3157_s23  ;;  %2201 = vrot.lane.b32.xlu0 %v6090_v51, %s3157_s23 }
 0x516   :  { %2205 = vrot.lane.b32.xlu2 %v6099_v31, %s3157_s23 }
 0x51d   :  { %2226 = vrot.lane.b32.xlu1 %v6114_v33, %s3157_s23  ;;  %2207 = vrot.lane.b32.xlu0 %v6110_v14, %s3157_s23 }
 0x51e   :  { %2228 = vrot.lane.b32.xlu2 %v6127_v18, %s3157_s23 }
 0x525   :  { %2232 = vrot.lane.b32.xlu1 %v6132_v23, %s3157_s23  ;;  %2230 = vrot.lane.b32.xlu0 %v6123_v15, %s3157_s23 }
 0x526   :  { %2251 = vrot.lane.b32.xlu2 %v6090_v51, %s3159_s25 }
 0x52d   :  { %2255 = vrot.lane.b32.xlu1 %v6099_v31, %s3159_s25  ;;  %2253 = vrot.lane.b32.xlu0 %v6096_v37, %s3159_s25 }
 0x52e   :  { %2257 = vrot.lane.b32.xlu2 %v6110_v14, %s3159_s25 }
 0x535   :  { %2278 = vrot.lane.b32.xlu1 %v6127_v18, %s3159_s25  ;;  %2276 = vrot.lane.b32.xlu0 %v6114_v33, %s3159_s25 }
 0x536   :  { %2280 = vrot.lane.b32.xlu2 %v6123_v15, %s3159_s25 }
 0x53d   :  { %2319 = vrot.lane.b32.xlu1 %v6090_v51, %s3161_s27  ;;  %2282 = vrot.lane.b32.xlu0 %v6132_v23, %s3159_s25 }
 0x53e   :  { %2321 = vrot.lane.b32.xlu2 %v6096_v37, %s3161_s27 }
 0x545   :  { %2325 = vrot.lane.b32.xlu1 %v6110_v14, %s3161_s27  ;;  %2323 = vrot.lane.b32.xlu0 %v6099_v31, %s3161_s27 }
 0x546   :  { %2344 = vrot.lane.b32.xlu2 %v6114_v33, %s3161_s27 }
 0x54d   :  { %2348 = vrot.lane.b32.xlu1 %v6123_v15, %s3161_s27  ;;  %2346 = vrot.lane.b32.xlu0 %v6127_v18, %s3161_s27 }
 0x54e   :  { %2350 = vrot.lane.b32.xlu2 %v6132_v23, %s3161_s27 }
 0x555   :  { %2371 = vrot.lane.b32.xlu1 %v6096_v37, %s3160_s26  ;;  %2369 = vrot.lane.b32.xlu0 %v6090_v51, %s3160_s26 }
 0x556   :  { %2373 = vrot.lane.b32.xlu2 %v6099_v31, %s3160_s26 }
 0x557   :  { %v2154_v24 = vpop.permute.xlu2 %2153 }
 0x55d   :  { %2394 = vrot.lane.b32.xlu1 %v6114_v33, %s3160_s26  ;;  %2375 = vrot.lane.b32.xlu0 %v6110_v14, %s3160_s26 }
 0x55e   :  { %2396 = vrot.lane.b32.xlu2 %v6127_v18, %s3160_s26 }
 0x55f   :  { %v2177_v13 = vpop.permute.xlu2 %2176 }
 0x565   :  { %2400 = vrot.lane.b32.xlu1 %v6132_v23, %s3160_s26  ;;  %2398 = vrot.lane.b32.xlu0 %v6123_v15, %s3160_s26 }
 0x566   :  { %2419 = vrot.lane.b32.xlu2 %v6090_v51, %s3162_s28 }
 0x568   :  { %v2183_v60 = vpop.permute.xlu2 %2182 }
 0x56d   :  { %2423 = vrot.lane.b32.xlu1 %v6099_v31, %s3162_s28  ;;  %2421 = vrot.lane.b32.xlu0 %v6096_v37, %s3162_s28 }
 0x56e   :  { %2425 = vrot.lane.b32.xlu2 %v6110_v14, %s3162_s28 }
 0x56f   :  { %v2152_v32 = vpop.permute.xlu1 %2151 }
 0x570   :  { %v2206_v34 = vpop.permute.xlu2 %2205  ;;  %v2156_v27 = vpop.permute.xlu0 %2155 }
 0x571   :  { %v2159_v58 = vsel %vm7573_vm10, %v2152_v32, %v2156_v27  ;;  %v2161_v20 = vsel %vm7574_vm13, %v2156_v27, %v2152_v32  ;;  %vm7580_vm10 = vmmov %vm7576_vm14 }
 0x572   :  { %v2163_v21 = vsel %vm7575_vm7, %v2161_v20, 0.0  ;;  %v2164_v2 = vsel %vm7576_vm14, %v2159_v58, 0.0  ;;  %vm7582_vm13 = vmmov %vm7578_vm8 }
 0x573   :  { %v2168_v12 = vmul.f32 %v2167_v19, %v2163_v21  ;;  %v2169_v59 = vmul.f32 %v2167_v19, %v2164_v2  ;;  %vm7583_vm7 = vmmov %vm7578_vm8 }
 0x574   :  { %vm7584_vm14 = vmmov %vm7583_vm7 }
 0x575   :  { %v2172_v42 = vadd.f32 %v2168_v12, %v6083_v10  ;;  %v2173_v44 = vadd.f32 %v2169_v59, %v6085_v28  ;;  %2446 = vrot.lane.b32.xlu1 %v6127_v18, %s3162_s28  ;;  %2444 = vrot.lane.b32.xlu0 %v6114_v33, %s3162_s28  ;;  %v2217_v59 = vstv %s2986_s15 }
 0x576   :  { %2448 = vrot.lane.b32.xlu2 %v6123_v15, %s3162_s28 }
 0x577   :  { %v2158_v57 = vpop.permute.xlu1 %2157 }
 0x578   :  { %v2160_v55 = vsel %vm7577_vm12, %v2154_v24, %v2158_v57  ;;  %v2162_v50 = vsel %vm7578_vm8, %v2158_v57, %v2154_v24  ;;  %v6232_v0 = vpop.permute.xlu2 %2228  ;;  %vm7585_vm12 = vmmov %vm7583_vm7 }
 0x579   :  { %v2165_v62 = vsel %vm7579_vm9, %v2162_v50, 0.0  ;;  %v2166_v56 = vsel %vm7580_vm10, %v2160_v55, 0.0  ;;  %vm7586_vm8 = vmmov %vm7579_vm9 }
 0x57a   :  { %v2170_v10 = vmul.f32 %v2167_v19, %v2165_v62  ;;  %v2171_v28 = vmul.f32 %v2167_v19, %v2166_v56  ;;  %vm7587_vm9 = vmmov %vm7580_vm10 }
 0x57b   :  { %vm7588_vm10 = vmmov %vm7586_vm8 }
 0x57c   :  { %v2174_v47 = vadd.f32 %v2170_v10, %v6079_v41  ;;  %v2175_v30 = vadd.f32 %v2171_v28, %v6081_v38 }
 0x57d   :  { %2477 = vrot.lane.b32.xlu1 %v7581_v43, %s3166_s14  ;;  %2450 = vrot.lane.b32.xlu0 %v6132_v23, %s3162_s28 }
 0x57e   :  { %2479 = vrot.lane.b32.xlu2 %v7503_v7, %s3166_s14 }
 0x57f   :  { %v2181_v35 = vpop.permute.xlu1 %2180  ;;  %v2179_v29 = vpop.permute.xlu0 %2178 }
 0x580   :  { %v2184_v4 = vsel %vm7582_vm13, %v2177_v13, %v2181_v35  ;;  %v2186_v41 = vsel %vm7583_vm7, %v2181_v35, %v2177_v13  ;;  %v2185_v38 = vsel %vm7584_vm14, %v2179_v29, %v2183_v60  ;;  %v2187_v52 = vsel %vm7585_vm12, %v2183_v60, %v2179_v29  ;;  %v6254_v16 = vpop.permute.xlu2 %2251  ;;  %vm7589_vm13 = vmmov %vm7587_vm9 }
 0x581   :  { %v2188_v7 = vsel %vm7586_vm8, %v2186_v41, 0.0  ;;  %v2189_v45 = vsel %vm7587_vm9, %v2184_v4, 0.0  ;;  %v2190_v24 = vsel %vm7588_vm10, %v2187_v52, 0.0  ;;  %v2191_v13 = vsel %vm7589_vm13, %v2185_v38, 0.0 }
 0x582   :  { %v2193_v32 = vmul.f32 %v2192_v46, %v2188_v7  ;;  %v2194_v19 = vmul.f32 %v2192_v46, %v2189_v45  ;;  %v2195_v27 = vmul.f32 %v2192_v46, %v2190_v24  ;;  %v2196_v58 = vmul.f32 %v2192_v46, %v2191_v13 }
 0x583   :  { %vm7590_vm7 = vcmp.ge.s32.totalorder %v4119_v6, 0  ;;  %vm7591_vm14 = vcmp.ge.s32.totalorder %v4132_v26, 0  ;;  %v2242_v29 = vstv %s3035_s16 }
 0x584   :  { %v2197_v20 = vadd.f32 %v2193_v32, %v2172_v42  ;;  %v2198_v60 = vadd.f32 %v2194_v19, %v2173_v44  ;;  %v2199_v21 = vadd.f32 %v2195_v27, %v2174_v47  ;;  %v2200_v2 = vadd.f32 %v2196_v58, %v2175_v30  ;;  %vm7592_vm12 = vmmov %vm7590_vm7 }
 0x585   :  { %2483 = vrot.lane.b32.xlu1 %v7504_v22, %s3166_s14  ;;  %2481 = vrot.lane.b32.xlu0 %v7501_v3, %s3166_s14  ;;  %vm7593_vm8 = vmmov %vm7591_vm14 }
 0x586   :  { %2498 = vrot.lane.b32.xlu2 %v7502_v63, %s3166_s14  ;;  %vm7594_vm9 = vmmov %vm7590_vm7 }
 0x587   :  { %v2204_v12 = vpop.permute.xlu1 %2203  ;;  %v2202_v57 = vpop.permute.xlu0 %2201  ;;  %vm7595_vm10 = vmmov %vm7593_vm8 }
 0x588   :  { %v2209_v55 = vsel %vm382_vm11, %v2202_v57, %v2206_v34  ;;  %v2211_v42 = vsel %vm382_vm11, %v2206_v34, %v2202_v57  ;;  %v2258_v44 = vpop.permute.xlu2 %2257  ;;  %vm7596_vm13 = vmmov %vm7590_vm7  ;;  %v2267_v57 = vstv %s2987_s17 }
 0x589   :  { %v2213_v50 = vsel %vm7590_vm7, %v2211_v42, 0.0  ;;  %v2214_v22 = vsel %vm7591_vm14, %v2209_v55, 0.0  ;;  %vm7597_vm7 = vmmov %vm7593_vm8  ;;  %vm7598_vm14 = vcmp.lt.s32.totalorder %v3247_v9, 1 }
 0x58a   :  { %v2218_v3 = vmul.f32 %v2217_v59, %v2213_v50  ;;  %v2219_v62 = vmul.f32 %v2217_v59, %v2214_v22 }
 0x58c   :  { %v2222_v56 = vadd.f32 %v2218_v3, %v2197_v20  ;;  %v2223_v63 = vadd.f32 %v2219_v62, %v2198_v60 }
 0x58d   :  { %2502 = vrot.lane.b32.xlu1 %v7505_v39, %s3166_s14  ;;  %2500 = vrot.lane.b32.xlu0 %v7507_v8, %s3166_s14 }
 0x58e   :  { %2504 = vrot.lane.b32.xlu2 %v7508_v36, %s3166_s14 }
 0x58f   :  { %v2227_v34 = vpop.permute.xlu1 %2226  ;;  %v2208_v10 = vpop.permute.xlu0 %2207 }
 0x590   :  { %v2210_v28 = vsel %vm382_vm11, %v2204_v12, %v2208_v10  ;;  %v2212_v47 = vsel %vm382_vm11, %v2208_v10, %v2204_v12  ;;  %v2281_v30 = vpop.permute.xlu2 %2280 }
 0x591   :  { %v2215_v43 = vsel %vm7592_vm12, %v2212_v47, 0.0  ;;  %v2216_v39 = vsel %vm7593_vm8, %v2210_v28, 0.0  ;;  %vm7599_vm12 = vmmov %vm7598_vm14 }
 0x592   :  { %v2220_v8 = vmul.f32 %v2217_v59, %v2215_v43  ;;  %v2221_v46 = vmul.f32 %v2217_v59, %v2216_v39  ;;  %vm7600_vm8 = vmmov %vm7599_vm12 }
 0x594   :  { %v2224_v35 = vadd.f32 %v2220_v8, %v2199_v21  ;;  %v2225_v36 = vadd.f32 %v2221_v46, %v2200_v2 }
 0x597   :  { %v2233_v4 = vpop.permute.xlu1 %2232  ;;  %v2231_v41 = vpop.permute.xlu0 %2230 }
 0x598   :  { %v2235_v38 = vsel %vm382_vm11, %v6232_v0, %v2233_v4  ;;  %v2237_v52 = vsel %vm382_vm11, %v2233_v4, %v6232_v0  ;;  %v2234_v7 = vsel %vm382_vm11, %v2227_v34, %v2231_v41  ;;  %v2236_v45 = vsel %vm382_vm11, %v2231_v41, %v2227_v34  ;;  %v6310_v60 = vpop.permute.xlu2 %2321 }
 0x599   :  { %v2240_v24 = vsel %vm7594_vm9, %v2237_v52, 0.0  ;;  %v2241_v13 = vsel %vm7595_vm10, %v2235_v38, 0.0  ;;  %v2238_v32 = vsel %vm7596_vm13, %v2236_v45, 0.0  ;;  %v2239_v19 = vsel %vm7597_vm7, %v2234_v7, 0.0  ;;  %vm7601_vm9 = vmmov %vm7600_vm8 }
 0x59a   :  { %v2245_v27 = vmul.f32 %v2242_v29, %v2240_v24  ;;  %v2246_v0 = vmul.f32 %v2242_v29, %v2241_v13  ;;  %v2243_v58 = vmul.f32 %v2242_v29, %v2238_v32  ;;  %v2244_v20 = vmul.f32 %v2242_v29, %v2239_v19 }
 0x59b   :  { %vm7602_vm10 = vcmp.ge.s32.totalorder %v4177_v17, 0  ;;  %vm7603_vm13 = vcmp.ge.s32.totalorder %v4180_v54, 0  ;;  %v2292_v29 = vstv %s3036_s18 }
 0x59c   :  { %v2249_v21 = vadd.f32 %v2245_v27, %v2224_v35  ;;  %v2250_v2 = vadd.f32 %v2246_v0, %v2225_v36  ;;  %v2247_v12 = vadd.f32 %v2243_v58, %v2222_v56  ;;  %v2248_v59 = vadd.f32 %v2244_v20, %v2223_v63  ;;  %vm7604_vm7 = vmmov %vm7602_vm10 }
 0x59d   :  { %v2301_v20 = vstv %s2988_s19  ;;  %s2937_s19 = sshll.u32 %s6890_s3, 4  ;;  %s2938_s19 = int_to_ptr.hbm [resolvable:$true] %s2937_s19 }
 0x59f   :  { %v2256_v55 = vpop.permute.xlu1 %2255  ;;  %v2254_v42 = vpop.permute.xlu0 %2253 }
 0x5a0   :  { %v2259_v50 = vsel %vm7598_vm14, %v6254_v16, %v2256_v55  ;;  %v2261_v22 = vsel %vm7599_vm12, %v2256_v55, %v6254_v16  ;;  %v2260_v3 = vsel %vm7600_vm8, %v2254_v42, %v2258_v44  ;;  %v2262_v62 = vsel %vm7601_vm9, %v2258_v44, %v2254_v42  ;;  %vm7605_vm14 = vmmov %vm7603_vm13  ;;  %v6330_v35 = vpop.permute.xlu2 %2344 }
 0x5a1   :  { %v2263_v56 = vsel %vm7602_vm10, %v2261_v22, 0.0  ;;  %v2264_v63 = vsel %vm7603_vm13, %v2259_v50, 0.0  ;;  %v2265_v34 = vsel %vm7604_vm7, %v2262_v62, 0.0  ;;  %v2266_v10 = vsel %vm7605_vm14, %v2260_v3, 0.0  ;;  %vm7606_vm12 = vmmov %vm7600_vm8 }
 0x5a2   :  { %v2268_v28 = vmul.f32 %v2267_v57, %v2263_v56  ;;  %v2269_v16 = vmul.f32 %v2267_v57, %v2264_v63  ;;  %v2270_v47 = vmul.f32 %v2267_v57, %v2265_v34  ;;  %v2271_v43 = vmul.f32 %v2267_v57, %v2266_v10  ;;  %vm7607_vm9 = vmmov %vm7604_vm7 }
 0x5a3   :  { %vm7608_vm10 = vmmov %vm7603_vm13  ;;  %v2310_v57 = vstv %s3037_s22  ;;  %v2304_v55 = vmul.f32 %v2301_v20, %v6096_v37  ;;  %v2305_v42 = vmul.f32 %v2301_v20, %v6110_v14  ;;  %v2302_v3 = vmul.f32 %v2301_v20, %v6090_v51 }
 0x5a4   :  { %v2272_v39 = vadd.f32 %v2268_v28, %v2247_v12  ;;  %v2273_v8 = vadd.f32 %v2269_v16, %v2248_v59  ;;  %v2274_v46 = vadd.f32 %v2270_v47, %v2249_v21  ;;  %v2275_v44 = vadd.f32 %v2271_v43, %v2250_v2  ;;  %vm7609_vm13 = vmmov %vm7600_vm8 }
 0x5a5   :  { %vm7610_vm7 = vmmov %vm7600_vm8  ;;  %v2303_v62 = vmul.f32 %v2301_v20, %v6099_v31  ;;  %v2311_v56 = vmul.f32 %v2310_v57, %v6114_v33  ;;  %v2314_v10 = vmul.f32 %v2310_v57, %v6132_v23  ;;  %v2313_v28 = vmul.f32 %v2310_v57, %v6127_v18 }
 0x5a6   :  { %vm7611_vm14 = vmmov %vm7607_vm9  ;;  %v2335_v43 = vstv %s2989_s0  ;;  %v2312_v14 = vmul.f32 %v2310_v57, %v6123_v15 }
 0x5a7   :  { %v2279_v36 = vpop.permute.xlu1 %2278  ;;  %v2277_v4 = vpop.permute.xlu0 %2276 }
 0x5a8   :  { %v2284_v41 = vsel %vm7606_vm12, %v2277_v4, %v2281_v30  ;;  %v2286_v38 = vsel %vm7600_vm8, %v2281_v30, %v2277_v4  ;;  %v2351_v19 = vpop.permute.xlu2 %2350  ;;  %vm7612_vm12 = vmmov %vm7608_vm10  ;;  %vm7613_vm8 = vcmp.lt.s32.totalorder %v4390_v40, 16 }
 0x5a9   :  { %v2288_v52 = vsel %vm7607_vm9, %v2286_v38, 0.0  ;;  %v2289_v7 = vsel %vm7608_vm10, %v2284_v41, 0.0  ;;  %vm7614_vm9 = vmmov %vm7613_vm8 }
 0x5aa   :  { %v2293_v45 = vmul.f32 %v2292_v29, %v2288_v52  ;;  %v2294_v24 = vmul.f32 %v2292_v29, %v2289_v7  ;;  %vm7615_vm10 = vmmov %vm7613_vm8 }
 0x5ac   :  { %v2297_v13 = vadd.f32 %v2293_v45, %v2272_v39  ;;  %v2298_v32 = vadd.f32 %v2294_v24, %v2273_v8 }
 0x5ae   :  { %v2306_v16 = vadd.f32 %v2302_v3, %v2297_v13  ;;  %v2307_v47 = vadd.f32 %v2303_v62, %v2298_v32 }
 0x5af   :  { %v2320_v27 = vpop.permute.xlu1 %2319  ;;  %v2283_v0 = vpop.permute.xlu0 %2282 }
 0x5b0   :  { %v2285_v58 = vsel %vm7609_vm13, %v2279_v36, %v2283_v0  ;;  %v2287_v30 = vsel %vm7610_vm7, %v2283_v0, %v2279_v36  ;;  %v2374_v8 = vpop.permute.xlu2 %2373  ;;  %v2316_v41 = vadd.f32 %v2312_v14, %v2307_v47  ;;  %v2315_v38 = vadd.f32 %v2311_v56, %v2306_v16  ;;  %vm7616_vm13 = vmmov %vm7613_vm8 }
 0x5b1   :  { %v2290_v21 = vsel %vm7611_vm14, %v2287_v30, 0.0  ;;  %v2291_v2 = vsel %vm7612_vm12, %v2285_v58, 0.0  ;;  %v2360_v0 = vstv %s3038_s1  ;;  %vm2485_vm7 = vcmp.lt.s32.totalorder %v3247_v9, 80 }
 0x5b2   :  { %v2295_v12 = vmul.f32 %v2292_v29, %v2290_v21  ;;  %v2296_v59 = vmul.f32 %v2292_v29, %v2291_v2  ;;  %vm7617_vm12 = vcmp.lt.s32.totalorder %v3247_v9, 3 }
 0x5b4   :  { %v2299_v50 = vadd.f32 %v2295_v12, %v2274_v46  ;;  %v2300_v22 = vadd.f32 %v2296_v59, %v2275_v44 }
 0x5b6   :  { %v2308_v63 = vadd.f32 %v2304_v55, %v2299_v50  ;;  %v2309_v34 = vadd.f32 %v2305_v42, %v2300_v22 }
 0x5b7   :  { %v2326_v37 = vpop.permute.xlu1 %2325  ;;  %v2324_v39 = vpop.permute.xlu0 %2323 }
 0x5b8   :  { %v2317_v51 = vadd.f32 %v2313_v28, %v2308_v63  ;;  %v2318_v46 = vadd.f32 %v2314_v10, %v2309_v34  ;;  %v2328_v31 = vsel %vm526_vm1, %v6310_v60, %v2326_v37  ;;  %v2330_v33 = vsel %vm526_vm1, %v2326_v37, %v6310_v60  ;;  %v2397_v42 = vpop.permute.xlu2 %2396 }
 0x5b9   :  { %v2333_v18 = vsel %vm514_vm2, %v2328_v31, 0.0  ;;  %v2334_v23 = vsel %vm515_vm3, %v2330_v33, 0.0  ;;  %v2327_v15 = vsel %vm526_vm1, %v2320_v27, %v2324_v39  ;;  %v2329_v44 = vsel %vm526_vm1, %v2324_v39, %v2320_v27 }
 0x5ba   :  { %v2338_v36 = vmul.f32 %v2335_v43, %v2333_v18  ;;  %v2339_v29 = vmul.f32 %v2335_v43, %v2334_v23  ;;  %v2331_v4 = vsel %vm514_vm2, %v2327_v15, 0.0  ;;  %v2332_v60 = vsel %vm515_vm3, %v2329_v44, 0.0 }
 0x5bb   :  { %v2336_v52 = vmul.f32 %v2335_v43, %v2331_v4  ;;  %v2337_v7 = vmul.f32 %v2335_v43, %v2332_v60  ;;  %v2385_v10 = vstv %s2990_s29 }
 0x5bc   :  { %v2342_v45 = vadd.f32 %v2338_v36, %v2317_v51  ;;  %v2343_v24 = vadd.f32 %v2339_v29, %v2318_v46 }
 0x5bd   :  { %v2340_v13 = vadd.f32 %v2336_v52, %v2315_v38  ;;  %v2341_v32 = vadd.f32 %v2337_v7, %v2316_v41  ;;  %v2410_v38 = vstv %s3039_s30 }
 0x5bf   :  { %v2349_v58 = vpop.permute.xlu1 %2348  ;;  %v2347_v30 = vpop.permute.xlu0 %2346 }
 0x5c0   :  { %v2352_v27 = vsel %vm526_vm1, %v6330_v35, %v2349_v58  ;;  %v2354_v20 = vsel %vm526_vm1, %v2349_v58, %v6330_v35  ;;  %v2353_v21 = vsel %vm526_vm1, %v2347_v30, %v2351_v19  ;;  %v2355_v2 = vsel %vm526_vm1, %v2351_v19, %v2347_v30  ;;  %v2420_v51 = vpop.permute.xlu2 %2419 }
 0x5c1   :  { %v2356_v12 = vsel %vm514_vm2, %v2352_v27, 0.0  ;;  %v2357_v59 = vsel %vm515_vm3, %v2354_v20, 0.0  ;;  %v2358_v57 = vsel %vm514_vm2, %v2353_v21, 0.0  ;;  %v2359_v55 = vsel %vm515_vm3, %v2355_v2, 0.0 }
 0x5c2   :  { %v2361_v35 = vmul.f32 %v2360_v0, %v2356_v12  ;;  %v2362_v50 = vmul.f32 %v2360_v0, %v2357_v59  ;;  %v2363_v22 = vmul.f32 %v2360_v0, %v2358_v57  ;;  %v2364_v3 = vmul.f32 %v2360_v0, %v2359_v55 }
 0x5c4   :  { %v2365_v62 = vadd.f32 %v2361_v35, %v2340_v13  ;;  %v2366_v56 = vadd.f32 %v2362_v50, %v2341_v32  ;;  %v2367_v19 = vadd.f32 %v2363_v22, %v2342_v45  ;;  %v2368_v63 = vadd.f32 %v2364_v3, %v2343_v24 }
 0x5c5   :  { %v2435_v35 = vstv %s2991_s4 }
 0x5c7   :  { %v2372_v34 = vpop.permute.xlu1 %2371  ;;  %v2370_v28 = vpop.permute.xlu0 %2369 }
 0x5c8   :  { %v2377_v16 = vsel %vm589_vm4, %v2370_v28, %v2374_v8  ;;  %v2379_v47 = vsel %vm589_vm4, %v2374_v8, %v2370_v28  ;;  %v2426_v41 = vpop.permute.xlu2 %2425 }
 0x5c9   :  { %v2381_v43 = vsel %vm577_vm5, %v2377_v16, 0.0  ;;  %v2382_v37 = vsel %vm578_vm6, %v2379_v47, 0.0 }
 0x5ca   :  { %v2386_v14 = vmul.f32 %v2385_v10, %v2381_v43  ;;  %v2387_v39 = vmul.f32 %v2385_v10, %v2382_v37 }
 0x5cc   :  { %v2390_v46 = vadd.f32 %v2386_v14, %v2365_v62  ;;  %v2391_v31 = vadd.f32 %v2387_v39, %v2366_v56 }
 0x5cf   :  { %v2395_v33 = vpop.permute.xlu1 %2394  ;;  %v2376_v18 = vpop.permute.xlu0 %2375 }
 0x5d0   :  { %v2378_v23 = vsel %vm589_vm4, %v2372_v34, %v2376_v18  ;;  %v2380_v8 = vsel %vm589_vm4, %v2376_v18, %v2372_v34  ;;  %v2460_v18 = vstv %s3040_s5 }
 0x5d1   :  { %v2383_v15 = vsel %vm577_vm5, %v2378_v23, 0.0  ;;  %v2384_v44 = vsel %vm578_vm6, %v2380_v8, 0.0 }
 0x5d2   :  { %v2388_v36 = vmul.f32 %v2385_v10, %v2383_v15  ;;  %v2389_v29 = vmul.f32 %v2385_v10, %v2384_v44 }
 0x5d4   :  { %v2392_v4 = vadd.f32 %v2388_v36, %v2367_v19  ;;  %v2393_v60 = vadd.f32 %v2389_v29, %v2368_v63  ;;  %v2449_v63 = vpop.permute.xlu2 %2448 }
 0x5d7   :  { %v2401_v52 = vpop.permute.xlu1 %2400  ;;  %v2399_v7 = vpop.permute.xlu0 %2398 }
 0x5d8   :  { %v2403_v45 = vsel %vm589_vm4, %v2397_v42, %v2401_v52  ;;  %v2405_v24 = vsel %vm589_vm4, %v2401_v52, %v2397_v42  ;;  %v2402_v13 = vsel %vm589_vm4, %v2395_v33, %v2399_v7  ;;  %v2404_v32 = vsel %vm589_vm4, %v2399_v7, %v2395_v33 }
 0x5d9   :  { %v2408_v0 = vsel %vm577_vm5, %v2403_v45, 0.0  ;;  %v2409_v58 = vsel %vm578_vm6, %v2405_v24, 0.0  ;;  %v2406_v30 = vsel %vm577_vm5, %v2402_v13, 0.0  ;;  %v2407_v27 = vsel %vm578_vm6, %v2404_v32, 0.0 }
 0x5da   :  { %v2413_v20 = vmul.f32 %v2410_v38, %v2408_v0  ;;  %v2414_v21 = vmul.f32 %v2410_v38, %v2409_v58  ;;  %v2411_v2 = vmul.f32 %v2410_v38, %v2406_v30  ;;  %v2412_v12 = vmul.f32 %v2410_v38, %v2407_v27 }
 0x5db   :  { %v2470_v30 = vadd.s32 48, %v7570_v1 }
 0x5dc   :  { %v2417_v59 = vadd.f32 %v2413_v20, %v2392_v4  ;;  %v2418_v57 = vadd.f32 %v2414_v21, %v2393_v60  ;;  %v2415_v55 = vadd.f32 %v2411_v2, %v2390_v46  ;;  %v2416_v42 = vadd.f32 %v2412_v12, %v2391_v31  ;;  %v2480_v29 = vpop.permute.xlu2 %2479 }
 0x5dd   :  { %vm2474_vm14 = vcmp.lt.s32.totalorder %v2470_v30, 256 }
 0x5df   :  { %v2424_v50 = vpop.permute.xlu1 %2423  ;;  %v2422_v22 = vpop.permute.xlu0 %2421 }
 0x5e0   :  { %v2427_v3 = vsel %vm652_vm0, %v2420_v51, %v2424_v50  ;;  %v2429_v62 = vsel %vm652_vm0, %v2424_v50, %v2420_v51  ;;  %v2428_v56 = vsel %vm652_vm0, %v2422_v22, %v2426_v41  ;;  %v2430_v19 = vsel %vm652_vm0, %v2426_v41, %v2422_v22 }
 0x5e1   :  { %v2431_v34 = vsel %vm640_vm15, %v2427_v3, 0.0  ;;  %v2432_v10 = vsel %vm7613_vm8, %v2429_v62, 0.0  ;;  %v2433_v28 = vsel %vm640_vm15, %v2428_v56, 0.0  ;;  %v2434_v16 = vsel %vm7614_vm9, %v2430_v19, 0.0  ;;  %vm7618_vm8 = vmmov %vm7617_vm12 }
 0x5e2   :  { %v2436_v47 = vmul.f32 %v2435_v35, %v2431_v34  ;;  %v2437_v43 = vmul.f32 %v2435_v35, %v2432_v10  ;;  %v2438_v37 = vmul.f32 %v2435_v35, %v2433_v28  ;;  %v2439_v14 = vmul.f32 %v2435_v35, %v2434_v16 }
 0x5e3   :  { %vm7619_vm9 = vcmp.ge.s32.totalorder %v4111_v11, 0 }
 0x5e4   :  { %v2440_v39 = vadd.f32 %v2436_v47, %v2415_v55  ;;  %v2441_v51 = vadd.f32 %v2437_v43, %v2416_v42  ;;  %v2442_v46 = vadd.f32 %v2438_v37, %v2417_v59  ;;  %v2443_v31 = vadd.f32 %v2439_v14, %v2418_v57  ;;  %v2499_v27 = vpop.permute.xlu2 %2498 }
 0x5e7   :  { %v2447_v33 = vpop.permute.xlu1 %2446  ;;  %v2445_v23 = vpop.permute.xlu0 %2444 }
 0x5e8   :  { %v2452_v8 = vsel %vm652_vm0, %v2445_v23, %v2449_v63  ;;  %v2454_v15 = vsel %vm652_vm0, %v2449_v63, %v2445_v23 }
 0x5e9   :  { %v2456_v44 = vsel %vm640_vm15, %v2452_v8, 0.0  ;;  %v2457_v36 = vsel %vm7615_vm10, %v2454_v15, 0.0  ;;  %vm7620_vm10 = vcmp.ge.s32.totalorder %v4116_v5, 0 }
 0x5ea   :  { %v2461_v4 = vmul.f32 %v2460_v18, %v2456_v44  ;;  %v2462_v60 = vmul.f32 %v2460_v18, %v2457_v36 }
 0x5ec   :  { %v6448_v41 = vadd.f32 %v2461_v4, %v2440_v39  ;;  %v6450_v38 = vadd.f32 %v2462_v60, %v2441_v51  ;;  %v2505_v35 = vpop.permute.xlu2 %2504 }
 0x5ef   :  { %v2478_v52 = vpop.permute.xlu1 %2477  ;;  %v2451_v7 = vpop.permute.xlu0 %2450 }
 0x5f0   :  { %v2453_v45 = vsel %vm652_vm0, %v2447_v33, %v2451_v7  ;;  %v2455_v24 = vsel %vm652_vm0, %v2451_v7, %v2447_v33 }
 0x5f1   :  { %v2458_v13 = vsel %vm640_vm15, %v2453_v45, 0.0  ;;  %v2459_v32 = vsel %vm7616_vm13, %v2455_v24, 0.0  ;;  %vm7621_vm13 = vmmov %vm7618_vm8 }
 0x5f2   :  { %v2463_v0 = vmul.f32 %v2460_v18, %v2458_v13  ;;  %v2464_v58 = vmul.f32 %v2460_v18, %v2459_v32 }
 0x5f4   :  { %v6461_v20 = vadd.f32 %v2463_v0, %v2442_v46  ;;  %v6463_v21 = vadd.f32 %v2464_v58, %v2443_v31 }
 0x5f7   :  { %v2484_v2 = vpop.permute.xlu1 %2483  ;;  %v2482_v12 = vpop.permute.xlu0 %2481 }
 0x5f8   :  { %v6468_v59 = vsel %vm2485_vm7, %v2480_v29, %v2484_v2  ;;  %v6472_v57 = vsel %vm2485_vm7, %v2478_v52, %v2482_v12  ;;  %v2488_v1 = vsel %vm2485_vm7, %v2482_v12, %v2478_v52  ;;  %v2489_v42 = vsel %vm2485_vm7, %v2484_v2, %v2480_v29 }
 0x5f9   :  { %v6477_v55 = vsel %vm2474_vm14, %v2488_v1, 0.0  ;;  %2516 = vrot.lane.b32.xlu1 %v6468_v59, %s3158_s24  ;;  %2514 = vrot.lane.b32.xlu0 %v6472_v57, %s3158_s24  ;;  %v6488_v3 = vsel %vm2474_vm14, %v2489_v42, 0.0 }
 0x5fa   :  { %2518 = vrot.lane.b32.xlu2 %v6477_v55, %s3158_s24 }
 0x5ff   :  { %v2503_v50 = vpop.permute.xlu1 %2502  ;;  %v2501_v22 = vpop.permute.xlu0 %2500 }
 0x600   :  { %v6492_v62 = vsel %vm2485_vm7, %v2499_v27, %v2503_v50  ;;  %v6496_v56 = vsel %vm2485_vm7, %v2501_v22, %v2505_v35  ;;  %v2509_v19 = vsel %vm2485_vm7, %v2505_v35, %v2501_v22  ;;  %v2508_v63 = vsel %vm2485_vm7, %v2503_v50, %v2499_v27  ;;  %vm7622_vm7 = vmmov %vm7618_vm8 }
 0x601   :  { %2539 = vrot.lane.b32.xlu1 %v6492_v62, %s3158_s24  ;;  %2520 = vrot.lane.b32.xlu0 %v6488_v3, %s3158_s24  ;;  %v6509_v34 = vsel %vm2474_vm14, %v2509_v19, 0.0  ;;  %v6512_v10 = vsel %vm2474_vm14, %v2508_v63, 0.0  ;;  %vm7623_vm14 = vmmov %vm7619_vm9 }
 0x602   :  { %2541 = vrot.lane.b32.xlu2 %v6496_v56, %s3158_s24 }
 0x609   :  { %2543 = vrot.lane.b32.xlu0 %v6512_v10, %s3158_s24  ;;  %2545 = vrot.lane.b32.xlu1 %v6509_v34, %s3158_s24  ;;  %s3041_s24 = sld [smem:[#allocation7 + $0x5b]] }
 0x60a   :  { %2564 = vrot.lane.b32.xlu2 %v6472_v57, %s3157_s23 }
 0x60f   :  { %v2555_v13 = vstv %s3041_s24 }
 0x611   :  { %2566 = vrot.lane.b32.xlu0 %v6468_v59, %s3157_s23  ;;  %2568 = vrot.lane.b32.xlu1 %v6477_v55, %s3157_s23 }
 0x612   :  { %2570 = vrot.lane.b32.xlu2 %v6488_v3, %s3157_s23 }
 0x619   :  { %2589 = vrot.lane.b32.xlu0 %v6492_v62, %s3157_s23  ;;  %2591 = vrot.lane.b32.xlu1 %v6496_v56, %s3157_s23 }
 0x61a   :  { %2593 = vrot.lane.b32.xlu2 %v6512_v10, %s3157_s23 }
 0x621   :  { %2595 = vrot.lane.b32.xlu0 %v6509_v34, %s3157_s23  ;;  %2614 = vrot.lane.b32.xlu1 %v6472_v57, %s3159_s25  ;;  %s2992_s23 = sld [smem:[#allocation7 + $0x2a]] }
 0x622   :  { %2616 = vrot.lane.b32.xlu2 %v6468_v59, %s3159_s25 }
 0x627   :  { %v2530_v37 = vstv %s2992_s23 }
 0x629   :  { %2618 = vrot.lane.b32.xlu0 %v6477_v55, %s3159_s25  ;;  %2620 = vrot.lane.b32.xlu1 %v6488_v3, %s3159_s25 }
 0x62a   :  { %2639 = vrot.lane.b32.xlu2 %v6492_v62, %s3159_s25 }
 0x631   :  { %2641 = vrot.lane.b32.xlu0 %v6496_v56, %s3159_s25  ;;  %2643 = vrot.lane.b32.xlu1 %v6512_v10, %s3159_s25 }
 0x632   :  { %2645 = vrot.lane.b32.xlu2 %v6509_v34, %s3159_s25  ;;  %s2993_s25 = sld [smem:[#allocation7 + $0x2b]] }
 0x639   :  { %2682 = vrot.lane.b32.xlu0 %v6472_v57, %s3161_s27  ;;  %2684 = vrot.lane.b32.xlu1 %v6468_v59, %s3161_s27 }
 0x63a   :  { %2686 = vrot.lane.b32.xlu2 %v6477_v55, %s3161_s27 }
 0x641   :  { %2688 = vrot.lane.b32.xlu0 %v6488_v3, %s3161_s27  ;;  %2707 = vrot.lane.b32.xlu1 %v6492_v62, %s3161_s27 }
 0x642   :  { %2709 = vrot.lane.b32.xlu2 %v6496_v56, %s3161_s27 }
 0x649   :  { %2711 = vrot.lane.b32.xlu0 %v6512_v10, %s3161_s27  ;;  %2713 = vrot.lane.b32.xlu1 %v6509_v34, %s3161_s27  ;;  %s2994_s27 = sld [smem:[#allocation7 + $0x2c]] }
 0x64a   :  { %2732 = vrot.lane.b32.xlu2 %v6472_v57, %s3160_s26 }
 0x651   :  { %2734 = vrot.lane.b32.xlu0 %v6468_v59, %s3160_s26  ;;  %2736 = vrot.lane.b32.xlu1 %v6477_v55, %s3160_s26 }
 0x652   :  { %2738 = vrot.lane.b32.xlu2 %v6488_v3, %s3160_s26 }
 0x654   :  { %v2519_v28 = vpop.permute.xlu2 %2518 }
 0x659   :  { %2757 = vrot.lane.b32.xlu0 %v6492_v62, %s3160_s26  ;;  %2759 = vrot.lane.b32.xlu1 %v6496_v56, %s3160_s26 }
 0x65a   :  { %2761 = vrot.lane.b32.xlu2 %v6512_v10, %s3160_s26 }
 0x65c   :  { %v2542_v16 = vpop.permute.xlu2 %2541 }
 0x661   :  { %2763 = vrot.lane.b32.xlu0 %v6509_v34, %s3160_s26  ;;  %2782 = vrot.lane.b32.xlu1 %v6472_v57, %s3162_s28  ;;  %s3042_s26 = sld [smem:[#allocation7 + $0x5c]] }
 0x662   :  { %2784 = vrot.lane.b32.xlu2 %v6468_v59, %s3162_s28 }
 0x664   :  { %v2565_v47 = vpop.permute.xlu2 %2564 }
 0x669   :  { %2786 = vrot.lane.b32.xlu0 %v6477_v55, %s3162_s28  ;;  %2788 = vrot.lane.b32.xlu1 %v6488_v3, %s3162_s28 }
 0x66a   :  { %2807 = vrot.lane.b32.xlu2 %v6492_v62, %s3162_s28 }
 0x66b   :  { %v2517_v43 = vpop.permute.xlu1 %2516  ;;  %v2515_v14 = vpop.permute.xlu0 %2514 }
 0x66c   :  { %v2522_v39 = vsel %vm7617_vm12, %v2515_v14, %v2519_v28  ;;  %v2524_v51 = vsel %vm7618_vm8, %v2519_v28, %v2515_v14  ;;  %v2571_v46 = vpop.permute.xlu2 %2570  ;;  %vm7624_vm12 = vmmov %vm7620_vm10 }
 0x66d   :  { %v2526_v31 = vsel %vm7619_vm9, %v2524_v51, 0.0  ;;  %v2527_v33 = vsel %vm7620_vm10, %v2522_v39, 0.0  ;;  %vm7625_vm8 = vmmov %vm7622_vm7 }
 0x66e   :  { %v2531_v18 = vmul.f32 %v2530_v37, %v2526_v31  ;;  %v2532_v23 = vmul.f32 %v2530_v37, %v2527_v33  ;;  %vm7626_vm9 = vmmov %vm7622_vm7 }
 0x66f   :  { %vm7627_vm10 = vmmov %vm7622_vm7 }
 0x670   :  { %v2535_v8 = vadd.f32 %v2531_v18, %v6448_v41  ;;  %v2536_v15 = vadd.f32 %v2532_v23, %v6450_v38 }
 0x671   :  { %2809 = vrot.lane.b32.xlu0 %v6496_v56, %s3162_s28  ;;  %2811 = vrot.lane.b32.xlu1 %v6512_v10, %s3162_s28 }
 0x672   :  { %2813 = vrot.lane.b32.xlu2 %v6509_v34, %s3162_s28  ;;  %s3043_s28 = sld [smem:[#allocation7 + $0x5d]] }
 0x673   :  { %v2540_v44 = vpop.permute.xlu1 %2539  ;;  %v2521_v36 = vpop.permute.xlu0 %2520 }
 0x674   :  { %v2523_v29 = vsel %vm7621_vm13, %v2517_v43, %v2521_v36  ;;  %v2525_v4 = vsel %vm7622_vm7, %v2521_v36, %v2517_v43  ;;  %v2594_v60 = vpop.permute.xlu2 %2593  ;;  %vm7628_vm13 = vmmov %vm7622_vm7 }
 0x675   :  { %v2528_v41 = vsel %vm7623_vm14, %v2525_v4, 0.0  ;;  %v2529_v38 = vsel %vm7624_vm12, %v2523_v29, 0.0  ;;  %vm7629_vm7 = vmmov %vm7623_vm14 }
 0x676   :  { %v2533_v52 = vmul.f32 %v2530_v37, %v2528_v41  ;;  %v2534_v7 = vmul.f32 %v2530_v37, %v2529_v38  ;;  %vm7630_vm14 = vmmov %vm7624_vm12  ;;  %v2580_v37 = vstv %s2993_s25 }
 0x677   :  { %vm7631_vm12 = vmmov %vm7629_vm7 }
 0x678   :  { %v2537_v45 = vadd.f32 %v2533_v52, %v6461_v20  ;;  %v2538_v24 = vadd.f32 %v2534_v7, %v6463_v21  ;;  %v2605_v7 = vstv %s3042_s26 }
 0x67b   :  { %v2546_v32 = vpop.permute.xlu1 %2545  ;;  %v2544_v0 = vpop.permute.xlu0 %2543 }
 0x67c   :  { %v2548_v58 = vsel %vm7625_vm8, %v2542_v16, %v2546_v32  ;;  %v2550_v30 = vsel %vm7626_vm9, %v2546_v32, %v2542_v16  ;;  %v2547_v27 = vsel %vm7627_vm10, %v2540_v44, %v2544_v0  ;;  %v2549_v2 = vsel %vm7628_vm13, %v2544_v0, %v2540_v44  ;;  %vm7632_vm8 = vmmov %vm7630_vm14  ;;  %v6634_v19 = vpop.permute.xlu2 %2616 }
 0x67d   :  { %v2553_v20 = vsel %vm7629_vm7, %v2550_v30, 0.0  ;;  %v2554_v21 = vsel %vm7630_vm14, %v2548_v58, 0.0  ;;  %v2551_v12 = vsel %vm7631_vm12, %v2549_v2, 0.0  ;;  %v2552_v1 = vsel %vm7632_vm8, %v2547_v27, 0.0 }
 0x67e   :  { %v2558_v42 = vmul.f32 %v2555_v13, %v2553_v20  ;;  %v2559_v35 = vmul.f32 %v2555_v13, %v2554_v21  ;;  %v2556_v50 = vmul.f32 %v2555_v13, %v2551_v12  ;;  %v2557_v22 = vmul.f32 %v2555_v13, %v2552_v1 }
 0x67f   :  { %vm7633_vm9 = vcmp.ge.s32.totalorder %v4119_v6, 0  ;;  %vm7634_vm10 = vcmp.ge.s32.totalorder %v4132_v26, 0 }
 0x680   :  { %v2562_v63 = vadd.f32 %v2558_v42, %v2537_v45  ;;  %v2563_v28 = vadd.f32 %v2559_v35, %v2538_v24  ;;  %v2560_v16 = vadd.f32 %v2556_v50, %v2535_v8  ;;  %v2561_v43 = vadd.f32 %v2557_v22, %v2536_v15  ;;  %vm7635_vm13 = vmmov %vm7633_vm9 }
 0x681   :  { %vm7636_vm7 = vmmov %vm7634_vm10 }
 0x682   :  { %vm7637_vm14 = vmmov %vm7633_vm9 }
 0x683   :  { %v2569_v14 = vpop.permute.xlu1 %2568  ;;  %v2567_v39 = vpop.permute.xlu0 %2566  ;;  %vm7638_vm12 = vmmov %vm7636_vm7 }
 0x684   :  { %v2572_v11 = vsel %vm382_vm11, %v2565_v47, %v2569_v14  ;;  %v2574_v5 = vsel %vm382_vm11, %v2569_v14, %v2565_v47  ;;  %v2573_v51 = vsel %vm382_vm11, %v2567_v39, %v2571_v46  ;;  %v2575_v31 = vsel %vm382_vm11, %v2571_v46, %v2567_v39  ;;  %v2640_v38 = vpop.permute.xlu2 %2639  ;;  %vm7639_vm8 = vmmov %vm7633_vm9 }
 0x685   :  { %v2576_v33 = vsel %vm7633_vm9, %v2574_v5, 0.0  ;;  %v2577_v18 = vsel %vm7634_vm10, %v2572_v11, 0.0  ;;  %v2578_v23 = vsel %vm7635_vm13, %v2575_v31, 0.0  ;;  %v2579_v8 = vsel %vm7636_vm7, %v2573_v51, 0.0  ;;  %vm7640_vm9 = vmmov %vm7636_vm7 }
 0x686   :  { %v2581_v15 = vmul.f32 %v2580_v37, %v2576_v33  ;;  %v2582_v47 = vmul.f32 %v2580_v37, %v2577_v18  ;;  %v2583_v44 = vmul.f32 %v2580_v37, %v2578_v23  ;;  %v2584_v36 = vmul.f32 %v2580_v37, %v2579_v8 }
 0x687   :  { %vm7641_vm10 = vcmp.lt.s32.totalorder %v3247_v9, 1  ;;  %vm7643_vm13 = vcmp.ge.s32.totalorder %v4177_v17, 0  ;;  %v2832_v9 = vstv %s6889_s2  ;;  %s3167_s2 = smov [#allocation8]  }
 0x688   :  { %v2585_v29 = vadd.f32 %v2581_v15, %v2560_v16  ;;  %v2586_v4 = vadd.f32 %v2582_v47, %v2561_v43  ;;  %v2587_v41 = vadd.f32 %v2583_v44, %v2562_v63  ;;  %v2588_v46 = vadd.f32 %v2584_v36, %v2563_v28  ;;  %vm7644_vm7 = vmmov %vm7643_vm13  ;;  %s2935_s16 = sshll.u32 %s3167_s2, 4  ;;  %s2936_s16 = int_to_ptr.vmem [resolvable:$true] %s2935_s16 }
 0x689   :  { %v2630_v16 = vstv %s2994_s27 }
 0x68b   :  { %v2592_v52 = vpop.permute.xlu1 %2591  ;;  %v2590_v45 = vpop.permute.xlu0 %2589 }
 0x68c   :  { %v2597_v24 = vsel %vm382_vm11, %v2590_v45, %v2594_v60  ;;  %v2599_v13 = vsel %vm382_vm11, %v2594_v60, %v2590_v45  ;;  %v2646_v20 = vpop.permute.xlu2 %2645 }
 0x68d   :  { %v2601_v32 = vsel %vm7637_vm14, %v2599_v13, 0.0  ;;  %v2602_v0 = vsel %vm7638_vm12, %v2597_v24, 0.0  ;;  %vm7645_vm14 = vmmov %vm7641_vm10 }
 0x68e   :  { %v2606_v58 = vmul.f32 %v2605_v7, %v2601_v32  ;;  %v2607_v30 = vmul.f32 %v2605_v7, %v2602_v0  ;;  %vm7646_vm12 = vmmov %vm7641_vm10 }
 0x690   :  { %v2610_v27 = vadd.f32 %v2606_v58, %v2585_v29  ;;  %v2611_v2 = vadd.f32 %v2607_v30, %v2586_v4 }
 0x693   :  { %v2615_v21 = vpop.permute.xlu1 %2614  ;;  %v2596_v12 = vpop.permute.xlu0 %2595 }
 0x694   :  { %v2598_v1 = vsel %vm382_vm11, %v2592_v52, %v2596_v12  ;;  %v2600_v60 = vsel %vm382_vm11, %v2596_v12, %v2592_v52  ;;  %v6668_v14 = vpop.permute.xlu2 %2686  ;;  %vm7642_vm11 = vmmov %vm7641_vm10 }
 0x695   :  { %v2603_v42 = vsel %vm7639_vm8, %v2600_v60, 0.0  ;;  %v2604_v35 = vsel %vm7640_vm9, %v2598_v1, 0.0  ;;  %vm7647_vm8 = vmmov %vm7641_vm10 }
 0x696   :  { %v2608_v50 = vmul.f32 %v2605_v7, %v2603_v42  ;;  %v2609_v22 = vmul.f32 %v2605_v7, %v2604_v35  ;;  %vm7648_vm9 = vmmov %vm7647_vm8 }
 0x698   :  { %v2612_v63 = vadd.f32 %v2608_v50, %v2587_v41  ;;  %v2613_v28 = vadd.f32 %v2609_v22, %v2588_v46 }
 0x69b   :  { %v2621_v43 = vpop.permute.xlu1 %2620  ;;  %v2619_v37 = vpop.permute.xlu0 %2618 }
 0x69c   :  { %v2625_v39 = vsel %vm7641_vm10, %v2621_v43, %v6634_v19  ;;  %v2624_v6 = vsel %vm7642_vm11, %v2619_v37, %v2615_v21  ;;  %v6679_v8 = vpop.permute.xlu2 %2709  ;;  %v2622_v41 = vsel %vm7645_vm14, %v2615_v21, %v2619_v37  ;;  %v2623_v7 = vsel %vm7646_vm12, %v6634_v19, %v2621_v43  ;;  %vm7649_vm10 = vmmov %vm7647_vm8 }
 0x69d   :  { %v2628_v26 = vsel %vm7643_vm13, %v2625_v39, 0.0  ;;  %v2626_v11 = vsel %vm7644_vm7, %v2624_v6, 0.0  ;;  %vm7650_vm11 = vcmp.ge.s32.totalorder %v4180_v54, 0  ;;  %vm7651_vm13 = vmmov %vm7647_vm8  ;;  %v2655_v19 = vstv %s3043_s28 }
 0x69e   :  { %v2633_v5 = vmul.f32 %v2630_v16, %v2628_v26  ;;  %v2631_v51 = vmul.f32 %v2630_v16, %v2626_v11  ;;  %v2627_v32 = vsel %vm7650_vm11, %v2622_v41, 0.0  ;;  %vm7652_vm7 = vmmov %vm7650_vm11  ;;  %vm7653_vm14 = vcmp.ge.s32.totalorder %v4177_v17, 0 }
 0x69f   :  { %v2629_v58 = vsel %vm7652_vm7, %v2623_v7, 0.0  ;;  %vm7654_vm12 = vmmov %vm7652_vm7  ;;  %v2632_v21 = vmul.f32 %v2630_v16, %v2627_v32  ;;  %v2664_v37 = vstv %s2995_s6  ;;  %v2673_v6 = vstv %s3044_s7 }
 0x6a0   :  { %v2637_v31 = vadd.f32 %v2633_v5, %v2612_v63  ;;  %v2635_v33 = vadd.f32 %v2631_v51, %v2610_v27  ;;  %v2634_v1 = vmul.f32 %v2630_v16, %v2629_v58  ;;  %v2665_v5 = vmul.f32 %v2664_v37, %v6472_v57 }
 0x6a1   :  { %v2636_v43 = vadd.f32 %v2632_v21, %v2611_v2  ;;  %v2666_v51 = vmul.f32 %v2664_v37, %v6477_v55  ;;  %v2667_v2 = vmul.f32 %v2664_v37, %v6468_v59  ;;  %v2748_v58 = vstv %s6722_s10 }
 0x6a2   :  { %v2638_v17 = vadd.f32 %v2634_v1, %v2613_v28  ;;  %v2668_v28 = vmul.f32 %v2664_v37, %v6488_v3  ;;  %v2773_v1 = vstv %s6731_s11 }
 0x6a3   :  { %v2644_v18 = vpop.permute.xlu1 %2643  ;;  %v2642_v23 = vpop.permute.xlu0 %2641 }
 0x6a4   :  { %v6683_v44 = vpop.permute.xlu2 %2732  ;;  %v2647_v45 = vsel %vm7647_vm8, %v2640_v38, %v2644_v18  ;;  %v2649_v24 = vsel %vm7648_vm9, %v2644_v18, %v2640_v38  ;;  %v2650_v13 = vsel %vm7649_vm10, %v2646_v20, %v2642_v23  ;;  %v2648_v0 = vsel %vm7651_vm13, %v2642_v23, %v2646_v20  ;;  %vm7655_vm8 = vmmov %vm7653_vm14 }
 0x6a5   :  { %v2651_v30 = vsel %vm7653_vm14, %v2649_v24, 0.0  ;;  %v2652_v38 = vsel %vm7654_vm12, %v2647_v45, 0.0  ;;  %v2653_v27 = vsel %vm7655_vm8, %v2650_v13, 0.0  ;;  %vm7656_vm9 = vmmov %vm7652_vm7  ;;  %v2698_v18 = vstv %s2996_s8 }
 0x6a6   :  { %v2654_v12 = vsel %vm7656_vm9, %v2648_v0, 0.0  ;;  %v2656_v20 = vmul.f32 %v2655_v19, %v2651_v30  ;;  %v2657_v60 = vmul.f32 %v2655_v19, %v2652_v38  ;;  %v2658_v42 = vmul.f32 %v2655_v19, %v2653_v27 }
 0x6a7   :  { %v2659_v22 = vmul.f32 %v2655_v19, %v2654_v12  ;;  %v2676_v23 = vmul.f32 %v2673_v6, %v6496_v56  ;;  %v2677_v0 = vmul.f32 %v2673_v6, %v6509_v34 }
 0x6a8   :  { %v2660_v54 = vadd.f32 %v2656_v20, %v2635_v33  ;;  %v2661_v16 = vadd.f32 %v2657_v60, %v2636_v43  ;;  %v2662_v39 = vadd.f32 %v2658_v42, %v2637_v31  ;;  %v2674_v33 = vmul.f32 %v2673_v6, %v6492_v62 }
 0x6a9   :  { %v2663_v26 = vadd.f32 %v2659_v22, %v2638_v17  ;;  %v2675_v31 = vmul.f32 %v2673_v6, %v6512_v10 }
 0x6aa   :  { %v2669_v41 = vadd.f32 %v2665_v5, %v2660_v54  ;;  %v2670_v7 = vadd.f32 %v2666_v51, %v2661_v16  ;;  %v2671_v45 = vadd.f32 %v2667_v2, %v2662_v39 }
 0x6ab   :  { %v6681_v15 = vpop.permute.xlu1 %2684  ;;  %v2683_v47 = vpop.permute.xlu0 %2682  ;;  %v2672_v3 = vadd.f32 %v2668_v28, %v2663_v26 }
 0x6ac   :  { %v6687_v4 = vpop.permute.xlu2 %2738  ;;  %v2690_v11 = vsel %vm526_vm1, %v2683_v47, %v6668_v14  ;;  %v2692_v62 = vsel %vm526_vm1, %v6668_v14, %v2683_v47  ;;  %v2678_v19 = vadd.f32 %v2674_v33, %v2669_v41  ;;  %v2679_v27 = vadd.f32 %v2675_v31, %v2670_v7 }
 0x6ad   :  { %v2694_v57 = vsel %vm514_vm2, %v2690_v11, 0.0  ;;  %v2680_v21 = vadd.f32 %v2676_v23, %v2671_v45  ;;  %v2681_v12 = vadd.f32 %v2677_v0, %v2672_v3  ;;  %v2798_v33 = vstv %s6764_s12 }
 0x6ae   :  { %v2699_v32 = vmul.f32 %v2698_v18, %v2694_v57 }
 0x6b0   :  { %v2703_v60 = vadd.f32 %v2699_v32, %v2678_v19 }
 0x6b3   :  { %v6685_v36 = vpop.permute.xlu1 %2707  ;;  %v2689_v29 = vpop.permute.xlu0 %2688 }
 0x6b4   :  { %v6718_v63 = vpop.permute.xlu2 %2761  ;;  %v2691_v10 = vsel %vm526_vm1, %v6681_v15, %v2689_v29  ;;  %v2693_v56 = vsel %vm526_vm1, %v2689_v29, %v6681_v15  ;;  %v2723_v15 = vstv %s6720_s9 }
 0x6bb   :  { %v2714_v46 = vpop.permute.xlu1 %2713  ;;  %v2712_v52 = vpop.permute.xlu0 %2711 }
 0x6bc   :  { %v2716_v24 = vsel %vm526_vm1, %v6679_v8, %v2714_v46  ;;  %v2718_v13 = vsel %vm526_vm1, %v2714_v46, %v6679_v8  ;;  %v2715_v14 = vsel %vm526_vm1, %v6685_v36, %v2712_v52  ;;  %v2717_v47 = vsel %vm526_vm1, %v2712_v52, %v6685_v36  ;;  %v6761_v29 = vpop.permute.xlu2 %2784 }
 0x6bd   :  { %v2695_v8 = vsel %vm515_vm3, %v2692_v62, 0.0  ;;  %v2696_v46 = vsel %vm514_vm2, %v2691_v10, 0.0  ;;  %v2697_v36 = vsel %vm515_vm3, %v2693_v56, 0.0  ;;  %v2721_v34 = vsel %vm514_vm2, %v2716_v24, 0.0 }
 0x6be   :  { %v2722_v52 = vsel %vm515_vm3, %v2718_v13, 0.0  ;;  %v2719_v30 = vsel %vm514_vm2, %v2715_v14, 0.0  ;;  %v2720_v38 = vsel %vm515_vm3, %v2717_v47, 0.0  ;;  %v2700_v20 = vmul.f32 %v2698_v18, %v2695_v8 }
 0x6bf   :  { %v2701_v42 = vmul.f32 %v2698_v18, %v2696_v46  ;;  %v2702_v22 = vmul.f32 %v2698_v18, %v2697_v36  ;;  %v2726_v43 = vmul.f32 %v2723_v15, %v2721_v34  ;;  %v2727_v17 = vmul.f32 %v2723_v15, %v2722_v52 }
 0x6c0   :  { %v2724_v37 = vmul.f32 %v2723_v15, %v2719_v30  ;;  %v2725_v54 = vmul.f32 %v2723_v15, %v2720_v38  ;;  %v2704_v51 = vadd.f32 %v2700_v20, %v2679_v27  ;;  %vm7657_vm1 = vcmp.lt.s32.totalorder %v4390_v40, 16 }
 0x6c1   :  { %v2705_v2 = vadd.f32 %v2701_v42, %v2680_v21  ;;  %v2706_v28 = vadd.f32 %v2702_v22, %v2681_v12  ;;  %vm7658_vm2 = vmmov %vm7657_vm1 }
 0x6c2   :  { %v2729_v3 = vadd.f32 %v2725_v54, %v2704_v51  ;;  %vm7659_vm3 = vmmov %vm7657_vm1 }
 0x6c3   :  { %v6714_v35 = vpop.permute.xlu1 %2736  ;;  %v6716_v50 = vpop.permute.xlu0 %2734  ;;  %v2730_v57 = vadd.f32 %v2726_v43, %v2705_v2 }
 0x6c4   :  { %v2740_v53 = vsel %vm589_vm4, %v6683_v44, %v6714_v35  ;;  %v2742_v49 = vsel %vm589_vm4, %v6714_v35, %v6683_v44  ;;  %v2741_v6 = vsel %vm589_vm4, %v6716_v50, %v6687_v4  ;;  %v2743_v26 = vsel %vm589_vm4, %v6687_v4, %v6716_v50  ;;  %v2808_v18 = vpop.permute.xlu2 %2807 }
 0x6c5   :  { %v2744_v4 = vsel %vm577_vm5, %v2740_v53, 0.0  ;;  %v2745_v50 = vsel %vm578_vm6, %v2742_v49, 0.0  ;;  %v2746_v31 = vsel %vm577_vm5, %v2741_v6, 0.0 }
 0x6c6   :  { %v2749_v62 = vmul.f32 %v2748_v58, %v2744_v4  ;;  %v2750_v10 = vmul.f32 %v2748_v58, %v2745_v50  ;;  %v2751_v56 = vmul.f32 %v2748_v58, %v2746_v31 }
 0x6c8   :  { %v2755_v30 = vadd.f32 %v2751_v56, %v2730_v57 }
 0x6cb   :  { %v2760_v59 = vpop.permute.xlu1 %2759  ;;  %v2758_v55 = vpop.permute.xlu0 %2757 }
 0x6cc   :  { %v2765_v11 = vsel %vm589_vm4, %v2758_v55, %v6718_v63  ;;  %v2767_v5 = vsel %vm589_vm4, %v6718_v63, %v2758_v55  ;;  %v2747_v63 = vsel %vm578_vm6, %v2743_v26, 0.0  ;;  %v2728_v55 = vadd.f32 %v2724_v37, %v2703_v60  ;;  %v2814_v43 = vpop.permute.xlu2 %2813 }
 0x6cd   :  { %v2769_v23 = vsel %vm577_vm5, %v2765_v11, 0.0  ;;  %v2770_v41 = vsel %vm578_vm6, %v2767_v5, 0.0  ;;  %v2752_v24 = vmul.f32 %v2748_v58, %v2747_v63 }
 0x6ce   :  { %v2774_v13 = vmul.f32 %v2773_v1, %v2769_v23  ;;  %v2775_v14 = vmul.f32 %v2773_v1, %v2770_v41  ;;  %v2753_v52 = vadd.f32 %v2749_v62, %v2728_v55 }
 0x6d0   :  { %v2778_v20 = vadd.f32 %v2774_v13, %v2753_v52 }
 0x6d3   :  { %v2783_v16 = vpop.permute.xlu1 %2782  ;;  %v2764_v39 = vpop.permute.xlu0 %2763 }
 0x6d4   :  { %v2766_v44 = vsel %vm589_vm4, %v2760_v59, %v2764_v39  ;;  %v2768_v35 = vsel %vm589_vm4, %v2764_v39, %v2760_v59  ;;  %v2731_v59 = vadd.f32 %v2727_v17, %v2706_v28  ;;  %v2823_v17 = vstv %s3047_s13  ;;  %vm7660_vm4 = vmmov %vm7657_vm1 }
 0x6d5   :  { %v2771_v7 = vsel %vm577_vm5, %v2766_v44, 0.0  ;;  %v2772_v45 = vsel %vm578_vm6, %v2768_v35, 0.0 }
 0x6d6   :  { %v2776_v47 = vmul.f32 %v2773_v1, %v2771_v7  ;;  %v2777_v32 = vmul.f32 %v2773_v1, %v2772_v45  ;;  %v2756_v38 = vadd.f32 %v2752_v24, %v2731_v59 }
 0x6d8   :  { %v2780_v42 = vadd.f32 %v2776_v47, %v2755_v30  ;;  %v2781_v22 = vadd.f32 %v2777_v32, %v2756_v38 }
 0x6db   :  { %v2789_v0 = vpop.permute.xlu1 %2788  ;;  %v2787_v15 = vpop.permute.xlu0 %2786 }
 0x6dc   :  { %v2791_v61 = vsel %vm652_vm0, %v6761_v29, %v2789_v0  ;;  %v2793_v25 = vsel %vm652_vm0, %v2789_v0, %v6761_v29  ;;  %v2790_v19 = vsel %vm652_vm0, %v2783_v16, %v2787_v15  ;;  %v2792_v58 = vsel %vm652_vm0, %v2787_v15, %v2783_v16 }
 0x6dd   :  { %v2796_v8 = vsel %vm640_vm15, %v2791_v61, 0.0  ;;  %v2797_v46 = vsel %vm7657_vm1, %v2793_v25, 0.0  ;;  %v2794_v36 = vsel %vm640_vm15, %v2790_v19, 0.0  ;;  %v2795_v34 = vsel %vm7658_vm2, %v2792_v58, 0.0 }
 0x6de   :  { %v2754_v29 = vadd.f32 %v2750_v10, %v2729_v3  ;;  %v2801_v27 = vmul.f32 %v2798_v33, %v2796_v8  ;;  %v2802_v21 = vmul.f32 %v2798_v33, %v2797_v46  ;;  %v2799_v12 = vmul.f32 %v2798_v33, %v2794_v36 }
 0x6df   :  { %v2800_v1 = vmul.f32 %v2798_v33, %v2795_v34 }
 0x6e0   :  { %v2779_v60 = vadd.f32 %v2775_v14, %v2754_v29  ;;  %v2805_v37 = vadd.f32 %v2801_v27, %v2780_v42  ;;  %v2806_v54 = vadd.f32 %v2802_v21, %v2781_v22  ;;  %v2803_v16 = vadd.f32 %v2799_v12, %v2778_v20 }
 0x6e2   :  { %v2804_v39 = vadd.f32 %v2800_v1, %v2779_v60 }
 0x6e3   :  { %v2812_v53 = vpop.permute.xlu1 %2811  ;;  %v2810_v49 = vpop.permute.xlu0 %2809 }
 0x6e4   :  { %v2815_v6 = vsel %vm652_vm0, %v2808_v18, %v2812_v53  ;;  %v2817_v26 = vsel %vm652_vm0, %v2812_v53, %v2808_v18  ;;  %v2816_v11 = vsel %vm652_vm0, %v2810_v49, %v2814_v43  ;;  %v2818_v5 = vsel %vm652_vm0, %v2814_v43, %v2810_v49 }
 0x6e5   :  { %v2819_v44 = vsel %vm640_vm15, %v2815_v6, 0.0  ;;  %v2820_v35 = vsel %vm7659_vm3, %v2817_v26, 0.0  ;;  %v2821_v51 = vsel %vm640_vm15, %v2816_v11, 0.0  ;;  %v2822_v2 = vsel %vm7660_vm4, %v2818_v5, 0.0 }
 0x6e6   :  { %v2824_v28 = vmul.f32 %v2823_v17, %v2819_v44  ;;  %v2825_v33 = vmul.f32 %v2823_v17, %v2820_v35  ;;  %v2826_v4 = vmul.f32 %v2823_v17, %v2821_v51  ;;  %v2827_v50 = vmul.f32 %v2823_v17, %v2822_v2 }
 0x6e8   :  { %v2828_v31 = vadd.f32 %v2824_v28, %v2803_v16  ;;  %v2829_v63 = vadd.f32 %v2825_v33, %v2804_v39  ;;  %v2830_v18 = vadd.f32 %v2826_v4, %v2805_v37  ;;  %v2831_v23 = vadd.f32 %v2827_v50, %v2806_v54 }
 0x6ea   :  { %v2833_v41 = vadd.f32 %v2832_v9, %v2828_v31  ;;  %v2834_v7 = vadd.f32 %v2832_v9, %v2829_v63  ;;  %v2835_v45 = vadd.f32 %v2832_v9, %v2830_v18  ;;  %v2836_v48 = vadd.f32 %v2832_v9, %v2831_v23 }
 0x6ec   :  { %v3048_v57 = vmul.f32 -1.442695, %v2833_v41  ;;  %v3049_v59 = vmul.f32 -1.442695, %v2834_v7  ;;  %v3050_v40 = vmul.f32 -1.442695, %v2835_v45 }
 0x6ed   :  { %v3051_v55 = vmul.f32 -1.442695, %v2836_v48  ;;  %v7666_v7 = vld [vmem:[#allocation12_spill] sm:$0xff] }
 0x6ee   :  { %3069 = vpow2.f32 %v3048_v57  ;;  %v7668_v57 = vld [vmem:[#allocation13_spill] sm:$0xff] }
 0x6ef   :  { %3071 = vpow2.f32 %v3049_v59 }
 0x6f0   :  { %3073 = vpow2.f32 %v3050_v40 }
 0x6f1   :  { %3075 = vpow2.f32 %v3051_v55 }
 0x6f4   :  { %v3070_v3 = vpop.eup %3069 }
 0x6f5   :  { %v3072_v62 = vpop.eup %3071  ;;  %v2849_v10 = vadd.f32 1.0, %v3070_v3 }
 0x6f6   :  { %v3074_v56 = vpop.eup %3073  ;;  %v2850_v24 = vadd.f32 1.0, %v3072_v62 }
 0x6f7   :  { %v3076_v13 = vpop.eup %3075  ;;  %3077 = vrcp.f32 %v2849_v10  ;;  %v2851_v14 = vadd.f32 1.0, %v3074_v56  ;;  %v2862_v32 = vand.u32 2147483647, %v2849_v10  ;;  %v2864_v15 = vand.u32 2147483648, %v2849_v10 }
 0x6f8   :  { %3079 = vrcp.f32 %v2850_v24  ;;  %v2852_v47 = vadd.f32 1.0, %v3076_v13  ;;  %vm2858_vm0 = vweird.f32 %v2849_v10  ;;  %vm2873_vm5 = vweird.f32 %v2850_v24 }
 0x6f9   :  { %3081 = vrcp.f32 %v2851_v14  ;;  %vm6861_vm15 = vcmp.eq.f32.partialorder %v2862_v32, 8.507059e+37  ;;  %v2877_v34 = vand.u32 2147483647, %v2850_v24  ;;  %v2879_v52 = vand.u32 2147483648, %v2850_v24 }
 0x6fa   :  { %3083 = vrcp.f32 %v2852_v47  ;;  %v2865_v30 = vor.u32 1.1754944e-38, %v2864_v15  ;;  %vm2888_vm6 = vweird.f32 %v2851_v14  ;;  %v2892_v1 = vand.u32 2147483647, %v2851_v14 }
 0x6fb   :  { %v2894_v60 = vand.u32 2147483648, %v2851_v14  ;;  %v2909_v17 = vand.u32 2147483648, %v2852_v47  ;;  %v2907_v39 = vand.u32 2147483647, %v2852_v47  ;;  %vm2878_vm8 = vcmp.eq.f32.partialorder %v2877_v34, 8.507059e+37 }
 0x6fc   :  { %v2880_v49 = vor.u32 1.1754944e-38, %v2879_v52  ;;  %vm2903_vm1 = vweird.f32 %v2852_v47  ;;  %vm2893_vm3 = vcmp.eq.f32.partialorder %v2892_v1, 8.507059e+37 }
 0x6fd   :  { %v3078_v0 = vpop.eup %3077  ;;  %v2895_v11 = vor.u32 1.1754944e-38, %v2894_v60  ;;  %v2910_v2 = vor.u32 1.1754944e-38, %v2909_v17  ;;  %vm2908_vm4 = vcmp.eq.f32.partialorder %v2907_v39, 8.507059e+37 }
 0x6fe   :  { %v3080_v61 = vpop.eup %3079  ;;  %v2854_v25 = vmul.f32 %v3078_v0, %v2849_v10  ;;  %vm2859_vm10 = vweird.f32 %v3078_v0 }
 0x6ff   :  { %v3082_v19 = vpop.eup %3081  ;;  %v2869_v8 = vmul.f32 %v3080_v61, %v2850_v24  ;;  %vm2874_vm11 = vweird.f32 %v3080_v61  ;;  %vm6866_vm7 = vmor %vm2858_vm0, %vm2859_vm10  ;;  %vm7665_vm0 = vcmask 1043456  }
 0x700   :  { %v3084_v46 = vpop.eup %3083  ;;  %v2855_v36 = vsub.f32 1.0, %v2854_v25  ;;  %v2884_v29 = vmul.f32 %v3082_v19, %v2851_v14  ;;  %vm2889_vm13 = vweird.f32 %v3082_v19  ;;  %vm2875_vm12 = vmor %vm2873_vm5, %vm2874_vm11 }
 0x701   :  { %v2870_v38 = vsub.f32 1.0, %v2869_v8  ;;  %v2899_v27 = vmul.f32 %v3084_v46, %v2852_v47  ;;  %vm2904_vm14 = vweird.f32 %v3084_v46  ;;  %vm2890_vm9 = vmor %vm2888_vm6, %vm2889_vm13 }
 0x702   :  { %v2856_v21 = vmul.f32 %v3078_v0, %v2855_v36  ;;  %v2885_v12 = vsub.f32 1.0, %v2884_v29  ;;  %vm2905_vm2 = vmor %vm2903_vm1, %vm2904_vm14 }
 0x703   :  { %v2871_v20 = vmul.f32 %v3080_v61, %v2870_v38  ;;  %v2900_v42 = vsub.f32 1.0, %v2899_v27 }
 0x704   :  { %v2857_v22 = vadd.f32 %v3078_v0, %v2856_v21  ;;  %v2886_v43 = vmul.f32 %v3082_v19, %v2885_v12 }
 0x705   :  { %v2872_v54 = vadd.f32 %v3080_v61, %v2871_v20  ;;  %v2901_v16 = vmul.f32 %v3084_v46, %v2900_v42 }
 0x706   :  { %v2861_v53 = vsel %vm6866_vm7, %v3078_v0, %v2857_v22  ;;  %v2887_v6 = vadd.f32 %v3082_v19, %v2886_v43 }
 0x707   :  { %v2876_v26 = vsel %vm2875_vm12, %v3080_v61, %v2872_v54  ;;  %v2902_v5 = vadd.f32 %v3084_v46, %v2901_v16  ;;  %v2866_v44 = vsel %vm6861_vm15, %v2865_v30, %v2861_v53  ;;  %vm7667_vm15 = vmmov %vm7665_vm0 }
 0x708   :  { %v2881_v35 = vsel %vm2878_vm8, %v2880_v49, %v2876_v26  ;;  %v2891_v51 = vsel %vm2890_vm9, %v3082_v19, %v2887_v6  ;;  %v2913_v9 = vperm.slane %v2866_v44, 0 }
 0x709   :  { %v2906_v28 = vsel %vm2905_vm2, %v3084_v46, %v2902_v5  ;;  %v2914_v33 = vperm.slane %v2881_v35, 0  ;;  %v2896_v4 = vsel %vm2893_vm3, %v2895_v11, %v2891_v51 }
 0x70a   :  { %v2911_v50 = vsel %vm2908_vm4, %v2910_v2, %v2906_v28  ;;  %v2915_v18 = vperm.slane %v2896_v4, 0 }
 0x70b   :  { %v2916_v31 = vperm.slane %v2911_v50, 0  ;;  %v2921_v63 = vrot.slane %v2914_v33, 4 }
 0x70d   :  { %v2922_v23 = vrot.slane %v2916_v31, 4  ;;  %v2923_v41 = vsel %vm7665_vm0, %v2913_v9, %v2921_v63 }
 0x70e   :  { %v2927_v45 = vmul.f32 %v2923_v41, %v7666_v7 }
 0x70f   :  { %v2924_v48 = vsel %vm7667_vm15, %v2915_v18, %v2922_v23 }
 0x710   :  { %v2928_v59 = vmul.f32 %v2924_v48, %v7668_v57  ;;  %2929 = vst [vmem:[#allocation8] sm:$0xff] %v2927_v45 }
 0x712   :  { %2930 = vst [vmem:[#allocation8 + $0x8] sm:$0xff] %v2928_v59 }
 0x713   :  { %2943 = dma.vmem_to_hbm [thread:$0]  %s2936_s16, 256, %s2938_s19, [#allocation5], %s3152_s20, %s3152_s20, %s3153_s21  }
 0x714   :  { %3149 = dma.done.wait [#allocation5], 256  }
 0x715   :  { %3150 = vsyncadd [#allocation5], 4294967040 }
 0x716   :  { %2948 = vsyncpa [#allocation4], 1 }
 0x717   :  { %2949 = vsyncpa [#allocation5], 1 }
 0x718   :  { %2950 = vsyncpa [#allocation6], 1 }

</bundles_post_ra>
